<compile_context>
chip_gen: v7x
topology: tpu7x:2x2x1
jax: 0.10.0
libtpu: 0.0.40
codegen_flags: <defaults>
</compile_context>

<pallas_src>
import math

import jax
import jax.numpy as jnp
from jax import lax
from jax.experimental import pallas as pl
from jax.experimental.pallas import tpu as pltpu

T_SEQ = 28        # sequence length (image rows)
F_IN = 28         # LSTM input size (image cols)
HIDDEN = 64       # LSTM hidden size
HP = 128          # hidden padded so each gate occupies a full 128-lane vreg
FC1_OUT = 32
FCP = 128         # fc1 output padded to 128 lanes
NUM_CLASSES = 10
OUT_PAD = 128     # lane-dense output slab
BN_EPS = 1e-5
NEG_INF = -1e30
MAX_B_TILE = 512  # batch tile upper bound (multiple of 16); bf16 gx keeps this v7x-safe


def _round_up(n, m):
    return ((n + m - 1) // m) * m


def _sigmoid_tanh(x):
    # sigmoid(x) == 0.5 * tanh(0.5 * x) + 0.5  (single EUP op + cheap VPU fma)
    return 0.5 * jnp.tanh(0.5 * x) + 0.5


def _choose_tiles(B):
    """Return (batch tile, number of grid tiles); tile is a multiple of 16 (bf16 sublanes)."""
    if B <= 16:
        return 16, 1
    # Always >= 2 tiles when the batch would fit in one, so v7x's 2nd TensorCore gets work.
    n = 2 if B <= 2 * MAX_B_TILE else -(-B // MAX_B_TILE)
    bt = _round_up(-(-B // n), 16)
    return bt, n


def net_kernel(x_ref,       # (T, BT, F_IN)   bf16 time-major input tile
               wih_ref,     # (F_IN, 4*HP)    bf16 LSTM input weights (transposed, gate-padded)
               whh_ref,     # (HP, 4*HP)      bf16 LSTM recurrent weights (transposed, padded)
               b_ref,       # (1, 4*HP)       f32  b_ih + b_hh (gate-padded)
               fc1w_ref,    # (HP, FCP)       bf16 fc1 with BatchNorm folded in (padded)
               fc1b_ref,    # (1, FCP)        f32
               fc2w_ref,    # (FCP, OUT_PAD)  bf16
               fc2b_ref,    # (1, OUT_PAD)    f32  (padded classes carry -1e30)
               out_ref,     # (BT, OUT_PAD)   f32
               gx_ref):     # scratch (T, BT, 4*HP) bf16: precomputed input-projection gates
    T, BT, F = x_ref.shape

    wih = wih_ref[...]
    whh = whh_ref[...]
    bias = b_ref[...]

    # --- hoisted input projection, chunked over timesteps to bound the f32 intermediate ---
    CH = next(d for d in (28, 14, 7, 4, 2, 1) if d * BT <= 2048)   # CH divides 28
    n_chunks = T // CH

    def proj_chunk(ci, _):
        t0 = ci * CH
        xs = x_ref[pl.ds(t0, CH)]                                   # (CH, BT, F) bf16
        g = jnp.dot(xs.reshape(CH * BT, F), wih,
                    preferred_element_type=jnp.float32) + bias      # (CH*BT, 4*HP) f32
        gx_ref[pl.ds(t0, CH)] = g.astype(jnp.bfloat16).reshape(CH, BT, 4 * HP)
        return 0

    lax.fori_loop(0, n_chunks, proj_chunk, 0, unroll=False)

    # --- serial LSTM recurrence: only h @ Whh + gx[t] on the critical path ---
    def lstm_step(t, carry):
        h, c = carry
        gates = (jnp.dot(h.astype(jnp.bfloat16), whh, preferred_element_type=jnp.float32)
                 + gx_ref[t].astype(jnp.float32))                   # (BT, 4*HP) f32
        # PyTorch gate order i, f, g, o; each slice is a full 128-lane slab.
        i_g = _sigmoid_tanh(gates[:, 0 * HP:1 * HP])
        f_g = _sigmoid_tanh(gates[:, 1 * HP:2 * HP])
        g_g = jnp.tanh(gates[:, 2 * HP:3 * HP])
        o_g = _sigmoid_tanh(gates[:, 3 * HP:4 * HP])
        c_new = f_g * c + i_g * g_g
        h_new = o_g * jnp.tanh(c_new)
        return (h_new, c_new)

    h0 = jnp.zeros((BT, HP), jnp.float32)
    c0 = jnp.zeros((BT, HP), jnp.float32)
    # Full unroll at small tiles; partial unroll at large tiles to bound vreg/VMEM live ranges.
    h_last, _ = lax.fori_loop(0, T, lstm_step, (h0, c0),
                              unroll=(True if BT <= 128 else 7))     # output[:, -1, :]

    # BatchNorm (eval) is folded into fc1; dropout1/dropout2 are identity in eval mode.
    z = jnp.dot(h_last.astype(jnp.bfloat16), fc1w_ref[...],
                preferred_element_type=jnp.float32) + fc1b_ref[...]
    z = jnp.maximum(z, 0.0)                                          # ReLU
    logits = jnp.dot(z.astype(jnp.bfloat16), fc2w_ref[...],
                     preferred_element_type=jnp.float32) + fc2b_ref[...]

    # log_softmax over the padded class axis (padded logits == -1e30 -> exp() == 0).
    m = jnp.max(logits, axis=1, keepdims=True)
    shifted = logits - m
    lse = jnp.log(jnp.sum(jnp.exp(shifted), axis=1, keepdims=True))
    out_ref[...] = shifted - lse


def _pad_gates_cols(w):
    """Pad the trailing 4*HIDDEN gate axis to 4*HP, zero-padding each gate block."""
    lead = w.shape[:-1]
    w4 = w.reshape(lead + (4, HIDDEN))
    w4 = jnp.pad(w4, [(0, 0)] * len(lead) + [(0, 0), (0, HP - HIDDEN)])
    return w4.reshape(lead + (4 * HP,))


def init_params(key):
    """Deterministic PyTorch-style init for all parameters."""
    ks = jax.random.split(key, 8)
    k_lstm = 1.0 / math.sqrt(HIDDEN)
    w_ih = jax.random.uniform(ks[0], (4 * HIDDEN, F_IN), jnp.float32, -k_lstm, k_lstm)
    w_hh = jax.random.uniform(ks[1], (4 * HIDDEN, HIDDEN), jnp.float32, -k_lstm, k_lstm)
    b_ih = jax.random.uniform(ks[2], (4 * HIDDEN,), jnp.float32, -k_lstm, k_lstm)
    b_hh = jax.random.uniform(ks[3], (4 * HIDDEN,), jnp.float32, -k_lstm, k_lstm)

    k1 = 1.0 / math.sqrt(HIDDEN)
    fc1_w = jax.random.uniform(ks[4], (FC1_OUT, HIDDEN), jnp.float32, -k1, k1)
    fc1_b = jax.random.uniform(ks[5], (FC1_OUT,), jnp.float32, -k1, k1)
    k2 = 1.0 / math.sqrt(FC1_OUT)
    fc2_w = jax.random.uniform(ks[6], (NUM_CLASSES, FC1_OUT), jnp.float32, -k2, k2)
    fc2_b = jax.random.uniform(ks[7], (NUM_CLASSES,), jnp.float32, -k2, k2)

    bn_gamma = jnp.ones((HIDDEN,), jnp.float32)
    bn_beta = jnp.zeros((HIDDEN,), jnp.float32)
    bn_mean = jnp.zeros((HIDDEN,), jnp.float32)
    bn_var = jnp.ones((HIDDEN,), jnp.float32)

    return dict(w_ih=w_ih, w_hh=w_hh, b_ih=b_ih, b_hh=b_hh,
                fc1_w=fc1_w, fc1_b=fc1_b, fc2_w=fc2_w, fc2_b=fc2_b,
                bn_gamma=bn_gamma, bn_beta=bn_beta, bn_mean=bn_mean, bn_var=bn_var)


@jax.jit
def net_forward(x, params):
    # Glue: reshape to (B, 28, 28), pad batch to the tile grid, go time-major, cast matmul
    # operands to bf16, and fold eval-mode BatchNorm into fc1 (all tiny, one-time).
    x = x.reshape(-1, T_SEQ, F_IN).astype(jnp.float32)
    B = x.shape[0]

    bt, n_tiles = _choose_tiles(B)
    BP = bt * n_tiles
    if BP > B:
        x = jnp.pad(x, ((0, BP - B), (0, 0), (0, 0)))
    x_tm = jnp.transpose(x, (1, 0, 2)).astype(jnp.bfloat16)          # (T, BP, F_IN) time-major

    # LSTM weights: transpose to (in, out), pad every gate block 64 -> 128, cast to bf16.
    wih_p = _pad_gates_cols(params["w_ih"].T).astype(jnp.bfloat16)                 # (28, 512)
    whh_p = jnp.pad(_pad_gates_cols(params["w_hh"].T),
                    ((0, HP - HIDDEN), (0, 0))).astype(jnp.bfloat16)               # (128, 512)
    b_p = _pad_gates_cols((params["b_ih"] + params["b_hh"])[None, :])              # (1, 512) f32

    # Fold eval-mode BatchNorm into fc1:  y = h*scale + shift ;  fc1(y) = h @ (scale*W) + (shift@W + b)
    scale = params["bn_gamma"] / jnp.sqrt(params["bn_var"] + BN_EPS)               # (64,)
    shift = params["bn_beta"] - params["bn_mean"] * scale                          # (64,)
    fc1w_t = params["fc1_w"].T                                                     # (64, 32)
    fc1w_eff = scale[:, None] * fc1w_t
    fc1b_eff = params["fc1_b"] + shift @ fc1w_t                                    # (32,)
    fc1w_p = jnp.pad(fc1w_eff, ((0, HP - HIDDEN),
                                (0, FCP - FC1_OUT))).astype(jnp.bfloat16)          # (128, 128)
    fc1b_p = jnp.pad(fc1b_eff[None, :], ((0, 0), (0, FCP - FC1_OUT)))              # (1, 128) f32

    fc2w_p = jnp.pad(params["fc2_w"].T,
                     ((0, FCP - FC1_OUT),
                      (0, OUT_PAD - NUM_CLASSES))).astype(jnp.bfloat16)            # (128, 128)
    fc2b_p = jnp.full((1, OUT_PAD), NEG_INF, jnp.float32)
    fc2b_p = fc2b_p.at[0, :NUM_CLASSES].set(params["fc2_b"])                       # (1, 128)

    vmem_limit = (32 if bt <= 256 else 48) * 1024 * 1024
    out = pl.pallas_call(
        net_kernel,
        out_shape=jax.ShapeDtypeStruct((BP, OUT_PAD), jnp.float32),
        grid=(n_tiles,),
        in_specs=[
            pl.BlockSpec((T_SEQ, bt, F_IN), lambda i: (0, i, 0)),    # x: tiled over batch
            pl.BlockSpec((F_IN, 4 * HP), lambda i: (0, 0)),
            pl.BlockSpec((HP, 4 * HP), lambda i: (0, 0)),
            pl.BlockSpec((1, 4 * HP), lambda i: (0, 0)),
            pl.BlockSpec((HP, FCP), lambda i: (0, 0)),
            pl.BlockSpec((1, FCP), lambda i: (0, 0)),
            pl.BlockSpec((FCP, OUT_PAD), lambda i: (0, 0)),
            pl.BlockSpec((1, OUT_PAD), lambda i: (0, 0)),
        ],
        out_specs=pl.BlockSpec((bt, OUT_PAD), lambda i: (i, 0)),
        scratch_shapes=[pltpu.VMEM((T_SEQ, bt, 4 * HP), jnp.bfloat16)],
        compiler_params=pltpu.CompilerParams(
            dimension_semantics=("parallel",),          # shards batch tiles across v7x's 2 TCs
            vmem_limit_bytes=vmem_limit,
        ),
    )(x_tm, wih_p, whh_p, b_p, fc1w_p, fc1b_p, fc2w_p, fc2b_p)

    return out[:B, :NUM_CLASSES]


def net_forward_ref(x, params):
    """Pure-JAX f32 reference (unfused, unpadded) for correctness checking."""
    x = x.reshape(-1, T_SEQ, F_IN).astype(jnp.float32)
    B = x.shape[0]
    h = jnp.zeros((B, HIDDEN), jnp.float32)
    c = jnp.zeros((B, HIDDEN), jnp.float32)
    wih_t = params["w_ih"].T
    whh_t = params["w_hh"].T
    b = params["b_ih"] + params["b_hh"]
    for t in range(T_SEQ):
        gates = x[:, t, :] @ wih_t + h @ whh_t + b
        i_g = jax.nn.sigmoid(gates[:, 0:HIDDEN])
        f_g = jax.nn.sigmoid(gates[:, HIDDEN:2 * HIDDEN])
        g_g = jnp.tanh(gates[:, 2 * HIDDEN:3 * HIDDEN])
        o_g = jax.nn.sigmoid(gates[:, 3 * HIDDEN:4 * HIDDEN])
        c = f_g * c + i_g * g_g
        h = o_g * jnp.tanh(c)
    y = (h - params["bn_mean"]) / jnp.sqrt(params["bn_var"] + BN_EPS)
    y = y * params["bn_gamma"] + params["bn_beta"]
    z = jnp.maximum(y @ params["fc1_w"].T + params["fc1_b"], 0.0)
    logits = z @ params["fc2_w"].T + params["fc2_b"]
    return jax.nn.log_softmax(logits, axis=1)


if __name__ == "__main__":
    key = jax.random.PRNGKey(0)
    k_x, k_x2, k_p = jax.random.split(key, 3)
    params = init_params(k_p)

    # bf16 MXU operands drift ~1e-3 on log-probs over the 28-step recurrence vs the f32 reference,
    # hence the relaxed 2.5e-2 tolerance (a wrong implementation would be off by O(1)).
    TOL = 2.5e-2

    # Small batch (single tile) -- matches the original NCHW MNIST input shape.
    x = jax.random.normal(k_x, (2, 1, 28, 28), dtype=jnp.float32)
    out = jax.block_until_ready(net_forward(x, params))
    ref = net_forward_ref(x, params)
    assert out.shape == (2, NUM_CLASSES)
    assert jnp.allclose(out, ref, atol=TOL, rtol=TOL), "mismatch vs reference (B=2)"

    # Larger, non-multiple-of-8 batch: exercises batch padding + the multi-tile grid path.
    x2 = jax.random.normal(k_x2, (50, 1, 28, 28), dtype=jnp.float32)
    out2 = jax.block_until_ready(net_forward(x2, params))
    ref2 = net_forward_ref(x2, params)
    assert out2.shape == (50, NUM_CLASSES)
    assert jnp.allclose(out2, ref2, atol=TOL, rtol=TOL), "mismatch vs reference (B=50)"

    print("KERNEL_OK")
</pallas_src>

<mosaic_0001>
module attributes {stable_mosaic.version = 11 : i64} {
  func.func @net_kernel(%arg0: i32, %arg1: memref<28x16x28xbf16, #tpu.memory_space<vmem>>, %arg2: memref<28x512xbf16, #tpu.memory_space<vmem>>, %arg3: memref<128x512xbf16, #tpu.memory_space<vmem>>, %arg4: memref<1x512xf32, #tpu.memory_space<vmem>>, %arg5: memref<128x128xbf16, #tpu.memory_space<vmem>>, %arg6: memref<1x128xf32, #tpu.memory_space<vmem>>, %arg7: memref<128x128xbf16, #tpu.memory_space<vmem>>, %arg8: memref<1x128xf32, #tpu.memory_space<vmem>>, %arg9: memref<16x128xf32, #tpu.memory_space<vmem>>, %arg10: memref<28x16x512xbf16, #tpu.memory_space<vmem>>) attributes {dimension_semantics = [#tpu.dimension_semantics<parallel>], iteration_bounds = array<i64: 1>, scalar_prefetch = 0 : i64, scratch_operands = 1 : i64, tpu.core_type = #tpu.core_type<tc>, window_params = [{transform_indices = @transform_0, window_bounds = array<i64: 28, 16, 28>}, {pipeline_mode = #tpu.pipeline_mode<synchronous>, transform_indices = @transform_1, window_bounds = array<i64: 28, 512>}, {pipeline_mode = #tpu.pipeline_mode<synchronous>, transform_indices = @transform_2, window_bounds = array<i64: 128, 512>}, {pipeline_mode = #tpu.pipeline_mode<synchronous>, transform_indices = @transform_3, window_bounds = array<i64: 1, 512>}, {pipeline_mode = #tpu.pipeline_mode<synchronous>, transform_indices = @transform_4, window_bounds = array<i64: 128, 128>}, {pipeline_mode = #tpu.pipeline_mode<synchronous>, transform_indices = @transform_5, window_bounds = array<i64: 1, 128>}, {pipeline_mode = #tpu.pipeline_mode<synchronous>, transform_indices = @transform_6, window_bounds = array<i64: 128, 128>}, {pipeline_mode = #tpu.pipeline_mode<synchronous>, transform_indices = @transform_7, window_bounds = array<i64: 1, 128>}, {transform_indices = @transform_8, window_bounds = array<i64: 16, 128>}]} {
    %c0 = arith.constant 0 : index
    %c0_0 = arith.constant 0 : index
    %0 = vector.load %arg2[%c0, %c0_0] : memref<28x512xbf16, #tpu.memory_space<vmem>>, vector<28x512xbf16>
    %c0_1 = arith.constant 0 : index
    %c0_2 = arith.constant 0 : index
    %1 = vector.load %arg3[%c0_1, %c0_2] : memref<128x512xbf16, #tpu.memory_space<vmem>>, vector<128x512xbf16>
    %c0_3 = arith.constant 0 : index
    %c0_4 = arith.constant 0 : index
    %2 = vector.load %arg4[%c0_3, %c0_4] : memref<1x512xf32, #tpu.memory_space<vmem>>, vector<1x512xf32>
    %c0_i32 = arith.constant 0 : i32
    %c28_i32 = arith.constant 28 : i32
    %3 = arith.muli %c0_i32, %c28_i32 : i32
    %4 = arith.index_cast %3 : i32 to index
    %c0_5 = arith.constant 0 : index
    %c0_6 = arith.constant 0 : index
    %5 = vector.load %arg1[%4, %c0_5, %c0_6] : memref<28x16x28xbf16, #tpu.memory_space<vmem>>, vector<28x16x28xbf16>
    %6 = vector.shape_cast %5 : vector<28x16x28xbf16> to vector<448x28xbf16>
    %cst = arith.constant dense<0.000000e+00> : vector<448x512xf32>
    %7 = tpu.matmul %6, %0, %cst {dimension_numbers = #tpu.dot_dimension_numbers<[1], [0], [0], [1], [0, 0, 1, 1], [], []>} : vector<448x28xbf16>, vector<28x512xbf16>, vector<448x512xf32> -> vector<448x512xf32>
    %8 = vector.broadcast %2 : vector<1x512xf32> to vector<448x512xf32>
    %9 = arith.addf %7, %8 : vector<448x512xf32>
    %10 = arith.truncf %9 : vector<448x512xf32> to vector<448x512xbf16>
    %11 = vector.shape_cast %10 : vector<448x512xbf16> to vector<28x16x512xbf16>
    %12 = arith.index_cast %3 : i32 to index
    %c0_7 = arith.constant 0 : index
    %c0_8 = arith.constant 0 : index
    %13 = vector.load %arg10[%12, %c0_7, %c0_8] : memref<28x16x512xbf16, #tpu.memory_space<vmem>>, vector<28x16x512xbf16>
    tpu.vector_store %arg10[%12, %c0_7, %c0_8], %11 {strides = array<i32>} : memref<28x16x512xbf16, #tpu.memory_space<vmem>>, vector<28x16x512xbf16>,
    %c1_i32 = arith.constant 1 : i32
    %cst_9 = arith.constant 0.000000e+00 : f32
    %14 = vector.broadcast %cst_9 : f32 to vector<16x128xf32>
    %cst_10 = arith.constant 0.000000e+00 : f32
    %15 = vector.broadcast %cst_10 : f32 to vector<16x128xf32>
    %c0_i32_11 = arith.constant 0 : i32
    %16 = arith.truncf %14 : vector<16x128xf32> to vector<16x128xbf16>
    %cst_12 = arith.constant dense<0.000000e+00> : vector<16x512xf32>
    %17 = tpu.matmul %16, %1, %cst_12 {dimension_numbers = #tpu.dot_dimension_numbers<[1], [0], [0], [1], [0, 0, 1, 1], [], []>} : vector<16x128xbf16>, vector<128x512xbf16>, vector<16x512xf32> -> vector<16x512xf32>
    %18 = arith.index_cast %c0_i32_11 : i32 to index
    %c0_13 = arith.constant 0 : index
    %c0_14 = arith.constant 0 : index
    %19 = vector.load %arg10[%18, %c0_13, %c0_14] : memref<28x16x512xbf16, #tpu.memory_space<vmem>>, vector<1x16x512xbf16>
    %20 = vector.shape_cast %19 : vector<1x16x512xbf16> to vector<16x512xbf16>
    %21 = arith.extf %20 : vector<16x512xbf16> to vector<16x512xf32>
    %22 = arith.addf %17, %21 : vector<16x512xf32>
    %23 = vector.extract_strided_slice %22 {offsets = [0, 0], sizes = [16, 128], strides = [1, 1]} : vector<16x512xf32> to vector<16x128xf32>
    %cst_15 = arith.constant 5.000000e-01 : f32
    %24 = vector.broadcast %cst_15 : f32 to vector<16x128xf32>
    %25 = arith.mulf %24, %23 : vector<16x128xf32>
    %26 = math.tanh %25 : vector<16x128xf32>
    %cst_16 = arith.constant 5.000000e-01 : f32
    %27 = vector.broadcast %cst_16 : f32 to vector<16x128xf32>
    %28 = arith.mulf %27, %26 : vector<16x128xf32>
    %cst_17 = arith.constant 5.000000e-01 : f32
    %29 = vector.broadcast %cst_17 : f32 to vector<16x128xf32>
    %30 = arith.addf %28, %29 : vector<16x128xf32>
    %31 = vector.extract_strided_slice %22 {offsets = [0, 128], sizes = [16, 128], strides = [1, 1]} : vector<16x512xf32> to vector<16x128xf32>
    %cst_18 = arith.constant 5.000000e-01 : f32
    %32 = vector.broadcast %cst_18 : f32 to vector<16x128xf32>
    %33 = arith.mulf %32, %31 : vector<16x128xf32>
    %34 = math.tanh %33 : vector<16x128xf32>
    %cst_19 = arith.constant 5.000000e-01 : f32
    %35 = vector.broadcast %cst_19 : f32 to vector<16x128xf32>
    %36 = arith.mulf %35, %34 : vector<16x128xf32>
    %cst_20 = arith.constant 5.000000e-01 : f32
    %37 = vector.broadcast %cst_20 : f32 to vector<16x128xf32>
    %38 = arith.addf %36, %37 : vector<16x128xf32>
    %39 = vector.extract_strided_slice %22 {offsets = [0, 256], sizes = [16, 128], strides = [1, 1]} : vector<16x512xf32> to vector<16x128xf32>
    %40 = math.tanh %39 : vector<16x128xf32>
    %41 = vector.extract_strided_slice %22 {offsets = [0, 384], sizes = [16, 128], strides = [1, 1]} : vector<16x512xf32> to vector<16x128xf32>
    %cst_21 = arith.constant 5.000000e-01 : f32
    %42 = vector.broadcast %cst_21 : f32 to vector<16x128xf32>
    %43 = arith.mulf %42, %41 : vector<16x128xf32>
    %44 = math.tanh %43 : vector<16x128xf32>
    %cst_22 = arith.constant 5.000000e-01 : f32
    %45 = vector.broadcast %cst_22 : f32 to vector<16x128xf32>
    %46 = arith.mulf %45, %44 : vector<16x128xf32>
    %cst_23 = arith.constant 5.000000e-01 : f32
    %47 = vector.broadcast %cst_23 : f32 to vector<16x128xf32>
    %48 = arith.addf %46, %47 : vector<16x128xf32>
    %49 = arith.mulf %38, %15 : vector<16x128xf32>
    %50 = arith.mulf %30, %40 : vector<16x128xf32>
    %51 = arith.addf %49, %50 : vector<16x128xf32>
    %52 = math.tanh %51 : vector<16x128xf32>
    %53 = arith.mulf %48, %52 : vector<16x128xf32>
    %c1_i32_24 = arith.constant 1 : i32
    %54 = arith.truncf %53 : vector<16x128xf32> to vector<16x128xbf16>
    %cst_25 = arith.constant dense<0.000000e+00> : vector<16x512xf32>
    %55 = tpu.matmul %54, %1, %cst_25 {dimension_numbers = #tpu.dot_dimension_numbers<[1], [0], [0], [1], [0, 0, 1, 1], [], []>} : vector<16x128xbf16>, vector<128x512xbf16>, vector<16x512xf32> -> vector<16x512xf32>
    %56 = arith.index_cast %c1_i32_24 : i32 to index
    %c0_26 = arith.constant 0 : index
    %c0_27 = arith.constant 0 : index
    %57 = vector.load %arg10[%56, %c0_26, %c0_27] : memref<28x16x512xbf16, #tpu.memory_space<vmem>>, vector<1x16x512xbf16>
    %58 = vector.shape_cast %57 : vector<1x16x512xbf16> to vector<16x512xbf16>
    %59 = arith.extf %58 : vector<16x512xbf16> to vector<16x512xf32>
    %60 = arith.addf %55, %59 : vector<16x512xf32>
    %61 = vector.extract_strided_slice %60 {offsets = [0, 0], sizes = [16, 128], strides = [1, 1]} : vector<16x512xf32> to vector<16x128xf32>
    %cst_28 = arith.constant 5.000000e-01 : f32
    %62 = vector.broadcast %cst_28 : f32 to vector<16x128xf32>
    %63 = arith.mulf %62, %61 : vector<16x128xf32>
    %64 = math.tanh %63 : vector<16x128xf32>
    %cst_29 = arith.constant 5.000000e-01 : f32
    %65 = vector.broadcast %cst_29 : f32 to vector<16x128xf32>
    %66 = arith.mulf %65, %64 : vector<16x128xf32>
    %cst_30 = arith.constant 5.000000e-01 : f32
    %67 = vector.broadcast %cst_30 : f32 to vector<16x128xf32>
    %68 = arith.addf %66, %67 : vector<16x128xf32>
    %69 = vector.extract_strided_slice %60 {offsets = [0, 128], sizes = [16, 128], strides = [1, 1]} : vector<16x512xf32> to vector<16x128xf32>
    %cst_31 = arith.constant 5.000000e-01 : f32
    %70 = vector.broadcast %cst_31 : f32 to vector<16x128xf32>
    %71 = arith.mulf %70, %69 : vector<16x128xf32>
    %72 = math.tanh %71 : vector<16x128xf32>
    %cst_32 = arith.constant 5.000000e-01 : f32
    %73 = vector.broadcast %cst_32 : f32 to vector<16x128xf32>
    %74 = arith.mulf %73, %72 : vector<16x128xf32>
    %cst_33 = arith.constant 5.000000e-01 : f32
    %75 = vector.broadcast %cst_33 : f32 to vector<16x128xf32>
    %76 = arith.addf %74, %75 : vector<16x128xf32>
    %77 = vector.extract_strided_slice %60 {offsets = [0, 256], sizes = [16, 128], strides = [1, 1]} : vector<16x512xf32> to vector<16x128xf32>
    %78 = math.tanh %77 : vector<16x128xf32>
    %79 = vector.extract_strided_slice %60 {offsets = [0, 384], sizes = [16, 128], strides = [1, 1]} : vector<16x512xf32> to vector<16x128xf32>
    %cst_34 = arith.constant 5.000000e-01 : f32
    %80 = vector.broadcast %cst_34 : f32 to vector<16x128xf32>
    %81 = arith.mulf %80, %79 : vector<16x128xf32>
    %82 = math.tanh %81 : vector<16x128xf32>
    %cst_35 = arith.constant 5.000000e-01 : f32
    %83 = vector.broadcast %cst_35 : f32 to vector<16x128xf32>
    %84 = arith.mulf %83, %82 : vector<16x128xf32>
    %cst_36 = arith.constant 5.000000e-01 : f32
    %85 = vector.broadcast %cst_36 : f32 to vector<16x128xf32>
    %86 = arith.addf %84, %85 : vector<16x128xf32>
    %87 = arith.mulf %76, %51 : vector<16x128xf32>
    %88 = arith.mulf %68, %78 : vector<16x128xf32>
    %89 = arith.addf %87, %88 : vector<16x128xf32>
    %90 = math.tanh %89 : vector<16x128xf32>
    %91 = arith.mulf %86, %90 : vector<16x128xf32>
    %c2_i32 = arith.constant 2 : i32
    %92 = arith.truncf %91 : vector<16x128xf32> to vector<16x128xbf16>
    %cst_37 = arith.constant dense<0.000000e+00> : vector<16x512xf32>
    %93 = tpu.matmul %92, %1, %cst_37 {dimension_numbers = #tpu.dot_dimension_numbers<[1], [0], [0], [1], [0, 0, 1, 1], [], []>} : vector<16x128xbf16>, vector<128x512xbf16>, vector<16x512xf32> -> vector<16x512xf32>
    %94 = arith.index_cast %c2_i32 : i32 to index
    %c0_38 = arith.constant 0 : index
    %c0_39 = arith.constant 0 : index
    %95 = vector.load %arg10[%94, %c0_38, %c0_39] : memref<28x16x512xbf16, #tpu.memory_space<vmem>>, vector<1x16x512xbf16>
    %96 = vector.shape_cast %95 : vector<1x16x512xbf16> to vector<16x512xbf16>
    %97 = arith.extf %96 : vector<16x512xbf16> to vector<16x512xf32>
    %98 = arith.addf %93, %97 : vector<16x512xf32>
    %99 = vector.extract_strided_slice %98 {offsets = [0, 0], sizes = [16, 128], strides = [1, 1]} : vector<16x512xf32> to vector<16x128xf32>
    %cst_40 = arith.constant 5.000000e-01 : f32
    %100 = vector.broadcast %cst_40 : f32 to vector<16x128xf32>
    %101 = arith.mulf %100, %99 : vector<16x128xf32>
    %102 = math.tanh %101 : vector<16x128xf32>
    %cst_41 = arith.constant 5.000000e-01 : f32
    %103 = vector.broadcast %cst_41 : f32 to vector<16x128xf32>
    %104 = arith.mulf %103, %102 : vector<16x128xf32>
    %cst_42 = arith.constant 5.000000e-01 : f32
    %105 = vector.broadcast %cst_42 : f32 to vector<16x128xf32>
    %106 = arith.addf %104, %105 : vector<16x128xf32>
    %107 = vector.extract_strided_slice %98 {offsets = [0, 128], sizes = [16, 128], strides = [1, 1]} : vector<16x512xf32> to vector<16x128xf32>
    %cst_43 = arith.constant 5.000000e-01 : f32
    %108 = vector.broadcast %cst_43 : f32 to vector<16x128xf32>
    %109 = arith.mulf %108, %107 : vector<16x128xf32>
    %110 = math.tanh %109 : vector<16x128xf32>
    %cst_44 = arith.constant 5.000000e-01 : f32
    %111 = vector.broadcast %cst_44 : f32 to vector<16x128xf32>
    %112 = arith.mulf %111, %110 : vector<16x128xf32>
    %cst_45 = arith.constant 5.000000e-01 : f32
    %113 = vector.broadcast %cst_45 : f32 to vector<16x128xf32>
    %114 = arith.addf %112, %113 : vector<16x128xf32>
    %115 = vector.extract_strided_slice %98 {offsets = [0, 256], sizes = [16, 128], strides = [1, 1]} : vector<16x512xf32> to vector<16x128xf32>
    %116 = math.tanh %115 : vector<16x128xf32>
    %117 = vector.extract_strided_slice %98 {offsets = [0, 384], sizes = [16, 128], strides = [1, 1]} : vector<16x512xf32> to vector<16x128xf32>
    %cst_46 = arith.constant 5.000000e-01 : f32
    %118 = vector.broadcast %cst_46 : f32 to vector<16x128xf32>
    %119 = arith.mulf %118, %117 : vector<16x128xf32>
    %120 = math.tanh %119 : vector<16x128xf32>
    %cst_47 = arith.constant 5.000000e-01 : f32
    %121 = vector.broadcast %cst_47 : f32 to vector<16x128xf32>
    %122 = arith.mulf %121, %120 : vector<16x128xf32>
    %cst_48 = arith.constant 5.000000e-01 : f32
    %123 = vector.broadcast %cst_48 : f32 to vector<16x128xf32>
    %124 = arith.addf %122, %123 : vector<16x128xf32>
    %125 = arith.mulf %114, %89 : vector<16x128xf32>
    %126 = arith.mulf %106, %116 : vector<16x128xf32>
    %127 = arith.addf %125, %126 : vector<16x128xf32>
    %128 = math.tanh %127 : vector<16x128xf32>
    %129 = arith.mulf %124, %128 : vector<16x128xf32>
    %c3_i32 = arith.constant 3 : i32
    %130 = arith.truncf %129 : vector<16x128xf32> to vector<16x128xbf16>
    %cst_49 = arith.constant dense<0.000000e+00> : vector<16x512xf32>
    %131 = tpu.matmul %130, %1, %cst_49 {dimension_numbers = #tpu.dot_dimension_numbers<[1], [0], [0], [1], [0, 0, 1, 1], [], []>} : vector<16x128xbf16>, vector<128x512xbf16>, vector<16x512xf32> -> vector<16x512xf32>
    %132 = arith.index_cast %c3_i32 : i32 to index
    %c0_50 = arith.constant 0 : index
    %c0_51 = arith.constant 0 : index
    %133 = vector.load %arg10[%132, %c0_50, %c0_51] : memref<28x16x512xbf16, #tpu.memory_space<vmem>>, vector<1x16x512xbf16>
    %134 = vector.shape_cast %133 : vector<1x16x512xbf16> to vector<16x512xbf16>
    %135 = arith.extf %134 : vector<16x512xbf16> to vector<16x512xf32>
    %136 = arith.addf %131, %135 : vector<16x512xf32>
    %137 = vector.extract_strided_slice %136 {offsets = [0, 0], sizes = [16, 128], strides = [1, 1]} : vector<16x512xf32> to vector<16x128xf32>
    %cst_52 = arith.constant 5.000000e-01 : f32
    %138 = vector.broadcast %cst_52 : f32 to vector<16x128xf32>
    %139 = arith.mulf %138, %137 : vector<16x128xf32>
    %140 = math.tanh %139 : vector<16x128xf32>
    %cst_53 = arith.constant 5.000000e-01 : f32
    %141 = vector.broadcast %cst_53 : f32 to vector<16x128xf32>
    %142 = arith.mulf %141, %140 : vector<16x128xf32>
    %cst_54 = arith.constant 5.000000e-01 : f32
    %143 = vector.broadcast %cst_54 : f32 to vector<16x128xf32>
    %144 = arith.addf %142, %143 : vector<16x128xf32>
    %145 = vector.extract_strided_slice %136 {offsets = [0, 128], sizes = [16, 128], strides = [1, 1]} : vector<16x512xf32> to vector<16x128xf32>
    %cst_55 = arith.constant 5.000000e-01 : f32
    %146 = vector.broadcast %cst_55 : f32 to vector<16x128xf32>
    %147 = arith.mulf %146, %145 : vector<16x128xf32>
    %148 = math.tanh %147 : vector<16x128xf32>
    %cst_56 = arith.constant 5.000000e-01 : f32
    %149 = vector.broadcast %cst_56 : f32 to vector<16x128xf32>
    %150 = arith.mulf %149, %148 : vector<16x128xf32>
    %cst_57 = arith.constant 5.000000e-01 : f32
    %151 = vector.broadcast %cst_57 : f32 to vector<16x128xf32>
    %152 = arith.addf %150, %151 : vector<16x128xf32>
    %153 = vector.extract_strided_slice %136 {offsets = [0, 256], sizes = [16, 128], strides = [1, 1]} : vector<16x512xf32> to vector<16x128xf32>
    %154 = math.tanh %153 : vector<16x128xf32>
    %155 = vector.extract_strided_slice %136 {offsets = [0, 384], sizes = [16, 128], strides = [1, 1]} : vector<16x512xf32> to vector<16x128xf32>
    %cst_58 = arith.constant 5.000000e-01 : f32
    %156 = vector.broadcast %cst_58 : f32 to vector<16x128xf32>
    %157 = arith.mulf %156, %155 : vector<16x128xf32>
    %158 = math.tanh %157 : vector<16x128xf32>
    %cst_59 = arith.constant 5.000000e-01 : f32
    %159 = vector.broadcast %cst_59 : f32 to vector<16x128xf32>
    %160 = arith.mulf %159, %158 : vector<16x128xf32>
    %cst_60 = arith.constant 5.000000e-01 : f32
    %161 = vector.broadcast %cst_60 : f32 to vector<16x128xf32>
    %162 = arith.addf %160, %161 : vector<16x128xf32>
    %163 = arith.mulf %152, %127 : vector<16x128xf32>
    %164 = arith.mulf %144, %154 : vector<16x128xf32>
    %165 = arith.addf %163, %164 : vector<16x128xf32>
    %166 = math.tanh %165 : vector<16x128xf32>
    %167 = arith.mulf %162, %166 : vector<16x128xf32>
    %c4_i32 = arith.constant 4 : i32
    %168 = arith.truncf %167 : vector<16x128xf32> to vector<16x128xbf16>
    %cst_61 = arith.constant dense<0.000000e+00> : vector<16x512xf32>
    %169 = tpu.matmul %168, %1, %cst_61 {dimension_numbers = #tpu.dot_dimension_numbers<[1], [0], [0], [1], [0, 0, 1, 1], [], []>} : vector<16x128xbf16>, vector<128x512xbf16>, vector<16x512xf32> -> vector<16x512xf32>
    %170 = arith.index_cast %c4_i32 : i32 to index
    %c0_62 = arith.constant 0 : index
    %c0_63 = arith.constant 0 : index
    %171 = vector.load %arg10[%170, %c0_62, %c0_63] : memref<28x16x512xbf16, #tpu.memory_space<vmem>>, vector<1x16x512xbf16>
    %172 = vector.shape_cast %171 : vector<1x16x512xbf16> to vector<16x512xbf16>
    %173 = arith.extf %172 : vector<16x512xbf16> to vector<16x512xf32>
    %174 = arith.addf %169, %173 : vector<16x512xf32>
    %175 = vector.extract_strided_slice %174 {offsets = [0, 0], sizes = [16, 128], strides = [1, 1]} : vector<16x512xf32> to vector<16x128xf32>
    %cst_64 = arith.constant 5.000000e-01 : f32
    %176 = vector.broadcast %cst_64 : f32 to vector<16x128xf32>
    %177 = arith.mulf %176, %175 : vector<16x128xf32>
    %178 = math.tanh %177 : vector<16x128xf32>
    %cst_65 = arith.constant 5.000000e-01 : f32
    %179 = vector.broadcast %cst_65 : f32 to vector<16x128xf32>
    %180 = arith.mulf %179, %178 : vector<16x128xf32>
    %cst_66 = arith.constant 5.000000e-01 : f32
    %181 = vector.broadcast %cst_66 : f32 to vector<16x128xf32>
    %182 = arith.addf %180, %181 : vector<16x128xf32>
    %183 = vector.extract_strided_slice %174 {offsets = [0, 128], sizes = [16, 128], strides = [1, 1]} : vector<16x512xf32> to vector<16x128xf32>
    %cst_67 = arith.constant 5.000000e-01 : f32
    %184 = vector.broadcast %cst_67 : f32 to vector<16x128xf32>
    %185 = arith.mulf %184, %183 : vector<16x128xf32>
    %186 = math.tanh %185 : vector<16x128xf32>
    %cst_68 = arith.constant 5.000000e-01 : f32
    %187 = vector.broadcast %cst_68 : f32 to vector<16x128xf32>
    %188 = arith.mulf %187, %186 : vector<16x128xf32>
    %cst_69 = arith.constant 5.000000e-01 : f32
    %189 = vector.broadcast %cst_69 : f32 to vector<16x128xf32>
    %190 = arith.addf %188, %189 : vector<16x128xf32>
    %191 = vector.extract_strided_slice %174 {offsets = [0, 256], sizes = [16, 128], strides = [1, 1]} : vector<16x512xf32> to vector<16x128xf32>
    %192 = math.tanh %191 : vector<16x128xf32>
    %193 = vector.extract_strided_slice %174 {offsets = [0, 384], sizes = [16, 128], strides = [1, 1]} : vector<16x512xf32> to vector<16x128xf32>
    %cst_70 = arith.constant 5.000000e-01 : f32
    %194 = vector.broadcast %cst_70 : f32 to vector<16x128xf32>
    %195 = arith.mulf %194, %193 : vector<16x128xf32>
    %196 = math.tanh %195 : vector<16x128xf32>
    %cst_71 = arith.constant 5.000000e-01 : f32
    %197 = vector.broadcast %cst_71 : f32 to vector<16x128xf32>
    %198 = arith.mulf %197, %196 : vector<16x128xf32>
    %cst_72 = arith.constant 5.000000e-01 : f32
    %199 = vector.broadcast %cst_72 : f32 to vector<16x128xf32>
    %200 = arith.addf %198, %199 : vector<16x128xf32>
    %201 = arith.mulf %190, %165 : vector<16x128xf32>
    %202 = arith.mulf %182, %192 : vector<16x128xf32>
    %203 = arith.addf %201, %202 : vector<16x128xf32>
    %204 = math.tanh %203 : vector<16x128xf32>
    %205 = arith.mulf %200, %204 : vector<16x128xf32>
    %c5_i32 = arith.constant 5 : i32
    %206 = arith.truncf %205 : vector<16x128xf32> to vector<16x128xbf16>
    %cst_73 = arith.constant dense<0.000000e+00> : vector<16x512xf32>
    %207 = tpu.matmul %206, %1, %cst_73 {dimension_numbers = #tpu.dot_dimension_numbers<[1], [0], [0], [1], [0, 0, 1, 1], [], []>} : vector<16x128xbf16>, vector<128x512xbf16>, vector<16x512xf32> -> vector<16x512xf32>
    %208 = arith.index_cast %c5_i32 : i32 to index
    %c0_74 = arith.constant 0 : index
    %c0_75 = arith.constant 0 : index
    %209 = vector.load %arg10[%208, %c0_74, %c0_75] : memref<28x16x512xbf16, #tpu.memory_space<vmem>>, vector<1x16x512xbf16>
    %210 = vector.shape_cast %209 : vector<1x16x512xbf16> to vector<16x512xbf16>
    %211 = arith.extf %210 : vector<16x512xbf16> to vector<16x512xf32>
    %212 = arith.addf %207, %211 : vector<16x512xf32>
    %213 = vector.extract_strided_slice %212 {offsets = [0, 0], sizes = [16, 128], strides = [1, 1]} : vector<16x512xf32> to vector<16x128xf32>
    %cst_76 = arith.constant 5.000000e-01 : f32
    %214 = vector.broadcast %cst_76 : f32 to vector<16x128xf32>
    %215 = arith.mulf %214, %213 : vector<16x128xf32>
    %216 = math.tanh %215 : vector<16x128xf32>
    %cst_77 = arith.constant 5.000000e-01 : f32
    %217 = vector.broadcast %cst_77 : f32 to vector<16x128xf32>
    %218 = arith.mulf %217, %216 : vector<16x128xf32>
    %cst_78 = arith.constant 5.000000e-01 : f32
    %219 = vector.broadcast %cst_78 : f32 to vector<16x128xf32>
    %220 = arith.addf %218, %219 : vector<16x128xf32>
    %221 = vector.extract_strided_slice %212 {offsets = [0, 128], sizes = [16, 128], strides = [1, 1]} : vector<16x512xf32> to vector<16x128xf32>
    %cst_79 = arith.constant 5.000000e-01 : f32
    %222 = vector.broadcast %cst_79 : f32 to vector<16x128xf32>
    %223 = arith.mulf %222, %221 : vector<16x128xf32>
    %224 = math.tanh %223 : vector<16x128xf32>
    %cst_80 = arith.constant 5.000000e-01 : f32
    %225 = vector.broadcast %cst_80 : f32 to vector<16x128xf32>
    %226 = arith.mulf %225, %224 : vector<16x128xf32>
    %cst_81 = arith.constant 5.000000e-01 : f32
    %227 = vector.broadcast %cst_81 : f32 to vector<16x128xf32>
    %228 = arith.addf %226, %227 : vector<16x128xf32>
    %229 = vector.extract_strided_slice %212 {offsets = [0, 256], sizes = [16, 128], strides = [1, 1]} : vector<16x512xf32> to vector<16x128xf32>
    %230 = math.tanh %229 : vector<16x128xf32>
    %231 = vector.extract_strided_slice %212 {offsets = [0, 384], sizes = [16, 128], strides = [1, 1]} : vector<16x512xf32> to vector<16x128xf32>
    %cst_82 = arith.constant 5.000000e-01 : f32
    %232 = vector.broadcast %cst_82 : f32 to vector<16x128xf32>
    %233 = arith.mulf %232, %231 : vector<16x128xf32>
    %234 = math.tanh %233 : vector<16x128xf32>
    %cst_83 = arith.constant 5.000000e-01 : f32
    %235 = vector.broadcast %cst_83 : f32 to vector<16x128xf32>
    %236 = arith.mulf %235, %234 : vector<16x128xf32>
    %cst_84 = arith.constant 5.000000e-01 : f32
    %237 = vector.broadcast %cst_84 : f32 to vector<16x128xf32>
    %238 = arith.addf %236, %237 : vector<16x128xf32>
    %239 = arith.mulf %228, %203 : vector<16x128xf32>
    %240 = arith.mulf %220, %230 : vector<16x128xf32>
    %241 = arith.addf %239, %240 : vector<16x128xf32>
    %242 = math.tanh %241 : vector<16x128xf32>
    %243 = arith.mulf %238, %242 : vector<16x128xf32>
    %c6_i32 = arith.constant 6 : i32
    %244 = arith.truncf %243 : vector<16x128xf32> to vector<16x128xbf16>
    %cst_85 = arith.constant dense<0.000000e+00> : vector<16x512xf32>
    %245 = tpu.matmul %244, %1, %cst_85 {dimension_numbers = #tpu.dot_dimension_numbers<[1], [0], [0], [1], [0, 0, 1, 1], [], []>} : vector<16x128xbf16>, vector<128x512xbf16>, vector<16x512xf32> -> vector<16x512xf32>
    %246 = arith.index_cast %c6_i32 : i32 to index
    %c0_86 = arith.constant 0 : index
    %c0_87 = arith.constant 0 : index
    %247 = vector.load %arg10[%246, %c0_86, %c0_87] : memref<28x16x512xbf16, #tpu.memory_space<vmem>>, vector<1x16x512xbf16>
    %248 = vector.shape_cast %247 : vector<1x16x512xbf16> to vector<16x512xbf16>
    %249 = arith.extf %248 : vector<16x512xbf16> to vector<16x512xf32>
    %250 = arith.addf %245, %249 : vector<16x512xf32>
    %251 = vector.extract_strided_slice %250 {offsets = [0, 0], sizes = [16, 128], strides = [1, 1]} : vector<16x512xf32> to vector<16x128xf32>
    %cst_88 = arith.constant 5.000000e-01 : f32
    %252 = vector.broadcast %cst_88 : f32 to vector<16x128xf32>
    %253 = arith.mulf %252, %251 : vector<16x128xf32>
    %254 = math.tanh %253 : vector<16x128xf32>
    %cst_89 = arith.constant 5.000000e-01 : f32
    %255 = vector.broadcast %cst_89 : f32 to vector<16x128xf32>
    %256 = arith.mulf %255, %254 : vector<16x128xf32>
    %cst_90 = arith.constant 5.000000e-01 : f32
    %257 = vector.broadcast %cst_90 : f32 to vector<16x128xf32>
    %258 = arith.addf %256, %257 : vector<16x128xf32>
    %259 = vector.extract_strided_slice %250 {offsets = [0, 128], sizes = [16, 128], strides = [1, 1]} : vector<16x512xf32> to vector<16x128xf32>
    %cst_91 = arith.constant 5.000000e-01 : f32
    %260 = vector.broadcast %cst_91 : f32 to vector<16x128xf32>
    %261 = arith.mulf %260, %259 : vector<16x128xf32>
    %262 = math.tanh %261 : vector<16x128xf32>
    %cst_92 = arith.constant 5.000000e-01 : f32
    %263 = vector.broadcast %cst_92 : f32 to vector<16x128xf32>
    %264 = arith.mulf %263, %262 : vector<16x128xf32>
    %cst_93 = arith.constant 5.000000e-01 : f32
    %265 = vector.broadcast %cst_93 : f32 to vector<16x128xf32>
    %266 = arith.addf %264, %265 : vector<16x128xf32>
    %267 = vector.extract_strided_slice %250 {offsets = [0, 256], sizes = [16, 128], strides = [1, 1]} : vector<16x512xf32> to vector<16x128xf32>
    %268 = math.tanh %267 : vector<16x128xf32>
    %269 = vector.extract_strided_slice %250 {offsets = [0, 384], sizes = [16, 128], strides = [1, 1]} : vector<16x512xf32> to vector<16x128xf32>
    %cst_94 = arith.constant 5.000000e-01 : f32
    %270 = vector.broadcast %cst_94 : f32 to vector<16x128xf32>
    %271 = arith.mulf %270, %269 : vector<16x128xf32>
    %272 = math.tanh %271 : vector<16x128xf32>
    %cst_95 = arith.constant 5.000000e-01 : f32
    %273 = vector.broadcast %cst_95 : f32 to vector<16x128xf32>
    %274 = arith.mulf %273, %272 : vector<16x128xf32>
    %cst_96 = arith.constant 5.000000e-01 : f32
    %275 = vector.broadcast %cst_96 : f32 to vector<16x128xf32>
    %276 = arith.addf %274, %275 : vector<16x128xf32>
    %277 = arith.mulf %266, %241 : vector<16x128xf32>
    %278 = arith.mulf %258, %268 : vector<16x128xf32>
    %279 = arith.addf %277, %278 : vector<16x128xf32>
    %280 = math.tanh %279 : vector<16x128xf32>
    %281 = arith.mulf %276, %280 : vector<16x128xf32>
    %c7_i32 = arith.constant 7 : i32
    %282 = arith.truncf %281 : vector<16x128xf32> to vector<16x128xbf16>
    %cst_97 = arith.constant dense<0.000000e+00> : vector<16x512xf32>
    %283 = tpu.matmul %282, %1, %cst_97 {dimension_numbers = #tpu.dot_dimension_numbers<[1], [0], [0], [1], [0, 0, 1, 1], [], []>} : vector<16x128xbf16>, vector<128x512xbf16>, vector<16x512xf32> -> vector<16x512xf32>
    %284 = arith.index_cast %c7_i32 : i32 to index
    %c0_98 = arith.constant 0 : index
    %c0_99 = arith.constant 0 : index
    %285 = vector.load %arg10[%284, %c0_98, %c0_99] : memref<28x16x512xbf16, #tpu.memory_space<vmem>>, vector<1x16x512xbf16>
    %286 = vector.shape_cast %285 : vector<1x16x512xbf16> to vector<16x512xbf16>
    %287 = arith.extf %286 : vector<16x512xbf16> to vector<16x512xf32>
    %288 = arith.addf %283, %287 : vector<16x512xf32>
    %289 = vector.extract_strided_slice %288 {offsets = [0, 0], sizes = [16, 128], strides = [1, 1]} : vector<16x512xf32> to vector<16x128xf32>
    %cst_100 = arith.constant 5.000000e-01 : f32
    %290 = vector.broadcast %cst_100 : f32 to vector<16x128xf32>
    %291 = arith.mulf %290, %289 : vector<16x128xf32>
    %292 = math.tanh %291 : vector<16x128xf32>
    %cst_101 = arith.constant 5.000000e-01 : f32
    %293 = vector.broadcast %cst_101 : f32 to vector<16x128xf32>
    %294 = arith.mulf %293, %292 : vector<16x128xf32>
    %cst_102 = arith.constant 5.000000e-01 : f32
    %295 = vector.broadcast %cst_102 : f32 to vector<16x128xf32>
    %296 = arith.addf %294, %295 : vector<16x128xf32>
    %297 = vector.extract_strided_slice %288 {offsets = [0, 128], sizes = [16, 128], strides = [1, 1]} : vector<16x512xf32> to vector<16x128xf32>
    %cst_103 = arith.constant 5.000000e-01 : f32
    %298 = vector.broadcast %cst_103 : f32 to vector<16x128xf32>
    %299 = arith.mulf %298, %297 : vector<16x128xf32>
    %300 = math.tanh %299 : vector<16x128xf32>
    %cst_104 = arith.constant 5.000000e-01 : f32
    %301 = vector.broadcast %cst_104 : f32 to vector<16x128xf32>
    %302 = arith.mulf %301, %300 : vector<16x128xf32>
    %cst_105 = arith.constant 5.000000e-01 : f32
    %303 = vector.broadcast %cst_105 : f32 to vector<16x128xf32>
    %304 = arith.addf %302, %303 : vector<16x128xf32>
    %305 = vector.extract_strided_slice %288 {offsets = [0, 256], sizes = [16, 128], strides = [1, 1]} : vector<16x512xf32> to vector<16x128xf32>
    %306 = math.tanh %305 : vector<16x128xf32>
    %307 = vector.extract_strided_slice %288 {offsets = [0, 384], sizes = [16, 128], strides = [1, 1]} : vector<16x512xf32> to vector<16x128xf32>
    %cst_106 = arith.constant 5.000000e-01 : f32
    %308 = vector.broadcast %cst_106 : f32 to vector<16x128xf32>
    %309 = arith.mulf %308, %307 : vector<16x128xf32>
    %310 = math.tanh %309 : vector<16x128xf32>
    %cst_107 = arith.constant 5.000000e-01 : f32
    %311 = vector.broadcast %cst_107 : f32 to vector<16x128xf32>
    %312 = arith.mulf %311, %310 : vector<16x128xf32>
    %cst_108 = arith.constant 5.000000e-01 : f32
    %313 = vector.broadcast %cst_108 : f32 to vector<16x128xf32>
    %314 = arith.addf %312, %313 : vector<16x128xf32>
    %315 = arith.mulf %304, %279 : vector<16x128xf32>
    %316 = arith.mulf %296, %306 : vector<16x128xf32>
    %317 = arith.addf %315, %316 : vector<16x128xf32>
    %318 = math.tanh %317 : vector<16x128xf32>
    %319 = arith.mulf %314, %318 : vector<16x128xf32>
    %c8_i32 = arith.constant 8 : i32
    %320 = arith.truncf %319 : vector<16x128xf32> to vector<16x128xbf16>
    %cst_109 = arith.constant dense<0.000000e+00> : vector<16x512xf32>
    %321 = tpu.matmul %320, %1, %cst_109 {dimension_numbers = #tpu.dot_dimension_numbers<[1], [0], [0], [1], [0, 0, 1, 1], [], []>} : vector<16x128xbf16>, vector<128x512xbf16>, vector<16x512xf32> -> vector<16x512xf32>
    %322 = arith.index_cast %c8_i32 : i32 to index
    %c0_110 = arith.constant 0 : index
    %c0_111 = arith.constant 0 : index
    %323 = vector.load %arg10[%322, %c0_110, %c0_111] : memref<28x16x512xbf16, #tpu.memory_space<vmem>>, vector<1x16x512xbf16>
    %324 = vector.shape_cast %323 : vector<1x16x512xbf16> to vector<16x512xbf16>
    %325 = arith.extf %324 : vector<16x512xbf16> to vector<16x512xf32>
    %326 = arith.addf %321, %325 : vector<16x512xf32>
    %327 = vector.extract_strided_slice %326 {offsets = [0, 0], sizes = [16, 128], strides = [1, 1]} : vector<16x512xf32> to vector<16x128xf32>
    %cst_112 = arith.constant 5.000000e-01 : f32
    %328 = vector.broadcast %cst_112 : f32 to vector<16x128xf32>
    %329 = arith.mulf %328, %327 : vector<16x128xf32>
    %330 = math.tanh %329 : vector<16x128xf32>
    %cst_113 = arith.constant 5.000000e-01 : f32
    %331 = vector.broadcast %cst_113 : f32 to vector<16x128xf32>
    %332 = arith.mulf %331, %330 : vector<16x128xf32>
    %cst_114 = arith.constant 5.000000e-01 : f32
    %333 = vector.broadcast %cst_114 : f32 to vector<16x128xf32>
    %334 = arith.addf %332, %333 : vector<16x128xf32>
    %335 = vector.extract_strided_slice %326 {offsets = [0, 128], sizes = [16, 128], strides = [1, 1]} : vector<16x512xf32> to vector<16x128xf32>
    %cst_115 = arith.constant 5.000000e-01 : f32
    %336 = vector.broadcast %cst_115 : f32 to vector<16x128xf32>
    %337 = arith.mulf %336, %335 : vector<16x128xf32>
    %338 = math.tanh %337 : vector<16x128xf32>
    %cst_116 = arith.constant 5.000000e-01 : f32
    %339 = vector.broadcast %cst_116 : f32 to vector<16x128xf32>
    %340 = arith.mulf %339, %338 : vector<16x128xf32>
    %cst_117 = arith.constant 5.000000e-01 : f32
    %341 = vector.broadcast %cst_117 : f32 to vector<16x128xf32>
    %342 = arith.addf %340, %341 : vector<16x128xf32>
    %343 = vector.extract_strided_slice %326 {offsets = [0, 256], sizes = [16, 128], strides = [1, 1]} : vector<16x512xf32> to vector<16x128xf32>
    %344 = math.tanh %343 : vector<16x128xf32>
    %345 = vector.extract_strided_slice %326 {offsets = [0, 384], sizes = [16, 128], strides = [1, 1]} : vector<16x512xf32> to vector<16x128xf32>
    %cst_118 = arith.constant 5.000000e-01 : f32
    %346 = vector.broadcast %cst_118 : f32 to vector<16x128xf32>
    %347 = arith.mulf %346, %345 : vector<16x128xf32>
    %348 = math.tanh %347 : vector<16x128xf32>
    %cst_119 = arith.constant 5.000000e-01 : f32
    %349 = vector.broadcast %cst_119 : f32 to vector<16x128xf32>
    %350 = arith.mulf %349, %348 : vector<16x128xf32>
    %cst_120 = arith.constant 5.000000e-01 : f32
    %351 = vector.broadcast %cst_120 : f32 to vector<16x128xf32>
    %352 = arith.addf %350, %351 : vector<16x128xf32>
    %353 = arith.mulf %342, %317 : vector<16x128xf32>
    %354 = arith.mulf %334, %344 : vector<16x128xf32>
    %355 = arith.addf %353, %354 : vector<16x128xf32>
    %356 = math.tanh %355 : vector<16x128xf32>
    %357 = arith.mulf %352, %356 : vector<16x128xf32>
    %c9_i32 = arith.constant 9 : i32
    %358 = arith.truncf %357 : vector<16x128xf32> to vector<16x128xbf16>
    %cst_121 = arith.constant dense<0.000000e+00> : vector<16x512xf32>
    %359 = tpu.matmul %358, %1, %cst_121 {dimension_numbers = #tpu.dot_dimension_numbers<[1], [0], [0], [1], [0, 0, 1, 1], [], []>} : vector<16x128xbf16>, vector<128x512xbf16>, vector<16x512xf32> -> vector<16x512xf32>
    %360 = arith.index_cast %c9_i32 : i32 to index
    %c0_122 = arith.constant 0 : index
    %c0_123 = arith.constant 0 : index
    %361 = vector.load %arg10[%360, %c0_122, %c0_123] : memref<28x16x512xbf16, #tpu.memory_space<vmem>>, vector<1x16x512xbf16>
    %362 = vector.shape_cast %361 : vector<1x16x512xbf16> to vector<16x512xbf16>
    %363 = arith.extf %362 : vector<16x512xbf16> to vector<16x512xf32>
    %364 = arith.addf %359, %363 : vector<16x512xf32>
    %365 = vector.extract_strided_slice %364 {offsets = [0, 0], sizes = [16, 128], strides = [1, 1]} : vector<16x512xf32> to vector<16x128xf32>
    %cst_124 = arith.constant 5.000000e-01 : f32
    %366 = vector.broadcast %cst_124 : f32 to vector<16x128xf32>
    %367 = arith.mulf %366, %365 : vector<16x128xf32>
    %368 = math.tanh %367 : vector<16x128xf32>
    %cst_125 = arith.constant 5.000000e-01 : f32
    %369 = vector.broadcast %cst_125 : f32 to vector<16x128xf32>
    %370 = arith.mulf %369, %368 : vector<16x128xf32>
    %cst_126 = arith.constant 5.000000e-01 : f32
    %371 = vector.broadcast %cst_126 : f32 to vector<16x128xf32>
    %372 = arith.addf %370, %371 : vector<16x128xf32>
    %373 = vector.extract_strided_slice %364 {offsets = [0, 128], sizes = [16, 128], strides = [1, 1]} : vector<16x512xf32> to vector<16x128xf32>
    %cst_127 = arith.constant 5.000000e-01 : f32
    %374 = vector.broadcast %cst_127 : f32 to vector<16x128xf32>
    %375 = arith.mulf %374, %373 : vector<16x128xf32>
    %376 = math.tanh %375 : vector<16x128xf32>
    %cst_128 = arith.constant 5.000000e-01 : f32
    %377 = vector.broadcast %cst_128 : f32 to vector<16x128xf32>
    %378 = arith.mulf %377, %376 : vector<16x128xf32>
    %cst_129 = arith.constant 5.000000e-01 : f32
    %379 = vector.broadcast %cst_129 : f32 to vector<16x128xf32>
    %380 = arith.addf %378, %379 : vector<16x128xf32>
    %381 = vector.extract_strided_slice %364 {offsets = [0, 256], sizes = [16, 128], strides = [1, 1]} : vector<16x512xf32> to vector<16x128xf32>
    %382 = math.tanh %381 : vector<16x128xf32>
    %383 = vector.extract_strided_slice %364 {offsets = [0, 384], sizes = [16, 128], strides = [1, 1]} : vector<16x512xf32> to vector<16x128xf32>
    %cst_130 = arith.constant 5.000000e-01 : f32
    %384 = vector.broadcast %cst_130 : f32 to vector<16x128xf32>
    %385 = arith.mulf %384, %383 : vector<16x128xf32>
    %386 = math.tanh %385 : vector<16x128xf32>
    %cst_131 = arith.constant 5.000000e-01 : f32
    %387 = vector.broadcast %cst_131 : f32 to vector<16x128xf32>
    %388 = arith.mulf %387, %386 : vector<16x128xf32>
    %cst_132 = arith.constant 5.000000e-01 : f32
    %389 = vector.broadcast %cst_132 : f32 to vector<16x128xf32>
    %390 = arith.addf %388, %389 : vector<16x128xf32>
    %391 = arith.mulf %380, %355 : vector<16x128xf32>
    %392 = arith.mulf %372, %382 : vector<16x128xf32>
    %393 = arith.addf %391, %392 : vector<16x128xf32>
    %394 = math.tanh %393 : vector<16x128xf32>
    %395 = arith.mulf %390, %394 : vector<16x128xf32>
    %c10_i32 = arith.constant 10 : i32
    %396 = arith.truncf %395 : vector<16x128xf32> to vector<16x128xbf16>
    %cst_133 = arith.constant dense<0.000000e+00> : vector<16x512xf32>
    %397 = tpu.matmul %396, %1, %cst_133 {dimension_numbers = #tpu.dot_dimension_numbers<[1], [0], [0], [1], [0, 0, 1, 1], [], []>} : vector<16x128xbf16>, vector<128x512xbf16>, vector<16x512xf32> -> vector<16x512xf32>
    %398 = arith.index_cast %c10_i32 : i32 to index
    %c0_134 = arith.constant 0 : index
    %c0_135 = arith.constant 0 : index
    %399 = vector.load %arg10[%398, %c0_134, %c0_135] : memref<28x16x512xbf16, #tpu.memory_space<vmem>>, vector<1x16x512xbf16>
    %400 = vector.shape_cast %399 : vector<1x16x512xbf16> to vector<16x512xbf16>
    %401 = arith.extf %400 : vector<16x512xbf16> to vector<16x512xf32>
    %402 = arith.addf %397, %401 : vector<16x512xf32>
    %403 = vector.extract_strided_slice %402 {offsets = [0, 0], sizes = [16, 128], strides = [1, 1]} : vector<16x512xf32> to vector<16x128xf32>
    %cst_136 = arith.constant 5.000000e-01 : f32
    %404 = vector.broadcast %cst_136 : f32 to vector<16x128xf32>
    %405 = arith.mulf %404, %403 : vector<16x128xf32>
    %406 = math.tanh %405 : vector<16x128xf32>
    %cst_137 = arith.constant 5.000000e-01 : f32
    %407 = vector.broadcast %cst_137 : f32 to vector<16x128xf32>
    %408 = arith.mulf %407, %406 : vector<16x128xf32>
    %cst_138 = arith.constant 5.000000e-01 : f32
    %409 = vector.broadcast %cst_138 : f32 to vector<16x128xf32>
    %410 = arith.addf %408, %409 : vector<16x128xf32>
    %411 = vector.extract_strided_slice %402 {offsets = [0, 128], sizes = [16, 128], strides = [1, 1]} : vector<16x512xf32> to vector<16x128xf32>
    %cst_139 = arith.constant 5.000000e-01 : f32
    %412 = vector.broadcast %cst_139 : f32 to vector<16x128xf32>
    %413 = arith.mulf %412, %411 : vector<16x128xf32>
    %414 = math.tanh %413 : vector<16x128xf32>
    %cst_140 = arith.constant 5.000000e-01 : f32
    %415 = vector.broadcast %cst_140 : f32 to vector<16x128xf32>
    %416 = arith.mulf %415, %414 : vector<16x128xf32>
    %cst_141 = arith.constant 5.000000e-01 : f32
    %417 = vector.broadcast %cst_141 : f32 to vector<16x128xf32>
    %418 = arith.addf %416, %417 : vector<16x128xf32>
    %419 = vector.extract_strided_slice %402 {offsets = [0, 256], sizes = [16, 128], strides = [1, 1]} : vector<16x512xf32> to vector<16x128xf32>
    %420 = math.tanh %419 : vector<16x128xf32>
    %421 = vector.extract_strided_slice %402 {offsets = [0, 384], sizes = [16, 128], strides = [1, 1]} : vector<16x512xf32> to vector<16x128xf32>
    %cst_142 = arith.constant 5.000000e-01 : f32
    %422 = vector.broadcast %cst_142 : f32 to vector<16x128xf32>
    %423 = arith.mulf %422, %421 : vector<16x128xf32>
    %424 = math.tanh %423 : vector<16x128xf32>
    %cst_143 = arith.constant 5.000000e-01 : f32
    %425 = vector.broadcast %cst_143 : f32 to vector<16x128xf32>
    %426 = arith.mulf %425, %424 : vector<16x128xf32>
    %cst_144 = arith.constant 5.000000e-01 : f32
    %427 = vector.broadcast %cst_144 : f32 to vector<16x128xf32>
    %428 = arith.addf %426, %427 : vector<16x128xf32>
    %429 = arith.mulf %418, %393 : vector<16x128xf32>
    %430 = arith.mulf %410, %420 : vector<16x128xf32>
    %431 = arith.addf %429, %430 : vector<16x128xf32>
    %432 = math.tanh %431 : vector<16x128xf32>
    %433 = arith.mulf %428, %432 : vector<16x128xf32>
    %c11_i32 = arith.constant 11 : i32
    %434 = arith.truncf %433 : vector<16x128xf32> to vector<16x128xbf16>
    %cst_145 = arith.constant dense<0.000000e+00> : vector<16x512xf32>
    %435 = tpu.matmul %434, %1, %cst_145 {dimension_numbers = #tpu.dot_dimension_numbers<[1], [0], [0], [1], [0, 0, 1, 1], [], []>} : vector<16x128xbf16>, vector<128x512xbf16>, vector<16x512xf32> -> vector<16x512xf32>
    %436 = arith.index_cast %c11_i32 : i32 to index
    %c0_146 = arith.constant 0 : index
    %c0_147 = arith.constant 0 : index
    %437 = vector.load %arg10[%436, %c0_146, %c0_147] : memref<28x16x512xbf16, #tpu.memory_space<vmem>>, vector<1x16x512xbf16>
    %438 = vector.shape_cast %437 : vector<1x16x512xbf16> to vector<16x512xbf16>
    %439 = arith.extf %438 : vector<16x512xbf16> to vector<16x512xf32>
    %440 = arith.addf %435, %439 : vector<16x512xf32>
    %441 = vector.extract_strided_slice %440 {offsets = [0, 0], sizes = [16, 128], strides = [1, 1]} : vector<16x512xf32> to vector<16x128xf32>
    %cst_148 = arith.constant 5.000000e-01 : f32
    %442 = vector.broadcast %cst_148 : f32 to vector<16x128xf32>
    %443 = arith.mulf %442, %441 : vector<16x128xf32>
    %444 = math.tanh %443 : vector<16x128xf32>
    %cst_149 = arith.constant 5.000000e-01 : f32
    %445 = vector.broadcast %cst_149 : f32 to vector<16x128xf32>
    %446 = arith.mulf %445, %444 : vector<16x128xf32>
    %cst_150 = arith.constant 5.000000e-01 : f32
    %447 = vector.broadcast %cst_150 : f32 to vector<16x128xf32>
    %448 = arith.addf %446, %447 : vector<16x128xf32>
    %449 = vector.extract_strided_slice %440 {offsets = [0, 128], sizes = [16, 128], strides = [1, 1]} : vector<16x512xf32> to vector<16x128xf32>
    %cst_151 = arith.constant 5.000000e-01 : f32
    %450 = vector.broadcast %cst_151 : f32 to vector<16x128xf32>
    %451 = arith.mulf %450, %449 : vector<16x128xf32>
    %452 = math.tanh %451 : vector<16x128xf32>
    %cst_152 = arith.constant 5.000000e-01 : f32
    %453 = vector.broadcast %cst_152 : f32 to vector<16x128xf32>
    %454 = arith.mulf %453, %452 : vector<16x128xf32>
    %cst_153 = arith.constant 5.000000e-01 : f32
    %455 = vector.broadcast %cst_153 : f32 to vector<16x128xf32>
    %456 = arith.addf %454, %455 : vector<16x128xf32>
    %457 = vector.extract_strided_slice %440 {offsets = [0, 256], sizes = [16, 128], strides = [1, 1]} : vector<16x512xf32> to vector<16x128xf32>
    %458 = math.tanh %457 : vector<16x128xf32>
    %459 = vector.extract_strided_slice %440 {offsets = [0, 384], sizes = [16, 128], strides = [1, 1]} : vector<16x512xf32> to vector<16x128xf32>
    %cst_154 = arith.constant 5.000000e-01 : f32
    %460 = vector.broadcast %cst_154 : f32 to vector<16x128xf32>
    %461 = arith.mulf %460, %459 : vector<16x128xf32>
    %462 = math.tanh %461 : vector<16x128xf32>
    %cst_155 = arith.constant 5.000000e-01 : f32
    %463 = vector.broadcast %cst_155 : f32 to vector<16x128xf32>
    %464 = arith.mulf %463, %462 : vector<16x128xf32>
    %cst_156 = arith.constant 5.000000e-01 : f32
    %465 = vector.broadcast %cst_156 : f32 to vector<16x128xf32>
    %466 = arith.addf %464, %465 : vector<16x128xf32>
    %467 = arith.mulf %456, %431 : vector<16x128xf32>
    %468 = arith.mulf %448, %458 : vector<16x128xf32>
    %469 = arith.addf %467, %468 : vector<16x128xf32>
    %470 = math.tanh %469 : vector<16x128xf32>
    %471 = arith.mulf %466, %470 : vector<16x128xf32>
    %c12_i32 = arith.constant 12 : i32
    %472 = arith.truncf %471 : vector<16x128xf32> to vector<16x128xbf16>
    %cst_157 = arith.constant dense<0.000000e+00> : vector<16x512xf32>
    %473 = tpu.matmul %472, %1, %cst_157 {dimension_numbers = #tpu.dot_dimension_numbers<[1], [0], [0], [1], [0, 0, 1, 1], [], []>} : vector<16x128xbf16>, vector<128x512xbf16>, vector<16x512xf32> -> vector<16x512xf32>
    %474 = arith.index_cast %c12_i32 : i32 to index
    %c0_158 = arith.constant 0 : index
    %c0_159 = arith.constant 0 : index
    %475 = vector.load %arg10[%474, %c0_158, %c0_159] : memref<28x16x512xbf16, #tpu.memory_space<vmem>>, vector<1x16x512xbf16>
    %476 = vector.shape_cast %475 : vector<1x16x512xbf16> to vector<16x512xbf16>
    %477 = arith.extf %476 : vector<16x512xbf16> to vector<16x512xf32>
    %478 = arith.addf %473, %477 : vector<16x512xf32>
    %479 = vector.extract_strided_slice %478 {offsets = [0, 0], sizes = [16, 128], strides = [1, 1]} : vector<16x512xf32> to vector<16x128xf32>
    %cst_160 = arith.constant 5.000000e-01 : f32
    %480 = vector.broadcast %cst_160 : f32 to vector<16x128xf32>
    %481 = arith.mulf %480, %479 : vector<16x128xf32>
    %482 = math.tanh %481 : vector<16x128xf32>
    %cst_161 = arith.constant 5.000000e-01 : f32
    %483 = vector.broadcast %cst_161 : f32 to vector<16x128xf32>
    %484 = arith.mulf %483, %482 : vector<16x128xf32>
    %cst_162 = arith.constant 5.000000e-01 : f32
    %485 = vector.broadcast %cst_162 : f32 to vector<16x128xf32>
    %486 = arith.addf %484, %485 : vector<16x128xf32>
    %487 = vector.extract_strided_slice %478 {offsets = [0, 128], sizes = [16, 128], strides = [1, 1]} : vector<16x512xf32> to vector<16x128xf32>
    %cst_163 = arith.constant 5.000000e-01 : f32
    %488 = vector.broadcast %cst_163 : f32 to vector<16x128xf32>
    %489 = arith.mulf %488, %487 : vector<16x128xf32>
    %490 = math.tanh %489 : vector<16x128xf32>
    %cst_164 = arith.constant 5.000000e-01 : f32
    %491 = vector.broadcast %cst_164 : f32 to vector<16x128xf32>
    %492 = arith.mulf %491, %490 : vector<16x128xf32>
    %cst_165 = arith.constant 5.000000e-01 : f32
    %493 = vector.broadcast %cst_165 : f32 to vector<16x128xf32>
    %494 = arith.addf %492, %493 : vector<16x128xf32>
    %495 = vector.extract_strided_slice %478 {offsets = [0, 256], sizes = [16, 128], strides = [1, 1]} : vector<16x512xf32> to vector<16x128xf32>
    %496 = math.tanh %495 : vector<16x128xf32>
    %497 = vector.extract_strided_slice %478 {offsets = [0, 384], sizes = [16, 128], strides = [1, 1]} : vector<16x512xf32> to vector<16x128xf32>
    %cst_166 = arith.constant 5.000000e-01 : f32
    %498 = vector.broadcast %cst_166 : f32 to vector<16x128xf32>
    %499 = arith.mulf %498, %497 : vector<16x128xf32>
    %500 = math.tanh %499 : vector<16x128xf32>
    %cst_167 = arith.constant 5.000000e-01 : f32
    %501 = vector.broadcast %cst_167 : f32 to vector<16x128xf32>
    %502 = arith.mulf %501, %500 : vector<16x128xf32>
    %cst_168 = arith.constant 5.000000e-01 : f32
    %503 = vector.broadcast %cst_168 : f32 to vector<16x128xf32>
    %504 = arith.addf %502, %503 : vector<16x128xf32>
    %505 = arith.mulf %494, %469 : vector<16x128xf32>
    %506 = arith.mulf %486, %496 : vector<16x128xf32>
    %507 = arith.addf %505, %506 : vector<16x128xf32>
    %508 = math.tanh %507 : vector<16x128xf32>
    %509 = arith.mulf %504, %508 : vector<16x128xf32>
    %c13_i32 = arith.constant 13 : i32
    %510 = arith.truncf %509 : vector<16x128xf32> to vector<16x128xbf16>
    %cst_169 = arith.constant dense<0.000000e+00> : vector<16x512xf32>
    %511 = tpu.matmul %510, %1, %cst_169 {dimension_numbers = #tpu.dot_dimension_numbers<[1], [0], [0], [1], [0, 0, 1, 1], [], []>} : vector<16x128xbf16>, vector<128x512xbf16>, vector<16x512xf32> -> vector<16x512xf32>
    %512 = arith.index_cast %c13_i32 : i32 to index
    %c0_170 = arith.constant 0 : index
    %c0_171 = arith.constant 0 : index
    %513 = vector.load %arg10[%512, %c0_170, %c0_171] : memref<28x16x512xbf16, #tpu.memory_space<vmem>>, vector<1x16x512xbf16>
    %514 = vector.shape_cast %513 : vector<1x16x512xbf16> to vector<16x512xbf16>
    %515 = arith.extf %514 : vector<16x512xbf16> to vector<16x512xf32>
    %516 = arith.addf %511, %515 : vector<16x512xf32>
    %517 = vector.extract_strided_slice %516 {offsets = [0, 0], sizes = [16, 128], strides = [1, 1]} : vector<16x512xf32> to vector<16x128xf32>
    %cst_172 = arith.constant 5.000000e-01 : f32
    %518 = vector.broadcast %cst_172 : f32 to vector<16x128xf32>
    %519 = arith.mulf %518, %517 : vector<16x128xf32>
    %520 = math.tanh %519 : vector<16x128xf32>
    %cst_173 = arith.constant 5.000000e-01 : f32
    %521 = vector.broadcast %cst_173 : f32 to vector<16x128xf32>
    %522 = arith.mulf %521, %520 : vector<16x128xf32>
    %cst_174 = arith.constant 5.000000e-01 : f32
    %523 = vector.broadcast %cst_174 : f32 to vector<16x128xf32>
    %524 = arith.addf %522, %523 : vector<16x128xf32>
    %525 = vector.extract_strided_slice %516 {offsets = [0, 128], sizes = [16, 128], strides = [1, 1]} : vector<16x512xf32> to vector<16x128xf32>
    %cst_175 = arith.constant 5.000000e-01 : f32
    %526 = vector.broadcast %cst_175 : f32 to vector<16x128xf32>
    %527 = arith.mulf %526, %525 : vector<16x128xf32>
    %528 = math.tanh %527 : vector<16x128xf32>
    %cst_176 = arith.constant 5.000000e-01 : f32
    %529 = vector.broadcast %cst_176 : f32 to vector<16x128xf32>
    %530 = arith.mulf %529, %528 : vector<16x128xf32>
    %cst_177 = arith.constant 5.000000e-01 : f32
    %531 = vector.broadcast %cst_177 : f32 to vector<16x128xf32>
    %532 = arith.addf %530, %531 : vector<16x128xf32>
    %533 = vector.extract_strided_slice %516 {offsets = [0, 256], sizes = [16, 128], strides = [1, 1]} : vector<16x512xf32> to vector<16x128xf32>
    %534 = math.tanh %533 : vector<16x128xf32>
    %535 = vector.extract_strided_slice %516 {offsets = [0, 384], sizes = [16, 128], strides = [1, 1]} : vector<16x512xf32> to vector<16x128xf32>
    %cst_178 = arith.constant 5.000000e-01 : f32
    %536 = vector.broadcast %cst_178 : f32 to vector<16x128xf32>
    %537 = arith.mulf %536, %535 : vector<16x128xf32>
    %538 = math.tanh %537 : vector<16x128xf32>
    %cst_179 = arith.constant 5.000000e-01 : f32
    %539 = vector.broadcast %cst_179 : f32 to vector<16x128xf32>
    %540 = arith.mulf %539, %538 : vector<16x128xf32>
    %cst_180 = arith.constant 5.000000e-01 : f32
    %541 = vector.broadcast %cst_180 : f32 to vector<16x128xf32>
    %542 = arith.addf %540, %541 : vector<16x128xf32>
    %543 = arith.mulf %532, %507 : vector<16x128xf32>
    %544 = arith.mulf %524, %534 : vector<16x128xf32>
    %545 = arith.addf %543, %544 : vector<16x128xf32>
    %546 = math.tanh %545 : vector<16x128xf32>
    %547 = arith.mulf %542, %546 : vector<16x128xf32>
    %c14_i32 = arith.constant 14 : i32
    %548 = arith.truncf %547 : vector<16x128xf32> to vector<16x128xbf16>
    %cst_181 = arith.constant dense<0.000000e+00> : vector<16x512xf32>
    %549 = tpu.matmul %548, %1, %cst_181 {dimension_numbers = #tpu.dot_dimension_numbers<[1], [0], [0], [1], [0, 0, 1, 1], [], []>} : vector<16x128xbf16>, vector<128x512xbf16>, vector<16x512xf32> -> vector<16x512xf32>
    %550 = arith.index_cast %c14_i32 : i32 to index
    %c0_182 = arith.constant 0 : index
    %c0_183 = arith.constant 0 : index
    %551 = vector.load %arg10[%550, %c0_182, %c0_183] : memref<28x16x512xbf16, #tpu.memory_space<vmem>>, vector<1x16x512xbf16>
    %552 = vector.shape_cast %551 : vector<1x16x512xbf16> to vector<16x512xbf16>
    %553 = arith.extf %552 : vector<16x512xbf16> to vector<16x512xf32>
    %554 = arith.addf %549, %553 : vector<16x512xf32>
    %555 = vector.extract_strided_slice %554 {offsets = [0, 0], sizes = [16, 128], strides = [1, 1]} : vector<16x512xf32> to vector<16x128xf32>
    %cst_184 = arith.constant 5.000000e-01 : f32
    %556 = vector.broadcast %cst_184 : f32 to vector<16x128xf32>
    %557 = arith.mulf %556, %555 : vector<16x128xf32>
    %558 = math.tanh %557 : vector<16x128xf32>
    %cst_185 = arith.constant 5.000000e-01 : f32
    %559 = vector.broadcast %cst_185 : f32 to vector<16x128xf32>
    %560 = arith.mulf %559, %558 : vector<16x128xf32>
    %cst_186 = arith.constant 5.000000e-01 : f32
    %561 = vector.broadcast %cst_186 : f32 to vector<16x128xf32>
    %562 = arith.addf %560, %561 : vector<16x128xf32>
    %563 = vector.extract_strided_slice %554 {offsets = [0, 128], sizes = [16, 128], strides = [1, 1]} : vector<16x512xf32> to vector<16x128xf32>
    %cst_187 = arith.constant 5.000000e-01 : f32
    %564 = vector.broadcast %cst_187 : f32 to vector<16x128xf32>
    %565 = arith.mulf %564, %563 : vector<16x128xf32>
    %566 = math.tanh %565 : vector<16x128xf32>
    %cst_188 = arith.constant 5.000000e-01 : f32
    %567 = vector.broadcast %cst_188 : f32 to vector<16x128xf32>
    %568 = arith.mulf %567, %566 : vector<16x128xf32>
    %cst_189 = arith.constant 5.000000e-01 : f32
    %569 = vector.broadcast %cst_189 : f32 to vector<16x128xf32>
    %570 = arith.addf %568, %569 : vector<16x128xf32>
    %571 = vector.extract_strided_slice %554 {offsets = [0, 256], sizes = [16, 128], strides = [1, 1]} : vector<16x512xf32> to vector<16x128xf32>
    %572 = math.tanh %571 : vector<16x128xf32>
    %573 = vector.extract_strided_slice %554 {offsets = [0, 384], sizes = [16, 128], strides = [1, 1]} : vector<16x512xf32> to vector<16x128xf32>
    %cst_190 = arith.constant 5.000000e-01 : f32
    %574 = vector.broadcast %cst_190 : f32 to vector<16x128xf32>
    %575 = arith.mulf %574, %573 : vector<16x128xf32>
    %576 = math.tanh %575 : vector<16x128xf32>
    %cst_191 = arith.constant 5.000000e-01 : f32
    %577 = vector.broadcast %cst_191 : f32 to vector<16x128xf32>
    %578 = arith.mulf %577, %576 : vector<16x128xf32>
    %cst_192 = arith.constant 5.000000e-01 : f32
    %579 = vector.broadcast %cst_192 : f32 to vector<16x128xf32>
    %580 = arith.addf %578, %579 : vector<16x128xf32>
    %581 = arith.mulf %570, %545 : vector<16x128xf32>
    %582 = arith.mulf %562, %572 : vector<16x128xf32>
    %583 = arith.addf %581, %582 : vector<16x128xf32>
    %584 = math.tanh %583 : vector<16x128xf32>
    %585 = arith.mulf %580, %584 : vector<16x128xf32>
    %c15_i32 = arith.constant 15 : i32
    %586 = arith.truncf %585 : vector<16x128xf32> to vector<16x128xbf16>
    %cst_193 = arith.constant dense<0.000000e+00> : vector<16x512xf32>
    %587 = tpu.matmul %586, %1, %cst_193 {dimension_numbers = #tpu.dot_dimension_numbers<[1], [0], [0], [1], [0, 0, 1, 1], [], []>} : vector<16x128xbf16>, vector<128x512xbf16>, vector<16x512xf32> -> vector<16x512xf32>
    %588 = arith.index_cast %c15_i32 : i32 to index
    %c0_194 = arith.constant 0 : index
    %c0_195 = arith.constant 0 : index
    %589 = vector.load %arg10[%588, %c0_194, %c0_195] : memref<28x16x512xbf16, #tpu.memory_space<vmem>>, vector<1x16x512xbf16>
    %590 = vector.shape_cast %589 : vector<1x16x512xbf16> to vector<16x512xbf16>
    %591 = arith.extf %590 : vector<16x512xbf16> to vector<16x512xf32>
    %592 = arith.addf %587, %591 : vector<16x512xf32>
    %593 = vector.extract_strided_slice %592 {offsets = [0, 0], sizes = [16, 128], strides = [1, 1]} : vector<16x512xf32> to vector<16x128xf32>
    %cst_196 = arith.constant 5.000000e-01 : f32
    %594 = vector.broadcast %cst_196 : f32 to vector<16x128xf32>
    %595 = arith.mulf %594, %593 : vector<16x128xf32>
    %596 = math.tanh %595 : vector<16x128xf32>
    %cst_197 = arith.constant 5.000000e-01 : f32
    %597 = vector.broadcast %cst_197 : f32 to vector<16x128xf32>
    %598 = arith.mulf %597, %596 : vector<16x128xf32>
    %cst_198 = arith.constant 5.000000e-01 : f32
    %599 = vector.broadcast %cst_198 : f32 to vector<16x128xf32>
    %600 = arith.addf %598, %599 : vector<16x128xf32>
    %601 = vector.extract_strided_slice %592 {offsets = [0, 128], sizes = [16, 128], strides = [1, 1]} : vector<16x512xf32> to vector<16x128xf32>
    %cst_199 = arith.constant 5.000000e-01 : f32
    %602 = vector.broadcast %cst_199 : f32 to vector<16x128xf32>
    %603 = arith.mulf %602, %601 : vector<16x128xf32>
    %604 = math.tanh %603 : vector<16x128xf32>
    %cst_200 = arith.constant 5.000000e-01 : f32
    %605 = vector.broadcast %cst_200 : f32 to vector<16x128xf32>
    %606 = arith.mulf %605, %604 : vector<16x128xf32>
    %cst_201 = arith.constant 5.000000e-01 : f32
    %607 = vector.broadcast %cst_201 : f32 to vector<16x128xf32>
    %608 = arith.addf %606, %607 : vector<16x128xf32>
    %609 = vector.extract_strided_slice %592 {offsets = [0, 256], sizes = [16, 128], strides = [1, 1]} : vector<16x512xf32> to vector<16x128xf32>
    %610 = math.tanh %609 : vector<16x128xf32>
    %611 = vector.extract_strided_slice %592 {offsets = [0, 384], sizes = [16, 128], strides = [1, 1]} : vector<16x512xf32> to vector<16x128xf32>
    %cst_202 = arith.constant 5.000000e-01 : f32
    %612 = vector.broadcast %cst_202 : f32 to vector<16x128xf32>
    %613 = arith.mulf %612, %611 : vector<16x128xf32>
    %614 = math.tanh %613 : vector<16x128xf32>
    %cst_203 = arith.constant 5.000000e-01 : f32
    %615 = vector.broadcast %cst_203 : f32 to vector<16x128xf32>
    %616 = arith.mulf %615, %614 : vector<16x128xf32>
    %cst_204 = arith.constant 5.000000e-01 : f32
    %617 = vector.broadcast %cst_204 : f32 to vector<16x128xf32>
    %618 = arith.addf %616, %617 : vector<16x128xf32>
    %619 = arith.mulf %608, %583 : vector<16x128xf32>
    %620 = arith.mulf %600, %610 : vector<16x128xf32>
    %621 = arith.addf %619, %620 : vector<16x128xf32>
    %622 = math.tanh %621 : vector<16x128xf32>
    %623 = arith.mulf %618, %622 : vector<16x128xf32>
    %c16_i32 = arith.constant 16 : i32
    %624 = arith.truncf %623 : vector<16x128xf32> to vector<16x128xbf16>
    %cst_205 = arith.constant dense<0.000000e+00> : vector<16x512xf32>
    %625 = tpu.matmul %624, %1, %cst_205 {dimension_numbers = #tpu.dot_dimension_numbers<[1], [0], [0], [1], [0, 0, 1, 1], [], []>} : vector<16x128xbf16>, vector<128x512xbf16>, vector<16x512xf32> -> vector<16x512xf32>
    %626 = arith.index_cast %c16_i32 : i32 to index
    %c0_206 = arith.constant 0 : index
    %c0_207 = arith.constant 0 : index
    %627 = vector.load %arg10[%626, %c0_206, %c0_207] : memref<28x16x512xbf16, #tpu.memory_space<vmem>>, vector<1x16x512xbf16>
    %628 = vector.shape_cast %627 : vector<1x16x512xbf16> to vector<16x512xbf16>
    %629 = arith.extf %628 : vector<16x512xbf16> to vector<16x512xf32>
    %630 = arith.addf %625, %629 : vector<16x512xf32>
    %631 = vector.extract_strided_slice %630 {offsets = [0, 0], sizes = [16, 128], strides = [1, 1]} : vector<16x512xf32> to vector<16x128xf32>
    %cst_208 = arith.constant 5.000000e-01 : f32
    %632 = vector.broadcast %cst_208 : f32 to vector<16x128xf32>
    %633 = arith.mulf %632, %631 : vector<16x128xf32>
    %634 = math.tanh %633 : vector<16x128xf32>
    %cst_209 = arith.constant 5.000000e-01 : f32
    %635 = vector.broadcast %cst_209 : f32 to vector<16x128xf32>
    %636 = arith.mulf %635, %634 : vector<16x128xf32>
    %cst_210 = arith.constant 5.000000e-01 : f32
    %637 = vector.broadcast %cst_210 : f32 to vector<16x128xf32>
    %638 = arith.addf %636, %637 : vector<16x128xf32>
    %639 = vector.extract_strided_slice %630 {offsets = [0, 128], sizes = [16, 128], strides = [1, 1]} : vector<16x512xf32> to vector<16x128xf32>
    %cst_211 = arith.constant 5.000000e-01 : f32
    %640 = vector.broadcast %cst_211 : f32 to vector<16x128xf32>
    %641 = arith.mulf %640, %639 : vector<16x128xf32>
    %642 = math.tanh %641 : vector<16x128xf32>
    %cst_212 = arith.constant 5.000000e-01 : f32
    %643 = vector.broadcast %cst_212 : f32 to vector<16x128xf32>
    %644 = arith.mulf %643, %642 : vector<16x128xf32>
    %cst_213 = arith.constant 5.000000e-01 : f32
    %645 = vector.broadcast %cst_213 : f32 to vector<16x128xf32>
    %646 = arith.addf %644, %645 : vector<16x128xf32>
    %647 = vector.extract_strided_slice %630 {offsets = [0, 256], sizes = [16, 128], strides = [1, 1]} : vector<16x512xf32> to vector<16x128xf32>
    %648 = math.tanh %647 : vector<16x128xf32>
    %649 = vector.extract_strided_slice %630 {offsets = [0, 384], sizes = [16, 128], strides = [1, 1]} : vector<16x512xf32> to vector<16x128xf32>
    %cst_214 = arith.constant 5.000000e-01 : f32
    %650 = vector.broadcast %cst_214 : f32 to vector<16x128xf32>
    %651 = arith.mulf %650, %649 : vector<16x128xf32>
    %652 = math.tanh %651 : vector<16x128xf32>
    %cst_215 = arith.constant 5.000000e-01 : f32
    %653 = vector.broadcast %cst_215 : f32 to vector<16x128xf32>
    %654 = arith.mulf %653, %652 : vector<16x128xf32>
    %cst_216 = arith.constant 5.000000e-01 : f32
    %655 = vector.broadcast %cst_216 : f32 to vector<16x128xf32>
    %656 = arith.addf %654, %655 : vector<16x128xf32>
    %657 = arith.mulf %646, %621 : vector<16x128xf32>
    %658 = arith.mulf %638, %648 : vector<16x128xf32>
    %659 = arith.addf %657, %658 : vector<16x128xf32>
    %660 = math.tanh %659 : vector<16x128xf32>
    %661 = arith.mulf %656, %660 : vector<16x128xf32>
    %c17_i32 = arith.constant 17 : i32
    %662 = arith.truncf %661 : vector<16x128xf32> to vector<16x128xbf16>
    %cst_217 = arith.constant dense<0.000000e+00> : vector<16x512xf32>
    %663 = tpu.matmul %662, %1, %cst_217 {dimension_numbers = #tpu.dot_dimension_numbers<[1], [0], [0], [1], [0, 0, 1, 1], [], []>} : vector<16x128xbf16>, vector<128x512xbf16>, vector<16x512xf32> -> vector<16x512xf32>
    %664 = arith.index_cast %c17_i32 : i32 to index
    %c0_218 = arith.constant 0 : index
    %c0_219 = arith.constant 0 : index
    %665 = vector.load %arg10[%664, %c0_218, %c0_219] : memref<28x16x512xbf16, #tpu.memory_space<vmem>>, vector<1x16x512xbf16>
    %666 = vector.shape_cast %665 : vector<1x16x512xbf16> to vector<16x512xbf16>
    %667 = arith.extf %666 : vector<16x512xbf16> to vector<16x512xf32>
    %668 = arith.addf %663, %667 : vector<16x512xf32>
    %669 = vector.extract_strided_slice %668 {offsets = [0, 0], sizes = [16, 128], strides = [1, 1]} : vector<16x512xf32> to vector<16x128xf32>
    %cst_220 = arith.constant 5.000000e-01 : f32
    %670 = vector.broadcast %cst_220 : f32 to vector<16x128xf32>
    %671 = arith.mulf %670, %669 : vector<16x128xf32>
    %672 = math.tanh %671 : vector<16x128xf32>
    %cst_221 = arith.constant 5.000000e-01 : f32
    %673 = vector.broadcast %cst_221 : f32 to vector<16x128xf32>
    %674 = arith.mulf %673, %672 : vector<16x128xf32>
    %cst_222 = arith.constant 5.000000e-01 : f32
    %675 = vector.broadcast %cst_222 : f32 to vector<16x128xf32>
    %676 = arith.addf %674, %675 : vector<16x128xf32>
    %677 = vector.extract_strided_slice %668 {offsets = [0, 128], sizes = [16, 128], strides = [1, 1]} : vector<16x512xf32> to vector<16x128xf32>
    %cst_223 = arith.constant 5.000000e-01 : f32
    %678 = vector.broadcast %cst_223 : f32 to vector<16x128xf32>
    %679 = arith.mulf %678, %677 : vector<16x128xf32>
    %680 = math.tanh %679 : vector<16x128xf32>
    %cst_224 = arith.constant 5.000000e-01 : f32
    %681 = vector.broadcast %cst_224 : f32 to vector<16x128xf32>
    %682 = arith.mulf %681, %680 : vector<16x128xf32>
    %cst_225 = arith.constant 5.000000e-01 : f32
    %683 = vector.broadcast %cst_225 : f32 to vector<16x128xf32>
    %684 = arith.addf %682, %683 : vector<16x128xf32>
    %685 = vector.extract_strided_slice %668 {offsets = [0, 256], sizes = [16, 128], strides = [1, 1]} : vector<16x512xf32> to vector<16x128xf32>
    %686 = math.tanh %685 : vector<16x128xf32>
    %687 = vector.extract_strided_slice %668 {offsets = [0, 384], sizes = [16, 128], strides = [1, 1]} : vector<16x512xf32> to vector<16x128xf32>
    %cst_226 = arith.constant 5.000000e-01 : f32
    %688 = vector.broadcast %cst_226 : f32 to vector<16x128xf32>
    %689 = arith.mulf %688, %687 : vector<16x128xf32>
    %690 = math.tanh %689 : vector<16x128xf32>
    %cst_227 = arith.constant 5.000000e-01 : f32
    %691 = vector.broadcast %cst_227 : f32 to vector<16x128xf32>
    %692 = arith.mulf %691, %690 : vector<16x128xf32>
    %cst_228 = arith.constant 5.000000e-01 : f32
    %693 = vector.broadcast %cst_228 : f32 to vector<16x128xf32>
    %694 = arith.addf %692, %693 : vector<16x128xf32>
    %695 = arith.mulf %684, %659 : vector<16x128xf32>
    %696 = arith.mulf %676, %686 : vector<16x128xf32>
    %697 = arith.addf %695, %696 : vector<16x128xf32>
    %698 = math.tanh %697 : vector<16x128xf32>
    %699 = arith.mulf %694, %698 : vector<16x128xf32>
    %c18_i32 = arith.constant 18 : i32
    %700 = arith.truncf %699 : vector<16x128xf32> to vector<16x128xbf16>
    %cst_229 = arith.constant dense<0.000000e+00> : vector<16x512xf32>
    %701 = tpu.matmul %700, %1, %cst_229 {dimension_numbers = #tpu.dot_dimension_numbers<[1], [0], [0], [1], [0, 0, 1, 1], [], []>} : vector<16x128xbf16>, vector<128x512xbf16>, vector<16x512xf32> -> vector<16x512xf32>
    %702 = arith.index_cast %c18_i32 : i32 to index
    %c0_230 = arith.constant 0 : index
    %c0_231 = arith.constant 0 : index
    %703 = vector.load %arg10[%702, %c0_230, %c0_231] : memref<28x16x512xbf16, #tpu.memory_space<vmem>>, vector<1x16x512xbf16>
    %704 = vector.shape_cast %703 : vector<1x16x512xbf16> to vector<16x512xbf16>
    %705 = arith.extf %704 : vector<16x512xbf16> to vector<16x512xf32>
    %706 = arith.addf %701, %705 : vector<16x512xf32>
    %707 = vector.extract_strided_slice %706 {offsets = [0, 0], sizes = [16, 128], strides = [1, 1]} : vector<16x512xf32> to vector<16x128xf32>
    %cst_232 = arith.constant 5.000000e-01 : f32
    %708 = vector.broadcast %cst_232 : f32 to vector<16x128xf32>
    %709 = arith.mulf %708, %707 : vector<16x128xf32>
    %710 = math.tanh %709 : vector<16x128xf32>
    %cst_233 = arith.constant 5.000000e-01 : f32
    %711 = vector.broadcast %cst_233 : f32 to vector<16x128xf32>
    %712 = arith.mulf %711, %710 : vector<16x128xf32>
    %cst_234 = arith.constant 5.000000e-01 : f32
    %713 = vector.broadcast %cst_234 : f32 to vector<16x128xf32>
    %714 = arith.addf %712, %713 : vector<16x128xf32>
    %715 = vector.extract_strided_slice %706 {offsets = [0, 128], sizes = [16, 128], strides = [1, 1]} : vector<16x512xf32> to vector<16x128xf32>
    %cst_235 = arith.constant 5.000000e-01 : f32
    %716 = vector.broadcast %cst_235 : f32 to vector<16x128xf32>
    %717 = arith.mulf %716, %715 : vector<16x128xf32>
    %718 = math.tanh %717 : vector<16x128xf32>
    %cst_236 = arith.constant 5.000000e-01 : f32
    %719 = vector.broadcast %cst_236 : f32 to vector<16x128xf32>
    %720 = arith.mulf %719, %718 : vector<16x128xf32>
    %cst_237 = arith.constant 5.000000e-01 : f32
    %721 = vector.broadcast %cst_237 : f32 to vector<16x128xf32>
    %722 = arith.addf %720, %721 : vector<16x128xf32>
    %723 = vector.extract_strided_slice %706 {offsets = [0, 256], sizes = [16, 128], strides = [1, 1]} : vector<16x512xf32> to vector<16x128xf32>
    %724 = math.tanh %723 : vector<16x128xf32>
    %725 = vector.extract_strided_slice %706 {offsets = [0, 384], sizes = [16, 128], strides = [1, 1]} : vector<16x512xf32> to vector<16x128xf32>
    %cst_238 = arith.constant 5.000000e-01 : f32
    %726 = vector.broadcast %cst_238 : f32 to vector<16x128xf32>
    %727 = arith.mulf %726, %725 : vector<16x128xf32>
    %728 = math.tanh %727 : vector<16x128xf32>
    %cst_239 = arith.constant 5.000000e-01 : f32
    %729 = vector.broadcast %cst_239 : f32 to vector<16x128xf32>
    %730 = arith.mulf %729, %728 : vector<16x128xf32>
    %cst_240 = arith.constant 5.000000e-01 : f32
    %731 = vector.broadcast %cst_240 : f32 to vector<16x128xf32>
    %732 = arith.addf %730, %731 : vector<16x128xf32>
    %733 = arith.mulf %722, %697 : vector<16x128xf32>
    %734 = arith.mulf %714, %724 : vector<16x128xf32>
    %735 = arith.addf %733, %734 : vector<16x128xf32>
    %736 = math.tanh %735 : vector<16x128xf32>
    %737 = arith.mulf %732, %736 : vector<16x128xf32>
    %c19_i32 = arith.constant 19 : i32
    %738 = arith.truncf %737 : vector<16x128xf32> to vector<16x128xbf16>
    %cst_241 = arith.constant dense<0.000000e+00> : vector<16x512xf32>
    %739 = tpu.matmul %738, %1, %cst_241 {dimension_numbers = #tpu.dot_dimension_numbers<[1], [0], [0], [1], [0, 0, 1, 1], [], []>} : vector<16x128xbf16>, vector<128x512xbf16>, vector<16x512xf32> -> vector<16x512xf32>
    %740 = arith.index_cast %c19_i32 : i32 to index
    %c0_242 = arith.constant 0 : index
    %c0_243 = arith.constant 0 : index
    %741 = vector.load %arg10[%740, %c0_242, %c0_243] : memref<28x16x512xbf16, #tpu.memory_space<vmem>>, vector<1x16x512xbf16>
    %742 = vector.shape_cast %741 : vector<1x16x512xbf16> to vector<16x512xbf16>
    %743 = arith.extf %742 : vector<16x512xbf16> to vector<16x512xf32>
    %744 = arith.addf %739, %743 : vector<16x512xf32>
    %745 = vector.extract_strided_slice %744 {offsets = [0, 0], sizes = [16, 128], strides = [1, 1]} : vector<16x512xf32> to vector<16x128xf32>
    %cst_244 = arith.constant 5.000000e-01 : f32
    %746 = vector.broadcast %cst_244 : f32 to vector<16x128xf32>
    %747 = arith.mulf %746, %745 : vector<16x128xf32>
    %748 = math.tanh %747 : vector<16x128xf32>
    %cst_245 = arith.constant 5.000000e-01 : f32
    %749 = vector.broadcast %cst_245 : f32 to vector<16x128xf32>
    %750 = arith.mulf %749, %748 : vector<16x128xf32>
    %cst_246 = arith.constant 5.000000e-01 : f32
    %751 = vector.broadcast %cst_246 : f32 to vector<16x128xf32>
    %752 = arith.addf %750, %751 : vector<16x128xf32>
    %753 = vector.extract_strided_slice %744 {offsets = [0, 128], sizes = [16, 128], strides = [1, 1]} : vector<16x512xf32> to vector<16x128xf32>
    %cst_247 = arith.constant 5.000000e-01 : f32
    %754 = vector.broadcast %cst_247 : f32 to vector<16x128xf32>
    %755 = arith.mulf %754, %753 : vector<16x128xf32>
    %756 = math.tanh %755 : vector<16x128xf32>
    %cst_248 = arith.constant 5.000000e-01 : f32
    %757 = vector.broadcast %cst_248 : f32 to vector<16x128xf32>
    %758 = arith.mulf %757, %756 : vector<16x128xf32>
    %cst_249 = arith.constant 5.000000e-01 : f32
    %759 = vector.broadcast %cst_249 : f32 to vector<16x128xf32>
    %760 = arith.addf %758, %759 : vector<16x128xf32>
    %761 = vector.extract_strided_slice %744 {offsets = [0, 256], sizes = [16, 128], strides = [1, 1]} : vector<16x512xf32> to vector<16x128xf32>
    %762 = math.tanh %761 : vector<16x128xf32>
    %763 = vector.extract_strided_slice %744 {offsets = [0, 384], sizes = [16, 128], strides = [1, 1]} : vector<16x512xf32> to vector<16x128xf32>
    %cst_250 = arith.constant 5.000000e-01 : f32
    %764 = vector.broadcast %cst_250 : f32 to vector<16x128xf32>
    %765 = arith.mulf %764, %763 : vector<16x128xf32>
    %766 = math.tanh %765 : vector<16x128xf32>
    %cst_251 = arith.constant 5.000000e-01 : f32
    %767 = vector.broadcast %cst_251 : f32 to vector<16x128xf32>
    %768 = arith.mulf %767, %766 : vector<16x128xf32>
    %cst_252 = arith.constant 5.000000e-01 : f32
    %769 = vector.broadcast %cst_252 : f32 to vector<16x128xf32>
    %770 = arith.addf %768, %769 : vector<16x128xf32>
    %771 = arith.mulf %760, %735 : vector<16x128xf32>
    %772 = arith.mulf %752, %762 : vector<16x128xf32>
    %773 = arith.addf %771, %772 : vector<16x128xf32>
    %774 = math.tanh %773 : vector<16x128xf32>
    %775 = arith.mulf %770, %774 : vector<16x128xf32>
    %c20_i32 = arith.constant 20 : i32
    %776 = arith.truncf %775 : vector<16x128xf32> to vector<16x128xbf16>
    %cst_253 = arith.constant dense<0.000000e+00> : vector<16x512xf32>
    %777 = tpu.matmul %776, %1, %cst_253 {dimension_numbers = #tpu.dot_dimension_numbers<[1], [0], [0], [1], [0, 0, 1, 1], [], []>} : vector<16x128xbf16>, vector<128x512xbf16>, vector<16x512xf32> -> vector<16x512xf32>
    %778 = arith.index_cast %c20_i32 : i32 to index
    %c0_254 = arith.constant 0 : index
    %c0_255 = arith.constant 0 : index
    %779 = vector.load %arg10[%778, %c0_254, %c0_255] : memref<28x16x512xbf16, #tpu.memory_space<vmem>>, vector<1x16x512xbf16>
    %780 = vector.shape_cast %779 : vector<1x16x512xbf16> to vector<16x512xbf16>
    %781 = arith.extf %780 : vector<16x512xbf16> to vector<16x512xf32>
    %782 = arith.addf %777, %781 : vector<16x512xf32>
    %783 = vector.extract_strided_slice %782 {offsets = [0, 0], sizes = [16, 128], strides = [1, 1]} : vector<16x512xf32> to vector<16x128xf32>
    %cst_256 = arith.constant 5.000000e-01 : f32
    %784 = vector.broadcast %cst_256 : f32 to vector<16x128xf32>
    %785 = arith.mulf %784, %783 : vector<16x128xf32>
    %786 = math.tanh %785 : vector<16x128xf32>
    %cst_257 = arith.constant 5.000000e-01 : f32
    %787 = vector.broadcast %cst_257 : f32 to vector<16x128xf32>
    %788 = arith.mulf %787, %786 : vector<16x128xf32>
    %cst_258 = arith.constant 5.000000e-01 : f32
    %789 = vector.broadcast %cst_258 : f32 to vector<16x128xf32>
    %790 = arith.addf %788, %789 : vector<16x128xf32>
    %791 = vector.extract_strided_slice %782 {offsets = [0, 128], sizes = [16, 128], strides = [1, 1]} : vector<16x512xf32> to vector<16x128xf32>
    %cst_259 = arith.constant 5.000000e-01 : f32
    %792 = vector.broadcast %cst_259 : f32 to vector<16x128xf32>
    %793 = arith.mulf %792, %791 : vector<16x128xf32>
    %794 = math.tanh %793 : vector<16x128xf32>
    %cst_260 = arith.constant 5.000000e-01 : f32
    %795 = vector.broadcast %cst_260 : f32 to vector<16x128xf32>
    %796 = arith.mulf %795, %794 : vector<16x128xf32>
    %cst_261 = arith.constant 5.000000e-01 : f32
    %797 = vector.broadcast %cst_261 : f32 to vector<16x128xf32>
    %798 = arith.addf %796, %797 : vector<16x128xf32>
    %799 = vector.extract_strided_slice %782 {offsets = [0, 256], sizes = [16, 128], strides = [1, 1]} : vector<16x512xf32> to vector<16x128xf32>
    %800 = math.tanh %799 : vector<16x128xf32>
    %801 = vector.extract_strided_slice %782 {offsets = [0, 384], sizes = [16, 128], strides = [1, 1]} : vector<16x512xf32> to vector<16x128xf32>
    %cst_262 = arith.constant 5.000000e-01 : f32
    %802 = vector.broadcast %cst_262 : f32 to vector<16x128xf32>
    %803 = arith.mulf %802, %801 : vector<16x128xf32>
    %804 = math.tanh %803 : vector<16x128xf32>
    %cst_263 = arith.constant 5.000000e-01 : f32
    %805 = vector.broadcast %cst_263 : f32 to vector<16x128xf32>
    %806 = arith.mulf %805, %804 : vector<16x128xf32>
    %cst_264 = arith.constant 5.000000e-01 : f32
    %807 = vector.broadcast %cst_264 : f32 to vector<16x128xf32>
    %808 = arith.addf %806, %807 : vector<16x128xf32>
    %809 = arith.mulf %798, %773 : vector<16x128xf32>
    %810 = arith.mulf %790, %800 : vector<16x128xf32>
    %811 = arith.addf %809, %810 : vector<16x128xf32>
    %812 = math.tanh %811 : vector<16x128xf32>
    %813 = arith.mulf %808, %812 : vector<16x128xf32>
    %c21_i32 = arith.constant 21 : i32
    %814 = arith.truncf %813 : vector<16x128xf32> to vector<16x128xbf16>
    %cst_265 = arith.constant dense<0.000000e+00> : vector<16x512xf32>
    %815 = tpu.matmul %814, %1, %cst_265 {dimension_numbers = #tpu.dot_dimension_numbers<[1], [0], [0], [1], [0, 0, 1, 1], [], []>} : vector<16x128xbf16>, vector<128x512xbf16>, vector<16x512xf32> -> vector<16x512xf32>
    %816 = arith.index_cast %c21_i32 : i32 to index
    %c0_266 = arith.constant 0 : index
    %c0_267 = arith.constant 0 : index
    %817 = vector.load %arg10[%816, %c0_266, %c0_267] : memref<28x16x512xbf16, #tpu.memory_space<vmem>>, vector<1x16x512xbf16>
    %818 = vector.shape_cast %817 : vector<1x16x512xbf16> to vector<16x512xbf16>
    %819 = arith.extf %818 : vector<16x512xbf16> to vector<16x512xf32>
    %820 = arith.addf %815, %819 : vector<16x512xf32>
    %821 = vector.extract_strided_slice %820 {offsets = [0, 0], sizes = [16, 128], strides = [1, 1]} : vector<16x512xf32> to vector<16x128xf32>
    %cst_268 = arith.constant 5.000000e-01 : f32
    %822 = vector.broadcast %cst_268 : f32 to vector<16x128xf32>
    %823 = arith.mulf %822, %821 : vector<16x128xf32>
    %824 = math.tanh %823 : vector<16x128xf32>
    %cst_269 = arith.constant 5.000000e-01 : f32
    %825 = vector.broadcast %cst_269 : f32 to vector<16x128xf32>
    %826 = arith.mulf %825, %824 : vector<16x128xf32>
    %cst_270 = arith.constant 5.000000e-01 : f32
    %827 = vector.broadcast %cst_270 : f32 to vector<16x128xf32>
    %828 = arith.addf %826, %827 : vector<16x128xf32>
    %829 = vector.extract_strided_slice %820 {offsets = [0, 128], sizes = [16, 128], strides = [1, 1]} : vector<16x512xf32> to vector<16x128xf32>
    %cst_271 = arith.constant 5.000000e-01 : f32
    %830 = vector.broadcast %cst_271 : f32 to vector<16x128xf32>
    %831 = arith.mulf %830, %829 : vector<16x128xf32>
    %832 = math.tanh %831 : vector<16x128xf32>
    %cst_272 = arith.constant 5.000000e-01 : f32
    %833 = vector.broadcast %cst_272 : f32 to vector<16x128xf32>
    %834 = arith.mulf %833, %832 : vector<16x128xf32>
    %cst_273 = arith.constant 5.000000e-01 : f32
    %835 = vector.broadcast %cst_273 : f32 to vector<16x128xf32>
    %836 = arith.addf %834, %835 : vector<16x128xf32>
    %837 = vector.extract_strided_slice %820 {offsets = [0, 256], sizes = [16, 128], strides = [1, 1]} : vector<16x512xf32> to vector<16x128xf32>
    %838 = math.tanh %837 : vector<16x128xf32>
    %839 = vector.extract_strided_slice %820 {offsets = [0, 384], sizes = [16, 128], strides = [1, 1]} : vector<16x512xf32> to vector<16x128xf32>
    %cst_274 = arith.constant 5.000000e-01 : f32
    %840 = vector.broadcast %cst_274 : f32 to vector<16x128xf32>
    %841 = arith.mulf %840, %839 : vector<16x128xf32>
    %842 = math.tanh %841 : vector<16x128xf32>
    %cst_275 = arith.constant 5.000000e-01 : f32
    %843 = vector.broadcast %cst_275 : f32 to vector<16x128xf32>
    %844 = arith.mulf %843, %842 : vector<16x128xf32>
    %cst_276 = arith.constant 5.000000e-01 : f32
    %845 = vector.broadcast %cst_276 : f32 to vector<16x128xf32>
    %846 = arith.addf %844, %845 : vector<16x128xf32>
    %847 = arith.mulf %836, %811 : vector<16x128xf32>
    %848 = arith.mulf %828, %838 : vector<16x128xf32>
    %849 = arith.addf %847, %848 : vector<16x128xf32>
    %850 = math.tanh %849 : vector<16x128xf32>
    %851 = arith.mulf %846, %850 : vector<16x128xf32>
    %c22_i32 = arith.constant 22 : i32
    %852 = arith.truncf %851 : vector<16x128xf32> to vector<16x128xbf16>
    %cst_277 = arith.constant dense<0.000000e+00> : vector<16x512xf32>
    %853 = tpu.matmul %852, %1, %cst_277 {dimension_numbers = #tpu.dot_dimension_numbers<[1], [0], [0], [1], [0, 0, 1, 1], [], []>} : vector<16x128xbf16>, vector<128x512xbf16>, vector<16x512xf32> -> vector<16x512xf32>
    %854 = arith.index_cast %c22_i32 : i32 to index
    %c0_278 = arith.constant 0 : index
    %c0_279 = arith.constant 0 : index
    %855 = vector.load %arg10[%854, %c0_278, %c0_279] : memref<28x16x512xbf16, #tpu.memory_space<vmem>>, vector<1x16x512xbf16>
    %856 = vector.shape_cast %855 : vector<1x16x512xbf16> to vector<16x512xbf16>
    %857 = arith.extf %856 : vector<16x512xbf16> to vector<16x512xf32>
    %858 = arith.addf %853, %857 : vector<16x512xf32>
    %859 = vector.extract_strided_slice %858 {offsets = [0, 0], sizes = [16, 128], strides = [1, 1]} : vector<16x512xf32> to vector<16x128xf32>
    %cst_280 = arith.constant 5.000000e-01 : f32
    %860 = vector.broadcast %cst_280 : f32 to vector<16x128xf32>
    %861 = arith.mulf %860, %859 : vector<16x128xf32>
    %862 = math.tanh %861 : vector<16x128xf32>
    %cst_281 = arith.constant 5.000000e-01 : f32
    %863 = vector.broadcast %cst_281 : f32 to vector<16x128xf32>
    %864 = arith.mulf %863, %862 : vector<16x128xf32>
    %cst_282 = arith.constant 5.000000e-01 : f32
    %865 = vector.broadcast %cst_282 : f32 to vector<16x128xf32>
    %866 = arith.addf %864, %865 : vector<16x128xf32>
    %867 = vector.extract_strided_slice %858 {offsets = [0, 128], sizes = [16, 128], strides = [1, 1]} : vector<16x512xf32> to vector<16x128xf32>
    %cst_283 = arith.constant 5.000000e-01 : f32
    %868 = vector.broadcast %cst_283 : f32 to vector<16x128xf32>
    %869 = arith.mulf %868, %867 : vector<16x128xf32>
    %870 = math.tanh %869 : vector<16x128xf32>
    %cst_284 = arith.constant 5.000000e-01 : f32
    %871 = vector.broadcast %cst_284 : f32 to vector<16x128xf32>
    %872 = arith.mulf %871, %870 : vector<16x128xf32>
    %cst_285 = arith.constant 5.000000e-01 : f32
    %873 = vector.broadcast %cst_285 : f32 to vector<16x128xf32>
    %874 = arith.addf %872, %873 : vector<16x128xf32>
    %875 = vector.extract_strided_slice %858 {offsets = [0, 256], sizes = [16, 128], strides = [1, 1]} : vector<16x512xf32> to vector<16x128xf32>
    %876 = math.tanh %875 : vector<16x128xf32>
    %877 = vector.extract_strided_slice %858 {offsets = [0, 384], sizes = [16, 128], strides = [1, 1]} : vector<16x512xf32> to vector<16x128xf32>
    %cst_286 = arith.constant 5.000000e-01 : f32
    %878 = vector.broadcast %cst_286 : f32 to vector<16x128xf32>
    %879 = arith.mulf %878, %877 : vector<16x128xf32>
    %880 = math.tanh %879 : vector<16x128xf32>
    %cst_287 = arith.constant 5.000000e-01 : f32
    %881 = vector.broadcast %cst_287 : f32 to vector<16x128xf32>
    %882 = arith.mulf %881, %880 : vector<16x128xf32>
    %cst_288 = arith.constant 5.000000e-01 : f32
    %883 = vector.broadcast %cst_288 : f32 to vector<16x128xf32>
    %884 = arith.addf %882, %883 : vector<16x128xf32>
    %885 = arith.mulf %874, %849 : vector<16x128xf32>
    %886 = arith.mulf %866, %876 : vector<16x128xf32>
    %887 = arith.addf %885, %886 : vector<16x128xf32>
    %888 = math.tanh %887 : vector<16x128xf32>
    %889 = arith.mulf %884, %888 : vector<16x128xf32>
    %c23_i32 = arith.constant 23 : i32
    %890 = arith.truncf %889 : vector<16x128xf32> to vector<16x128xbf16>
    %cst_289 = arith.constant dense<0.000000e+00> : vector<16x512xf32>
    %891 = tpu.matmul %890, %1, %cst_289 {dimension_numbers = #tpu.dot_dimension_numbers<[1], [0], [0], [1], [0, 0, 1, 1], [], []>} : vector<16x128xbf16>, vector<128x512xbf16>, vector<16x512xf32> -> vector<16x512xf32>
    %892 = arith.index_cast %c23_i32 : i32 to index
    %c0_290 = arith.constant 0 : index
    %c0_291 = arith.constant 0 : index
    %893 = vector.load %arg10[%892, %c0_290, %c0_291] : memref<28x16x512xbf16, #tpu.memory_space<vmem>>, vector<1x16x512xbf16>
    %894 = vector.shape_cast %893 : vector<1x16x512xbf16> to vector<16x512xbf16>
    %895 = arith.extf %894 : vector<16x512xbf16> to vector<16x512xf32>
    %896 = arith.addf %891, %895 : vector<16x512xf32>
    %897 = vector.extract_strided_slice %896 {offsets = [0, 0], sizes = [16, 128], strides = [1, 1]} : vector<16x512xf32> to vector<16x128xf32>
    %cst_292 = arith.constant 5.000000e-01 : f32
    %898 = vector.broadcast %cst_292 : f32 to vector<16x128xf32>
    %899 = arith.mulf %898, %897 : vector<16x128xf32>
    %900 = math.tanh %899 : vector<16x128xf32>
    %cst_293 = arith.constant 5.000000e-01 : f32
    %901 = vector.broadcast %cst_293 : f32 to vector<16x128xf32>
    %902 = arith.mulf %901, %900 : vector<16x128xf32>
    %cst_294 = arith.constant 5.000000e-01 : f32
    %903 = vector.broadcast %cst_294 : f32 to vector<16x128xf32>
    %904 = arith.addf %902, %903 : vector<16x128xf32>
    %905 = vector.extract_strided_slice %896 {offsets = [0, 128], sizes = [16, 128], strides = [1, 1]} : vector<16x512xf32> to vector<16x128xf32>
    %cst_295 = arith.constant 5.000000e-01 : f32
    %906 = vector.broadcast %cst_295 : f32 to vector<16x128xf32>
    %907 = arith.mulf %906, %905 : vector<16x128xf32>
    %908 = math.tanh %907 : vector<16x128xf32>
    %cst_296 = arith.constant 5.000000e-01 : f32
    %909 = vector.broadcast %cst_296 : f32 to vector<16x128xf32>
    %910 = arith.mulf %909, %908 : vector<16x128xf32>
    %cst_297 = arith.constant 5.000000e-01 : f32
    %911 = vector.broadcast %cst_297 : f32 to vector<16x128xf32>
    %912 = arith.addf %910, %911 : vector<16x128xf32>
    %913 = vector.extract_strided_slice %896 {offsets = [0, 256], sizes = [16, 128], strides = [1, 1]} : vector<16x512xf32> to vector<16x128xf32>
    %914 = math.tanh %913 : vector<16x128xf32>
    %915 = vector.extract_strided_slice %896 {offsets = [0, 384], sizes = [16, 128], strides = [1, 1]} : vector<16x512xf32> to vector<16x128xf32>
    %cst_298 = arith.constant 5.000000e-01 : f32
    %916 = vector.broadcast %cst_298 : f32 to vector<16x128xf32>
    %917 = arith.mulf %916, %915 : vector<16x128xf32>
    %918 = math.tanh %917 : vector<16x128xf32>
    %cst_299 = arith.constant 5.000000e-01 : f32
    %919 = vector.broadcast %cst_299 : f32 to vector<16x128xf32>
    %920 = arith.mulf %919, %918 : vector<16x128xf32>
    %cst_300 = arith.constant 5.000000e-01 : f32
    %921 = vector.broadcast %cst_300 : f32 to vector<16x128xf32>
    %922 = arith.addf %920, %921 : vector<16x128xf32>
    %923 = arith.mulf %912, %887 : vector<16x128xf32>
    %924 = arith.mulf %904, %914 : vector<16x128xf32>
    %925 = arith.addf %923, %924 : vector<16x128xf32>
    %926 = math.tanh %925 : vector<16x128xf32>
    %927 = arith.mulf %922, %926 : vector<16x128xf32>
    %c24_i32 = arith.constant 24 : i32
    %928 = arith.truncf %927 : vector<16x128xf32> to vector<16x128xbf16>
    %cst_301 = arith.constant dense<0.000000e+00> : vector<16x512xf32>
    %929 = tpu.matmul %928, %1, %cst_301 {dimension_numbers = #tpu.dot_dimension_numbers<[1], [0], [0], [1], [0, 0, 1, 1], [], []>} : vector<16x128xbf16>, vector<128x512xbf16>, vector<16x512xf32> -> vector<16x512xf32>
    %930 = arith.index_cast %c24_i32 : i32 to index
    %c0_302 = arith.constant 0 : index
    %c0_303 = arith.constant 0 : index
    %931 = vector.load %arg10[%930, %c0_302, %c0_303] : memref<28x16x512xbf16, #tpu.memory_space<vmem>>, vector<1x16x512xbf16>
    %932 = vector.shape_cast %931 : vector<1x16x512xbf16> to vector<16x512xbf16>
    %933 = arith.extf %932 : vector<16x512xbf16> to vector<16x512xf32>
    %934 = arith.addf %929, %933 : vector<16x512xf32>
    %935 = vector.extract_strided_slice %934 {offsets = [0, 0], sizes = [16, 128], strides = [1, 1]} : vector<16x512xf32> to vector<16x128xf32>
    %cst_304 = arith.constant 5.000000e-01 : f32
    %936 = vector.broadcast %cst_304 : f32 to vector<16x128xf32>
    %937 = arith.mulf %936, %935 : vector<16x128xf32>
    %938 = math.tanh %937 : vector<16x128xf32>
    %cst_305 = arith.constant 5.000000e-01 : f32
    %939 = vector.broadcast %cst_305 : f32 to vector<16x128xf32>
    %940 = arith.mulf %939, %938 : vector<16x128xf32>
    %cst_306 = arith.constant 5.000000e-01 : f32
    %941 = vector.broadcast %cst_306 : f32 to vector<16x128xf32>
    %942 = arith.addf %940, %941 : vector<16x128xf32>
    %943 = vector.extract_strided_slice %934 {offsets = [0, 128], sizes = [16, 128], strides = [1, 1]} : vector<16x512xf32> to vector<16x128xf32>
    %cst_307 = arith.constant 5.000000e-01 : f32
    %944 = vector.broadcast %cst_307 : f32 to vector<16x128xf32>
    %945 = arith.mulf %944, %943 : vector<16x128xf32>
    %946 = math.tanh %945 : vector<16x128xf32>
    %cst_308 = arith.constant 5.000000e-01 : f32
    %947 = vector.broadcast %cst_308 : f32 to vector<16x128xf32>
    %948 = arith.mulf %947, %946 : vector<16x128xf32>
    %cst_309 = arith.constant 5.000000e-01 : f32
    %949 = vector.broadcast %cst_309 : f32 to vector<16x128xf32>
    %950 = arith.addf %948, %949 : vector<16x128xf32>
    %951 = vector.extract_strided_slice %934 {offsets = [0, 256], sizes = [16, 128], strides = [1, 1]} : vector<16x512xf32> to vector<16x128xf32>
    %952 = math.tanh %951 : vector<16x128xf32>
    %953 = vector.extract_strided_slice %934 {offsets = [0, 384], sizes = [16, 128], strides = [1, 1]} : vector<16x512xf32> to vector<16x128xf32>
    %cst_310 = arith.constant 5.000000e-01 : f32
    %954 = vector.broadcast %cst_310 : f32 to vector<16x128xf32>
    %955 = arith.mulf %954, %953 : vector<16x128xf32>
    %956 = math.tanh %955 : vector<16x128xf32>
    %cst_311 = arith.constant 5.000000e-01 : f32
    %957 = vector.broadcast %cst_311 : f32 to vector<16x128xf32>
    %958 = arith.mulf %957, %956 : vector<16x128xf32>
    %cst_312 = arith.constant 5.000000e-01 : f32
    %959 = vector.broadcast %cst_312 : f32 to vector<16x128xf32>
    %960 = arith.addf %958, %959 : vector<16x128xf32>
    %961 = arith.mulf %950, %925 : vector<16x128xf32>
    %962 = arith.mulf %942, %952 : vector<16x128xf32>
    %963 = arith.addf %961, %962 : vector<16x128xf32>
    %964 = math.tanh %963 : vector<16x128xf32>
    %965 = arith.mulf %960, %964 : vector<16x128xf32>
    %c25_i32 = arith.constant 25 : i32
    %966 = arith.truncf %965 : vector<16x128xf32> to vector<16x128xbf16>
    %cst_313 = arith.constant dense<0.000000e+00> : vector<16x512xf32>
    %967 = tpu.matmul %966, %1, %cst_313 {dimension_numbers = #tpu.dot_dimension_numbers<[1], [0], [0], [1], [0, 0, 1, 1], [], []>} : vector<16x128xbf16>, vector<128x512xbf16>, vector<16x512xf32> -> vector<16x512xf32>
    %968 = arith.index_cast %c25_i32 : i32 to index
    %c0_314 = arith.constant 0 : index
    %c0_315 = arith.constant 0 : index
    %969 = vector.load %arg10[%968, %c0_314, %c0_315] : memref<28x16x512xbf16, #tpu.memory_space<vmem>>, vector<1x16x512xbf16>
    %970 = vector.shape_cast %969 : vector<1x16x512xbf16> to vector<16x512xbf16>
    %971 = arith.extf %970 : vector<16x512xbf16> to vector<16x512xf32>
    %972 = arith.addf %967, %971 : vector<16x512xf32>
    %973 = vector.extract_strided_slice %972 {offsets = [0, 0], sizes = [16, 128], strides = [1, 1]} : vector<16x512xf32> to vector<16x128xf32>
    %cst_316 = arith.constant 5.000000e-01 : f32
    %974 = vector.broadcast %cst_316 : f32 to vector<16x128xf32>
    %975 = arith.mulf %974, %973 : vector<16x128xf32>
    %976 = math.tanh %975 : vector<16x128xf32>
    %cst_317 = arith.constant 5.000000e-01 : f32
    %977 = vector.broadcast %cst_317 : f32 to vector<16x128xf32>
    %978 = arith.mulf %977, %976 : vector<16x128xf32>
    %cst_318 = arith.constant 5.000000e-01 : f32
    %979 = vector.broadcast %cst_318 : f32 to vector<16x128xf32>
    %980 = arith.addf %978, %979 : vector<16x128xf32>
    %981 = vector.extract_strided_slice %972 {offsets = [0, 128], sizes = [16, 128], strides = [1, 1]} : vector<16x512xf32> to vector<16x128xf32>
    %cst_319 = arith.constant 5.000000e-01 : f32
    %982 = vector.broadcast %cst_319 : f32 to vector<16x128xf32>
    %983 = arith.mulf %982, %981 : vector<16x128xf32>
    %984 = math.tanh %983 : vector<16x128xf32>
    %cst_320 = arith.constant 5.000000e-01 : f32
    %985 = vector.broadcast %cst_320 : f32 to vector<16x128xf32>
    %986 = arith.mulf %985, %984 : vector<16x128xf32>
    %cst_321 = arith.constant 5.000000e-01 : f32
    %987 = vector.broadcast %cst_321 : f32 to vector<16x128xf32>
    %988 = arith.addf %986, %987 : vector<16x128xf32>
    %989 = vector.extract_strided_slice %972 {offsets = [0, 256], sizes = [16, 128], strides = [1, 1]} : vector<16x512xf32> to vector<16x128xf32>
    %990 = math.tanh %989 : vector<16x128xf32>
    %991 = vector.extract_strided_slice %972 {offsets = [0, 384], sizes = [16, 128], strides = [1, 1]} : vector<16x512xf32> to vector<16x128xf32>
    %cst_322 = arith.constant 5.000000e-01 : f32
    %992 = vector.broadcast %cst_322 : f32 to vector<16x128xf32>
    %993 = arith.mulf %992, %991 : vector<16x128xf32>
    %994 = math.tanh %993 : vector<16x128xf32>
    %cst_323 = arith.constant 5.000000e-01 : f32
    %995 = vector.broadcast %cst_323 : f32 to vector<16x128xf32>
    %996 = arith.mulf %995, %994 : vector<16x128xf32>
    %cst_324 = arith.constant 5.000000e-01 : f32
    %997 = vector.broadcast %cst_324 : f32 to vector<16x128xf32>
    %998 = arith.addf %996, %997 : vector<16x128xf32>
    %999 = arith.mulf %988, %963 : vector<16x128xf32>
    %1000 = arith.mulf %980, %990 : vector<16x128xf32>
    %1001 = arith.addf %999, %1000 : vector<16x128xf32>
    %1002 = math.tanh %1001 : vector<16x128xf32>
    %1003 = arith.mulf %998, %1002 : vector<16x128xf32>
    %c26_i32 = arith.constant 26 : i32
    %1004 = arith.truncf %1003 : vector<16x128xf32> to vector<16x128xbf16>
    %cst_325 = arith.constant dense<0.000000e+00> : vector<16x512xf32>
    %1005 = tpu.matmul %1004, %1, %cst_325 {dimension_numbers = #tpu.dot_dimension_numbers<[1], [0], [0], [1], [0, 0, 1, 1], [], []>} : vector<16x128xbf16>, vector<128x512xbf16>, vector<16x512xf32> -> vector<16x512xf32>
    %1006 = arith.index_cast %c26_i32 : i32 to index
    %c0_326 = arith.constant 0 : index
    %c0_327 = arith.constant 0 : index
    %1007 = vector.load %arg10[%1006, %c0_326, %c0_327] : memref<28x16x512xbf16, #tpu.memory_space<vmem>>, vector<1x16x512xbf16>
    %1008 = vector.shape_cast %1007 : vector<1x16x512xbf16> to vector<16x512xbf16>
    %1009 = arith.extf %1008 : vector<16x512xbf16> to vector<16x512xf32>
    %1010 = arith.addf %1005, %1009 : vector<16x512xf32>
    %1011 = vector.extract_strided_slice %1010 {offsets = [0, 0], sizes = [16, 128], strides = [1, 1]} : vector<16x512xf32> to vector<16x128xf32>
    %cst_328 = arith.constant 5.000000e-01 : f32
    %1012 = vector.broadcast %cst_328 : f32 to vector<16x128xf32>
    %1013 = arith.mulf %1012, %1011 : vector<16x128xf32>
    %1014 = math.tanh %1013 : vector<16x128xf32>
    %cst_329 = arith.constant 5.000000e-01 : f32
    %1015 = vector.broadcast %cst_329 : f32 to vector<16x128xf32>
    %1016 = arith.mulf %1015, %1014 : vector<16x128xf32>
    %cst_330 = arith.constant 5.000000e-01 : f32
    %1017 = vector.broadcast %cst_330 : f32 to vector<16x128xf32>
    %1018 = arith.addf %1016, %1017 : vector<16x128xf32>
    %1019 = vector.extract_strided_slice %1010 {offsets = [0, 128], sizes = [16, 128], strides = [1, 1]} : vector<16x512xf32> to vector<16x128xf32>
    %cst_331 = arith.constant 5.000000e-01 : f32
    %1020 = vector.broadcast %cst_331 : f32 to vector<16x128xf32>
    %1021 = arith.mulf %1020, %1019 : vector<16x128xf32>
    %1022 = math.tanh %1021 : vector<16x128xf32>
    %cst_332 = arith.constant 5.000000e-01 : f32
    %1023 = vector.broadcast %cst_332 : f32 to vector<16x128xf32>
    %1024 = arith.mulf %1023, %1022 : vector<16x128xf32>
    %cst_333 = arith.constant 5.000000e-01 : f32
    %1025 = vector.broadcast %cst_333 : f32 to vector<16x128xf32>
    %1026 = arith.addf %1024, %1025 : vector<16x128xf32>
    %1027 = vector.extract_strided_slice %1010 {offsets = [0, 256], sizes = [16, 128], strides = [1, 1]} : vector<16x512xf32> to vector<16x128xf32>
    %1028 = math.tanh %1027 : vector<16x128xf32>
    %1029 = vector.extract_strided_slice %1010 {offsets = [0, 384], sizes = [16, 128], strides = [1, 1]} : vector<16x512xf32> to vector<16x128xf32>
    %cst_334 = arith.constant 5.000000e-01 : f32
    %1030 = vector.broadcast %cst_334 : f32 to vector<16x128xf32>
    %1031 = arith.mulf %1030, %1029 : vector<16x128xf32>
    %1032 = math.tanh %1031 : vector<16x128xf32>
    %cst_335 = arith.constant 5.000000e-01 : f32
    %1033 = vector.broadcast %cst_335 : f32 to vector<16x128xf32>
    %1034 = arith.mulf %1033, %1032 : vector<16x128xf32>
    %cst_336 = arith.constant 5.000000e-01 : f32
    %1035 = vector.broadcast %cst_336 : f32 to vector<16x128xf32>
    %1036 = arith.addf %1034, %1035 : vector<16x128xf32>
    %1037 = arith.mulf %1026, %1001 : vector<16x128xf32>
    %1038 = arith.mulf %1018, %1028 : vector<16x128xf32>
    %1039 = arith.addf %1037, %1038 : vector<16x128xf32>
    %1040 = math.tanh %1039 : vector<16x128xf32>
    %1041 = arith.mulf %1036, %1040 : vector<16x128xf32>
    %c27_i32 = arith.constant 27 : i32
    %1042 = arith.truncf %1041 : vector<16x128xf32> to vector<16x128xbf16>
    %cst_337 = arith.constant dense<0.000000e+00> : vector<16x512xf32>
    %1043 = tpu.matmul %1042, %1, %cst_337 {dimension_numbers = #tpu.dot_dimension_numbers<[1], [0], [0], [1], [0, 0, 1, 1], [], []>} : vector<16x128xbf16>, vector<128x512xbf16>, vector<16x512xf32> -> vector<16x512xf32>
    %1044 = arith.index_cast %c27_i32 : i32 to index
    %c0_338 = arith.constant 0 : index
    %c0_339 = arith.constant 0 : index
    %1045 = vector.load %arg10[%1044, %c0_338, %c0_339] : memref<28x16x512xbf16, #tpu.memory_space<vmem>>, vector<1x16x512xbf16>
    %1046 = vector.shape_cast %1045 : vector<1x16x512xbf16> to vector<16x512xbf16>
    %1047 = arith.extf %1046 : vector<16x512xbf16> to vector<16x512xf32>
    %1048 = arith.addf %1043, %1047 : vector<16x512xf32>
    %1049 = vector.extract_strided_slice %1048 {offsets = [0, 0], sizes = [16, 128], strides = [1, 1]} : vector<16x512xf32> to vector<16x128xf32>
    %cst_340 = arith.constant 5.000000e-01 : f32
    %1050 = vector.broadcast %cst_340 : f32 to vector<16x128xf32>
    %1051 = arith.mulf %1050, %1049 : vector<16x128xf32>
    %1052 = math.tanh %1051 : vector<16x128xf32>
    %cst_341 = arith.constant 5.000000e-01 : f32
    %1053 = vector.broadcast %cst_341 : f32 to vector<16x128xf32>
    %1054 = arith.mulf %1053, %1052 : vector<16x128xf32>
    %cst_342 = arith.constant 5.000000e-01 : f32
    %1055 = vector.broadcast %cst_342 : f32 to vector<16x128xf32>
    %1056 = arith.addf %1054, %1055 : vector<16x128xf32>
    %1057 = vector.extract_strided_slice %1048 {offsets = [0, 128], sizes = [16, 128], strides = [1, 1]} : vector<16x512xf32> to vector<16x128xf32>
    %cst_343 = arith.constant 5.000000e-01 : f32
    %1058 = vector.broadcast %cst_343 : f32 to vector<16x128xf32>
    %1059 = arith.mulf %1058, %1057 : vector<16x128xf32>
    %1060 = math.tanh %1059 : vector<16x128xf32>
    %cst_344 = arith.constant 5.000000e-01 : f32
    %1061 = vector.broadcast %cst_344 : f32 to vector<16x128xf32>
    %1062 = arith.mulf %1061, %1060 : vector<16x128xf32>
    %cst_345 = arith.constant 5.000000e-01 : f32
    %1063 = vector.broadcast %cst_345 : f32 to vector<16x128xf32>
    %1064 = arith.addf %1062, %1063 : vector<16x128xf32>
    %1065 = vector.extract_strided_slice %1048 {offsets = [0, 256], sizes = [16, 128], strides = [1, 1]} : vector<16x512xf32> to vector<16x128xf32>
    %1066 = math.tanh %1065 : vector<16x128xf32>
    %1067 = vector.extract_strided_slice %1048 {offsets = [0, 384], sizes = [16, 128], strides = [1, 1]} : vector<16x512xf32> to vector<16x128xf32>
    %cst_346 = arith.constant 5.000000e-01 : f32
    %1068 = vector.broadcast %cst_346 : f32 to vector<16x128xf32>
    %1069 = arith.mulf %1068, %1067 : vector<16x128xf32>
    %1070 = math.tanh %1069 : vector<16x128xf32>
    %cst_347 = arith.constant 5.000000e-01 : f32
    %1071 = vector.broadcast %cst_347 : f32 to vector<16x128xf32>
    %1072 = arith.mulf %1071, %1070 : vector<16x128xf32>
    %cst_348 = arith.constant 5.000000e-01 : f32
    %1073 = vector.broadcast %cst_348 : f32 to vector<16x128xf32>
    %1074 = arith.addf %1072, %1073 : vector<16x128xf32>
    %1075 = arith.mulf %1064, %1039 : vector<16x128xf32>
    %1076 = arith.mulf %1056, %1066 : vector<16x128xf32>
    %1077 = arith.addf %1075, %1076 : vector<16x128xf32>
    %1078 = math.tanh %1077 : vector<16x128xf32>
    %1079 = arith.mulf %1074, %1078 : vector<16x128xf32>
    %c28_i32_349 = arith.constant 28 : i32
    %1080 = arith.truncf %1079 : vector<16x128xf32> to vector<16x128xbf16>
    %c0_350 = arith.constant 0 : index
    %c0_351 = arith.constant 0 : index
    %1081 = vector.load %arg5[%c0_350, %c0_351] : memref<128x128xbf16, #tpu.memory_space<vmem>>, vector<128x128xbf16>
    %cst_352 = arith.constant dense<0.000000e+00> : vector<16x128xf32>
    %1082 = tpu.matmul %1080, %1081, %cst_352 {dimension_numbers = #tpu.dot_dimension_numbers<[1], [0], [0], [1], [0, 0, 1, 1], [], []>} : vector<16x128xbf16>, vector<128x128xbf16>, vector<16x128xf32> -> vector<16x128xf32>
    %c0_353 = arith.constant 0 : index
    %c0_354 = arith.constant 0 : index
    %1083 = vector.load %arg6[%c0_353, %c0_354] : memref<1x128xf32, #tpu.memory_space<vmem>>, vector<1x128xf32>
    %1084 = vector.broadcast %1083 : vector<1x128xf32> to vector<16x128xf32>
    %1085 = arith.addf %1082, %1084 : vector<16x128xf32>
    %cst_355 = arith.constant 0.000000e+00 : f32
    %1086 = vector.broadcast %cst_355 : f32 to vector<16x128xf32>
    %1087 = arith.maximumf %1085, %1086 : vector<16x128xf32>
    %1088 = arith.truncf %1087 : vector<16x128xf32> to vector<16x128xbf16>
    %c0_356 = arith.constant 0 : index
    %c0_357 = arith.constant 0 : index
    %1089 = vector.load %arg7[%c0_356, %c0_357] : memref<128x128xbf16, #tpu.memory_space<vmem>>, vector<128x128xbf16>
    %cst_358 = arith.constant dense<0.000000e+00> : vector<16x128xf32>
    %1090 = tpu.matmul %1088, %1089, %cst_358 {dimension_numbers = #tpu.dot_dimension_numbers<[1], [0], [0], [1], [0, 0, 1, 1], [], []>} : vector<16x128xbf16>, vector<128x128xbf16>, vector<16x128xf32> -> vector<16x128xf32>
    %c0_359 = arith.constant 0 : index
    %c0_360 = arith.constant 0 : index
    %1091 = vector.load %arg8[%c0_359, %c0_360] : memref<1x128xf32, #tpu.memory_space<vmem>>, vector<1x128xf32>
    %1092 = vector.broadcast %1091 : vector<1x128xf32> to vector<16x128xf32>
    %1093 = arith.addf %1090, %1092 : vector<16x128xf32>
    %cst_361 = arith.constant dense<0xFF800000> : vector<16xf32>
    %1094 = vector.multi_reduction <maximumf>, %1093, %cst_361 [1] : vector<16x128xf32> to vector<16xf32>
    %1095 = vector.shape_cast %1094 : vector<16xf32> to vector<16x1xf32>
    %1096 = vector.broadcast %1095 : vector<16x1xf32> to vector<16x128xf32>
    %1097 = arith.subf %1093, %1096 : vector<16x128xf32>
    %1098 = math.exp %1097 : vector<16x128xf32>
    %cst_362 = arith.constant dense<0.000000e+00> : vector<16xf32>
    %1099 = vector.multi_reduction <add>, %1098, %cst_362 [1] : vector<16x128xf32> to vector<16xf32>
    %1100 = vector.shape_cast %1099 : vector<16xf32> to vector<16x1xf32>
    %1101 = math.log %1100 : vector<16x1xf32>
    %1102 = vector.broadcast %1101 : vector<16x1xf32> to vector<16x128xf32>
    %1103 = arith.subf %1097, %1102 : vector<16x128xf32>
    %c0_363 = arith.constant 0 : index
    %c0_364 = arith.constant 0 : index
    %1104 = vector.load %arg9[%c0_363, %c0_364] : memref<16x128xf32, #tpu.memory_space<vmem>>, vector<16x128xf32>
    tpu.vector_store %arg9[%c0_363, %c0_364], %1103 {strides = array<i32>} : memref<16x128xf32, #tpu.memory_space<vmem>>, vector<16x128xf32>,
    return
  }
  func.func @transform_0(%arg0: i32) -> (i32, i32, i32) {
    %c0_i32 = arith.constant 0 : i32
    %c0_i32_0 = arith.constant 0 : i32
    %c0_i32_1 = arith.constant 0 : i32
    return %c0_i32, %arg0, %c0_i32_0 : i32, i32, i32
  }
  func.func @transform_1(%arg0: i32) -> (i32, i32) {
    %c0_i32 = arith.constant 0 : i32
    %c0_i32_0 = arith.constant 0 : i32
    %c0_i32_1 = arith.constant 0 : i32
    return %c0_i32, %c0_i32_0 : i32, i32
  }
  func.func @transform_2(%arg0: i32) -> (i32, i32) {
    %c0_i32 = arith.constant 0 : i32
    %c0_i32_0 = arith.constant 0 : i32
    %c0_i32_1 = arith.constant 0 : i32
    return %c0_i32, %c0_i32_0 : i32, i32
  }
  func.func @transform_3(%arg0: i32) -> (i32, i32) {
    %c0_i32 = arith.constant 0 : i32
    %c0_i32_0 = arith.constant 0 : i32
    %c0_i32_1 = arith.constant 0 : i32
    return %c0_i32, %c0_i32_0 : i32, i32
  }
  func.func @transform_4(%arg0: i32) -> (i32, i32) {
    %c0_i32 = arith.constant 0 : i32
    %c0_i32_0 = arith.constant 0 : i32
    %c0_i32_1 = arith.constant 0 : i32
    return %c0_i32, %c0_i32_0 : i32, i32
  }
  func.func @transform_5(%arg0: i32) -> (i32, i32) {
    %c0_i32 = arith.constant 0 : i32
    %c0_i32_0 = arith.constant 0 : i32
    %c0_i32_1 = arith.constant 0 : i32
    return %c0_i32, %c0_i32_0 : i32, i32
  }
  func.func @transform_6(%arg0: i32) -> (i32, i32) {
    %c0_i32 = arith.constant 0 : i32
    %c0_i32_0 = arith.constant 0 : i32
    %c0_i32_1 = arith.constant 0 : i32
    return %c0_i32, %c0_i32_0 : i32, i32
  }
  func.func @transform_7(%arg0: i32) -> (i32, i32) {
    %c0_i32 = arith.constant 0 : i32
    %c0_i32_0 = arith.constant 0 : i32
    %c0_i32_1 = arith.constant 0 : i32
    return %c0_i32, %c0_i32_0 : i32, i32
  }
  func.func @transform_8(%arg0: i32) -> (i32, i32) {
    %c0_i32 = arith.constant 0 : i32
    %c0_i32_0 = arith.constant 0 : i32
    return %arg0, %c0_i32 : i32, i32
  }
}

</mosaic_0001>

<bundles_post_ra>
// kernel: net_forward.1
= control target key start
LH: loop header
LB: loop body
LE: loop exit
PB: predicated region body
PF: predicated region fallthrough
CT: control target
= control target key end

     0   :  { %v9787_v1 = vmov 0   ;;  %vm409_vm0 = vcmask 1045504   ;;  %vm324_vm1 = vcmask 228352   ;;  %vm6561_vm2 = vmmov 0   ;;  %s9778_s1 = inlined_call_operand.vmem [shape: bf16[28,512], index: 1, kind: input, shape index: {}]   ;;  %s9779_s0 = inlined_call_operand.vmem [shape: bf16[28,16,28], index: 0, kind: input, shape index: {}]   ;;  %s9780_s2 = inlined_call_operand.vmem [shape: bf16[128,512], index: 2, kind: input, shape index: {}]   ;;  %s9781_s3 = inlined_call_operand.vmem [shape: f32[1,512], index: 3, kind: input, shape index: {}]   ;;  %s9782_s4 = inlined_call_operand.vmem [shape: bf16[128,128], index: 4, kind: input, shape index: {}]   ;;  %s9783_s6 = inlined_call_operand.vmem [shape: bf16[128,128], index: 6, kind: input, shape index: {}]   ;;  %s9784_s5 = inlined_call_operand.vmem [shape: f32[1,128], index: 5, kind: input, shape index: {}]   ;;  %s9785_s7 = inlined_call_operand.vmem [shape: f32[1,128], index: 7, kind: input, shape index: {}]   ;;  %s9786_s8 = inlined_call_operand.vmem [shape: f32[16,128], index: 8, kind: output, shape index: {}]  }
   0x1   :  { %v5697_v0 = vld [vmem:[%s9778_s1 + $0x4] ss:$16 sps:$4 sm:$0xff]   ;;  %454 = vmatprep.mubr.bf16.mxu0 %v9787_v1  ;;  %767 = vmatprep.mubr.bf16.mxu1 %v9787_v1  ;;  %v5699_v2 = vld [vmem:[%s9778_s1 + $0xc] ss:$16 sps:$4 sm:$0xff]   ;;  %v5701_v3 = vld [vmem:[%s9778_s1] ss:$16 sps:$4 sm:$0xff]  }
   0x2   :  { %422 = vmatprep.subr.bf16.mxu0 %v5697_v0  ;;  %v5702_v4 = vld [vmem:[%s9778_s1 + $0x8] ss:$16 sps:$4 sm:$0xff]   ;;  %735 = vmatprep.subr.bf16.mxu1 %v5699_v2  ;;  %v5703_v5 = vld [vmem:[%s9778_s1 + $0x24] ss:$16 sps:$4 sm:$0x3f]  }
   0x3   :  { %423 = vmatpush1.bf16.msra.mxu0 %v5701_v3  ;;  %736 = vmatpush1.bf16.msra.mxu1 %v5702_v4  ;;  %v5705_v6 = vld [vmem:[%s9778_s1 + $0x2c] ss:$16 sps:$4 sm:$0x3f]   ;;  %v5707_v7 = vld [vmem:[%s9778_s1 + $0x20] ss:$16 sps:$4 sm:$0x3f]  }
   0x4   :  { %5528 = vmatprep.subr.msk.bf16.mxu0 %vm409_vm0, %v5703_v5  ;;  %v5708_v8 = vld [vmem:[%s9778_s1 + $0x28] ss:$16 sps:$4 sm:$0x3f]   ;;  %v5709_v9 = vld [vmem:[%s9779_s0] sm:$0xff]   ;;  %5557 = vmatprep.subr.msk.bf16.mxu1 %vm409_vm0, %v5705_v6  ;;  %v411_v10 = vsel %vm409_vm0, %v5707_v7, 0  ;;  %v5717_v25 = vld [vmem:[%s9779_s0 + $0x10] sm:$0xff]   ;;  %v128_v6 = vlaneseq }
   0x5   :  { %v417_v11 = vsel %vm409_vm0, %v5708_v8, 0  ;;  %v6639_v12 = vld [vmem:[%s9780_s2 + $0x4] ss:$16 sps:$4 sm:$0xff]   ;;  %v6644_v13 = vld [vmem:[%s9780_s2] ss:$16 sps:$4 sm:$0xff]   ;;  %v5715_v18 = vld [vmem:[%s9779_s0 + $0x8] sm:$0xff]  }
   0x6   :  { %v6649_v14 = vld [vmem:[%s9780_s2 + $0xc] ss:$16 sps:$4 sm:$0xff]   ;;  %v6656_v15 = vld [vmem:[%s9780_s2 + $0x8] ss:$16 sps:$4 sm:$0xff]   ;;  %v6667_v16 = vld [vmem:[%s9780_s2 + $0x24] ss:$16 sps:$4 sm:$0xff]  }
   0x7   :  { %425 = vmatpush1.bf16.msra.mxu0 %v411_v10  ;;  %738 = vmatpush1.bf16.msra.mxu1 %v417_v11  ;;  %v6672_v17 = vld [vmem:[%s9780_s2 + $0x20] ss:$16 sps:$4 sm:$0xff]   ;;  %v6681_v19 = vld [vmem:[%s9780_s2 + $0x2c] ss:$16 sps:$4 sm:$0xff]   ;;  %v6686_v20 = vld [vmem:[%s9780_s2 + $0x28] ss:$16 sps:$4 sm:$0xff]  }
   0x8   :  { %1444 = vmatprep.subr.bf16.mxu0 %v6639_v12  ;;  %1487 = vmatprep.subr.bf16.mxu1 %v6649_v14  ;;  %v6696_v21 = vld [vmem:[%s9780_s2 + $0x44] ss:$16 sps:$4 sm:$0xff]   ;;  %v6703_v22 = vld [vmem:[%s9780_s2 + $0x40] ss:$16 sps:$4 sm:$0xff]   ;;  %v6709_v23 = vld [vmem:[%s9780_s2 + $0x4c] ss:$16 sps:$4 sm:$0xff]  }
   0x9   :  { %v6715_v24 = vld [vmem:[%s9780_s2 + $0x48] ss:$16 sps:$4 sm:$0xff]   ;;  %v6725_v26 = vld [vmem:[%s9780_s2 + $0x64] ss:$16 sps:$4 sm:$0xff]   ;;  %v6730_v27 = vld [vmem:[%s9780_s2 + $0x60] ss:$16 sps:$4 sm:$0xff]  }
   0xa   :  { %5529 = vmatmul.mubr.msk.bf16.vlgmr.msra.gmra.mrb[0].mxu0 %vm324_vm1, %v5709_v9  ;;  %5558 = vmatmul.mubr.msk.bf16.vlgmr.msra.gmra.mrb[0].mxu1 %vm324_vm1, %v5709_v9  ;;  %v6737_v28 = vld [vmem:[%s9780_s2 + $0x6c] ss:$16 sps:$4 sm:$0xff]   ;;  %v6744_v29 = vld [vmem:[%s9780_s2 + $0x68] ss:$16 sps:$4 sm:$0xff]   ;;  %v6756_v31 = vld [vmem:[%s9780_s2 + $0x84] ss:$16 sps:$4 sm:$0xff]  }
   0xb   :  { %1445 = vmatpush1.bf16.msra.mxu0 %v6644_v13  ;;  %464 = vmatprep.mubr.bf16.mxu0 %v9787_v1  ;;  %v5718_v30 = vld [vmem:[%s9779_s0 + $0x18] sm:$0xff]   ;;  %v6761_v32 = vld [vmem:[%s9780_s2 + $0x80] ss:$16 sps:$4 sm:$0xff]   ;;  %v6783_v35 = vld [vmem:[%s9780_s2 + $0xa4] ss:$16 sps:$4 sm:$0xff]   ;;  %v129_v7 = vshrl.u32 %v128_v6, 7 }
   0xc   :  { %777 = vmatprep.mubr.bf16.mxu1 %v9787_v1  ;;  %1488 = vmatpush1.bf16.msra.mxu1 %v6656_v15  ;;  %v6766_v33 = vld [vmem:[%s9780_s2 + $0x8c] ss:$16 sps:$4 sm:$0xff]   ;;  %v6772_v34 = vld [vmem:[%s9780_s2 + $0x88] ss:$16 sps:$4 sm:$0xff]   ;;  %v6789_v36 = vld [vmem:[%s9780_s2 + $0xa0] ss:$16 sps:$4 sm:$0xff]  }
   0xd   :  { %1446 = vmatprep.subr.bf16.mxu0 %v6667_v16  ;;  %1489 = vmatprep.subr.bf16.mxu1 %v6681_v19  ;;  %v5722_v37 = vld [vmem:[%s9779_s0 + $0x20] sm:$0xff]   ;;  %v6798_v38 = vld [vmem:[%s9780_s2 + $0xac] ss:$16 sps:$4 sm:$0xff]   ;;  %v6804_v39 = vld [vmem:[%s9780_s2 + $0xa8] ss:$16 sps:$4 sm:$0xff]   ;;  %v138_v9 = vsub.s32 2, %v129_v7 }
   0xe   :  { %v5726_v40 = vld [vmem:[%s9779_s0 + $0x28] sm:$0xff]   ;;  %v6820_v41 = vld [vmem:[%s9780_s2 + $0xc4] ss:$16 sps:$4 sm:$0xff]   ;;  %v6825_v42 = vld [vmem:[%s9780_s2 + $0xc0] ss:$16 sps:$4 sm:$0xff]   ;;  %v142_v10 = vsub.s32 3, %v129_v7 }
   0xf   :  { %1447 = vmatpush1.bf16.msra.mxu0 %v6672_v17  ;;  %v6832_v43 = vld [vmem:[%s9780_s2 + $0xcc] ss:$16 sps:$4 sm:$0xff]   ;;  %v5727_v44 = vld [vmem:[%s9779_s0 + $0x30] sm:$0xff]   ;;  %v6845_v45 = vld [vmem:[%s9780_s2 + $0xc8] ss:$16 sps:$4 sm:$0xff]   ;;  %v130_v11 = vsub.s32 0, %v129_v7 }
  0x10   :  { %1490 = vmatpush1.bf16.msra.mxu1 %v6686_v20  ;;  %1448 = vmatprep.subr.bf16.mxu0 %v6696_v21  ;;  %v5728_v46 = vld [vmem:[%s9779_s0 + $0x38] sm:$0xff]   ;;  %v5734_v47 = vld [vmem:[%s9779_s0 + $0x40] sm:$0xff]   ;;  %v5736_v50 = vld [vmem:[%s9779_s0 + $0x48] sm:$0xff]  }
  0x11   :  { %1491 = vmatprep.subr.bf16.mxu1 %v6709_v23  ;;  %v6865_v48 = vld [vmem:[%s9780_s2 + $0xe4] ss:$16 sps:$4 sm:$0xff]   ;;  %v6870_v49 = vld [vmem:[%s9780_s2 + $0xe0] ss:$16 sps:$4 sm:$0xff]   ;;  %v6885_v51 = vld [vmem:[%s9780_s2 + $0xec] ss:$16 sps:$4 sm:$0xff]  }
  0x12   :  { %5530 = vmatmul.mubr.msk.bf16.gmra.mrb[4].mxu0 %vm324_vm1, %v5715_v18  ;;  %5559 = vmatmul.mubr.msk.bf16.gmra.mrb[4].mxu1 %vm324_vm1, %v5715_v18  ;;  %v6890_v52 = vld [vmem:[%s9780_s2 + $0xe8] ss:$16 sps:$4 sm:$0xff]   ;;  %v5737_v53 = vld [vmem:[%s9779_s0 + $0x50] sm:$0xff]   ;;  %v5745_v55 = vld [vmem:[%s9779_s0 + $0x60] sm:$0xff]  }
  0x13   :  { %474 = vmatprep.mubr.bf16.mxu0 %v9787_v1  ;;  %787 = vmatprep.mubr.bf16.mxu1 %v9787_v1  ;;  %v5741_v54 = vld [vmem:[%s9779_s0 + $0x58] sm:$0xff]   ;;  %v5746_v56 = vld [vmem:[%s9779_s0 + $0x68] sm:$0xff]   ;;  %v5747_v57 = vld [vmem:[%s9779_s0 + $0x70] sm:$0xff]  }
  0x14   :  { %1449 = vmatpush1.bf16.msra.mxu0 %v6703_v22  ;;  %1492 = vmatpush1.bf16.msra.mxu1 %v6715_v24  ;;  %v5753_v58 = vld [vmem:[%s9779_s0 + $0x78] sm:$0xff]   ;;  %v5755_v59 = vld [vmem:[%s9779_s0 + $0x80] sm:$0xff]   ;;  %v5756_v60 = vld [vmem:[%s9779_s0 + $0x88] sm:$0xff]  }
  0x15   :  { %1450 = vmatprep.subr.bf16.mxu0 %v6725_v26  ;;  %1493 = vmatprep.subr.bf16.mxu1 %v6737_v28  ;;  %v5760_v61 = vld [vmem:[%s9779_s0 + $0x90] sm:$0xff]   ;;  %v5764_v62 = vld [vmem:[%s9779_s0 + $0x98] sm:$0xff]   ;;  %v5765_v63 = vld [vmem:[%s9779_s0 + $0xa0] sm:$0xff]  }
  0x16   :  { %v5766_v0 = vld [vmem:[%s9779_s0 + $0xa8] sm:$0xff]   ;;  %v5772_v2 = vld [vmem:[%s9779_s0 + $0xb0] sm:$0xff]   ;;  %v5774_v3 = vld [vmem:[%s9779_s0 + $0xb8] sm:$0xff]  }
  0x17   :  { %v5775_v4 = vld [vmem:[%s9779_s0 + $0xc0] sm:$0xff]   ;;  %v5779_v5 = vld [vmem:[%s9779_s0 + $0xc8] sm:$0xff]   ;;  %v5783_v8 = vld [vmem:[%s9779_s0 + $0xd0] sm:$0xff]  }
  0x18   :  { %1451 = vmatpush1.bf16.msra.mxu0 %v6730_v27  ;;  %1494 = vmatpush1.bf16.msra.mxu1 %v6744_v29  ;;  %v70_v18 = vld [vmem:[%s9781_s3] sm:$0xf] }
  0x19   :  { %1452 = vmatprep.subr.bf16.mxu0 %v6756_v31  ;;  %1495 = vmatprep.subr.bf16.mxu1 %v6766_v33 }
  0x1a   :  { %5531 = vmatmul.mubr.msk.bf16.gmra.mrb[8].mxu0 %vm324_vm1, %v5717_v25  ;;  %5560 = vmatmul.mubr.msk.bf16.gmra.mrb[8].mxu1 %vm324_vm1, %v5717_v25  ;;  %v134_v25 = vsub.s32 1, %v129_v7 }
  0x1b   :  { %484 = vmatprep.mubr.bf16.mxu0 %v9787_v1  ;;  %797 = vmatprep.mubr.bf16.mxu1 %v9787_v1 }
  0x1c   :  { %1453 = vmatpush1.bf16.msra.mxu0 %v6761_v32  ;;  %1496 = vmatpush1.bf16.msra.mxu1 %v6772_v34 }
  0x1d   :  { %1454 = vmatprep.subr.bf16.mxu0 %v6783_v35  ;;  %1497 = vmatprep.subr.bf16.mxu1 %v6798_v38 }
  0x20   :  { %1455 = vmatpush1.bf16.msra.mxu0 %v6789_v36  ;;  %1498 = vmatpush1.bf16.msra.mxu1 %v6804_v39 }
  0x21   :  { %1456 = vmatprep.subr.bf16.mxu0 %v6820_v41  ;;  %1499 = vmatprep.subr.bf16.mxu1 %v6832_v43 }
  0x22   :  { %5532 = vmatmul.mubr.msk.bf16.gmra.mrb[12].mxu0 %vm324_vm1, %v5718_v30  ;;  %5561 = vmatmul.mubr.msk.bf16.gmra.mrb[12].mxu1 %vm324_vm1, %v5718_v30  ;;  %v7017_v30 = vrot.slane %v70_v18, %v138_v9 }
  0x23   :  { %494 = vmatprep.mubr.bf16.mxu0 %v9787_v1  ;;  %807 = vmatprep.mubr.bf16.mxu1 %v9787_v1 }
  0x24   :  { %1457 = vmatpush1.bf16.msra.mxu0 %v6825_v42  ;;  %1500 = vmatpush1.bf16.msra.mxu1 %v6845_v45 }
  0x25   :  { %1458 = vmatprep.subr.bf16.mxu0 %v6865_v48  ;;  %1501 = vmatprep.subr.bf16.mxu1 %v6885_v51 }
  0x28   :  { %1459 = vmatpush1.bf16.msra.mxu0 %v6870_v49  ;;  %1502 = vmatpush1.bf16.msra.mxu1 %v6890_v52 }
  0x29   :  { %1580 = vmatprep.subr.bf16.mxu0 %v6639_v12  ;;  %1623 = vmatprep.subr.bf16.mxu1 %v6649_v14 }
  0x2a   :  { %5533 = vmatmul.mubr.msk.bf16.gmra.mrb[16].mxu0 %vm324_vm1, %v5722_v37  ;;  %5562 = vmatmul.mubr.msk.bf16.gmra.mrb[16].mxu1 %vm324_vm1, %v5722_v37  ;;  %v7021_v37 = vrot.slane %v70_v18, %v142_v10 }
  0x2b   :  { %504 = vmatprep.mubr.bf16.mxu0 %v9787_v1  ;;  %817 = vmatprep.mubr.bf16.mxu1 %v9787_v1 }
  0x32   :  { %5534 = vmatmul.mubr.msk.bf16.gmra.mrb[20].mxu0 %vm324_vm1, %v5726_v40  ;;  %5563 = vmatmul.mubr.msk.bf16.gmra.mrb[20].mxu1 %vm324_vm1, %v5726_v40  ;;  %v7023_v40 = vrot.slane %v70_v18, %v130_v11 }
  0x33   :  { %514 = vmatprep.mubr.bf16.mxu0 %v9787_v1  ;;  %827 = vmatprep.mubr.bf16.mxu1 %v9787_v1 }
  0x3a   :  { %5535 = vmatmul.mubr.msk.bf16.gmra.mrb[24].mxu0 %vm324_vm1, %v5727_v44  ;;  %5564 = vmatmul.mubr.msk.bf16.gmra.mrb[24].mxu1 %vm324_vm1, %v5727_v44 }
  0x3b   :  { %524 = vmatprep.mubr.bf16.mxu0 %v9787_v1  ;;  %837 = vmatprep.mubr.bf16.mxu1 %v9787_v1 }
  0x42   :  { %5536 = vmatmul.mubr.msk.bf16.gmra.mrb[28].mxu0 %vm324_vm1, %v5728_v46  ;;  %5565 = vmatmul.mubr.msk.bf16.gmra.mrb[28].mxu1 %vm324_vm1, %v5728_v46  ;;  %v7025_v46 = vrot.slane %v70_v18, %v134_v25 }
  0x43   :  { %534 = vmatprep.mubr.bf16.mxu0 %v9787_v1  ;;  %847 = vmatprep.mubr.bf16.mxu1 %v9787_v1 }
  0x4a   :  { %5537 = vmatmul.mubr.msk.bf16.gmra.mrb[32].mxu0 %vm324_vm1, %v5734_v47  ;;  %5566 = vmatmul.mubr.msk.bf16.gmra.mrb[32].mxu1 %vm324_vm1, %v5734_v47 }
  0x4b   :  { %544 = vmatprep.mubr.bf16.mxu0 %v9787_v1  ;;  %857 = vmatprep.mubr.bf16.mxu1 %v9787_v1 }
  0x52   :  { %5538 = vmatmul.mubr.msk.bf16.gmra.mrb[36].mxu0 %vm324_vm1, %v5736_v50  ;;  %5567 = vmatmul.mubr.msk.bf16.gmra.mrb[36].mxu1 %vm324_vm1, %v5736_v50 }
  0x53   :  { %554 = vmatprep.mubr.bf16.mxu0 %v9787_v1  ;;  %867 = vmatprep.mubr.bf16.mxu1 %v9787_v1 }
  0x5a   :  { %5539 = vmatmul.mubr.msk.bf16.gmra.mrb[40].mxu0 %vm324_vm1, %v5737_v53  ;;  %5568 = vmatmul.mubr.msk.bf16.gmra.mrb[40].mxu1 %vm324_vm1, %v5737_v53  ;;  %v5784_v53 = vld [vmem:[%s9779_s0 + $0xd8] sm:$0xff]  }
  0x5b   :  { %564 = vmatprep.mubr.bf16.mxu0 %v9787_v1  ;;  %877 = vmatprep.mubr.bf16.mxu1 %v9787_v1 }
  0x62   :  { %5540 = vmatmul.mubr.msk.bf16.gmra.mrb[44].mxu0 %vm324_vm1, %v5741_v54  ;;  %5569 = vmatmul.mubr.msk.bf16.gmra.mrb[44].mxu1 %vm324_vm1, %v5741_v54 }
  0x63   :  { %574 = vmatprep.mubr.bf16.mxu0 %v9787_v1  ;;  %887 = vmatprep.mubr.bf16.mxu1 %v9787_v1 }
  0x6a   :  { %5541 = vmatmul.mubr.msk.bf16.gmra.mrb[48].mxu0 %vm324_vm1, %v5745_v55  ;;  %5570 = vmatmul.mubr.msk.bf16.gmra.mrb[48].mxu1 %vm324_vm1, %v5745_v55 }
  0x6b   :  { %584 = vmatprep.mubr.bf16.mxu0 %v9787_v1  ;;  %897 = vmatprep.mubr.bf16.mxu1 %v9787_v1 }
  0x72   :  { %5542 = vmatmul.mubr.msk.bf16.gmra.mrb[52].mxu0 %vm324_vm1, %v5746_v56  ;;  %5571 = vmatmul.mubr.msk.bf16.gmra.mrb[52].mxu1 %vm324_vm1, %v5746_v56 }
  0x73   :  { %594 = vmatprep.mubr.bf16.mxu0 %v9787_v1  ;;  %907 = vmatprep.mubr.bf16.mxu1 %v9787_v1 }
  0x7a   :  { %5543 = vmatmul.mubr.msk.bf16.gmra.mrb[56].mxu0 %vm324_vm1, %v5747_v57  ;;  %5572 = vmatmul.mubr.msk.bf16.gmra.mrb[56].mxu1 %vm324_vm1, %v5747_v57 }
  0x7b   :  { %604 = vmatprep.mubr.bf16.mxu0 %v9787_v1  ;;  %917 = vmatprep.mubr.bf16.mxu1 %v9787_v1 }
  0x82   :  { %5544 = vmatmul.mubr.msk.bf16.gmra.mrb[60].mxu0 %vm324_vm1, %v5753_v58  ;;  %5573 = vmatmul.mubr.msk.bf16.gmra.mrb[60].mxu1 %vm324_vm1, %v5753_v58 }
  0x83   :  { %614 = vmatprep.mubr.bf16.mxu0 %v9787_v1  ;;  %927 = vmatprep.mubr.bf16.mxu1 %v9787_v1 }
  0x8a   :  { %5545 = vmatmul.mubr.msk.bf16.gmra.mrb[64].mxu0 %vm324_vm1, %v5755_v59  ;;  %5574 = vmatmul.mubr.msk.bf16.gmra.mrb[64].mxu1 %vm324_vm1, %v5755_v59 }
  0x8b   :  { %624 = vmatprep.mubr.bf16.mxu0 %v9787_v1  ;;  %937 = vmatprep.mubr.bf16.mxu1 %v9787_v1 }
  0x92   :  { %5546 = vmatmul.mubr.msk.bf16.gmra.mrb[68].mxu0 %vm324_vm1, %v5756_v60  ;;  %5575 = vmatmul.mubr.msk.bf16.gmra.mrb[68].mxu1 %vm324_vm1, %v5756_v60 }
  0x93   :  { %634 = vmatprep.mubr.bf16.mxu0 %v9787_v1  ;;  %947 = vmatprep.mubr.bf16.mxu1 %v9787_v1 }
  0x9a   :  { %5547 = vmatmul.mubr.msk.bf16.gmra.mrb[72].mxu0 %vm324_vm1, %v5760_v61  ;;  %5576 = vmatmul.mubr.msk.bf16.gmra.mrb[72].mxu1 %vm324_vm1, %v5760_v61 }
  0x9b   :  { %644 = vmatprep.mubr.bf16.mxu0 %v9787_v1  ;;  %957 = vmatprep.mubr.bf16.mxu1 %v9787_v1 }
  0xa2   :  { %5548 = vmatmul.mubr.msk.bf16.gmra.mrb[76].mxu0 %vm324_vm1, %v5764_v62  ;;  %5577 = vmatmul.mubr.msk.bf16.gmra.mrb[76].mxu1 %vm324_vm1, %v5764_v62 }
  0xa3   :  { %654 = vmatprep.mubr.bf16.mxu0 %v9787_v1  ;;  %967 = vmatprep.mubr.bf16.mxu1 %v9787_v1 }
  0xaa   :  { %5549 = vmatmul.mubr.msk.bf16.gmra.mrb[80].mxu0 %vm324_vm1, %v5765_v63  ;;  %5578 = vmatmul.mubr.msk.bf16.gmra.mrb[80].mxu1 %vm324_vm1, %v5765_v63 }
  0xab   :  { %664 = vmatprep.mubr.bf16.mxu0 %v9787_v1  ;;  %977 = vmatprep.mubr.bf16.mxu1 %v9787_v1 }
  0xb2   :  { %5550 = vmatmul.mubr.msk.bf16.gmra.mrb[84].mxu0 %vm324_vm1, %v5766_v0  ;;  %5579 = vmatmul.mubr.msk.bf16.gmra.mrb[84].mxu1 %vm324_vm1, %v5766_v0 }
  0xb3   :  { %674 = vmatprep.mubr.bf16.mxu0 %v9787_v1  ;;  %987 = vmatprep.mubr.bf16.mxu1 %v9787_v1 }
  0xba   :  { %5551 = vmatmul.mubr.msk.bf16.gmra.mrb[88].mxu0 %vm324_vm1, %v5772_v2  ;;  %5580 = vmatmul.mubr.msk.bf16.gmra.mrb[88].mxu1 %vm324_vm1, %v5772_v2 }
  0xbb   :  { %684 = vmatprep.mubr.bf16.mxu0 %v9787_v1  ;;  %997 = vmatprep.mubr.bf16.mxu1 %v9787_v1 }
  0xc2   :  { %5552 = vmatmul.mubr.msk.bf16.gmra.mrb[92].mxu0 %vm324_vm1, %v5774_v3  ;;  %5581 = vmatmul.mubr.msk.bf16.gmra.mrb[92].mxu1 %vm324_vm1, %v5774_v3 }
  0xc3   :  { %694 = vmatprep.mubr.bf16.mxu0 %v9787_v1  ;;  %1007 = vmatprep.mubr.bf16.mxu1 %v9787_v1 }
  0xca   :  { %5553 = vmatmul.mubr.msk.bf16.gmra.mrb[96].mxu0 %vm324_vm1, %v5775_v4  ;;  %5582 = vmatmul.mubr.msk.bf16.gmra.mrb[96].mxu1 %vm324_vm1, %v5775_v4 }
  0xcb   :  { %704 = vmatprep.mubr.bf16.mxu0 %v9787_v1  ;;  %1017 = vmatprep.mubr.bf16.mxu1 %v9787_v1 }
  0xd2   :  { %5554 = vmatmul.mubr.msk.bf16.gmra.mrb[100].mxu0 %vm324_vm1, %v5779_v5  ;;  %5583 = vmatmul.mubr.msk.bf16.gmra.mrb[100].mxu1 %vm324_vm1, %v5779_v5 }
  0xd3   :  { %714 = vmatprep.mubr.bf16.mxu0 %v9787_v1  ;;  %1027 = vmatprep.mubr.bf16.mxu1 %v9787_v1 }
  0xda   :  { %5555 = vmatmul.mubr.msk.bf16.gmra.mrb[104].mxu0 %vm324_vm1, %v5783_v8  ;;  %5584 = vmatmul.mubr.msk.bf16.gmra.mrb[104].mxu1 %vm324_vm1, %v5783_v8 }
  0xdb   :  { %724 = vmatprep.mubr.bf16.mxu0 %v9787_v1  ;;  %1037 = vmatprep.mubr.bf16.mxu1 %v9787_v1 }
  0xdd   :  { %v456_v44 = vpop.f32.mrb[0].mxu0  ;;  %v769_v47 = vpop.f32.mrb[0].mxu1 }
  0xde   :  { %v458_v50 = vpop.f32.mrb[1].mxu0  ;;  %v770_v54 = vadd.f32 %v769_v47, %v7017_v30  ;;  %v771_v55 = vpop.f32.mrb[1].mxu1  ;;  %v457_v59 = vadd.f32 %v456_v44, %v7023_v40 }
  0xdf   :  { %v460_v56 = vpop.f32.mrb[2].mxu0  ;;  %v772_v57 = vadd.f32 %v771_v55, %v7021_v37  ;;  %v773_v58 = vpop.f32.mrb[2].mxu1  ;;  %v459_v0 = vadd.f32 %v458_v50, %v7025_v46 }
  0xe0   :  { %v461_v60 = vadd.f32 %v460_v56, %v7023_v40  ;;  %v462_v61 = vpop.f32.mrb[3].mxu0  ;;  %v774_v62 = vadd.f32 %v773_v58, %v7017_v30  ;;  %v775_v63 = vpop.f32.mrb[3].mxu1 }
  0xe1   :  { %v463_v2 = vadd.f32 %v462_v61, %v7025_v46  ;;  %v776_v3 = vadd.f32 %v775_v63, %v7021_v37 }
  0xe2   :  { %v7038_v4 = vpack.c.bf16 %v461_v60, %v457_v59  ;;  %5556 = vmatmul.mubr.msk.bf16.gmra.mrb[108].mxu0 %vm324_vm1, %v5784_v53  ;;  %5585 = vmatmul.mubr.msk.bf16.gmra.mrb[108].mxu1 %vm324_vm1, %v5784_v53  ;;  %v7042_v5 = vpack.c.bf16 %v774_v62, %v770_v54 }
  0xe3   :  { %v7044_v6 = vpack.c.bf16 %v463_v2, %v459_v0  ;;  %v7046_v7 = vpack.c.bf16 %v776_v3, %v772_v57  ;;  %1476 = vmatprep.mubr.bf16.mxu0 %v9787_v1  ;;  %1519 = vmatprep.mubr.bf16.mxu1 %v9787_v1 }
  0xe5   :  { %v466_v8 = vpop.f32.mrb[4].mxu0  ;;  %v779_v9 = vpop.f32.mrb[4].mxu1 }
  0xe6   :  { %v468_v10 = vpop.f32.mrb[5].mxu0  ;;  %v780_v11 = vadd.f32 %v779_v9, %v7017_v30  ;;  %v781_v18 = vpop.f32.mrb[5].mxu1  ;;  %v467_v50 = vadd.f32 %v466_v8, %v7023_v40 }
  0xe7   :  { %v470_v25 = vpop.f32.mrb[6].mxu0  ;;  %v782_v44 = vadd.f32 %v781_v18, %v7021_v37  ;;  %v783_v47 = vpop.f32.mrb[6].mxu1  ;;  %v469_v57 = vadd.f32 %v468_v10, %v7025_v46 }
  0xe8   :  { %v471_v53 = vadd.f32 %v470_v25, %v7023_v40  ;;  %v472_v54 = vpop.f32.mrb[7].mxu0  ;;  %v784_v55 = vadd.f32 %v783_v47, %v7017_v30  ;;  %v785_v56 = vpop.f32.mrb[7].mxu1 }
  0xe9   :  { %v473_v58 = vadd.f32 %v472_v54, %v7025_v46  ;;  %v786_v59 = vadd.f32 %v785_v56, %v7021_v37 }
  0xea   :  { %v7058_v60 = vpack.c.bf16 %v471_v53, %v467_v50  ;;  %1477 = vmatmul.mubr.bf16.vlgmr.msra.gmra.mrb[112].mxu0 %v9787_v1  ;;  %1520 = vmatmul.mubr.bf16.vlgmr.msra.gmra.mrb[112].mxu1 %v9787_v1  ;;  %v7062_v61 = vpack.c.bf16 %v784_v55, %v780_v11 }
  0xeb   :  { %v7064_v62 = vpack.c.bf16 %v473_v58, %v469_v57  ;;  %v7066_v63 = vpack.c.bf16 %v786_v59, %v782_v44  ;;  %1581 = vmatpush1.bf16.msra.mxu0 %v6644_v13  ;;  %1624 = vmatpush1.bf16.msra.mxu1 %v6656_v15 }
  0xec   :  { %1582 = vmatprep.subr.bf16.mxu0 %v6667_v16  ;;  %1625 = vmatprep.subr.bf16.mxu1 %v6681_v19 }
  0xed   :  { %v476_v0 = vpop.f32.mrb[8].mxu0  ;;  %v789_v2 = vpop.f32.mrb[8].mxu1  ;;  %1612 = vmatprep.mubr.bf16.mxu0 %v9787_v1  ;;  %1655 = vmatprep.mubr.bf16.mxu1 %v9787_v1 }
  0xee   :  { %v478_v3 = vpop.f32.mrb[9].mxu0  ;;  %v790_v8 = vadd.f32 %v789_v2, %v7017_v30  ;;  %v791_v9 = vpop.f32.mrb[9].mxu1  ;;  %v477_v15 = vadd.f32 %v476_v0, %v7023_v40 }
  0xef   :  { %v480_v10 = vpop.f32.mrb[10].mxu0  ;;  %v792_v11 = vadd.f32 %v791_v9, %v7021_v37  ;;  %v793_v13 = vpop.f32.mrb[10].mxu1  ;;  %1583 = vmatpush1.bf16.msra.mxu0 %v6672_v17  ;;  %1626 = vmatpush1.bf16.msra.mxu1 %v6686_v20  ;;  %v479_v44 = vadd.f32 %v478_v3, %v7025_v46 }
  0xf0   :  { %v481_v16 = vadd.f32 %v480_v10, %v7023_v40  ;;  %v482_v19 = vpop.f32.mrb[11].mxu0  ;;  %v794_v18 = vadd.f32 %v793_v13, %v7017_v30  ;;  %v795_v25 = vpop.f32.mrb[11].mxu1  ;;  %1584 = vmatprep.subr.bf16.mxu0 %v6696_v21  ;;  %1627 = vmatprep.subr.bf16.mxu1 %v6709_v23 }
  0xf1   :  { %v483_v47 = vadd.f32 %v482_v19, %v7025_v46  ;;  %v796_v17 = vadd.f32 %v795_v25, %v7021_v37 }
  0xf2   :  { %v7086_v50 = vpack.c.bf16 %v481_v16, %v477_v15  ;;  %v7088_v20 = vpack.c.bf16 %v794_v18, %v790_v8 }
  0xf3   :  { %v7090_v53 = vpack.c.bf16 %v483_v47, %v479_v44  ;;  %v7092_v54 = vpack.c.bf16 %v796_v17, %v792_v11  ;;  %1585 = vmatpush1.bf16.msra.mxu0 %v6703_v22  ;;  %1628 = vmatpush1.bf16.msra.mxu1 %v6715_v24 }
  0xf4   :  { %1586 = vmatprep.subr.bf16.mxu0 %v6725_v26  ;;  %1629 = vmatprep.subr.bf16.mxu1 %v6737_v28 }
  0xf5   :  { %9890 = vst [vmem:[#allocation3_spill] sm:$0xff] %v7092_v54  ;;  %v486_v21 = vpop.f32.mrb[12].mxu0  ;;  %v799_v23 = vpop.f32.mrb[12].mxu1 }
  0xf6   :  { %v488_v55 = vpop.f32.mrb[13].mxu0  ;;  %v800_v56 = vadd.f32 %v799_v23, %v7017_v30  ;;  %v801_v57 = vpop.f32.mrb[13].mxu1  ;;  %v487_v22 = vadd.f32 %v486_v21, %v7023_v40 }
  0xf7   :  { %v490_v58 = vpop.f32.mrb[14].mxu0  ;;  %v802_v59 = vadd.f32 %v801_v57, %v7021_v37  ;;  %v803_v0 = vpop.f32.mrb[14].mxu1  ;;  %1587 = vmatpush1.bf16.msra.mxu0 %v6730_v27  ;;  %1630 = vmatpush1.bf16.msra.mxu1 %v6744_v29  ;;  %v489_v3 = vadd.f32 %v488_v55, %v7025_v46 }
  0xf8   :  { %v491_v24 = vadd.f32 %v490_v58, %v7023_v40  ;;  %v492_v26 = vpop.f32.mrb[15].mxu0  ;;  %v804_v28 = vadd.f32 %v803_v0, %v7017_v30  ;;  %v805_v2 = vpop.f32.mrb[15].mxu1  ;;  %1588 = vmatprep.subr.bf16.mxu0 %v6756_v31  ;;  %1631 = vmatprep.subr.bf16.mxu1 %v6766_v33 }
  0xf9   :  { %v493_v8 = vadd.f32 %v492_v26, %v7025_v46  ;;  %v806_v27 = vadd.f32 %v805_v2, %v7021_v37 }
  0xfa   :  { %v7110_v9 = vpack.c.bf16 %v491_v24, %v487_v22  ;;  %v7112_v29 = vpack.c.bf16 %v804_v28, %v800_v56 }
  0xfb   :  { %v7114_v10 = vpack.c.bf16 %v493_v8, %v489_v3  ;;  %v7116_v11 = vpack.c.bf16 %v806_v27, %v802_v59  ;;  %1589 = vmatpush1.bf16.msra.mxu0 %v6761_v32  ;;  %1632 = vmatpush1.bf16.msra.mxu1 %v6772_v34 }
  0xfc   :  { %9891 = vst [vmem:[#allocation4_spill] sm:$0xff] %v7110_v9  ;;  %9892 = vst [vmem:[#allocation5_spill] sm:$0xff] %v7112_v29  ;;  %1590 = vmatprep.subr.bf16.mxu0 %v6783_v35  ;;  %1633 = vmatprep.subr.bf16.mxu1 %v6798_v38 }
  0xfd   :  { %9893 = vst [vmem:[#allocation6_spill] sm:$0xff] %v7114_v10  ;;  %9894 = vst [vmem:[#allocation7_spill] sm:$0xff] %v7116_v11  ;;  %v496_v31 = vpop.f32.mrb[16].mxu0  ;;  %v809_v33 = vpop.f32.mrb[16].mxu1  ;;  %v1579_v11 = vunpack.c.h.bf16 %v7066_v63 }
  0xfe   :  { %v498_v13 = vpop.f32.mrb[17].mxu0  ;;  %v810_v15 = vadd.f32 %v809_v33, %v7017_v30  ;;  %v811_v16 = vpop.f32.mrb[17].mxu1  ;;  %v497_v32 = vadd.f32 %v496_v31, %v7023_v40 }
  0xff   :  { %v500_v19 = vpop.f32.mrb[18].mxu0  ;;  %v812_v18 = vadd.f32 %v811_v16, %v7021_v37  ;;  %v813_v25 = vpop.f32.mrb[18].mxu1  ;;  %1591 = vmatpush1.bf16.msra.mxu0 %v6789_v36  ;;  %1634 = vmatpush1.bf16.msra.mxu1 %v6804_v39  ;;  %v499_v47 = vadd.f32 %v498_v13, %v7025_v46 }
 0x100   :  { %v501_v34 = vadd.f32 %v500_v19, %v7023_v40  ;;  %v502_v35 = vpop.f32.mrb[19].mxu0  ;;  %v814_v38 = vadd.f32 %v813_v25, %v7017_v30  ;;  %v815_v44 = vpop.f32.mrb[19].mxu1  ;;  %1592 = vmatprep.subr.bf16.mxu0 %v6820_v41  ;;  %1635 = vmatprep.subr.bf16.mxu1 %v6832_v43 }
 0x101   :  { %v503_v17 = vadd.f32 %v502_v35, %v7025_v46  ;;  %v816_v36 = vadd.f32 %v815_v44, %v7021_v37 }
 0x102   :  { %v7134_v21 = vpack.c.bf16 %v501_v34, %v497_v32  ;;  %v7136_v39 = vpack.c.bf16 %v814_v38, %v810_v15 }
 0x103   :  { %v7138_v23 = vpack.c.bf16 %v503_v17, %v499_v47  ;;  %v7140_v55 = vpack.c.bf16 %v816_v36, %v812_v18  ;;  %1593 = vmatpush1.bf16.msra.mxu0 %v6825_v42  ;;  %1636 = vmatpush1.bf16.msra.mxu1 %v6845_v45 }
 0x104   :  { %9895 = vst [vmem:[#allocation8_spill] sm:$0xff] %v7134_v21  ;;  %9896 = vst [vmem:[#allocation9_spill] sm:$0xff] %v7136_v39  ;;  %1594 = vmatprep.subr.bf16.mxu0 %v6865_v48  ;;  %1637 = vmatprep.subr.bf16.mxu1 %v6885_v51  ;;  %v1577_v21 = vunpack.c.h.bf16 %v7064_v62 }
 0x105   :  { %9897 = vst [vmem:[#allocation10_spill] sm:$0xff] %v7138_v23  ;;  %9898 = vst [vmem:[#allocation11_spill] sm:$0xff] %v7140_v55  ;;  %v506_v41 = vpop.f32.mrb[20].mxu0  ;;  %v819_v43 = vpop.f32.mrb[20].mxu1 }
 0x106   :  { %v508_v56 = vpop.f32.mrb[21].mxu0  ;;  %v820_v57 = vadd.f32 %v819_v43, %v7017_v30  ;;  %v821_v58 = vpop.f32.mrb[21].mxu1  ;;  %v507_v42 = vadd.f32 %v506_v41, %v7023_v40 }
 0x107   :  { %v510_v59 = vpop.f32.mrb[22].mxu0  ;;  %v822_v0 = vadd.f32 %v821_v58, %v7021_v37  ;;  %v823_v22 = vpop.f32.mrb[22].mxu1  ;;  %1595 = vmatpush1.bf16.msra.mxu0 %v6870_v49  ;;  %1638 = vmatpush1.bf16.msra.mxu1 %v6890_v52  ;;  %v509_v26 = vadd.f32 %v508_v56, %v7025_v46 }
 0x108   :  { %v511_v45 = vadd.f32 %v510_v59, %v7023_v40  ;;  %v512_v48 = vpop.f32.mrb[23].mxu0  ;;  %v824_v51 = vadd.f32 %v823_v22, %v7017_v30  ;;  %v825_v24 = vpop.f32.mrb[23].mxu1  ;;  %1716 = vmatprep.subr.bf16.mxu0 %v6639_v12  ;;  %1759 = vmatprep.subr.bf16.mxu1 %v6649_v14 }
 0x109   :  { %v513_v28 = vadd.f32 %v512_v48, %v7025_v46  ;;  %v826_v49 = vadd.f32 %v825_v24, %v7021_v37 }
 0x10a   :  { %v7158_v2 = vpack.c.bf16 %v511_v45, %v507_v42  ;;  %v7160_v52 = vpack.c.bf16 %v824_v51, %v820_v57 }
 0x10b   :  { %v7162_v3 = vpack.c.bf16 %v513_v28, %v509_v26  ;;  %v7164_v8 = vpack.c.bf16 %v826_v49, %v822_v0 }
 0x10c   :  { %9899 = vst [vmem:[#allocation12_spill] sm:$0xff] %v7158_v2  ;;  %9900 = vst [vmem:[#allocation13_spill] sm:$0xff] %v7160_v52  ;;  %v1578_v52 = vunpack.c.h.bf16 %v7062_v61 }
 0x10d   :  { %9901 = vst [vmem:[#allocation14_spill] sm:$0xff] %v7162_v3  ;;  %9902 = vst [vmem:[#allocation15_spill] sm:$0xff] %v7164_v8  ;;  %v516_v27 = vpop.f32.mrb[24].mxu0  ;;  %v829_v31 = vpop.f32.mrb[24].mxu1  ;;  %v1576_v3 = vunpack.c.h.bf16 %v7058_v60 }
 0x10e   :  { %v518_v33 = vpop.f32.mrb[25].mxu0  ;;  %v830_v12 = vadd.f32 %v829_v31, %v7017_v30  ;;  %v831_v14 = vpop.f32.mrb[25].mxu1  ;;  %v517_v19 = vadd.f32 %v516_v27, %v7023_v40 }
 0x10f   :  { %v520_v13 = vpop.f32.mrb[26].mxu0  ;;  %v832_v15 = vadd.f32 %v831_v14, %v7021_v37  ;;  %v833_v16 = vpop.f32.mrb[26].mxu1  ;;  %v519_v35 = vadd.f32 %v518_v33, %v7025_v46 }
 0x110   :  { %v521_v18 = vadd.f32 %v520_v13, %v7023_v40  ;;  %v522_v25 = vpop.f32.mrb[27].mxu0  ;;  %v834_v32 = vadd.f32 %v833_v16, %v7017_v30  ;;  %v835_v34 = vpop.f32.mrb[27].mxu1 }
 0x111   :  { %v523_v38 = vadd.f32 %v522_v25, %v7025_v46  ;;  %v836_v44 = vadd.f32 %v835_v34, %v7021_v37 }
 0x112   :  { %v7174_v47 = vpack.c.bf16 %v521_v18, %v517_v19  ;;  %v7176_v17 = vpack.c.bf16 %v834_v32, %v830_v12 }
 0x113   :  { %v7178_v36 = vpack.c.bf16 %v523_v38, %v519_v35  ;;  %v7180_v41 = vpack.c.bf16 %v836_v44, %v832_v15 }
 0x114   :  { %9903 = vst [vmem:[#allocation16_spill] sm:$0xff] %v7174_v47  ;;  %9904 = vst [vmem:[#allocation17_spill] sm:$0xff] %v7176_v17 }
 0x115   :  { %9905 = vst [vmem:[#allocation18_spill] sm:$0xff] %v7178_v36  ;;  %9906 = vst [vmem:[#allocation19_spill] sm:$0xff] %v7180_v41  ;;  %v526_v43 = vpop.f32.mrb[28].mxu0  ;;  %v839_v56 = vpop.f32.mrb[28].mxu1  ;;  %v1575_v41 = vunpack.c.l.bf16 %v7066_v63 }
 0x116   :  { %v528_v57 = vpop.f32.mrb[29].mxu0  ;;  %v840_v58 = vadd.f32 %v839_v56, %v7017_v30  ;;  %v841_v59 = vpop.f32.mrb[29].mxu1  ;;  %v527_v45 = vadd.f32 %v526_v43, %v7023_v40 }
 0x117   :  { %v530_v0 = vpop.f32.mrb[30].mxu0  ;;  %v842_v22 = vadd.f32 %v841_v59, %v7021_v37  ;;  %v843_v42 = vpop.f32.mrb[30].mxu1  ;;  %v529_v28 = vadd.f32 %v528_v57, %v7025_v46 }
 0x118   :  { %v531_v48 = vadd.f32 %v530_v0, %v7023_v40  ;;  %v532_v51 = vpop.f32.mrb[31].mxu0  ;;  %v844_v24 = vadd.f32 %v843_v42, %v7017_v30  ;;  %v845_v26 = vpop.f32.mrb[31].mxu1 }
 0x119   :  { %v533_v49 = vadd.f32 %v532_v51, %v7025_v46  ;;  %v846_v27 = vadd.f32 %v845_v26, %v7021_v37 }
 0x11a   :  { %v7190_v31 = vpack.c.bf16 %v531_v48, %v527_v45  ;;  %v7192_v33 = vpack.c.bf16 %v844_v24, %v840_v58 }
 0x11b   :  { %v7194_v12 = vpack.c.bf16 %v533_v49, %v529_v28  ;;  %v7196_v14 = vpack.c.bf16 %v846_v27, %v842_v22 }
 0x11c   :  { %9907 = vst [vmem:[#allocation20_spill] sm:$0xff] %v7190_v31  ;;  %9908 = vst [vmem:[#allocation21_spill] sm:$0xff] %v7192_v33  ;;  %v1573_v31 = vunpack.c.l.bf16 %v7064_v62 }
 0x11d   :  { %9909 = vst [vmem:[#allocation22_spill] sm:$0xff] %v7194_v12  ;;  %9910 = vst [vmem:[#allocation23_spill] sm:$0xff] %v7196_v14  ;;  %v536_v13 = vpop.f32.mrb[32].mxu0  ;;  %v849_v15 = vpop.f32.mrb[32].mxu1  ;;  %v1574_v14 = vunpack.c.l.bf16 %v7062_v61 }
 0x11e   :  { %v538_v16 = vpop.f32.mrb[33].mxu0  ;;  %v850_v19 = vadd.f32 %v849_v15, %v7017_v30  ;;  %v851_v18 = vpop.f32.mrb[33].mxu1  ;;  %v537_v35 = vadd.f32 %v536_v13, %v7023_v40 }
 0x11f   :  { %v540_v25 = vpop.f32.mrb[34].mxu0  ;;  %v852_v32 = vadd.f32 %v851_v18, %v7021_v37  ;;  %v853_v34 = vpop.f32.mrb[34].mxu1  ;;  %v539_v57 = vadd.f32 %v538_v16, %v7025_v46 }
 0x120   :  { %v541_v38 = vadd.f32 %v540_v25, %v7023_v40  ;;  %v542_v44 = vpop.f32.mrb[35].mxu0  ;;  %v854_v43 = vadd.f32 %v853_v34, %v7017_v30  ;;  %v855_v56 = vpop.f32.mrb[35].mxu1 }
 0x121   :  { %v543_v58 = vadd.f32 %v542_v44, %v7025_v46  ;;  %v856_v59 = vadd.f32 %v855_v56, %v7021_v37 }
 0x122   :  { %v7206_v0 = vpack.c.bf16 %v541_v38, %v537_v35  ;;  %v7208_v22 = vpack.c.bf16 %v854_v43, %v850_v19 }
 0x123   :  { %v7210_v42 = vpack.c.bf16 %v543_v58, %v539_v57  ;;  %v7212_v45 = vpack.c.bf16 %v856_v59, %v852_v32 }
 0x124   :  { %9911 = vst [vmem:[#allocation24_spill] sm:$0xff] %v7206_v0  ;;  %9912 = vst [vmem:[#allocation25_spill] sm:$0xff] %v7208_v22  ;;  %v7723_v22 = vld [vmem:[%s9780_s2 + $0xc] ss:$16 sps:$4 sm:$0xff]   ;;  %v1572_v0 = vunpack.c.l.bf16 %v7058_v60 }
 0x125   :  { %9913 = vst [vmem:[#allocation26_spill] sm:$0xff] %v7210_v42  ;;  %9914 = vst [vmem:[#allocation27_spill] sm:$0xff] %v7212_v45  ;;  %v546_v48 = vpop.f32.mrb[36].mxu0  ;;  %v859_v51 = vpop.f32.mrb[36].mxu1  ;;  %v7711_v45 = vld [vmem:[%s9780_s2 + $0xe8] ss:$16 sps:$4 sm:$0xff]  }
 0x126   :  { %v548_v24 = vpop.f32.mrb[37].mxu0  ;;  %v860_v26 = vadd.f32 %v859_v51, %v7017_v30  ;;  %v861_v28 = vpop.f32.mrb[37].mxu1  ;;  %v547_v15 = vadd.f32 %v546_v48, %v7023_v40  ;;  %v7717_v42 = vld [vmem:[%s9780_s2 + $0x4] ss:$16 sps:$4 sm:$0xff]  }
 0x127   :  { %v550_v49 = vpop.f32.mrb[38].mxu0  ;;  %v862_v27 = vadd.f32 %v861_v28, %v7021_v37  ;;  %v863_v13 = vpop.f32.mrb[38].mxu1  ;;  %v549_v32 = vadd.f32 %v548_v24, %v7025_v46 }
 0x128   :  { %v551_v16 = vadd.f32 %v550_v49, %v7023_v40  ;;  %v552_v19 = vpop.f32.mrb[39].mxu0  ;;  %v864_v18 = vadd.f32 %v863_v13, %v7017_v30  ;;  %v865_v25 = vpop.f32.mrb[39].mxu1 }
 0x129   :  { %v553_v34 = vadd.f32 %v552_v19, %v7025_v46  ;;  %v866_v35 = vadd.f32 %v865_v25, %v7021_v37 }
 0x12a   :  { %v7222_v38 = vpack.c.bf16 %v551_v16, %v547_v15  ;;  %v7224_v44 = vpack.c.bf16 %v864_v18, %v860_v26 }
 0x12b   :  { %v7226_v43 = vpack.c.bf16 %v553_v34, %v549_v32  ;;  %v7228_v56 = vpack.c.bf16 %v866_v35, %v862_v27 }
 0x12c   :  { %9915 = vst [vmem:[#allocation28_spill] sm:$0xff] %v7222_v38  ;;  %9916 = vst [vmem:[#allocation29_spill] sm:$0xff] %v7224_v44  ;;  %v7699_v44 = vld [vmem:[%s9780_s2 + $0xec] ss:$16 sps:$4 sm:$0xff]   ;;  %v7705_v38 = vld [vmem:[%s9780_s2 + $0xe0] ss:$16 sps:$4 sm:$0xff]  }
 0x12d   :  { %9917 = vst [vmem:[#allocation30_spill] sm:$0xff] %v7226_v43  ;;  %9918 = vst [vmem:[#allocation31_spill] sm:$0xff] %v7228_v56  ;;  %v556_v57 = vpop.f32.mrb[40].mxu0  ;;  %v869_v58 = vpop.f32.mrb[40].mxu1  ;;  %v7693_v43 = vld [vmem:[%s9780_s2 + $0xe4] ss:$16 sps:$4 sm:$0xff]  }
 0x12e   :  { %v558_v59 = vpop.f32.mrb[41].mxu0  ;;  %v870_v48 = vadd.f32 %v869_v58, %v7017_v30  ;;  %v871_v51 = vpop.f32.mrb[41].mxu1  ;;  %v557_v13 = vadd.f32 %v556_v57, %v7023_v40 }
 0x12f   :  { %v560_v28 = vpop.f32.mrb[42].mxu0  ;;  %v872_v24 = vadd.f32 %v871_v51, %v7021_v37  ;;  %v873_v49 = vpop.f32.mrb[42].mxu1  ;;  %v559_v27 = vadd.f32 %v558_v59, %v7025_v46 }
 0x130   :  { %v561_v15 = vadd.f32 %v560_v28, %v7023_v40  ;;  %v562_v26 = vpop.f32.mrb[43].mxu0  ;;  %v874_v16 = vadd.f32 %v873_v49, %v7017_v30  ;;  %v875_v19 = vpop.f32.mrb[43].mxu1 }
 0x131   :  { %v563_v18 = vadd.f32 %v562_v26, %v7025_v46  ;;  %v876_v25 = vadd.f32 %v875_v19, %v7021_v37 }
 0x132   :  { %v7238_v32 = vpack.c.bf16 %v561_v15, %v557_v13  ;;  %v7240_v34 = vpack.c.bf16 %v874_v16, %v870_v48 }
 0x133   :  { %v7242_v35 = vpack.c.bf16 %v563_v18, %v559_v27  ;;  %v7244_v58 = vpack.c.bf16 %v876_v25, %v872_v24 }
 0x134   :  { %9919 = vst [vmem:[#allocation32_spill] sm:$0xff] %v7238_v32  ;;  %9920 = vst [vmem:[#allocation33_spill] sm:$0xff] %v7240_v34 }
 0x135   :  { %9921 = vst [vmem:[#allocation34_spill] sm:$0xff] %v7242_v35  ;;  %9922 = vst [vmem:[#allocation35_spill] sm:$0xff] %v7244_v58  ;;  %v566_v57 = vpop.f32.mrb[44].mxu0  ;;  %v879_v51 = vpop.f32.mrb[44].mxu1 }
 0x136   :  { %v568_v28 = vpop.f32.mrb[45].mxu0  ;;  %v880_v49 = vadd.f32 %v879_v51, %v7017_v30  ;;  %v881_v1 = vpop.f32.mrb[45].mxu1  ;;  %v567_v19 = vadd.f32 %v566_v57, %v7023_v40 }
 0x137   :  { %v570_v56 = vpop.f32.mrb[46].mxu0  ;;  %v882_v59 = vadd.f32 %v881_v1, %v7021_v37  ;;  %v883_v26 = vpop.f32.mrb[46].mxu1  ;;  %v569_v24 = vadd.f32 %v568_v28, %v7025_v46 }
 0x138   :  { %v571_v13 = vadd.f32 %v570_v56, %v7023_v40  ;;  %v572_v48 = vpop.f32.mrb[47].mxu0  ;;  %v884_v15 = vadd.f32 %v883_v26, %v7017_v30  ;;  %v885_v16 = vpop.f32.mrb[47].mxu1 }
 0x139   :  { %v573_v27 = vadd.f32 %v572_v48, %v7025_v46  ;;  %v886_v18 = vadd.f32 %v885_v16, %v7021_v37 }
 0x13a   :  { %v7254_v25 = vpack.c.bf16 %v571_v13, %v567_v19  ;;  %v7256_v51 = vpack.c.bf16 %v884_v15, %v880_v49 }
 0x13b   :  { %v7258_v1 = vpack.c.bf16 %v573_v27, %v569_v24  ;;  %v7260_v58 = vpack.c.bf16 %v886_v18, %v882_v59 }
 0x13c   :  { %9923 = vst [vmem:[#allocation36_spill] sm:$0xff] %v7254_v25  ;;  %9924 = vst [vmem:[#allocation37_spill] sm:$0xff] %v7256_v51 }
 0x13d   :  { %9925 = vst [vmem:[#allocation38_spill] sm:$0xff] %v7258_v1  ;;  %9926 = vst [vmem:[#allocation39_spill] sm:$0xff] %v7260_v58  ;;  %v576_v57 = vpop.f32.mrb[48].mxu0  ;;  %v889_v56 = vpop.f32.mrb[48].mxu1 }
 0x13e   :  { %v578_v35 = vpop.f32.mrb[49].mxu0  ;;  %v890_v26 = vadd.f32 %v889_v56, %v7017_v30  ;;  %v891_v34 = vpop.f32.mrb[49].mxu1  ;;  %v577_v16 = vadd.f32 %v576_v57, %v7023_v40 }
 0x13f   :  { %v580_v32 = vpop.f32.mrb[50].mxu0  ;;  %v892_v28 = vadd.f32 %v891_v34, %v7021_v37  ;;  %v893_v48 = vpop.f32.mrb[50].mxu1  ;;  %v579_v59 = vadd.f32 %v578_v35, %v7025_v46 }
 0x140   :  { %v581_v19 = vadd.f32 %v580_v32, %v7023_v40  ;;  %v582_v49 = vpop.f32.mrb[51].mxu0  ;;  %v894_v13 = vadd.f32 %v893_v48, %v7017_v30  ;;  %v895_v15 = vpop.f32.mrb[51].mxu1 }
 0x141   :  { %v583_v24 = vadd.f32 %v582_v49, %v7025_v46  ;;  %v896_v27 = vadd.f32 %v895_v15, %v7021_v37 }
 0x142   :  { %v7270_v18 = vpack.c.bf16 %v581_v19, %v577_v16  ;;  %v7272_v56 = vpack.c.bf16 %v894_v13, %v890_v26 }
 0x143   :  { %v7274_v34 = vpack.c.bf16 %v583_v24, %v579_v59  ;;  %v7276_v58 = vpack.c.bf16 %v896_v27, %v892_v28 }
 0x144   :  { %9927 = vst [vmem:[#allocation40_spill] sm:$0xff] %v7270_v18  ;;  %9928 = vst [vmem:[#allocation41_spill] sm:$0xff] %v7272_v56 }
 0x145   :  { %9929 = vst [vmem:[#allocation42_spill] sm:$0xff] %v7274_v34  ;;  %9930 = vst [vmem:[#allocation43_spill] sm:$0xff] %v7276_v58  ;;  %v586_v57 = vpop.f32.mrb[52].mxu0  ;;  %v899_v32 = vpop.f32.mrb[52].mxu1 }
 0x146   :  { %v588_v1 = vpop.f32.mrb[53].mxu0  ;;  %v900_v48 = vadd.f32 %v899_v32, %v7017_v30  ;;  %v901_v51 = vpop.f32.mrb[53].mxu1  ;;  %v587_v15 = vadd.f32 %v586_v57, %v7023_v40 }
 0x147   :  { %v590_v25 = vpop.f32.mrb[54].mxu0  ;;  %v902_v35 = vadd.f32 %v901_v51, %v7021_v37  ;;  %v903_v49 = vpop.f32.mrb[54].mxu1  ;;  %v589_v28 = vadd.f32 %v588_v1, %v7025_v46 }
 0x148   :  { %v591_v16 = vadd.f32 %v590_v25, %v7023_v40  ;;  %v592_v26 = vpop.f32.mrb[55].mxu0  ;;  %v904_v19 = vadd.f32 %v903_v49, %v7017_v30  ;;  %v905_v13 = vpop.f32.mrb[55].mxu1 }
 0x149   :  { %v593_v59 = vadd.f32 %v592_v26, %v7025_v46  ;;  %v906_v24 = vadd.f32 %v905_v13, %v7021_v37 }
 0x14a   :  { %v7286_v27 = vpack.c.bf16 %v591_v16, %v587_v15  ;;  %v7288_v32 = vpack.c.bf16 %v904_v19, %v900_v48 }
 0x14b   :  { %v7290_v51 = vpack.c.bf16 %v593_v59, %v589_v28  ;;  %v7292_v58 = vpack.c.bf16 %v906_v24, %v902_v35 }
 0x14c   :  { %9931 = vst [vmem:[#allocation44_spill] sm:$0xff] %v7286_v27  ;;  %9932 = vst [vmem:[#allocation45_spill] sm:$0xff] %v7288_v32 }
 0x14d   :  { %9933 = vst [vmem:[#allocation46_spill] sm:$0xff] %v7290_v51  ;;  %9934 = vst [vmem:[#allocation47_spill] sm:$0xff] %v7292_v58  ;;  %v596_v57 = vpop.f32.mrb[56].mxu0  ;;  %v909_v25 = vpop.f32.mrb[56].mxu1 }
 0x14e   :  { %v598_v34 = vpop.f32.mrb[57].mxu0  ;;  %v910_v49 = vadd.f32 %v909_v25, %v7017_v30  ;;  %v911_v56 = vpop.f32.mrb[57].mxu1  ;;  %v597_v13 = vadd.f32 %v596_v57, %v7023_v40 }
 0x14f   :  { %v600_v18 = vpop.f32.mrb[58].mxu0  ;;  %v912_v1 = vadd.f32 %v911_v56, %v7021_v37  ;;  %v913_v26 = vpop.f32.mrb[58].mxu1  ;;  %v599_v35 = vadd.f32 %v598_v34, %v7025_v46 }
 0x150   :  { %v601_v15 = vadd.f32 %v600_v18, %v7023_v40  ;;  %v602_v48 = vpop.f32.mrb[59].mxu0  ;;  %v914_v16 = vadd.f32 %v913_v26, %v7017_v30  ;;  %v915_v19 = vpop.f32.mrb[59].mxu1 }
 0x151   :  { %v603_v28 = vadd.f32 %v602_v48, %v7025_v46  ;;  %v916_v59 = vadd.f32 %v915_v19, %v7021_v37 }
 0x152   :  { %v7302_v24 = vpack.c.bf16 %v601_v15, %v597_v13  ;;  %v7304_v25 = vpack.c.bf16 %v914_v16, %v910_v49 }
 0x153   :  { %v7306_v56 = vpack.c.bf16 %v603_v28, %v599_v35  ;;  %v7308_v58 = vpack.c.bf16 %v916_v59, %v912_v1 }
 0x154   :  { %9935 = vst [vmem:[#allocation48_spill] sm:$0xff] %v7302_v24  ;;  %9936 = vst [vmem:[#allocation49_spill] sm:$0xff] %v7304_v25 }
 0x155   :  { %9937 = vst [vmem:[#allocation50_spill] sm:$0xff] %v7306_v56  ;;  %9938 = vst [vmem:[#allocation51_spill] sm:$0xff] %v7308_v58  ;;  %v606_v57 = vpop.f32.mrb[60].mxu0  ;;  %v919_v18 = vpop.f32.mrb[60].mxu1 }
 0x156   :  { %v608_v51 = vpop.f32.mrb[61].mxu0  ;;  %v920_v26 = vadd.f32 %v919_v18, %v7017_v30  ;;  %v921_v32 = vpop.f32.mrb[61].mxu1  ;;  %v607_v19 = vadd.f32 %v606_v57, %v7023_v40 }
 0x157   :  { %v610_v27 = vpop.f32.mrb[62].mxu0  ;;  %v922_v34 = vadd.f32 %v921_v32, %v7021_v37  ;;  %v923_v48 = vpop.f32.mrb[62].mxu1  ;;  %v609_v1 = vadd.f32 %v608_v51, %v7025_v46 }
 0x158   :  { %v611_v13 = vadd.f32 %v610_v27, %v7023_v40  ;;  %v612_v49 = vpop.f32.mrb[63].mxu0  ;;  %v924_v15 = vadd.f32 %v923_v48, %v7017_v30  ;;  %v925_v16 = vpop.f32.mrb[63].mxu1 }
 0x159   :  { %v613_v35 = vadd.f32 %v612_v49, %v7025_v46  ;;  %v926_v28 = vadd.f32 %v925_v16, %v7021_v37 }
 0x15a   :  { %v7318_v59 = vpack.c.bf16 %v611_v13, %v607_v19  ;;  %v7320_v18 = vpack.c.bf16 %v924_v15, %v920_v26 }
 0x15b   :  { %v7322_v32 = vpack.c.bf16 %v613_v35, %v609_v1  ;;  %v7324_v58 = vpack.c.bf16 %v926_v28, %v922_v34 }
 0x15c   :  { %9939 = vst [vmem:[#allocation52_spill] sm:$0xff] %v7318_v59  ;;  %9940 = vst [vmem:[#allocation53_spill] sm:$0xff] %v7320_v18 }
 0x15d   :  { %9941 = vst [vmem:[#allocation54_spill] sm:$0xff] %v7322_v32  ;;  %9942 = vst [vmem:[#allocation55_spill] sm:$0xff] %v7324_v58  ;;  %v616_v57 = vpop.f32.mrb[64].mxu0  ;;  %v929_v27 = vpop.f32.mrb[64].mxu1 }
 0x15e   :  { %v618_v56 = vpop.f32.mrb[65].mxu0  ;;  %v930_v48 = vadd.f32 %v929_v27, %v7017_v30  ;;  %v931_v25 = vpop.f32.mrb[65].mxu1  ;;  %v617_v16 = vadd.f32 %v616_v57, %v7023_v40 }
 0x15f   :  { %v620_v24 = vpop.f32.mrb[66].mxu0  ;;  %v932_v51 = vadd.f32 %v931_v25, %v7021_v37  ;;  %v933_v49 = vpop.f32.mrb[66].mxu1  ;;  %v619_v34 = vadd.f32 %v618_v56, %v7025_v46 }
 0x160   :  { %v621_v19 = vadd.f32 %v620_v24, %v7023_v40  ;;  %v622_v26 = vpop.f32.mrb[67].mxu0  ;;  %v934_v13 = vadd.f32 %v933_v49, %v7017_v30  ;;  %v935_v15 = vpop.f32.mrb[67].mxu1 }
 0x161   :  { %v623_v1 = vadd.f32 %v622_v26, %v7025_v46  ;;  %v936_v35 = vadd.f32 %v935_v15, %v7021_v37 }
 0x162   :  { %v7334_v28 = vpack.c.bf16 %v621_v19, %v617_v16  ;;  %v7336_v27 = vpack.c.bf16 %v934_v13, %v930_v48 }
 0x163   :  { %v7338_v25 = vpack.c.bf16 %v623_v1, %v619_v34  ;;  %v7340_v58 = vpack.c.bf16 %v936_v35, %v932_v51 }
 0x164   :  { %9943 = vst [vmem:[#allocation56_spill] sm:$0xff] %v7334_v28  ;;  %9944 = vst [vmem:[#allocation57_spill] sm:$0xff] %v7336_v27 }
 0x165   :  { %9945 = vst [vmem:[#allocation58_spill] sm:$0xff] %v7338_v25  ;;  %9946 = vst [vmem:[#allocation59_spill] sm:$0xff] %v7340_v58  ;;  %v626_v57 = vpop.f32.mrb[68].mxu0  ;;  %v939_v24 = vpop.f32.mrb[68].mxu1 }
 0x166   :  { %v628_v32 = vpop.f32.mrb[69].mxu0  ;;  %v940_v49 = vadd.f32 %v939_v24, %v7017_v30  ;;  %v941_v18 = vpop.f32.mrb[69].mxu1  ;;  %v627_v15 = vadd.f32 %v626_v57, %v7023_v40 }
 0x167   :  { %v630_v59 = vpop.f32.mrb[70].mxu0  ;;  %v942_v56 = vadd.f32 %v941_v18, %v7021_v37  ;;  %v943_v26 = vpop.f32.mrb[70].mxu1  ;;  %v629_v51 = vadd.f32 %v628_v32, %v7025_v46 }
 0x168   :  { %v631_v16 = vadd.f32 %v630_v59, %v7023_v40  ;;  %v632_v48 = vpop.f32.mrb[71].mxu0  ;;  %v944_v19 = vadd.f32 %v943_v26, %v7017_v30  ;;  %v945_v13 = vpop.f32.mrb[71].mxu1 }
 0x169   :  { %v633_v34 = vadd.f32 %v632_v48, %v7025_v46  ;;  %v946_v1 = vadd.f32 %v945_v13, %v7021_v37 }
 0x16a   :  { %v7350_v35 = vpack.c.bf16 %v631_v16, %v627_v15  ;;  %v7352_v24 = vpack.c.bf16 %v944_v19, %v940_v49 }
 0x16b   :  { %v7354_v18 = vpack.c.bf16 %v633_v34, %v629_v51  ;;  %v7356_v58 = vpack.c.bf16 %v946_v1, %v942_v56 }
 0x16c   :  { %9947 = vst [vmem:[#allocation60_spill] sm:$0xff] %v7350_v35  ;;  %9948 = vst [vmem:[#allocation61_spill] sm:$0xff] %v7352_v24 }
 0x16d   :  { %9949 = vst [vmem:[#allocation62_spill] sm:$0xff] %v7354_v18  ;;  %9950 = vst [vmem:[#allocation63_spill] sm:$0xff] %v7356_v58  ;;  %v636_v57 = vpop.f32.mrb[72].mxu0  ;;  %v949_v59 = vpop.f32.mrb[72].mxu1 }
 0x16e   :  { %v638_v25 = vpop.f32.mrb[73].mxu0  ;;  %v950_v26 = vadd.f32 %v949_v59, %v7017_v30  ;;  %v951_v27 = vpop.f32.mrb[73].mxu1  ;;  %v637_v13 = vadd.f32 %v636_v57, %v7023_v40 }
 0x16f   :  { %v640_v28 = vpop.f32.mrb[74].mxu0  ;;  %v952_v32 = vadd.f32 %v951_v27, %v7021_v37  ;;  %v953_v48 = vpop.f32.mrb[74].mxu1  ;;  %v639_v56 = vadd.f32 %v638_v25, %v7025_v46 }
 0x170   :  { %v641_v15 = vadd.f32 %v640_v28, %v7023_v40  ;;  %v642_v49 = vpop.f32.mrb[75].mxu0  ;;  %v954_v16 = vadd.f32 %v953_v48, %v7017_v30  ;;  %v955_v19 = vpop.f32.mrb[75].mxu1 }
 0x171   :  { %v643_v51 = vadd.f32 %v642_v49, %v7025_v46  ;;  %v956_v34 = vadd.f32 %v955_v19, %v7021_v37 }
 0x172   :  { %v7366_v1 = vpack.c.bf16 %v641_v15, %v637_v13  ;;  %v7368_v59 = vpack.c.bf16 %v954_v16, %v950_v26 }
 0x173   :  { %v7370_v27 = vpack.c.bf16 %v643_v51, %v639_v56  ;;  %v7372_v58 = vpack.c.bf16 %v956_v34, %v952_v32 }
 0x174   :  { %9951 = vst [vmem:[#allocation64_spill] sm:$0xff] %v7366_v1  ;;  %9952 = vst [vmem:[#allocation65_spill] sm:$0xff] %v7368_v59 }
 0x175   :  { %9953 = vst [vmem:[#allocation66_spill] sm:$0xff] %v7370_v27  ;;  %9954 = vst [vmem:[#allocation67_spill] sm:$0xff] %v7372_v58  ;;  %v646_v57 = vpop.f32.mrb[76].mxu0  ;;  %v959_v28 = vpop.f32.mrb[76].mxu1 }
 0x176   :  { %v648_v18 = vpop.f32.mrb[77].mxu0  ;;  %v960_v48 = vadd.f32 %v959_v28, %v7017_v30  ;;  %v961_v24 = vpop.f32.mrb[77].mxu1  ;;  %v647_v19 = vadd.f32 %v646_v57, %v7023_v40 }
 0x177   :  { %v650_v35 = vpop.f32.mrb[78].mxu0  ;;  %v962_v25 = vadd.f32 %v961_v24, %v7021_v37  ;;  %v963_v49 = vpop.f32.mrb[78].mxu1  ;;  %v649_v32 = vadd.f32 %v648_v18, %v7025_v46 }
 0x178   :  { %v651_v13 = vadd.f32 %v650_v35, %v7023_v40  ;;  %v652_v26 = vpop.f32.mrb[79].mxu0  ;;  %v964_v15 = vadd.f32 %v963_v49, %v7017_v30  ;;  %v965_v16 = vpop.f32.mrb[79].mxu1 }
 0x179   :  { %v653_v56 = vadd.f32 %v652_v26, %v7025_v46  ;;  %v966_v51 = vadd.f32 %v965_v16, %v7021_v37 }
 0x17a   :  { %v7382_v34 = vpack.c.bf16 %v651_v13, %v647_v19  ;;  %v7384_v28 = vpack.c.bf16 %v964_v15, %v960_v48 }
 0x17b   :  { %v7386_v24 = vpack.c.bf16 %v653_v56, %v649_v32  ;;  %v7388_v58 = vpack.c.bf16 %v966_v51, %v962_v25 }
 0x17c   :  { %9955 = vst [vmem:[#allocation68_spill] sm:$0xff] %v7382_v34  ;;  %9956 = vst [vmem:[#allocation69_spill] sm:$0xff] %v7384_v28 }
 0x17d   :  { %9957 = vst [vmem:[#allocation70_spill] sm:$0xff] %v7386_v24  ;;  %9958 = vst [vmem:[#allocation71_spill] sm:$0xff] %v7388_v58  ;;  %v656_v57 = vpop.f32.mrb[80].mxu0  ;;  %v969_v35 = vpop.f32.mrb[80].mxu1 }
 0x17e   :  { %v658_v27 = vpop.f32.mrb[81].mxu0  ;;  %v970_v49 = vadd.f32 %v969_v35, %v7017_v30  ;;  %v971_v59 = vpop.f32.mrb[81].mxu1  ;;  %v657_v16 = vadd.f32 %v656_v57, %v7023_v40 }
 0x17f   :  { %v660_v1 = vpop.f32.mrb[82].mxu0  ;;  %v972_v18 = vadd.f32 %v971_v59, %v7021_v37  ;;  %v973_v26 = vpop.f32.mrb[82].mxu1  ;;  %v659_v25 = vadd.f32 %v658_v27, %v7025_v46 }
 0x180   :  { %v661_v19 = vadd.f32 %v660_v1, %v7023_v40  ;;  %v662_v48 = vpop.f32.mrb[83].mxu0  ;;  %v974_v13 = vadd.f32 %v973_v26, %v7017_v30  ;;  %v975_v15 = vpop.f32.mrb[83].mxu1 }
 0x181   :  { %v663_v32 = vadd.f32 %v662_v48, %v7025_v46  ;;  %v976_v56 = vadd.f32 %v975_v15, %v7021_v37 }
 0x182   :  { %v7398_v51 = vpack.c.bf16 %v661_v19, %v657_v16  ;;  %v7400_v35 = vpack.c.bf16 %v974_v13, %v970_v49 }
 0x183   :  { %v7402_v59 = vpack.c.bf16 %v663_v32, %v659_v25  ;;  %v7404_v58 = vpack.c.bf16 %v976_v56, %v972_v18 }
 0x184   :  { %9959 = vst [vmem:[#allocation72_spill] sm:$0xff] %v7398_v51  ;;  %9960 = vst [vmem:[#allocation73_spill] sm:$0xff] %v7400_v35 }
 0x185   :  { %9961 = vst [vmem:[#allocation74_spill] sm:$0xff] %v7402_v59  ;;  %9962 = vst [vmem:[#allocation75_spill] sm:$0xff] %v7404_v58  ;;  %v666_v57 = vpop.f32.mrb[84].mxu0  ;;  %v979_v1 = vpop.f32.mrb[84].mxu1 }
 0x186   :  { %v668_v24 = vpop.f32.mrb[85].mxu0  ;;  %v980_v26 = vadd.f32 %v979_v1, %v7017_v30  ;;  %v981_v28 = vpop.f32.mrb[85].mxu1  ;;  %v667_v15 = vadd.f32 %v666_v57, %v7023_v40 }
 0x187   :  { %v670_v34 = vpop.f32.mrb[86].mxu0  ;;  %v982_v27 = vadd.f32 %v981_v28, %v7021_v37  ;;  %v983_v48 = vpop.f32.mrb[86].mxu1  ;;  %v669_v18 = vadd.f32 %v668_v24, %v7025_v46 }
 0x188   :  { %v671_v16 = vadd.f32 %v670_v34, %v7023_v40  ;;  %v672_v49 = vpop.f32.mrb[87].mxu0  ;;  %v984_v19 = vadd.f32 %v983_v48, %v7017_v30  ;;  %v985_v13 = vpop.f32.mrb[87].mxu1 }
 0x189   :  { %v673_v25 = vadd.f32 %v672_v49, %v7025_v46  ;;  %v986_v32 = vadd.f32 %v985_v13, %v7021_v37 }
 0x18a   :  { %v7414_v56 = vpack.c.bf16 %v671_v16, %v667_v15  ;;  %v7416_v1 = vpack.c.bf16 %v984_v19, %v980_v26 }
 0x18b   :  { %v7418_v28 = vpack.c.bf16 %v673_v25, %v669_v18  ;;  %v7420_v58 = vpack.c.bf16 %v986_v32, %v982_v27 }
 0x18c   :  { %9963 = vst [vmem:[#allocation76_spill] sm:$0xff] %v7414_v56  ;;  %9964 = vst [vmem:[#allocation77_spill] sm:$0xff] %v7416_v1 }
 0x18d   :  { %9965 = vst [vmem:[#allocation78_spill] sm:$0xff] %v7418_v28  ;;  %9966 = vst [vmem:[#allocation79_spill] sm:$0xff] %v7420_v58  ;;  %v676_v57 = vpop.f32.mrb[88].mxu0  ;;  %v989_v34 = vpop.f32.mrb[88].mxu1 }
 0x18e   :  { %v678_v59 = vpop.f32.mrb[89].mxu0  ;;  %v990_v48 = vadd.f32 %v989_v34, %v7017_v30  ;;  %v991_v35 = vpop.f32.mrb[89].mxu1  ;;  %v677_v13 = vadd.f32 %v676_v57, %v7023_v40 }
 0x18f   :  { %v680_v51 = vpop.f32.mrb[90].mxu0  ;;  %v992_v24 = vadd.f32 %v991_v35, %v7021_v37  ;;  %v993_v49 = vpop.f32.mrb[90].mxu1  ;;  %v679_v27 = vadd.f32 %v678_v59, %v7025_v46 }
 0x190   :  { %v681_v15 = vadd.f32 %v680_v51, %v7023_v40  ;;  %v682_v26 = vpop.f32.mrb[91].mxu0  ;;  %v994_v16 = vadd.f32 %v993_v49, %v7017_v30  ;;  %v995_v19 = vpop.f32.mrb[91].mxu1 }
 0x191   :  { %v683_v18 = vadd.f32 %v682_v26, %v7025_v46  ;;  %v996_v25 = vadd.f32 %v995_v19, %v7021_v37 }
 0x192   :  { %v7430_v32 = vpack.c.bf16 %v681_v15, %v677_v13  ;;  %v7432_v34 = vpack.c.bf16 %v994_v16, %v990_v48 }
 0x193   :  { %v7434_v35 = vpack.c.bf16 %v683_v18, %v679_v27  ;;  %v7436_v58 = vpack.c.bf16 %v996_v25, %v992_v24 }
 0x194   :  { %9967 = vst [vmem:[#allocation80_spill] sm:$0xff] %v7430_v32  ;;  %9968 = vst [vmem:[#allocation81_spill] sm:$0xff] %v7432_v34 }
 0x195   :  { %9969 = vst [vmem:[#allocation82_spill] sm:$0xff] %v7434_v35  ;;  %9970 = vst [vmem:[#allocation83_spill] sm:$0xff] %v7436_v58  ;;  %v686_v57 = vpop.f32.mrb[92].mxu0  ;;  %v999_v51 = vpop.f32.mrb[92].mxu1 }
 0x196   :  { %v688_v28 = vpop.f32.mrb[93].mxu0  ;;  %v1000_v49 = vadd.f32 %v999_v51, %v7017_v30  ;;  %v1001_v1 = vpop.f32.mrb[93].mxu1  ;;  %v687_v19 = vadd.f32 %v686_v57, %v7023_v40 }
 0x197   :  { %v690_v56 = vpop.f32.mrb[94].mxu0  ;;  %v1002_v59 = vadd.f32 %v1001_v1, %v7021_v37  ;;  %v1003_v26 = vpop.f32.mrb[94].mxu1  ;;  %v689_v24 = vadd.f32 %v688_v28, %v7025_v46 }
 0x198   :  { %v691_v13 = vadd.f32 %v690_v56, %v7023_v40  ;;  %v692_v48 = vpop.f32.mrb[95].mxu0  ;;  %v1004_v15 = vadd.f32 %v1003_v26, %v7017_v30  ;;  %v1005_v16 = vpop.f32.mrb[95].mxu1 }
 0x199   :  { %v693_v27 = vadd.f32 %v692_v48, %v7025_v46  ;;  %v1006_v18 = vadd.f32 %v1005_v16, %v7021_v37 }
 0x19a   :  { %v7446_v25 = vpack.c.bf16 %v691_v13, %v687_v19  ;;  %v7448_v51 = vpack.c.bf16 %v1004_v15, %v1000_v49 }
 0x19b   :  { %v7450_v1 = vpack.c.bf16 %v693_v27, %v689_v24  ;;  %v7452_v58 = vpack.c.bf16 %v1006_v18, %v1002_v59 }
 0x19c   :  { %9971 = vst [vmem:[#allocation84_spill] sm:$0xff] %v7446_v25  ;;  %9972 = vst [vmem:[#allocation85_spill] sm:$0xff] %v7448_v51 }
 0x19d   :  { %9973 = vst [vmem:[#allocation86_spill] sm:$0xff] %v7450_v1  ;;  %9974 = vst [vmem:[#allocation87_spill] sm:$0xff] %v7452_v58  ;;  %v696_v57 = vpop.f32.mrb[96].mxu0  ;;  %v1009_v56 = vpop.f32.mrb[96].mxu1 }
 0x19e   :  { %v698_v35 = vpop.f32.mrb[97].mxu0  ;;  %v1010_v26 = vadd.f32 %v1009_v56, %v7017_v30  ;;  %v1011_v34 = vpop.f32.mrb[97].mxu1  ;;  %v697_v16 = vadd.f32 %v696_v57, %v7023_v40 }
 0x19f   :  { %v700_v32 = vpop.f32.mrb[98].mxu0  ;;  %v1012_v28 = vadd.f32 %v1011_v34, %v7021_v37  ;;  %v1013_v48 = vpop.f32.mrb[98].mxu1  ;;  %v699_v59 = vadd.f32 %v698_v35, %v7025_v46 }
 0x1a0   :  { %v701_v19 = vadd.f32 %v700_v32, %v7023_v40  ;;  %v702_v49 = vpop.f32.mrb[99].mxu0  ;;  %v1014_v13 = vadd.f32 %v1013_v48, %v7017_v30  ;;  %v1015_v15 = vpop.f32.mrb[99].mxu1 }
 0x1a1   :  { %v703_v24 = vadd.f32 %v702_v49, %v7025_v46  ;;  %v1016_v27 = vadd.f32 %v1015_v15, %v7021_v37 }
 0x1a2   :  { %v7462_v18 = vpack.c.bf16 %v701_v19, %v697_v16  ;;  %v7464_v56 = vpack.c.bf16 %v1014_v13, %v1010_v26 }
 0x1a3   :  { %v7466_v34 = vpack.c.bf16 %v703_v24, %v699_v59  ;;  %v7468_v58 = vpack.c.bf16 %v1016_v27, %v1012_v28 }
 0x1a4   :  { %9975 = vst [vmem:[#allocation88_spill] sm:$0xff] %v7462_v18  ;;  %9976 = vst [vmem:[#allocation89_spill] sm:$0xff] %v7464_v56 }
 0x1a5   :  { %9977 = vst [vmem:[#allocation90_spill] sm:$0xff] %v7466_v34  ;;  %9978 = vst [vmem:[#allocation91_spill] sm:$0xff] %v7468_v58  ;;  %v706_v57 = vpop.f32.mrb[100].mxu0  ;;  %v1019_v32 = vpop.f32.mrb[100].mxu1 }
 0x1a6   :  { %v708_v1 = vpop.f32.mrb[101].mxu0  ;;  %v1020_v48 = vadd.f32 %v1019_v32, %v7017_v30  ;;  %v1021_v51 = vpop.f32.mrb[101].mxu1  ;;  %v707_v15 = vadd.f32 %v706_v57, %v7023_v40 }
 0x1a7   :  { %v710_v25 = vpop.f32.mrb[102].mxu0  ;;  %v1022_v35 = vadd.f32 %v1021_v51, %v7021_v37  ;;  %v1023_v49 = vpop.f32.mrb[102].mxu1  ;;  %v709_v28 = vadd.f32 %v708_v1, %v7025_v46 }
 0x1a8   :  { %v711_v16 = vadd.f32 %v710_v25, %v7023_v40  ;;  %v712_v26 = vpop.f32.mrb[103].mxu0  ;;  %v1024_v19 = vadd.f32 %v1023_v49, %v7017_v30  ;;  %v1025_v13 = vpop.f32.mrb[103].mxu1 }
 0x1a9   :  { %v713_v59 = vadd.f32 %v712_v26, %v7025_v46  ;;  %v1026_v24 = vadd.f32 %v1025_v13, %v7021_v37 }
 0x1aa   :  { %v7478_v27 = vpack.c.bf16 %v711_v16, %v707_v15  ;;  %v7480_v32 = vpack.c.bf16 %v1024_v19, %v1020_v48 }
 0x1ab   :  { %v7482_v51 = vpack.c.bf16 %v713_v59, %v709_v28  ;;  %v7484_v58 = vpack.c.bf16 %v1026_v24, %v1022_v35 }
 0x1ac   :  { %9979 = vst [vmem:[#allocation92_spill] sm:$0xff] %v7478_v27  ;;  %9980 = vst [vmem:[#allocation93_spill] sm:$0xff] %v7480_v32 }
 0x1ad   :  { %9981 = vst [vmem:[#allocation94_spill] sm:$0xff] %v7482_v51  ;;  %9982 = vst [vmem:[#allocation95_spill] sm:$0xff] %v7484_v58  ;;  %v716_v57 = vpop.f32.mrb[104].mxu0  ;;  %v1029_v25 = vpop.f32.mrb[104].mxu1 }
 0x1ae   :  { %v718_v34 = vpop.f32.mrb[105].mxu0  ;;  %v1030_v49 = vadd.f32 %v1029_v25, %v7017_v30  ;;  %v1031_v56 = vpop.f32.mrb[105].mxu1  ;;  %v717_v13 = vadd.f32 %v716_v57, %v7023_v40 }
 0x1af   :  { %v720_v18 = vpop.f32.mrb[106].mxu0  ;;  %v1032_v1 = vadd.f32 %v1031_v56, %v7021_v37  ;;  %v1033_v26 = vpop.f32.mrb[106].mxu1  ;;  %v719_v35 = vadd.f32 %v718_v34, %v7025_v46 }
 0x1b0   :  { %v721_v15 = vadd.f32 %v720_v18, %v7023_v40  ;;  %v722_v48 = vpop.f32.mrb[107].mxu0  ;;  %v1034_v16 = vadd.f32 %v1033_v26, %v7017_v30  ;;  %v1035_v19 = vpop.f32.mrb[107].mxu1 }
 0x1b1   :  { %v723_v28 = vadd.f32 %v722_v48, %v7025_v46  ;;  %v1036_v59 = vadd.f32 %v1035_v19, %v7021_v37 }
 0x1b2   :  { %v7494_v24 = vpack.c.bf16 %v721_v15, %v717_v13  ;;  %v7496_v25 = vpack.c.bf16 %v1034_v16, %v1030_v49 }
 0x1b3   :  { %v7498_v56 = vpack.c.bf16 %v723_v28, %v719_v35  ;;  %v7500_v58 = vpack.c.bf16 %v1036_v59, %v1032_v1 }
 0x1b4   :  { %9983 = vst [vmem:[#allocation96_spill] sm:$0xff] %v7494_v24  ;;  %9984 = vst [vmem:[#allocation97_spill] sm:$0xff] %v7496_v25  ;;  %v7681_v25 = vld [vmem:[%s9780_s2 + $0xc0] ss:$16 sps:$4 sm:$0xff]   ;;  %v7687_v24 = vld [vmem:[%s9780_s2 + $0xc8] ss:$16 sps:$4 sm:$0xff]  }
 0x1b5   :  { %9985 = vst [vmem:[#allocation98_spill] sm:$0xff] %v7498_v56  ;;  %9986 = vst [vmem:[#allocation99_spill] sm:$0xff] %v7500_v58  ;;  %v726_v57 = vpop.f32.mrb[108].mxu0  ;;  %v1039_v18 = vpop.f32.mrb[108].mxu1  ;;  %v7675_v56 = vld [vmem:[%s9780_s2 + $0xcc] ss:$16 sps:$4 sm:$0xff]  }
 0x1b6   :  { %v728_v51 = vpop.f32.mrb[109].mxu0  ;;  %v1040_v26 = vadd.f32 %v1039_v18, %v7017_v30  ;;  %v1041_v32 = vpop.f32.mrb[109].mxu1  ;;  %v727_v19 = vadd.f32 %v726_v57, %v7023_v40 }
 0x1b7   :  { %v730_v27 = vpop.f32.mrb[110].mxu0  ;;  %v1042_v34 = vadd.f32 %v1041_v32, %v7021_v37  ;;  %v1043_v48 = vpop.f32.mrb[110].mxu1  ;;  %v729_v1 = vadd.f32 %v728_v51, %v7025_v46  ;;  %v1277_v51 = vunpack.c.l.bf16 %v7044_v6 }
 0x1b8   :  { %v731_v13 = vadd.f32 %v730_v27, %v7023_v40  ;;  %v732_v49 = vpop.f32.mrb[111].mxu0  ;;  %v1044_v15 = vadd.f32 %v1043_v48, %v7017_v30  ;;  %v1045_v16 = vpop.f32.mrb[111].mxu1  ;;  %v1276_v40 = vunpack.c.l.bf16 %v7038_v4  ;;  %v1278_v27 = vunpack.c.l.bf16 %v7042_v5 }
 0x1b9   :  { %v733_v35 = vadd.f32 %v732_v49, %v7025_v46  ;;  %v1046_v28 = vadd.f32 %v1045_v16, %v7021_v37  ;;  %v1279_v46 = vunpack.c.l.bf16 %v7046_v7  ;;  %v1282_v49 = vunpack.c.h.bf16 %v7042_v5 }
 0x1ba   :  { %v7510_v59 = vpack.c.bf16 %v731_v13, %v727_v19  ;;  %v7512_v18 = vpack.c.bf16 %v1044_v15, %v1040_v26  ;;  %v1280_v26 = vunpack.c.h.bf16 %v7038_v4 }
 0x1bb   :  { %v7514_v32 = vpack.c.bf16 %v733_v35, %v729_v1  ;;  %v7516_v58 = vpack.c.bf16 %v1046_v28, %v1042_v34  ;;  %v1281_v35 = vunpack.c.h.bf16 %v7044_v6  ;;  %v1283_v28 = vunpack.c.h.bf16 %v7046_v7 }
 0x1bc   :  { %9987 = vst [vmem:[#allocation100_spill] sm:$0xff] %v7510_v59  ;;  %9988 = vst [vmem:[#allocation101_spill] sm:$0xff] %v7512_v18 }
 0x1bd   :  { %9989 = vst [vmem:[#allocation102_spill] sm:$0xff] %v7514_v32  ;;  %9990 = vst [vmem:[#allocation103_spill] sm:$0xff] %v7516_v58  ;;  %v1478_v30 = vpop.f32.mrb[112].mxu0  ;;  %v1521_v57 = vpop.f32.mrb[112].mxu1 }
 0x1be   :  { %v1479_v48 = vadd.f32 %v1478_v30, %v1276_v40  ;;  %v1522_v37 = vadd.f32 %v1521_v57, %v1278_v27  ;;  %v1480_v19 = vpop.f32.mrb[113].mxu0  ;;  %v1523_v13 = vpop.f32.mrb[113].mxu1 }
 0x1bf   :  { %v1481_v34 = vadd.f32 %v1480_v19, %v1277_v51  ;;  %v1524_v15 = vadd.f32 %v1523_v13, %v1279_v46  ;;  %v1482_v16 = vpop.f32.mrb[114].mxu0  ;;  %v1525_v1 = vpop.f32.mrb[114].mxu1 }
 0x1c0   :  { %v1530_v58 = vmul.f32 0.5, %v1479_v48  ;;  %v1483_v32 = vadd.f32 %v1482_v16, %v1280_v26  ;;  %v1526_v18 = vadd.f32 %v1525_v1, %v1282_v49  ;;  %v1484_v59 = vpop.f32.mrb[115].mxu0  ;;  %v1527_v40 = vpop.f32.mrb[115].mxu1 }
 0x1c1   :  { %v1538_v27 = vmul.f32 0.5, %v1481_v34  ;;  %v1485_v30 = vadd.f32 %v1484_v59, %v1281_v35  ;;  %v1528_v57 = vadd.f32 %v1527_v40, %v1283_v28  ;;  %v1548_v7 = vmul.f32 0.5, %v1524_v15 }
 0x1c2   :  { %5801 = vtanh.f32 %v1530_v58  ;;  %v1531_v4 = vmul.f32 0.5, %v1483_v32 }
 0x1c3   :  { %5803 = vtanh.f32 %v1538_v27  ;;  %v1539_v5 = vmul.f32 0.5, %v1485_v30  ;;  %v1549_v19 = vmul.f32 0.5, %v1528_v57 }
 0x1c4   :  { %5805 = vtanh.f32 %v1531_v4 }
 0x1c5   :  { %5807 = vtanh.f32 %v1522_v37 }
 0x1c6   :  { %5809 = vtanh.f32 %v1539_v5 }
 0x1c7   :  { %5811 = vtanh.f32 %v1526_v18 }
 0x1c8   :  { %5813 = vtanh.f32 %v1548_v7 }
 0x1c9   :  { %5815 = vtanh.f32 %v1549_v19 }
 0x1cc   :  { %v5802_v51 = vpop.eup %5801 }
 0x1cd   :  { %v5804_v6 = vpop.eup %5803  ;;  %v1534_v46 = vmul.f32 0.5, %v5802_v51 }
 0x1ce   :  { %v1542_v48 = vmul.f32 0.5, %v5804_v6  ;;  %v5806_v13 = vpop.eup %5805 }
 0x1cf   :  { %v1536_v26 = vadd.f32 0.5, %v1534_v46  ;;  %v5808_v49 = vpop.eup %5807  ;;  %v1535_v59 = vmul.f32 0.5, %v5806_v13 }
 0x1d0   :  { %v1544_v34 = vadd.f32 0.5, %v1542_v48  ;;  %v5810_v16 = vpop.eup %5809 }
 0x1d1   :  { %v1558_v58 = vmul.f32 %v5808_v49, %v1536_v26  ;;  %v1537_v1 = vadd.f32 0.5, %v1535_v59  ;;  %v1543_v35 = vmul.f32 0.5, %v5810_v16  ;;  %v5812_v37 = vpop.eup %5811  ;;  %v7535_v26 = vld [vmem:[%s9780_s2] ss:$16 sps:$4 sm:$0xff]   ;;  %v7541_v49 = vld [vmem:[%s9780_s2 + $0x8] ss:$16 sps:$4 sm:$0xff]  }
 0x1d2   :  { %v1556_v32 = vmul.f32 0.0, %v1544_v34  ;;  %v5814_v30 = vpop.eup %5813  ;;  %v7547_v34 = vld [vmem:[%s9780_s2 + $0x24] ss:$16 sps:$4 sm:$0xff]   ;;  %v7553_v59 = vld [vmem:[%s9780_s2 + $0x2c] ss:$16 sps:$4 sm:$0xff]   ;;  %v9991_v16 = vmov 0  }
 0x1d3   :  { %v1545_v28 = vadd.f32 0.5, %v1543_v35  ;;  %v1559_v40 = vmul.f32 %v5812_v37, %v1537_v1  ;;  %v5816_v57 = vpop.eup %5815  ;;  %v1552_v4 = vmul.f32 0.5, %v5814_v30  ;;  %v7573_v1 = vld [vmem:[%s9780_s2 + $0x44] ss:$16 sps:$4 sm:$0xff]   ;;  %v7579_v35 = vld [vmem:[%s9780_s2 + $0x4c] ss:$16 sps:$4 sm:$0xff]  }
 0x1d4   :  { %v7526_v18 = vadd.f32 %v1558_v58, %v1556_v32  ;;  %v1553_v5 = vmul.f32 0.5, %v5816_v57  ;;  %v7561_v58 = vld [vmem:[%s9780_s2 + $0x20] ss:$16 sps:$4 sm:$0xff]   ;;  %v7567_v32 = vld [vmem:[%s9780_s2 + $0x28] ss:$16 sps:$4 sm:$0xff]  }
 0x1d5   :  { %v1557_v15 = vmul.f32 0.0, %v1545_v28  ;;  %v1554_v6 = vadd.f32 0.5, %v1552_v4  ;;  %v7585_v37 = vld [vmem:[%s9780_s2 + $0x40] ss:$16 sps:$4 sm:$0xff]   ;;  %v7591_v28 = vld [vmem:[%s9780_s2 + $0x48] ss:$16 sps:$4 sm:$0xff]  }
 0x1d6   :  { %5817 = vtanh.f32 %v7526_v18  ;;  %v1555_v46 = vadd.f32 0.5, %v1553_v5  ;;  %v7609_v30 = vld [vmem:[%s9780_s2 + $0x60] ss:$16 sps:$4 sm:$0xff]   ;;  %v7615_v57 = vld [vmem:[%s9780_s2 + $0x68] ss:$16 sps:$4 sm:$0xff]  }
 0x1d7   :  { %v7529_v27 = vadd.f32 %v1559_v40, %v1557_v15  ;;  %v7597_v40 = vld [vmem:[%s9780_s2 + $0x64] ss:$16 sps:$4 sm:$0xff]   ;;  %v7603_v15 = vld [vmem:[%s9780_s2 + $0x6c] ss:$16 sps:$4 sm:$0xff]  }
 0x1d8   :  { %v7621_v4 = vld [vmem:[%s9780_s2 + $0x84] ss:$16 sps:$4 sm:$0xff]   ;;  %v7627_v5 = vld [vmem:[%s9780_s2 + $0x8c] ss:$16 sps:$4 sm:$0xff]  }
 0x1d9   :  { %5819 = vtanh.f32 %v7529_v27 }
 0x1e0   :  { %v5818_v51 = vpop.eup %5817 }
 0x1e1   :  { %v1564_v48 = vmul.f32 %v5818_v51, %v1554_v6  ;;  %v7633_v51 = vld [vmem:[%s9780_s2 + $0x80] ss:$16 sps:$4 sm:$0xff]   ;;  %v7639_v6 = vld [vmem:[%s9780_s2 + $0x88] ss:$16 sps:$4 sm:$0xff]  }
 0x1e3   :  { %v5820_v7 = vpop.eup %5819 }
 0x1e4   :  { %v1565_v19 = vmul.f32 %v5820_v7, %v1555_v46  ;;  %v7645_v46 = vld [vmem:[%s9780_s2 + $0xa4] ss:$16 sps:$4 sm:$0xff]   ;;  %v7651_v7 = vld [vmem:[%s9780_s2 + $0xac] ss:$16 sps:$4 sm:$0xff]  }
 0x1e6   :  { %v1566_v13 = vpack.c.bf16 %v1565_v19, %v1564_v48  ;;  %v7657_v48 = vld [vmem:[%s9780_s2 + $0xa0] ss:$16 sps:$4 sm:$0xff]   ;;  %v7663_v19 = vld [vmem:[%s9780_s2 + $0xa8] ss:$16 sps:$4 sm:$0xff]  }
 0x1e8   :  { %1613 = vmatmul.mubr.bf16.vlgmr.msra.gmra.mrb[116].mxu0 %v1566_v13  ;;  %1656 = vmatmul.mubr.bf16.vlgmr.msra.gmra.mrb[116].mxu1 %v1566_v13  ;;  %v7669_v13 = vld [vmem:[%s9780_s2 + $0xc4] ss:$16 sps:$4 sm:$0xff]  }
 0x1e9   :  { %1717 = vmatpush1.bf16.msra.mxu0 %v7535_v26  ;;  %1760 = vmatpush1.bf16.msra.mxu1 %v7541_v49 }
 0x1ea   :  { %1718 = vmatprep.subr.bf16.mxu0 %v7547_v34  ;;  %1761 = vmatprep.subr.bf16.mxu1 %v7553_v59 }
 0x1eb   :  { %1748 = vmatprep.mubr.bf16.mxu0 %v9991_v16  ;;  %1791 = vmatprep.mubr.bf16.mxu1 %v9991_v16 }
 0x1ed   :  { %1719 = vmatpush1.bf16.msra.mxu0 %v7561_v58  ;;  %1762 = vmatpush1.bf16.msra.mxu1 %v7567_v32 }
 0x1ee   :  { %1720 = vmatprep.subr.bf16.mxu0 %v7573_v1  ;;  %1763 = vmatprep.subr.bf16.mxu1 %v7579_v35 }
 0x1f1   :  { %1721 = vmatpush1.bf16.msra.mxu0 %v7585_v37  ;;  %1764 = vmatpush1.bf16.msra.mxu1 %v7591_v28 }
 0x1f2   :  { %1722 = vmatprep.subr.bf16.mxu0 %v7597_v40  ;;  %1765 = vmatprep.subr.bf16.mxu1 %v7603_v15 }
 0x1f5   :  { %1723 = vmatpush1.bf16.msra.mxu0 %v7609_v30  ;;  %1766 = vmatpush1.bf16.msra.mxu1 %v7615_v57 }
 0x1f6   :  { %1724 = vmatprep.subr.bf16.mxu0 %v7621_v4  ;;  %1767 = vmatprep.subr.bf16.mxu1 %v7627_v5 }
 0x1f9   :  { %1725 = vmatpush1.bf16.msra.mxu0 %v7633_v51  ;;  %1768 = vmatpush1.bf16.msra.mxu1 %v7639_v6 }
 0x1fa   :  { %1726 = vmatprep.subr.bf16.mxu0 %v7645_v46  ;;  %1769 = vmatprep.subr.bf16.mxu1 %v7651_v7 }
 0x1fd   :  { %1727 = vmatpush1.bf16.msra.mxu0 %v7657_v48  ;;  %1770 = vmatpush1.bf16.msra.mxu1 %v7663_v19 }
 0x1fe   :  { %1728 = vmatprep.subr.bf16.mxu0 %v7669_v13  ;;  %1771 = vmatprep.subr.bf16.mxu1 %v7675_v56 }
 0x201   :  { %1729 = vmatpush1.bf16.msra.mxu0 %v7681_v25  ;;  %1772 = vmatpush1.bf16.msra.mxu1 %v7687_v24 }
 0x202   :  { %1730 = vmatprep.subr.bf16.mxu0 %v7693_v43  ;;  %1773 = vmatprep.subr.bf16.mxu1 %v7699_v44 }
 0x205   :  { %1731 = vmatpush1.bf16.msra.mxu0 %v7705_v38  ;;  %1774 = vmatpush1.bf16.msra.mxu1 %v7711_v45 }
 0x206   :  { %1852 = vmatprep.subr.bf16.mxu0 %v7717_v42  ;;  %1895 = vmatprep.subr.bf16.mxu1 %v7723_v22 }
 0x2bb   :  { %v1614_v12 = vpop.f32.mrb[116].mxu0  ;;  %v1657_v33 = vpop.f32.mrb[116].mxu1 }
 0x2bc   :  { %v1615_v36 = vadd.f32 %v1614_v12, %v1572_v0  ;;  %v1658_v17 = vadd.f32 %v1657_v33, %v1574_v14  ;;  %v1616_v47 = vpop.f32.mrb[117].mxu0  ;;  %v1659_v8 = vpop.f32.mrb[117].mxu1 }
 0x2bd   :  { %v1617_v2 = vadd.f32 %v1616_v47, %v1573_v31  ;;  %v1660_v55 = vadd.f32 %v1659_v8, %v1575_v41  ;;  %v1618_v23 = vpop.f32.mrb[118].mxu0  ;;  %v1661_v39 = vpop.f32.mrb[118].mxu1 }
 0x2be   :  { %v1666_v10 = vmul.f32 0.5, %v1615_v36  ;;  %v1619_v29 = vadd.f32 %v1618_v23, %v1576_v3  ;;  %v1662_v9 = vadd.f32 %v1661_v39, %v1578_v52  ;;  %v1620_v54 = vpop.f32.mrb[119].mxu0  ;;  %v1663_v12 = vpop.f32.mrb[119].mxu1 }
 0x2bf   :  { %v1674_v33 = vmul.f32 0.5, %v1617_v2  ;;  %v1621_v14 = vadd.f32 %v1620_v54, %v1577_v21  ;;  %v1664_v0 = vadd.f32 %v1663_v12, %v1579_v11  ;;  %v1684_v63 = vmul.f32 0.5, %v1660_v55 }
 0x2c0   :  { %5821 = vtanh.f32 %v1666_v10  ;;  %v1667_v60 = vmul.f32 0.5, %v1619_v29 }
 0x2c1   :  { %5823 = vtanh.f32 %v1674_v33  ;;  %v1675_v61 = vmul.f32 0.5, %v1621_v14  ;;  %v1685_v23 = vmul.f32 0.5, %v1664_v0 }
 0x2c2   :  { %5825 = vtanh.f32 %v1667_v60 }
 0x2c3   :  { %5827 = vtanh.f32 %v1658_v17 }
 0x2c4   :  { %5829 = vtanh.f32 %v1675_v61 }
 0x2c5   :  { %5831 = vtanh.f32 %v1662_v9 }
 0x2c6   :  { %5833 = vtanh.f32 %v1684_v63 }
 0x2c7   :  { %5835 = vtanh.f32 %v1685_v23 }
 0x2ca   :  { %v5822_v8 = vpop.eup %5821 }
 0x2cb   :  { %v5824_v62 = vpop.eup %5823  ;;  %v1670_v47 = vmul.f32 0.5, %v5822_v8 }
 0x2cc   :  { %v1678_v36 = vmul.f32 0.5, %v5824_v62  ;;  %v5826_v39 = vpop.eup %5825 }
 0x2cd   :  { %v1672_v52 = vadd.f32 0.5, %v1670_v47  ;;  %v5828_v3 = vpop.eup %5827  ;;  %v1671_v54 = vmul.f32 0.5, %v5826_v39  ;;  %v1710_v39 = vunpack.c.l.bf16 %v7088_v20 }
 0x2ce   :  { %v1680_v2 = vadd.f32 0.5, %v1678_v36  ;;  %v5830_v11 = vpop.eup %5829 }
 0x2cf   :  { %v1694_v10 = vmul.f32 %v5828_v3, %v1672_v52  ;;  %v1673_v21 = vadd.f32 0.5, %v1671_v54  ;;  %v1679_v17 = vmul.f32 0.5, %v5830_v11  ;;  %v5832_v9 = vpop.eup %5831  ;;  %v9992_v54 = vld [vmem:[#allocation3_spill] sm:$0xff] }
 0x2d0   :  { %v1692_v29 = vmul.f32 %v1680_v2, %v7526_v18  ;;  %v5834_v14 = vpop.eup %5833  ;;  %v1709_v2 = vunpack.c.l.bf16 %v7090_v53  ;;  %v1711_v11 = vunpack.c.l.bf16 %v9992_v54 }
 0x2d1   :  { %v1681_v31 = vadd.f32 0.5, %v1679_v17  ;;  %v1695_v55 = vmul.f32 %v5832_v9, %v1673_v21  ;;  %v5836_v0 = vpop.eup %5835  ;;  %v1688_v60 = vmul.f32 0.5, %v5834_v14  ;;  %v1712_v9 = vunpack.c.h.bf16 %v7086_v50 }
 0x2d2   :  { %v7735_v41 = vadd.f32 %v1694_v10, %v1692_v29  ;;  %v1689_v18 = vmul.f32 0.5, %v5836_v0 }
 0x2d3   :  { %v1693_v12 = vmul.f32 %v1681_v31, %v7529_v27  ;;  %v1690_v8 = vadd.f32 0.5, %v1688_v60  ;;  %v1708_v27 = vunpack.c.l.bf16 %v7086_v50  ;;  %v1714_v31 = vunpack.c.h.bf16 %v7088_v20 }
 0x2d4   :  { %5837 = vtanh.f32 %v7735_v41  ;;  %v1691_v62 = vadd.f32 0.5, %v1689_v18  ;;  %v1713_v60 = vunpack.c.h.bf16 %v7090_v53  ;;  %v1715_v18 = vunpack.c.h.bf16 %v9992_v54 }
 0x2d5   :  { %v7739_v33 = vadd.f32 %v1695_v55, %v1693_v12 }
 0x2d7   :  { %5839 = vtanh.f32 %v7739_v33 }
 0x2de   :  { %v5838_v61 = vpop.eup %5837 }
 0x2df   :  { %v1700_v63 = vmul.f32 %v5838_v61, %v1690_v8 }
 0x2e1   :  { %v5840_v47 = vpop.eup %5839 }
 0x2e2   :  { %v1701_v36 = vmul.f32 %v5840_v47, %v1691_v62 }
 0x2e4   :  { %v1702_v23 = vpack.c.bf16 %v1701_v36, %v1700_v63 }
 0x2e6   :  { %1749 = vmatmul.mubr.bf16.vlgmr.msra.gmra.mrb[120].mxu0 %v1702_v23  ;;  %1792 = vmatmul.mubr.bf16.vlgmr.msra.gmra.mrb[120].mxu1 %v1702_v23 }
 0x2e7   :  { %1853 = vmatpush1.bf16.msra.mxu0 %v7535_v26  ;;  %1896 = vmatpush1.bf16.msra.mxu1 %v7541_v49 }
 0x2e8   :  { %1854 = vmatprep.subr.bf16.mxu0 %v7547_v34  ;;  %1897 = vmatprep.subr.bf16.mxu1 %v7553_v59 }
 0x2e9   :  { %1884 = vmatprep.mubr.bf16.mxu0 %v9991_v16  ;;  %1927 = vmatprep.mubr.bf16.mxu1 %v9991_v16 }
 0x2eb   :  { %1855 = vmatpush1.bf16.msra.mxu0 %v7561_v58  ;;  %1898 = vmatpush1.bf16.msra.mxu1 %v7567_v32 }
 0x2ec   :  { %1856 = vmatprep.subr.bf16.mxu0 %v7573_v1  ;;  %1899 = vmatprep.subr.bf16.mxu1 %v7579_v35 }
 0x2ef   :  { %1857 = vmatpush1.bf16.msra.mxu0 %v7585_v37  ;;  %1900 = vmatpush1.bf16.msra.mxu1 %v7591_v28 }
 0x2f0   :  { %1858 = vmatprep.subr.bf16.mxu0 %v7597_v40  ;;  %1901 = vmatprep.subr.bf16.mxu1 %v7603_v15 }
 0x2f3   :  { %1859 = vmatpush1.bf16.msra.mxu0 %v7609_v30  ;;  %1902 = vmatpush1.bf16.msra.mxu1 %v7615_v57 }
 0x2f4   :  { %1860 = vmatprep.subr.bf16.mxu0 %v7621_v4  ;;  %1903 = vmatprep.subr.bf16.mxu1 %v7627_v5 }
 0x2f7   :  { %1861 = vmatpush1.bf16.msra.mxu0 %v7633_v51  ;;  %1904 = vmatpush1.bf16.msra.mxu1 %v7639_v6 }
 0x2f8   :  { %1862 = vmatprep.subr.bf16.mxu0 %v7645_v46  ;;  %1905 = vmatprep.subr.bf16.mxu1 %v7651_v7 }
 0x2fb   :  { %1863 = vmatpush1.bf16.msra.mxu0 %v7657_v48  ;;  %1906 = vmatpush1.bf16.msra.mxu1 %v7663_v19 }
 0x2fc   :  { %1864 = vmatprep.subr.bf16.mxu0 %v7669_v13  ;;  %1907 = vmatprep.subr.bf16.mxu1 %v7675_v56 }
 0x2ff   :  { %1865 = vmatpush1.bf16.msra.mxu0 %v7681_v25  ;;  %1908 = vmatpush1.bf16.msra.mxu1 %v7687_v24 }
 0x300   :  { %1866 = vmatprep.subr.bf16.mxu0 %v7693_v43  ;;  %1909 = vmatprep.subr.bf16.mxu1 %v7699_v44 }
 0x303   :  { %1867 = vmatpush1.bf16.msra.mxu0 %v7705_v38  ;;  %1910 = vmatpush1.bf16.msra.mxu1 %v7711_v45 }
 0x304   :  { %1988 = vmatprep.subr.bf16.mxu0 %v7717_v42  ;;  %2031 = vmatprep.subr.bf16.mxu1 %v7723_v22 }
 0x3b9   :  { %v1750_v52 = vpop.f32.mrb[120].mxu0  ;;  %v1793_v3 = vpop.f32.mrb[120].mxu1 }
 0x3ba   :  { %v1751_v10 = vadd.f32 %v1750_v52, %v1708_v27  ;;  %v1794_v29 = vadd.f32 %v1793_v3, %v1710_v39  ;;  %v1752_v21 = vpop.f32.mrb[121].mxu0  ;;  %v1795_v17 = vpop.f32.mrb[121].mxu1 }
 0x3bb   :  { %v1753_v55 = vadd.f32 %v1752_v21, %v1709_v2  ;;  %v1796_v12 = vadd.f32 %v1795_v17, %v1711_v11  ;;  %v1754_v14 = vpop.f32.mrb[122].mxu0  ;;  %v1797_v0 = vpop.f32.mrb[122].mxu1 }
 0x3bc   :  { %v1802_v61 = vmul.f32 0.5, %v1751_v10  ;;  %v1755_v8 = vadd.f32 %v1754_v14, %v1712_v9  ;;  %v1798_v62 = vadd.f32 %v1797_v0, %v1714_v31  ;;  %v1756_v47 = vpop.f32.mrb[123].mxu0  ;;  %v1799_v63 = vpop.f32.mrb[123].mxu1 }
 0x3bd   :  { %v1810_v36 = vmul.f32 0.5, %v1753_v55  ;;  %v1757_v23 = vadd.f32 %v1756_v47, %v1713_v60  ;;  %v1800_v27 = vadd.f32 %v1799_v63, %v1715_v18  ;;  %v1820_v3 = vmul.f32 0.5, %v1796_v12 }
 0x3be   :  { %5841 = vtanh.f32 %v1802_v61  ;;  %v1803_v50 = vmul.f32 0.5, %v1755_v8 }
 0x3bf   :  { %5843 = vtanh.f32 %v1810_v36  ;;  %v1811_v20 = vmul.f32 0.5, %v1757_v23  ;;  %v1821_v54 = vmul.f32 0.5, %v1800_v27 }
 0x3c0   :  { %5845 = vtanh.f32 %v1803_v50 }
 0x3c1   :  { %5847 = vtanh.f32 %v1794_v29 }
 0x3c2   :  { %5849 = vtanh.f32 %v1811_v20 }
 0x3c3   :  { %5851 = vtanh.f32 %v1798_v62 }
 0x3c4   :  { %5853 = vtanh.f32 %v1820_v3 }
 0x3c5   :  { %5855 = vtanh.f32 %v1821_v54 }
 0x3c8   :  { %v5842_v39 = vpop.eup %5841 }
 0x3c9   :  { %v5844_v53 = vpop.eup %5843  ;;  %v1806_v52 = vmul.f32 0.5, %v5842_v39 }
 0x3ca   :  { %v1814_v2 = vmul.f32 0.5, %v5844_v53  ;;  %v5846_v11 = vpop.eup %5845 }
 0x3cb   :  { %v1808_v10 = vadd.f32 0.5, %v1806_v52  ;;  %v5848_v21 = vpop.eup %5847  ;;  %v1807_v9 = vmul.f32 0.5, %v5846_v11 }
 0x3cc   :  { %v1816_v17 = vadd.f32 0.5, %v1814_v2  ;;  %v5850_v31 = vpop.eup %5849  ;;  %v9994_v2 = vld [vmem:[#allocation5_spill] sm:$0xff] }
 0x3cd   :  { %v1830_v55 = vmul.f32 %v5848_v21, %v1808_v10  ;;  %v1809_v0 = vadd.f32 0.5, %v1807_v9  ;;  %v1815_v29 = vmul.f32 0.5, %v5850_v31  ;;  %v5852_v60 = vpop.eup %5851  ;;  %v1846_v54 = vunpack.c.l.bf16 %v9994_v2  ;;  %v9995_v21 = vld [vmem:[#allocation6_spill] sm:$0xff]  ;;  %v9996_v9 = vld [vmem:[#allocation7_spill] sm:$0xff] }
 0x3ce   :  { %v1828_v14 = vmul.f32 %v1816_v17, %v7735_v41  ;;  %v5854_v47 = vpop.eup %5853  ;;  %v1845_v17 = vunpack.c.l.bf16 %v9995_v21  ;;  %v1847_v31 = vunpack.c.l.bf16 %v9996_v9 }
 0x3cf   :  { %v1817_v61 = vadd.f32 0.5, %v1815_v29  ;;  %v1831_v12 = vmul.f32 %v5852_v60, %v1809_v0  ;;  %v5856_v63 = vpop.eup %5855  ;;  %v1824_v36 = vmul.f32 0.5, %v5854_v47 }
 0x3d0   :  { %v7785_v18 = vadd.f32 %v1830_v55, %v1828_v14  ;;  %v1825_v41 = vmul.f32 0.5, %v5856_v63 }
 0x3d1   :  { %v1829_v8 = vmul.f32 %v1817_v61, %v7739_v33  ;;  %v1826_v27 = vadd.f32 0.5, %v1824_v36  ;;  %v9993_v33 = vld [vmem:[#allocation4_spill] sm:$0xff]  ;;  %v1850_v61 = vunpack.c.h.bf16 %v9994_v2  ;;  %v1849_v36 = vunpack.c.h.bf16 %v9995_v21 }
 0x3d2   :  { %5857 = vtanh.f32 %v7785_v18  ;;  %v1827_v50 = vadd.f32 0.5, %v1825_v41  ;;  %v1844_v3 = vunpack.c.l.bf16 %v9993_v33  ;;  %v1848_v60 = vunpack.c.h.bf16 %v9993_v33 }
 0x3d3   :  { %v7789_v62 = vadd.f32 %v1831_v12, %v1829_v8  ;;  %v1851_v41 = vunpack.c.h.bf16 %v9996_v9 }
 0x3d5   :  { %5859 = vtanh.f32 %v7789_v62 }
 0x3dc   :  { %v5858_v23 = vpop.eup %5857 }
 0x3dd   :  { %v1836_v39 = vmul.f32 %v5858_v23, %v1826_v27 }
 0x3df   :  { %v5860_v20 = vpop.eup %5859 }
 0x3e0   :  { %v1837_v53 = vmul.f32 %v5860_v20, %v1827_v50 }
 0x3e2   :  { %v1838_v52 = vpack.c.bf16 %v1837_v53, %v1836_v39 }
 0x3e4   :  { %1885 = vmatmul.mubr.bf16.vlgmr.msra.gmra.mrb[124].mxu0 %v1838_v52  ;;  %1928 = vmatmul.mubr.bf16.vlgmr.msra.gmra.mrb[124].mxu1 %v1838_v52 }
 0x3e5   :  { %1989 = vmatpush1.bf16.msra.mxu0 %v7535_v26  ;;  %2032 = vmatpush1.bf16.msra.mxu1 %v7541_v49 }
 0x3e6   :  { %1990 = vmatprep.subr.bf16.mxu0 %v7547_v34  ;;  %2033 = vmatprep.subr.bf16.mxu1 %v7553_v59 }
 0x3e7   :  { %2020 = vmatprep.mubr.bf16.mxu0 %v9991_v16  ;;  %2063 = vmatprep.mubr.bf16.mxu1 %v9991_v16 }
 0x3e9   :  { %1991 = vmatpush1.bf16.msra.mxu0 %v7561_v58  ;;  %2034 = vmatpush1.bf16.msra.mxu1 %v7567_v32 }
 0x3ea   :  { %1992 = vmatprep.subr.bf16.mxu0 %v7573_v1  ;;  %2035 = vmatprep.subr.bf16.mxu1 %v7579_v35 }
 0x3ed   :  { %1993 = vmatpush1.bf16.msra.mxu0 %v7585_v37  ;;  %2036 = vmatpush1.bf16.msra.mxu1 %v7591_v28 }
 0x3ee   :  { %1994 = vmatprep.subr.bf16.mxu0 %v7597_v40  ;;  %2037 = vmatprep.subr.bf16.mxu1 %v7603_v15 }
 0x3f1   :  { %1995 = vmatpush1.bf16.msra.mxu0 %v7609_v30  ;;  %2038 = vmatpush1.bf16.msra.mxu1 %v7615_v57 }
 0x3f2   :  { %1996 = vmatprep.subr.bf16.mxu0 %v7621_v4  ;;  %2039 = vmatprep.subr.bf16.mxu1 %v7627_v5 }
 0x3f5   :  { %1997 = vmatpush1.bf16.msra.mxu0 %v7633_v51  ;;  %2040 = vmatpush1.bf16.msra.mxu1 %v7639_v6 }
 0x3f6   :  { %1998 = vmatprep.subr.bf16.mxu0 %v7645_v46  ;;  %2041 = vmatprep.subr.bf16.mxu1 %v7651_v7 }
 0x3f9   :  { %1999 = vmatpush1.bf16.msra.mxu0 %v7657_v48  ;;  %2042 = vmatpush1.bf16.msra.mxu1 %v7663_v19 }
 0x3fa   :  { %2000 = vmatprep.subr.bf16.mxu0 %v7669_v13  ;;  %2043 = vmatprep.subr.bf16.mxu1 %v7675_v56 }
 0x3fd   :  { %2001 = vmatpush1.bf16.msra.mxu0 %v7681_v25  ;;  %2044 = vmatpush1.bf16.msra.mxu1 %v7687_v24 }
 0x3fe   :  { %2002 = vmatprep.subr.bf16.mxu0 %v7693_v43  ;;  %2045 = vmatprep.subr.bf16.mxu1 %v7699_v44 }
 0x401   :  { %2003 = vmatpush1.bf16.msra.mxu0 %v7705_v38  ;;  %2046 = vmatpush1.bf16.msra.mxu1 %v7711_v45 }
 0x402   :  { %2124 = vmatprep.subr.bf16.mxu0 %v7717_v42  ;;  %2167 = vmatprep.subr.bf16.mxu1 %v7723_v22 }
 0x4b7   :  { %v1886_v11 = vpop.f32.mrb[124].mxu0  ;;  %v1929_v10 = vpop.f32.mrb[124].mxu1 }
 0x4b8   :  { %v1887_v55 = vadd.f32 %v1886_v11, %v1844_v3  ;;  %v1930_v14 = vadd.f32 %v1929_v10, %v1846_v54  ;;  %v1888_v0 = vpop.f32.mrb[125].mxu0  ;;  %v1931_v29 = vpop.f32.mrb[125].mxu1 }
 0x4b9   :  { %v1889_v12 = vadd.f32 %v1888_v0, %v1845_v17  ;;  %v1932_v8 = vadd.f32 %v1931_v29, %v1847_v31  ;;  %v1890_v47 = vpop.f32.mrb[126].mxu0  ;;  %v1933_v63 = vpop.f32.mrb[126].mxu1 }
 0x4ba   :  { %v1938_v23 = vmul.f32 0.5, %v1887_v55  ;;  %v1891_v27 = vadd.f32 %v1890_v47, %v1848_v60  ;;  %v1934_v50 = vadd.f32 %v1933_v63, %v1850_v61  ;;  %v1892_v20 = vpop.f32.mrb[127].mxu0  ;;  %v1935_v39 = vpop.f32.mrb[127].mxu1 }
 0x4bb   :  { %v1946_v53 = vmul.f32 0.5, %v1889_v12  ;;  %v1893_v52 = vadd.f32 %v1892_v20, %v1849_v36  ;;  %v1936_v3 = vadd.f32 %v1935_v39, %v1851_v41  ;;  %v1956_v21 = vmul.f32 0.5, %v1932_v8 }
 0x4bc   :  { %5861 = vtanh.f32 %v1938_v23  ;;  %v1939_v33 = vmul.f32 0.5, %v1891_v27 }
 0x4bd   :  { %5863 = vtanh.f32 %v1946_v53  ;;  %v1947_v2 = vmul.f32 0.5, %v1893_v52  ;;  %v1957_v9 = vmul.f32 0.5, %v1936_v3 }
 0x4be   :  { %5865 = vtanh.f32 %v1939_v33 }
 0x4bf   :  { %5867 = vtanh.f32 %v1930_v14 }
 0x4c0   :  { %5869 = vtanh.f32 %v1947_v2 }
 0x4c1   :  { %5871 = vtanh.f32 %v1934_v50 }
 0x4c2   :  { %5873 = vtanh.f32 %v1956_v21 }
 0x4c3   :  { %5875 = vtanh.f32 %v1957_v9 }
 0x4c6   :  { %v5862_v54 = vpop.eup %5861 }
 0x4c7   :  { %v5864_v11 = vpop.eup %5863  ;;  %v1942_v10 = vmul.f32 0.5, %v5862_v54 }
 0x4c8   :  { %v1950_v17 = vmul.f32 0.5, %v5864_v11  ;;  %v5866_v31 = vpop.eup %5865 }
 0x4c9   :  { %v1944_v55 = vadd.f32 0.5, %v1942_v10  ;;  %v5868_v0 = vpop.eup %5867  ;;  %v1943_v60 = vmul.f32 0.5, %v5866_v31 }
 0x4ca   :  { %v1952_v29 = vadd.f32 0.5, %v1950_v17  ;;  %v5870_v61 = vpop.eup %5869  ;;  %v9998_v17 = vld [vmem:[#allocation9_spill] sm:$0xff] }
 0x4cb   :  { %v1966_v12 = vmul.f32 %v5868_v0, %v1944_v55  ;;  %v1945_v63 = vadd.f32 0.5, %v1943_v60  ;;  %v1951_v14 = vmul.f32 0.5, %v5870_v61  ;;  %v5872_v36 = vpop.eup %5871  ;;  %v1982_v9 = vunpack.c.l.bf16 %v9998_v17  ;;  %v9999_v0 = vld [vmem:[#allocation10_spill] sm:$0xff]  ;;  %v10000_v60 = vld [vmem:[#allocation11_spill] sm:$0xff] }
 0x4cc   :  { %v1964_v47 = vmul.f32 %v1952_v29, %v7785_v18  ;;  %v5874_v20 = vpop.eup %5873  ;;  %v1981_v29 = vunpack.c.l.bf16 %v9999_v0  ;;  %v1983_v61 = vunpack.c.l.bf16 %v10000_v60 }
 0x4cd   :  { %v1953_v23 = vadd.f32 0.5, %v1951_v14  ;;  %v1967_v8 = vmul.f32 %v5872_v36, %v1945_v63  ;;  %v5876_v39 = vpop.eup %5875  ;;  %v1960_v53 = vmul.f32 0.5, %v5874_v20 }
 0x4ce   :  { %v7835_v41 = vadd.f32 %v1966_v12, %v1964_v47  ;;  %v1961_v18 = vmul.f32 0.5, %v5876_v39 }
 0x4cf   :  { %v1965_v27 = vmul.f32 %v1953_v23, %v7789_v62  ;;  %v1962_v3 = vadd.f32 0.5, %v1960_v53  ;;  %v9997_v62 = vld [vmem:[#allocation8_spill] sm:$0xff]  ;;  %v1986_v23 = vunpack.c.h.bf16 %v9998_v17  ;;  %v1985_v53 = vunpack.c.h.bf16 %v9999_v0 }
 0x4d0   :  { %5877 = vtanh.f32 %v7835_v41  ;;  %v1963_v33 = vadd.f32 0.5, %v1961_v18  ;;  %v1980_v21 = vunpack.c.l.bf16 %v9997_v62  ;;  %v1984_v36 = vunpack.c.h.bf16 %v9997_v62 }
 0x4d1   :  { %v7839_v50 = vadd.f32 %v1967_v8, %v1965_v27  ;;  %v1987_v18 = vunpack.c.h.bf16 %v10000_v60 }
 0x4d3   :  { %5879 = vtanh.f32 %v7839_v50 }
 0x4da   :  { %v5878_v52 = vpop.eup %5877 }
 0x4db   :  { %v1972_v54 = vmul.f32 %v5878_v52, %v1962_v3 }
 0x4dd   :  { %v5880_v2 = vpop.eup %5879 }
 0x4de   :  { %v1973_v11 = vmul.f32 %v5880_v2, %v1963_v33 }
 0x4e0   :  { %v1974_v10 = vpack.c.bf16 %v1973_v11, %v1972_v54 }
 0x4e2   :  { %2021 = vmatmul.mubr.bf16.vlgmr.msra.gmra.mrb[128].mxu0 %v1974_v10  ;;  %2064 = vmatmul.mubr.bf16.vlgmr.msra.gmra.mrb[128].mxu1 %v1974_v10 }
 0x4e3   :  { %2125 = vmatpush1.bf16.msra.mxu0 %v7535_v26  ;;  %2168 = vmatpush1.bf16.msra.mxu1 %v7541_v49 }
 0x4e4   :  { %2126 = vmatprep.subr.bf16.mxu0 %v7547_v34  ;;  %2169 = vmatprep.subr.bf16.mxu1 %v7553_v59 }
 0x4e5   :  { %2156 = vmatprep.mubr.bf16.mxu0 %v9991_v16  ;;  %2199 = vmatprep.mubr.bf16.mxu1 %v9991_v16 }
 0x4e7   :  { %2127 = vmatpush1.bf16.msra.mxu0 %v7561_v58  ;;  %2170 = vmatpush1.bf16.msra.mxu1 %v7567_v32 }
 0x4e8   :  { %2128 = vmatprep.subr.bf16.mxu0 %v7573_v1  ;;  %2171 = vmatprep.subr.bf16.mxu1 %v7579_v35 }
 0x4eb   :  { %2129 = vmatpush1.bf16.msra.mxu0 %v7585_v37  ;;  %2172 = vmatpush1.bf16.msra.mxu1 %v7591_v28 }
 0x4ec   :  { %2130 = vmatprep.subr.bf16.mxu0 %v7597_v40  ;;  %2173 = vmatprep.subr.bf16.mxu1 %v7603_v15 }
 0x4ef   :  { %2131 = vmatpush1.bf16.msra.mxu0 %v7609_v30  ;;  %2174 = vmatpush1.bf16.msra.mxu1 %v7615_v57 }
 0x4f0   :  { %2132 = vmatprep.subr.bf16.mxu0 %v7621_v4  ;;  %2175 = vmatprep.subr.bf16.mxu1 %v7627_v5 }
 0x4f3   :  { %2133 = vmatpush1.bf16.msra.mxu0 %v7633_v51  ;;  %2176 = vmatpush1.bf16.msra.mxu1 %v7639_v6 }
 0x4f4   :  { %2134 = vmatprep.subr.bf16.mxu0 %v7645_v46  ;;  %2177 = vmatprep.subr.bf16.mxu1 %v7651_v7 }
 0x4f7   :  { %2135 = vmatpush1.bf16.msra.mxu0 %v7657_v48  ;;  %2178 = vmatpush1.bf16.msra.mxu1 %v7663_v19 }
 0x4f8   :  { %2136 = vmatprep.subr.bf16.mxu0 %v7669_v13  ;;  %2179 = vmatprep.subr.bf16.mxu1 %v7675_v56 }
 0x4fb   :  { %2137 = vmatpush1.bf16.msra.mxu0 %v7681_v25  ;;  %2180 = vmatpush1.bf16.msra.mxu1 %v7687_v24 }
 0x4fc   :  { %2138 = vmatprep.subr.bf16.mxu0 %v7693_v43  ;;  %2181 = vmatprep.subr.bf16.mxu1 %v7699_v44 }
 0x4ff   :  { %2139 = vmatpush1.bf16.msra.mxu0 %v7705_v38  ;;  %2182 = vmatpush1.bf16.msra.mxu1 %v7711_v45 }
 0x500   :  { %2260 = vmatprep.subr.bf16.mxu0 %v7717_v42  ;;  %2303 = vmatprep.subr.bf16.mxu1 %v7723_v22 }
 0x5b5   :  { %v2022_v31 = vpop.f32.mrb[128].mxu0  ;;  %v2065_v55 = vpop.f32.mrb[128].mxu1 }
 0x5b6   :  { %v2023_v12 = vadd.f32 %v2022_v31, %v1980_v21  ;;  %v2066_v47 = vadd.f32 %v2065_v55, %v1982_v9  ;;  %v2024_v63 = vpop.f32.mrb[129].mxu0  ;;  %v2067_v14 = vpop.f32.mrb[129].mxu1 }
 0x5b7   :  { %v2025_v8 = vadd.f32 %v2024_v63, %v1981_v29  ;;  %v2068_v27 = vadd.f32 %v2067_v14, %v1983_v61  ;;  %v2026_v20 = vpop.f32.mrb[130].mxu0  ;;  %v2069_v39 = vpop.f32.mrb[130].mxu1 }
 0x5b8   :  { %v2074_v52 = vmul.f32 0.5, %v2023_v12  ;;  %v2027_v3 = vadd.f32 %v2026_v20, %v1984_v36  ;;  %v2070_v33 = vadd.f32 %v2069_v39, %v1986_v23  ;;  %v2028_v2 = vpop.f32.mrb[131].mxu0  ;;  %v2071_v54 = vpop.f32.mrb[131].mxu1 }
 0x5b9   :  { %v2082_v11 = vmul.f32 0.5, %v2025_v8  ;;  %v2029_v10 = vadd.f32 %v2028_v2, %v1985_v53  ;;  %v2072_v21 = vadd.f32 %v2071_v54, %v1987_v18  ;;  %v2092_v0 = vmul.f32 0.5, %v2068_v27 }
 0x5ba   :  { %5881 = vtanh.f32 %v2074_v52  ;;  %v2075_v62 = vmul.f32 0.5, %v2027_v3 }
 0x5bb   :  { %5883 = vtanh.f32 %v2082_v11  ;;  %v2083_v17 = vmul.f32 0.5, %v2029_v10  ;;  %v2093_v60 = vmul.f32 0.5, %v2072_v21 }
 0x5bc   :  { %5885 = vtanh.f32 %v2075_v62 }
 0x5bd   :  { %5887 = vtanh.f32 %v2066_v47 }
 0x5be   :  { %5889 = vtanh.f32 %v2083_v17 }
 0x5bf   :  { %5891 = vtanh.f32 %v2070_v33 }
 0x5c0   :  { %5893 = vtanh.f32 %v2092_v0 }
 0x5c1   :  { %5895 = vtanh.f32 %v2093_v60 }
 0x5c4   :  { %v5882_v9 = vpop.eup %5881 }
 0x5c5   :  { %v5884_v31 = vpop.eup %5883  ;;  %v2078_v55 = vmul.f32 0.5, %v5882_v9 }
 0x5c6   :  { %v2086_v29 = vmul.f32 0.5, %v5884_v31  ;;  %v5886_v61 = vpop.eup %5885 }
 0x5c7   :  { %v2080_v12 = vadd.f32 0.5, %v2078_v55  ;;  %v5888_v63 = vpop.eup %5887  ;;  %v2079_v36 = vmul.f32 0.5, %v5886_v61 }
 0x5c8   :  { %v2088_v14 = vadd.f32 0.5, %v2086_v29  ;;  %v5890_v23 = vpop.eup %5889 }
 0x5c9   :  { %v2102_v8 = vmul.f32 %v5888_v63, %v2080_v12  ;;  %v2081_v39 = vadd.f32 0.5, %v2079_v36  ;;  %v2087_v47 = vmul.f32 0.5, %v5890_v23  ;;  %v5892_v53 = vpop.eup %5891 }
 0x5ca   :  { %v2100_v20 = vmul.f32 %v2088_v14, %v7835_v41  ;;  %v5894_v2 = vpop.eup %5893 }
 0x5cb   :  { %v2089_v52 = vadd.f32 0.5, %v2087_v47  ;;  %v2103_v27 = vmul.f32 %v5892_v53, %v2081_v39  ;;  %v5896_v54 = vpop.eup %5895  ;;  %v2096_v11 = vmul.f32 0.5, %v5894_v2 }
 0x5cc   :  { %v7885_v18 = vadd.f32 %v2102_v8, %v2100_v20  ;;  %v2097_v41 = vmul.f32 0.5, %v5896_v54 }
 0x5cd   :  { %v2101_v3 = vmul.f32 %v2089_v52, %v7839_v50  ;;  %v2098_v21 = vadd.f32 0.5, %v2096_v11 }
 0x5ce   :  { %5897 = vtanh.f32 %v7885_v18  ;;  %v2099_v62 = vadd.f32 0.5, %v2097_v41 }
 0x5cf   :  { %v7889_v33 = vadd.f32 %v2103_v27, %v2101_v3 }
 0x5d1   :  { %5899 = vtanh.f32 %v7889_v33 }
 0x5d8   :  { %v5898_v10 = vpop.eup %5897 }
 0x5d9   :  { %v2108_v9 = vmul.f32 %v5898_v10, %v2098_v21 }
 0x5db   :  { %v5900_v17 = vpop.eup %5899 }
 0x5dc   :  { %v2109_v31 = vmul.f32 %v5900_v17, %v2099_v62 }
 0x5de   :  { %v2110_v55 = vpack.c.bf16 %v2109_v31, %v2108_v9 }
 0x5e0   :  { %2157 = vmatmul.mubr.bf16.vlgmr.msra.gmra.mrb[132].mxu0 %v2110_v55  ;;  %2200 = vmatmul.mubr.bf16.vlgmr.msra.gmra.mrb[132].mxu1 %v2110_v55 }
 0x5e1   :  { %2261 = vmatpush1.bf16.msra.mxu0 %v7535_v26  ;;  %2304 = vmatpush1.bf16.msra.mxu1 %v7541_v49  ;;  %v10001_v26 = vld [vmem:[#allocation12_spill] sm:$0xff] }
 0x5e2   :  { %2262 = vmatprep.subr.bf16.mxu0 %v7547_v34  ;;  %2305 = vmatprep.subr.bf16.mxu1 %v7553_v59  ;;  %v2116_v49 = vunpack.c.l.bf16 %v10001_v26  ;;  %v10002_v34 = vld [vmem:[#allocation13_spill] sm:$0xff] }
 0x5e3   :  { %2292 = vmatprep.mubr.bf16.mxu0 %v9991_v16  ;;  %2335 = vmatprep.mubr.bf16.mxu1 %v9991_v16 }
 0x5e5   :  { %2263 = vmatpush1.bf16.msra.mxu0 %v7561_v58  ;;  %2306 = vmatpush1.bf16.msra.mxu1 %v7567_v32  ;;  %v10003_v58 = vld [vmem:[#allocation14_spill] sm:$0xff]  ;;  %v10004_v32 = vld [vmem:[#allocation15_spill] sm:$0xff] }
 0x5e6   :  { %2264 = vmatprep.subr.bf16.mxu0 %v7573_v1  ;;  %2307 = vmatprep.subr.bf16.mxu1 %v7579_v35 }
 0x5e9   :  { %2265 = vmatpush1.bf16.msra.mxu0 %v7585_v37  ;;  %2308 = vmatpush1.bf16.msra.mxu1 %v7591_v28 }
 0x5ea   :  { %2266 = vmatprep.subr.bf16.mxu0 %v7597_v40  ;;  %2309 = vmatprep.subr.bf16.mxu1 %v7603_v15  ;;  %v2121_v15 = vunpack.c.h.bf16 %v10003_v58 }
 0x5ed   :  { %2267 = vmatpush1.bf16.msra.mxu0 %v7609_v30  ;;  %2310 = vmatpush1.bf16.msra.mxu1 %v7615_v57  ;;  %v2123_v30 = vunpack.c.h.bf16 %v10004_v32 }
 0x5ee   :  { %2268 = vmatprep.subr.bf16.mxu0 %v7621_v4  ;;  %2311 = vmatprep.subr.bf16.mxu1 %v7627_v5 }
 0x5f1   :  { %2269 = vmatpush1.bf16.msra.mxu0 %v7633_v51  ;;  %2312 = vmatpush1.bf16.msra.mxu1 %v7639_v6 }
 0x5f2   :  { %2270 = vmatprep.subr.bf16.mxu0 %v7645_v46  ;;  %2313 = vmatprep.subr.bf16.mxu1 %v7651_v7 }
 0x5f5   :  { %2271 = vmatpush1.bf16.msra.mxu0 %v7657_v48  ;;  %2314 = vmatpush1.bf16.msra.mxu1 %v7663_v19 }
 0x5f6   :  { %2272 = vmatprep.subr.bf16.mxu0 %v7669_v13  ;;  %2315 = vmatprep.subr.bf16.mxu1 %v7675_v56  ;;  %v2118_v56 = vunpack.c.l.bf16 %v10002_v34 }
 0x5f9   :  { %2273 = vmatpush1.bf16.msra.mxu0 %v7681_v25  ;;  %2316 = vmatpush1.bf16.msra.mxu1 %v7687_v24  ;;  %v2117_v24 = vunpack.c.l.bf16 %v10003_v58  ;;  %v7971_v58 = vld [vmem:[%s9780_s2 + $0x20] ss:$16 sps:$4 sm:$0xff]  }
 0x5fa   :  { %2274 = vmatprep.subr.bf16.mxu0 %v7693_v43  ;;  %2317 = vmatprep.subr.bf16.mxu1 %v7699_v44  ;;  %v2119_v43 = vunpack.c.l.bf16 %v10004_v32  ;;  %v7983_v32 = vld [vmem:[%s9780_s2 + $0x44] ss:$16 sps:$4 sm:$0xff]  }
 0x5fd   :  { %2275 = vmatpush1.bf16.msra.mxu0 %v7705_v38  ;;  %2318 = vmatpush1.bf16.msra.mxu1 %v7711_v45  ;;  %v2120_v45 = vunpack.c.h.bf16 %v10001_v26 }
 0x5fe   :  { %2396 = vmatprep.subr.bf16.mxu0 %v7717_v42  ;;  %2439 = vmatprep.subr.bf16.mxu1 %v7723_v22  ;;  %v2122_v42 = vunpack.c.h.bf16 %v10002_v34 }
 0x6b3   :  { %v2158_v59 = vpop.f32.mrb[132].mxu0  ;;  %v2201_v25 = vpop.f32.mrb[132].mxu1 }
 0x6b4   :  { %v2159_v1 = vadd.f32 %v2158_v59, %v2116_v49  ;;  %v2202_v44 = vadd.f32 %v2201_v25, %v2118_v56  ;;  %v2160_v35 = vpop.f32.mrb[133].mxu0  ;;  %v2203_v38 = vpop.f32.mrb[133].mxu1  ;;  %v7951_v56 = vld [vmem:[%s9780_s2 + $0x8] ss:$16 sps:$4 sm:$0xff]   ;;  %v7957_v59 = vld [vmem:[%s9780_s2 + $0x24] ss:$16 sps:$4 sm:$0xff]  }
 0x6b5   :  { %v2161_v37 = vadd.f32 %v2160_v35, %v2117_v24  ;;  %v2204_v22 = vadd.f32 %v2203_v38, %v2119_v43  ;;  %v2162_v28 = vpop.f32.mrb[134].mxu0  ;;  %v2205_v40 = vpop.f32.mrb[134].mxu1  ;;  %v7963_v25 = vld [vmem:[%s9780_s2 + $0x2c] ss:$16 sps:$4 sm:$0xff]   ;;  %v7977_v24 = vld [vmem:[%s9780_s2 + $0x28] ss:$16 sps:$4 sm:$0xff]  }
 0x6b6   :  { %v2210_v57 = vmul.f32 0.5, %v2159_v1  ;;  %v2163_v4 = vadd.f32 %v2162_v28, %v2120_v45  ;;  %v2206_v5 = vadd.f32 %v2205_v40, %v2122_v42  ;;  %v2164_v51 = vpop.f32.mrb[135].mxu0  ;;  %v2207_v6 = vpop.f32.mrb[135].mxu1  ;;  %v7989_v43 = vld [vmem:[%s9780_s2 + $0x4c] ss:$16 sps:$4 sm:$0xff]  }
 0x6b7   :  { %v2218_v46 = vmul.f32 0.5, %v2161_v37  ;;  %v2165_v7 = vadd.f32 %v2164_v51, %v2121_v15  ;;  %v2208_v48 = vadd.f32 %v2207_v6, %v2123_v30  ;;  %v2228_v60 = vmul.f32 0.5, %v2204_v22  ;;  %v7995_v1 = vld [vmem:[%s9780_s2 + $0x40] ss:$16 sps:$4 sm:$0xff]   ;;  %v8007_v35 = vld [vmem:[%s9780_s2 + $0x64] ss:$16 sps:$4 sm:$0xff]  }
 0x6b8   :  { %5901 = vtanh.f32 %v2210_v57  ;;  %v2211_v19 = vmul.f32 0.5, %v2163_v4  ;;  %v8013_v38 = vld [vmem:[%s9780_s2 + $0x6c] ss:$16 sps:$4 sm:$0xff]   ;;  %v8019_v45 = vld [vmem:[%s9780_s2 + $0x60] ss:$16 sps:$4 sm:$0xff]  }
 0x6b9   :  { %5903 = vtanh.f32 %v2218_v46  ;;  %v2219_v13 = vmul.f32 0.5, %v2165_v7  ;;  %v2229_v12 = vmul.f32 0.5, %v2208_v48  ;;  %v8025_v42 = vld [vmem:[%s9780_s2 + $0x68] ss:$16 sps:$4 sm:$0xff]   ;;  %v8031_v37 = vld [vmem:[%s9780_s2 + $0x84] ss:$16 sps:$4 sm:$0xff]  }
 0x6ba   :  { %5905 = vtanh.f32 %v2211_v19  ;;  %v8037_v22 = vld [vmem:[%s9780_s2 + $0x8c] ss:$16 sps:$4 sm:$0xff]   ;;  %v8043_v28 = vld [vmem:[%s9780_s2 + $0x80] ss:$16 sps:$4 sm:$0xff]   ;;  %v8049_v40 = vld [vmem:[%s9780_s2 + $0x88] ss:$16 sps:$4 sm:$0xff]  }
 0x6bb   :  { %5907 = vtanh.f32 %v2202_v44  ;;  %v8001_v44 = vld [vmem:[%s9780_s2 + $0x48] ss:$16 sps:$4 sm:$0xff]   ;;  %v8055_v15 = vld [vmem:[%s9780_s2 + $0xa4] ss:$16 sps:$4 sm:$0xff]   ;;  %v8061_v30 = vld [vmem:[%s9780_s2 + $0xac] ss:$16 sps:$4 sm:$0xff]  }
 0x6bc   :  { %5909 = vtanh.f32 %v2219_v13  ;;  %v8067_v57 = vld [vmem:[%s9780_s2 + $0xa0] ss:$16 sps:$4 sm:$0xff]   ;;  %v8073_v4 = vld [vmem:[%s9780_s2 + $0xa8] ss:$16 sps:$4 sm:$0xff]   ;;  %v8085_v51 = vld [vmem:[%s9780_s2 + $0xcc] ss:$16 sps:$4 sm:$0xff]  }
 0x6bd   :  { %5911 = vtanh.f32 %v2206_v5  ;;  %v8079_v5 = vld [vmem:[%s9780_s2 + $0xc4] ss:$16 sps:$4 sm:$0xff]   ;;  %v8091_v6 = vld [vmem:[%s9780_s2 + $0xc0] ss:$16 sps:$4 sm:$0xff]   ;;  %v8097_v46 = vld [vmem:[%s9780_s2 + $0xc8] ss:$16 sps:$4 sm:$0xff]  }
 0x6be   :  { %5913 = vtanh.f32 %v2228_v60  ;;  %v8103_v7 = vld [vmem:[%s9780_s2 + $0xe4] ss:$16 sps:$4 sm:$0xff]   ;;  %v8109_v48 = vld [vmem:[%s9780_s2 + $0xec] ss:$16 sps:$4 sm:$0xff]   ;;  %v8115_v19 = vld [vmem:[%s9780_s2 + $0xe0] ss:$16 sps:$4 sm:$0xff]  }
 0x6bf   :  { %5915 = vtanh.f32 %v2229_v12  ;;  %v8121_v13 = vld [vmem:[%s9780_s2 + $0xe8] ss:$16 sps:$4 sm:$0xff]  }
 0x6c2   :  { %v5902_v50 = vpop.eup %5901 }
 0x6c3   :  { %v5904_v0 = vpop.eup %5903  ;;  %v2214_v29 = vmul.f32 0.5, %v5902_v50  ;;  %v8127_v50 = vld [vmem:[%s9780_s2 + $0x4] ss:$16 sps:$4 sm:$0xff]  }
 0x6c4   :  { %v2222_v61 = vmul.f32 0.5, %v5904_v0  ;;  %v5906_v63 = vpop.eup %5905  ;;  %v8133_v0 = vld [vmem:[%s9780_s2 + $0xc] ss:$16 sps:$4 sm:$0xff]  }
 0x6c5   :  { %v2216_v14 = vadd.f32 0.5, %v2214_v29  ;;  %v5908_v36 = vpop.eup %5907  ;;  %v2215_v8 = vmul.f32 0.5, %v5906_v63  ;;  %v10005_v29 = vld [vmem:[#allocation16_spill] sm:$0xff] }
 0x6c6   :  { %v2224_v23 = vadd.f32 0.5, %v2222_v61  ;;  %v5910_v20 = vpop.eup %5909  ;;  %v2252_v60 = vunpack.c.l.bf16 %v10005_v29  ;;  %v10006_v61 = vld [vmem:[#allocation17_spill] sm:$0xff] }
 0x6c7   :  { %v2238_v39 = vmul.f32 %v5908_v36, %v2216_v14  ;;  %v2217_v53 = vadd.f32 0.5, %v2215_v8  ;;  %v2223_v52 = vmul.f32 0.5, %v5910_v20  ;;  %v5912_v27 = vpop.eup %5911  ;;  %v2254_v12 = vunpack.c.l.bf16 %v10006_v61  ;;  %v10007_v36 = vld [vmem:[#allocation18_spill] sm:$0xff]  ;;  %v10008_v8 = vld [vmem:[#allocation19_spill] sm:$0xff] }
 0x6c8   :  { %v2236_v47 = vmul.f32 %v2224_v23, %v7885_v18  ;;  %v5914_v10 = vpop.eup %5913  ;;  %v2253_v23 = vunpack.c.l.bf16 %v10007_v36  ;;  %v2255_v20 = vunpack.c.l.bf16 %v10008_v8 }
 0x6c9   :  { %v2225_v2 = vadd.f32 0.5, %v2223_v52  ;;  %v2239_v54 = vmul.f32 %v5912_v27, %v2217_v53  ;;  %v5916_v21 = vpop.eup %5915  ;;  %v2232_v62 = vmul.f32 0.5, %v5914_v10  ;;  %v2256_v27 = vunpack.c.h.bf16 %v10005_v29 }
 0x6ca   :  { %v7935_v3 = vadd.f32 %v2238_v39, %v2236_v47  ;;  %v2233_v18 = vmul.f32 0.5, %v5916_v21 }
 0x6cb   :  { %v2237_v11 = vmul.f32 %v2225_v2, %v7889_v33  ;;  %v2234_v9 = vadd.f32 0.5, %v2232_v62  ;;  %v7945_v33 = vld [vmem:[%s9780_s2] ss:$16 sps:$4 sm:$0xff]   ;;  %v2258_v2 = vunpack.c.h.bf16 %v10006_v61  ;;  %v2257_v62 = vunpack.c.h.bf16 %v10007_v36 }
 0x6cc   :  { %5917 = vtanh.f32 %v7935_v3  ;;  %v2235_v31 = vadd.f32 0.5, %v2233_v18  ;;  %v2259_v18 = vunpack.c.h.bf16 %v10008_v8 }
 0x6cd   :  { %v7939_v41 = vadd.f32 %v2239_v54, %v2237_v11 }
 0x6cf   :  { %5919 = vtanh.f32 %v7939_v41 }
 0x6d6   :  { %v5918_v17 = vpop.eup %5917 }
 0x6d7   :  { %v2244_v26 = vmul.f32 %v5918_v17, %v2234_v9 }
 0x6d9   :  { %v5920_v55 = vpop.eup %5919 }
 0x6da   :  { %v2245_v49 = vmul.f32 %v5920_v55, %v2235_v31 }
 0x6dc   :  { %v2246_v34 = vpack.c.bf16 %v2245_v49, %v2244_v26 }
 0x6de   :  { %2293 = vmatmul.mubr.bf16.vlgmr.msra.gmra.mrb[136].mxu0 %v2246_v34  ;;  %2336 = vmatmul.mubr.bf16.vlgmr.msra.gmra.mrb[136].mxu1 %v2246_v34 }
 0x6df   :  { %2397 = vmatpush1.bf16.msra.mxu0 %v7945_v33  ;;  %2440 = vmatpush1.bf16.msra.mxu1 %v7951_v56 }
 0x6e0   :  { %2398 = vmatprep.subr.bf16.mxu0 %v7957_v59  ;;  %2441 = vmatprep.subr.bf16.mxu1 %v7963_v25 }
 0x6e1   :  { %2428 = vmatprep.mubr.bf16.mxu0 %v9991_v16  ;;  %2471 = vmatprep.mubr.bf16.mxu1 %v9991_v16 }
 0x6e3   :  { %2399 = vmatpush1.bf16.msra.mxu0 %v7971_v58  ;;  %2442 = vmatpush1.bf16.msra.mxu1 %v7977_v24 }
 0x6e4   :  { %2400 = vmatprep.subr.bf16.mxu0 %v7983_v32  ;;  %2443 = vmatprep.subr.bf16.mxu1 %v7989_v43 }
 0x6e7   :  { %2401 = vmatpush1.bf16.msra.mxu0 %v7995_v1  ;;  %2444 = vmatpush1.bf16.msra.mxu1 %v8001_v44 }
 0x6e8   :  { %2402 = vmatprep.subr.bf16.mxu0 %v8007_v35  ;;  %2445 = vmatprep.subr.bf16.mxu1 %v8013_v38 }
 0x6eb   :  { %2403 = vmatpush1.bf16.msra.mxu0 %v8019_v45  ;;  %2446 = vmatpush1.bf16.msra.mxu1 %v8025_v42 }
 0x6ec   :  { %2404 = vmatprep.subr.bf16.mxu0 %v8031_v37  ;;  %2447 = vmatprep.subr.bf16.mxu1 %v8037_v22 }
 0x6ef   :  { %2405 = vmatpush1.bf16.msra.mxu0 %v8043_v28  ;;  %2448 = vmatpush1.bf16.msra.mxu1 %v8049_v40 }
 0x6f0   :  { %2406 = vmatprep.subr.bf16.mxu0 %v8055_v15  ;;  %2449 = vmatprep.subr.bf16.mxu1 %v8061_v30 }
 0x6f3   :  { %2407 = vmatpush1.bf16.msra.mxu0 %v8067_v57  ;;  %2450 = vmatpush1.bf16.msra.mxu1 %v8073_v4 }
 0x6f4   :  { %2408 = vmatprep.subr.bf16.mxu0 %v8079_v5  ;;  %2451 = vmatprep.subr.bf16.mxu1 %v8085_v51 }
 0x6f7   :  { %2409 = vmatpush1.bf16.msra.mxu0 %v8091_v6  ;;  %2452 = vmatpush1.bf16.msra.mxu1 %v8097_v46 }
 0x6f8   :  { %2410 = vmatprep.subr.bf16.mxu0 %v8103_v7  ;;  %2453 = vmatprep.subr.bf16.mxu1 %v8109_v48 }
 0x6fb   :  { %2411 = vmatpush1.bf16.msra.mxu0 %v8115_v19  ;;  %2454 = vmatpush1.bf16.msra.mxu1 %v8121_v13 }
 0x6fc   :  { %2532 = vmatprep.subr.bf16.mxu0 %v8127_v50  ;;  %2575 = vmatprep.subr.bf16.mxu1 %v8133_v0 }
 0x7b1   :  { %v2294_v63 = vpop.f32.mrb[136].mxu0  ;;  %v2337_v14 = vpop.f32.mrb[136].mxu1 }
 0x7b2   :  { %v2295_v39 = vadd.f32 %v2294_v63, %v2252_v60  ;;  %v2338_v47 = vadd.f32 %v2337_v14, %v2254_v12  ;;  %v2296_v53 = vpop.f32.mrb[137].mxu0  ;;  %v2339_v52 = vpop.f32.mrb[137].mxu1 }
 0x7b3   :  { %v2297_v54 = vadd.f32 %v2296_v53, %v2253_v23  ;;  %v2340_v11 = vadd.f32 %v2339_v52, %v2255_v20  ;;  %v2298_v10 = vpop.f32.mrb[138].mxu0  ;;  %v2341_v21 = vpop.f32.mrb[138].mxu1 }
 0x7b4   :  { %v2346_v17 = vmul.f32 0.5, %v2295_v39  ;;  %v2299_v9 = vadd.f32 %v2298_v10, %v2256_v27  ;;  %v2342_v31 = vadd.f32 %v2341_v21, %v2258_v2  ;;  %v2300_v55 = vpop.f32.mrb[139].mxu0  ;;  %v2343_v26 = vpop.f32.mrb[139].mxu1 }
 0x7b5   :  { %v2354_v49 = vmul.f32 0.5, %v2297_v54  ;;  %v2301_v34 = vadd.f32 %v2300_v55, %v2257_v62  ;;  %v2344_v60 = vadd.f32 %v2343_v26, %v2259_v18  ;;  %v2364_v36 = vmul.f32 0.5, %v2340_v11 }
 0x7b6   :  { %5921 = vtanh.f32 %v2346_v17  ;;  %v2347_v29 = vmul.f32 0.5, %v2299_v9 }
 0x7b7   :  { %5923 = vtanh.f32 %v2354_v49  ;;  %v2355_v61 = vmul.f32 0.5, %v2301_v34  ;;  %v2365_v8 = vmul.f32 0.5, %v2344_v60 }
 0x7b8   :  { %5925 = vtanh.f32 %v2347_v29 }
 0x7b9   :  { %5927 = vtanh.f32 %v2338_v47 }
 0x7ba   :  { %5929 = vtanh.f32 %v2355_v61 }
 0x7bb   :  { %5931 = vtanh.f32 %v2342_v31 }
 0x7bc   :  { %5933 = vtanh.f32 %v2364_v36 }
 0x7bd   :  { %5935 = vtanh.f32 %v2365_v8 }
 0x7c0   :  { %v5922_v12 = vpop.eup %5921 }
 0x7c1   :  { %v5924_v63 = vpop.eup %5923  ;;  %v2350_v14 = vmul.f32 0.5, %v5922_v12 }
 0x7c2   :  { %v2358_v23 = vmul.f32 0.5, %v5924_v63  ;;  %v5926_v20 = vpop.eup %5925 }
 0x7c3   :  { %v2352_v39 = vadd.f32 0.5, %v2350_v14  ;;  %v5928_v53 = vpop.eup %5927  ;;  %v2351_v27 = vmul.f32 0.5, %v5926_v20 }
 0x7c4   :  { %v2360_v52 = vadd.f32 0.5, %v2358_v23  ;;  %v5930_v2 = vpop.eup %5929  ;;  %v10010_v23 = vld [vmem:[#allocation21_spill] sm:$0xff] }
 0x7c5   :  { %v2374_v54 = vmul.f32 %v5928_v53, %v2352_v39  ;;  %v2353_v21 = vadd.f32 0.5, %v2351_v27  ;;  %v2359_v47 = vmul.f32 0.5, %v5930_v2  ;;  %v5932_v62 = vpop.eup %5931  ;;  %v2390_v8 = vunpack.c.l.bf16 %v10010_v23  ;;  %v10011_v53 = vld [vmem:[#allocation22_spill] sm:$0xff]  ;;  %v10012_v27 = vld [vmem:[#allocation23_spill] sm:$0xff] }
 0x7c6   :  { %v2372_v10 = vmul.f32 %v2360_v52, %v7935_v3  ;;  %v5934_v55 = vpop.eup %5933  ;;  %v2389_v52 = vunpack.c.l.bf16 %v10011_v53  ;;  %v2391_v2 = vunpack.c.l.bf16 %v10012_v27 }
 0x7c7   :  { %v2361_v17 = vadd.f32 0.5, %v2359_v47  ;;  %v2375_v11 = vmul.f32 %v5932_v62, %v2353_v21  ;;  %v5936_v26 = vpop.eup %5935  ;;  %v2368_v49 = vmul.f32 0.5, %v5934_v55 }
 0x7c8   :  { %v8145_v18 = vadd.f32 %v2374_v54, %v2372_v10  ;;  %v2369_v3 = vmul.f32 0.5, %v5936_v26 }
 0x7c9   :  { %v2373_v9 = vmul.f32 %v2361_v17, %v7939_v41  ;;  %v2370_v60 = vadd.f32 0.5, %v2368_v49  ;;  %v10009_v41 = vld [vmem:[#allocation20_spill] sm:$0xff]  ;;  %v2394_v17 = vunpack.c.h.bf16 %v10010_v23  ;;  %v2393_v49 = vunpack.c.h.bf16 %v10011_v53 }
 0x7ca   :  { %5937 = vtanh.f32 %v8145_v18  ;;  %v2371_v29 = vadd.f32 0.5, %v2369_v3  ;;  %v2388_v36 = vunpack.c.l.bf16 %v10009_v41  ;;  %v2392_v62 = vunpack.c.h.bf16 %v10009_v41 }
 0x7cb   :  { %v8149_v31 = vadd.f32 %v2375_v11, %v2373_v9  ;;  %v2395_v3 = vunpack.c.h.bf16 %v10012_v27 }
 0x7cd   :  { %5939 = vtanh.f32 %v8149_v31 }
 0x7d4   :  { %v5938_v34 = vpop.eup %5937 }
 0x7d5   :  { %v2380_v12 = vmul.f32 %v5938_v34, %v2370_v60 }
 0x7d7   :  { %v5940_v61 = vpop.eup %5939 }
 0x7d8   :  { %v2381_v63 = vmul.f32 %v5940_v61, %v2371_v29 }
 0x7da   :  { %v2382_v14 = vpack.c.bf16 %v2381_v63, %v2380_v12 }
 0x7dc   :  { %2429 = vmatmul.mubr.bf16.vlgmr.msra.gmra.mrb[140].mxu0 %v2382_v14  ;;  %2472 = vmatmul.mubr.bf16.vlgmr.msra.gmra.mrb[140].mxu1 %v2382_v14 }
 0x7dd   :  { %2533 = vmatpush1.bf16.msra.mxu0 %v7945_v33  ;;  %2576 = vmatpush1.bf16.msra.mxu1 %v7951_v56 }
 0x7de   :  { %2534 = vmatprep.subr.bf16.mxu0 %v7957_v59  ;;  %2577 = vmatprep.subr.bf16.mxu1 %v7963_v25 }
 0x7df   :  { %2564 = vmatprep.mubr.bf16.mxu0 %v9991_v16  ;;  %2607 = vmatprep.mubr.bf16.mxu1 %v9991_v16 }
 0x7e1   :  { %2535 = vmatpush1.bf16.msra.mxu0 %v7971_v58  ;;  %2578 = vmatpush1.bf16.msra.mxu1 %v7977_v24 }
 0x7e2   :  { %2536 = vmatprep.subr.bf16.mxu0 %v7983_v32  ;;  %2579 = vmatprep.subr.bf16.mxu1 %v7989_v43 }
 0x7e5   :  { %2537 = vmatpush1.bf16.msra.mxu0 %v7995_v1  ;;  %2580 = vmatpush1.bf16.msra.mxu1 %v8001_v44 }
 0x7e6   :  { %2538 = vmatprep.subr.bf16.mxu0 %v8007_v35  ;;  %2581 = vmatprep.subr.bf16.mxu1 %v8013_v38 }
 0x7e9   :  { %2539 = vmatpush1.bf16.msra.mxu0 %v8019_v45  ;;  %2582 = vmatpush1.bf16.msra.mxu1 %v8025_v42 }
 0x7ea   :  { %2540 = vmatprep.subr.bf16.mxu0 %v8031_v37  ;;  %2583 = vmatprep.subr.bf16.mxu1 %v8037_v22 }
 0x7ed   :  { %2541 = vmatpush1.bf16.msra.mxu0 %v8043_v28  ;;  %2584 = vmatpush1.bf16.msra.mxu1 %v8049_v40 }
 0x7ee   :  { %2542 = vmatprep.subr.bf16.mxu0 %v8055_v15  ;;  %2585 = vmatprep.subr.bf16.mxu1 %v8061_v30 }
 0x7f1   :  { %2543 = vmatpush1.bf16.msra.mxu0 %v8067_v57  ;;  %2586 = vmatpush1.bf16.msra.mxu1 %v8073_v4 }
 0x7f2   :  { %2544 = vmatprep.subr.bf16.mxu0 %v8079_v5  ;;  %2587 = vmatprep.subr.bf16.mxu1 %v8085_v51 }
 0x7f5   :  { %2545 = vmatpush1.bf16.msra.mxu0 %v8091_v6  ;;  %2588 = vmatpush1.bf16.msra.mxu1 %v8097_v46 }
 0x7f6   :  { %2546 = vmatprep.subr.bf16.mxu0 %v8103_v7  ;;  %2589 = vmatprep.subr.bf16.mxu1 %v8109_v48 }
 0x7f9   :  { %2547 = vmatpush1.bf16.msra.mxu0 %v8115_v19  ;;  %2590 = vmatpush1.bf16.msra.mxu1 %v8121_v13 }
 0x7fa   :  { %2668 = vmatprep.subr.bf16.mxu0 %v8127_v50  ;;  %2711 = vmatprep.subr.bf16.mxu1 %v8133_v0 }
 0x8af   :  { %v2430_v20 = vpop.f32.mrb[140].mxu0  ;;  %v2473_v39 = vpop.f32.mrb[140].mxu1 }
 0x8b0   :  { %v2431_v54 = vadd.f32 %v2430_v20, %v2388_v36  ;;  %v2474_v10 = vadd.f32 %v2473_v39, %v2390_v8  ;;  %v2432_v21 = vpop.f32.mrb[141].mxu0  ;;  %v2475_v47 = vpop.f32.mrb[141].mxu1 }
 0x8b1   :  { %v2433_v11 = vadd.f32 %v2432_v21, %v2389_v52  ;;  %v2476_v9 = vadd.f32 %v2475_v47, %v2391_v2  ;;  %v2434_v55 = vpop.f32.mrb[142].mxu0  ;;  %v2477_v26 = vpop.f32.mrb[142].mxu1 }
 0x8b2   :  { %v2482_v34 = vmul.f32 0.5, %v2431_v54  ;;  %v2435_v60 = vadd.f32 %v2434_v55, %v2392_v62  ;;  %v2478_v29 = vadd.f32 %v2477_v26, %v2394_v17  ;;  %v2436_v61 = vpop.f32.mrb[143].mxu0  ;;  %v2479_v12 = vpop.f32.mrb[143].mxu1 }
 0x8b3   :  { %v2490_v63 = vmul.f32 0.5, %v2433_v11  ;;  %v2437_v14 = vadd.f32 %v2436_v61, %v2393_v49  ;;  %v2480_v36 = vadd.f32 %v2479_v12, %v2395_v3  ;;  %v2500_v53 = vmul.f32 0.5, %v2476_v9 }
 0x8b4   :  { %5941 = vtanh.f32 %v2482_v34  ;;  %v2483_v41 = vmul.f32 0.5, %v2435_v60 }
 0x8b5   :  { %5943 = vtanh.f32 %v2490_v63  ;;  %v2491_v23 = vmul.f32 0.5, %v2437_v14  ;;  %v2501_v27 = vmul.f32 0.5, %v2480_v36 }
 0x8b6   :  { %5945 = vtanh.f32 %v2483_v41 }
 0x8b7   :  { %5947 = vtanh.f32 %v2474_v10 }
 0x8b8   :  { %5949 = vtanh.f32 %v2491_v23 }
 0x8b9   :  { %5951 = vtanh.f32 %v2478_v29 }
 0x8ba   :  { %5953 = vtanh.f32 %v2500_v53 }
 0x8bb   :  { %5955 = vtanh.f32 %v2501_v27 }
 0x8be   :  { %v5942_v8 = vpop.eup %5941 }
 0x8bf   :  { %v5944_v20 = vpop.eup %5943  ;;  %v2486_v39 = vmul.f32 0.5, %v5942_v8 }
 0x8c0   :  { %v2494_v52 = vmul.f32 0.5, %v5944_v20  ;;  %v5946_v2 = vpop.eup %5945 }
 0x8c1   :  { %v2488_v54 = vadd.f32 0.5, %v2486_v39  ;;  %v5948_v21 = vpop.eup %5947  ;;  %v2487_v62 = vmul.f32 0.5, %v5946_v2 }
 0x8c2   :  { %v2496_v47 = vadd.f32 0.5, %v2494_v52  ;;  %v5950_v17 = vpop.eup %5949  ;;  %v10014_v52 = vld [vmem:[#allocation25_spill] sm:$0xff] }
 0x8c3   :  { %v2510_v11 = vmul.f32 %v5948_v21, %v2488_v54  ;;  %v2489_v26 = vadd.f32 0.5, %v2487_v62  ;;  %v2495_v10 = vmul.f32 0.5, %v5950_v17  ;;  %v5952_v49 = vpop.eup %5951  ;;  %v2526_v27 = vunpack.c.l.bf16 %v10014_v52  ;;  %v10015_v21 = vld [vmem:[#allocation26_spill] sm:$0xff]  ;;  %v10016_v62 = vld [vmem:[#allocation27_spill] sm:$0xff] }
 0x8c4   :  { %v2508_v55 = vmul.f32 %v2496_v47, %v8145_v18  ;;  %v5954_v61 = vpop.eup %5953  ;;  %v2525_v47 = vunpack.c.l.bf16 %v10015_v21  ;;  %v2527_v17 = vunpack.c.l.bf16 %v10016_v62 }
 0x8c5   :  { %v2497_v34 = vadd.f32 0.5, %v2495_v10  ;;  %v2511_v9 = vmul.f32 %v5952_v49, %v2489_v26  ;;  %v5956_v12 = vpop.eup %5955  ;;  %v2504_v63 = vmul.f32 0.5, %v5954_v61 }
 0x8c6   :  { %v8195_v3 = vadd.f32 %v2510_v11, %v2508_v55  ;;  %v2505_v18 = vmul.f32 0.5, %v5956_v12 }
 0x8c7   :  { %v2509_v60 = vmul.f32 %v2497_v34, %v8149_v31  ;;  %v2506_v36 = vadd.f32 0.5, %v2504_v63  ;;  %v10013_v31 = vld [vmem:[#allocation24_spill] sm:$0xff]  ;;  %v2530_v34 = vunpack.c.h.bf16 %v10014_v52  ;;  %v2529_v63 = vunpack.c.h.bf16 %v10015_v21 }
 0x8c8   :  { %5957 = vtanh.f32 %v8195_v3  ;;  %v2507_v41 = vadd.f32 0.5, %v2505_v18  ;;  %v2524_v53 = vunpack.c.l.bf16 %v10013_v31  ;;  %v2528_v49 = vunpack.c.h.bf16 %v10013_v31 }
 0x8c9   :  { %v8199_v29 = vadd.f32 %v2511_v9, %v2509_v60  ;;  %v2531_v18 = vunpack.c.h.bf16 %v10016_v62 }
 0x8cb   :  { %5959 = vtanh.f32 %v8199_v29 }
 0x8d2   :  { %v5958_v14 = vpop.eup %5957 }
 0x8d3   :  { %v2516_v8 = vmul.f32 %v5958_v14, %v2506_v36 }
 0x8d5   :  { %v5960_v23 = vpop.eup %5959 }
 0x8d6   :  { %v2517_v20 = vmul.f32 %v5960_v23, %v2507_v41 }
 0x8d8   :  { %v2518_v39 = vpack.c.bf16 %v2517_v20, %v2516_v8 }
 0x8da   :  { %2565 = vmatmul.mubr.bf16.vlgmr.msra.gmra.mrb[144].mxu0 %v2518_v39  ;;  %2608 = vmatmul.mubr.bf16.vlgmr.msra.gmra.mrb[144].mxu1 %v2518_v39 }
 0x8db   :  { %2669 = vmatpush1.bf16.msra.mxu0 %v7945_v33  ;;  %2712 = vmatpush1.bf16.msra.mxu1 %v7951_v56 }
 0x8dc   :  { %2670 = vmatprep.subr.bf16.mxu0 %v7957_v59  ;;  %2713 = vmatprep.subr.bf16.mxu1 %v7963_v25 }
 0x8dd   :  { %2700 = vmatprep.mubr.bf16.mxu0 %v9991_v16  ;;  %2743 = vmatprep.mubr.bf16.mxu1 %v9991_v16 }
 0x8df   :  { %2671 = vmatpush1.bf16.msra.mxu0 %v7971_v58  ;;  %2714 = vmatpush1.bf16.msra.mxu1 %v7977_v24 }
 0x8e0   :  { %2672 = vmatprep.subr.bf16.mxu0 %v7983_v32  ;;  %2715 = vmatprep.subr.bf16.mxu1 %v7989_v43 }
 0x8e3   :  { %2673 = vmatpush1.bf16.msra.mxu0 %v7995_v1  ;;  %2716 = vmatpush1.bf16.msra.mxu1 %v8001_v44 }
 0x8e4   :  { %2674 = vmatprep.subr.bf16.mxu0 %v8007_v35  ;;  %2717 = vmatprep.subr.bf16.mxu1 %v8013_v38 }
 0x8e7   :  { %2675 = vmatpush1.bf16.msra.mxu0 %v8019_v45  ;;  %2718 = vmatpush1.bf16.msra.mxu1 %v8025_v42 }
 0x8e8   :  { %2676 = vmatprep.subr.bf16.mxu0 %v8031_v37  ;;  %2719 = vmatprep.subr.bf16.mxu1 %v8037_v22 }
 0x8eb   :  { %2677 = vmatpush1.bf16.msra.mxu0 %v8043_v28  ;;  %2720 = vmatpush1.bf16.msra.mxu1 %v8049_v40 }
 0x8ec   :  { %2678 = vmatprep.subr.bf16.mxu0 %v8055_v15  ;;  %2721 = vmatprep.subr.bf16.mxu1 %v8061_v30 }
 0x8ef   :  { %2679 = vmatpush1.bf16.msra.mxu0 %v8067_v57  ;;  %2722 = vmatpush1.bf16.msra.mxu1 %v8073_v4 }
 0x8f0   :  { %2680 = vmatprep.subr.bf16.mxu0 %v8079_v5  ;;  %2723 = vmatprep.subr.bf16.mxu1 %v8085_v51 }
 0x8f3   :  { %2681 = vmatpush1.bf16.msra.mxu0 %v8091_v6  ;;  %2724 = vmatpush1.bf16.msra.mxu1 %v8097_v46 }
 0x8f4   :  { %2682 = vmatprep.subr.bf16.mxu0 %v8103_v7  ;;  %2725 = vmatprep.subr.bf16.mxu1 %v8109_v48 }
 0x8f7   :  { %2683 = vmatpush1.bf16.msra.mxu0 %v8115_v19  ;;  %2726 = vmatpush1.bf16.msra.mxu1 %v8121_v13 }
 0x8f8   :  { %2804 = vmatprep.subr.bf16.mxu0 %v8127_v50  ;;  %2847 = vmatprep.subr.bf16.mxu1 %v8133_v0 }
 0x9ad   :  { %v2566_v2 = vpop.f32.mrb[144].mxu0  ;;  %v2609_v54 = vpop.f32.mrb[144].mxu1 }
 0x9ae   :  { %v2567_v11 = vadd.f32 %v2566_v2, %v2524_v53  ;;  %v2610_v55 = vadd.f32 %v2609_v54, %v2526_v27  ;;  %v2568_v26 = vpop.f32.mrb[145].mxu0  ;;  %v2611_v10 = vpop.f32.mrb[145].mxu1 }
 0x9af   :  { %v2569_v9 = vadd.f32 %v2568_v26, %v2525_v47  ;;  %v2612_v60 = vadd.f32 %v2611_v10, %v2527_v17  ;;  %v2570_v61 = vpop.f32.mrb[146].mxu0  ;;  %v2613_v12 = vpop.f32.mrb[146].mxu1 }
 0x9b0   :  { %v2618_v14 = vmul.f32 0.5, %v2567_v11  ;;  %v2571_v36 = vadd.f32 %v2570_v61, %v2528_v49  ;;  %v2614_v41 = vadd.f32 %v2613_v12, %v2530_v34  ;;  %v2572_v23 = vpop.f32.mrb[147].mxu0  ;;  %v2615_v8 = vpop.f32.mrb[147].mxu1 }
 0x9b1   :  { %v2626_v20 = vmul.f32 0.5, %v2569_v9  ;;  %v2573_v39 = vadd.f32 %v2572_v23, %v2529_v63  ;;  %v2616_v53 = vadd.f32 %v2615_v8, %v2531_v18  ;;  %v2636_v21 = vmul.f32 0.5, %v2612_v60 }
 0x9b2   :  { %5961 = vtanh.f32 %v2618_v14  ;;  %v2619_v31 = vmul.f32 0.5, %v2571_v36 }
 0x9b3   :  { %5963 = vtanh.f32 %v2626_v20  ;;  %v2627_v52 = vmul.f32 0.5, %v2573_v39  ;;  %v2637_v62 = vmul.f32 0.5, %v2616_v53 }
 0x9b4   :  { %5965 = vtanh.f32 %v2619_v31 }
 0x9b5   :  { %5967 = vtanh.f32 %v2610_v55 }
 0x9b6   :  { %5969 = vtanh.f32 %v2627_v52 }
 0x9b7   :  { %5971 = vtanh.f32 %v2614_v41 }
 0x9b8   :  { %5973 = vtanh.f32 %v2636_v21 }
 0x9b9   :  { %5975 = vtanh.f32 %v2637_v62 }
 0x9bc   :  { %v5962_v27 = vpop.eup %5961 }
 0x9bd   :  { %v5964_v2 = vpop.eup %5963  ;;  %v2622_v54 = vmul.f32 0.5, %v5962_v27 }
 0x9be   :  { %v2630_v47 = vmul.f32 0.5, %v5964_v2  ;;  %v5966_v17 = vpop.eup %5965 }
 0x9bf   :  { %v2624_v11 = vadd.f32 0.5, %v2622_v54  ;;  %v5968_v26 = vpop.eup %5967  ;;  %v2623_v49 = vmul.f32 0.5, %v5966_v17 }
 0x9c0   :  { %v2632_v10 = vadd.f32 0.5, %v2630_v47  ;;  %v5970_v34 = vpop.eup %5969  ;;  %v10018_v47 = vld [vmem:[#allocation29_spill] sm:$0xff] }
 0x9c1   :  { %v2646_v9 = vmul.f32 %v5968_v26, %v2624_v11  ;;  %v2625_v12 = vadd.f32 0.5, %v2623_v49  ;;  %v2631_v55 = vmul.f32 0.5, %v5970_v34  ;;  %v5972_v63 = vpop.eup %5971  ;;  %v2662_v62 = vunpack.c.l.bf16 %v10018_v47  ;;  %v10019_v26 = vld [vmem:[#allocation30_spill] sm:$0xff]  ;;  %v10020_v49 = vld [vmem:[#allocation31_spill] sm:$0xff] }
 0x9c2   :  { %v2644_v61 = vmul.f32 %v2632_v10, %v8195_v3  ;;  %v5974_v23 = vpop.eup %5973  ;;  %v2661_v10 = vunpack.c.l.bf16 %v10019_v26  ;;  %v2663_v34 = vunpack.c.l.bf16 %v10020_v49 }
 0x9c3   :  { %v2633_v14 = vadd.f32 0.5, %v2631_v55  ;;  %v2647_v60 = vmul.f32 %v5972_v63, %v2625_v12  ;;  %v5976_v8 = vpop.eup %5975  ;;  %v2640_v20 = vmul.f32 0.5, %v5974_v23 }
 0x9c4   :  { %v8245_v18 = vadd.f32 %v2646_v9, %v2644_v61  ;;  %v2641_v3 = vmul.f32 0.5, %v5976_v8 }
 0x9c5   :  { %v2645_v36 = vmul.f32 %v2633_v14, %v8199_v29  ;;  %v2642_v53 = vadd.f32 0.5, %v2640_v20  ;;  %v10017_v29 = vld [vmem:[#allocation28_spill] sm:$0xff]  ;;  %v2666_v14 = vunpack.c.h.bf16 %v10018_v47  ;;  %v2665_v20 = vunpack.c.h.bf16 %v10019_v26 }
 0x9c6   :  { %5977 = vtanh.f32 %v8245_v18  ;;  %v2643_v31 = vadd.f32 0.5, %v2641_v3  ;;  %v2660_v21 = vunpack.c.l.bf16 %v10017_v29  ;;  %v2664_v63 = vunpack.c.h.bf16 %v10017_v29 }
 0x9c7   :  { %v8249_v41 = vadd.f32 %v2647_v60, %v2645_v36  ;;  %v2667_v3 = vunpack.c.h.bf16 %v10020_v49 }
 0x9c9   :  { %5979 = vtanh.f32 %v8249_v41 }
 0x9d0   :  { %v5978_v39 = vpop.eup %5977 }
 0x9d1   :  { %v2652_v27 = vmul.f32 %v5978_v39, %v2642_v53 }
 0x9d3   :  { %v5980_v52 = vpop.eup %5979 }
 0x9d4   :  { %v2653_v2 = vmul.f32 %v5980_v52, %v2643_v31 }
 0x9d6   :  { %v2654_v54 = vpack.c.bf16 %v2653_v2, %v2652_v27 }
 0x9d8   :  { %2701 = vmatmul.mubr.bf16.vlgmr.msra.gmra.mrb[148].mxu0 %v2654_v54  ;;  %2744 = vmatmul.mubr.bf16.vlgmr.msra.gmra.mrb[148].mxu1 %v2654_v54 }
 0x9d9   :  { %2805 = vmatpush1.bf16.msra.mxu0 %v7945_v33  ;;  %2848 = vmatpush1.bf16.msra.mxu1 %v7951_v56 }
 0x9da   :  { %2806 = vmatprep.subr.bf16.mxu0 %v7957_v59  ;;  %2849 = vmatprep.subr.bf16.mxu1 %v7963_v25 }
 0x9db   :  { %2836 = vmatprep.mubr.bf16.mxu0 %v9991_v16  ;;  %2879 = vmatprep.mubr.bf16.mxu1 %v9991_v16 }
 0x9dd   :  { %2807 = vmatpush1.bf16.msra.mxu0 %v7971_v58  ;;  %2850 = vmatpush1.bf16.msra.mxu1 %v7977_v24 }
 0x9de   :  { %2808 = vmatprep.subr.bf16.mxu0 %v7983_v32  ;;  %2851 = vmatprep.subr.bf16.mxu1 %v7989_v43 }
 0x9e1   :  { %2809 = vmatpush1.bf16.msra.mxu0 %v7995_v1  ;;  %2852 = vmatpush1.bf16.msra.mxu1 %v8001_v44 }
 0x9e2   :  { %2810 = vmatprep.subr.bf16.mxu0 %v8007_v35  ;;  %2853 = vmatprep.subr.bf16.mxu1 %v8013_v38 }
 0x9e5   :  { %2811 = vmatpush1.bf16.msra.mxu0 %v8019_v45  ;;  %2854 = vmatpush1.bf16.msra.mxu1 %v8025_v42 }
 0x9e6   :  { %2812 = vmatprep.subr.bf16.mxu0 %v8031_v37  ;;  %2855 = vmatprep.subr.bf16.mxu1 %v8037_v22 }
 0x9e9   :  { %2813 = vmatpush1.bf16.msra.mxu0 %v8043_v28  ;;  %2856 = vmatpush1.bf16.msra.mxu1 %v8049_v40 }
 0x9ea   :  { %2814 = vmatprep.subr.bf16.mxu0 %v8055_v15  ;;  %2857 = vmatprep.subr.bf16.mxu1 %v8061_v30 }
 0x9ed   :  { %2815 = vmatpush1.bf16.msra.mxu0 %v8067_v57  ;;  %2858 = vmatpush1.bf16.msra.mxu1 %v8073_v4 }
 0x9ee   :  { %2816 = vmatprep.subr.bf16.mxu0 %v8079_v5  ;;  %2859 = vmatprep.subr.bf16.mxu1 %v8085_v51 }
 0x9f1   :  { %2817 = vmatpush1.bf16.msra.mxu0 %v8091_v6  ;;  %2860 = vmatpush1.bf16.msra.mxu1 %v8097_v46 }
 0x9f2   :  { %2818 = vmatprep.subr.bf16.mxu0 %v8103_v7  ;;  %2861 = vmatprep.subr.bf16.mxu1 %v8109_v48 }
 0x9f5   :  { %2819 = vmatpush1.bf16.msra.mxu0 %v8115_v19  ;;  %2862 = vmatpush1.bf16.msra.mxu1 %v8121_v13 }
 0x9f6   :  { %2940 = vmatprep.subr.bf16.mxu0 %v8127_v50  ;;  %2983 = vmatprep.subr.bf16.mxu1 %v8133_v0 }
 0xaab   :  { %v2702_v17 = vpop.f32.mrb[148].mxu0  ;;  %v2745_v11 = vpop.f32.mrb[148].mxu1 }
 0xaac   :  { %v2703_v9 = vadd.f32 %v2702_v17, %v2660_v21  ;;  %v2746_v61 = vadd.f32 %v2745_v11, %v2662_v62  ;;  %v2704_v12 = vpop.f32.mrb[149].mxu0  ;;  %v2747_v55 = vpop.f32.mrb[149].mxu1 }
 0xaad   :  { %v2705_v60 = vadd.f32 %v2704_v12, %v2661_v10  ;;  %v2748_v36 = vadd.f32 %v2747_v55, %v2663_v34  ;;  %v2706_v23 = vpop.f32.mrb[150].mxu0  ;;  %v2749_v8 = vpop.f32.mrb[150].mxu1 }
 0xaae   :  { %v2754_v39 = vmul.f32 0.5, %v2703_v9  ;;  %v2707_v53 = vadd.f32 %v2706_v23, %v2664_v63  ;;  %v2750_v31 = vadd.f32 %v2749_v8, %v2666_v14  ;;  %v2708_v52 = vpop.f32.mrb[151].mxu0  ;;  %v2751_v27 = vpop.f32.mrb[151].mxu1 }
 0xaaf   :  { %v2762_v2 = vmul.f32 0.5, %v2705_v60  ;;  %v2709_v54 = vadd.f32 %v2708_v52, %v2665_v20  ;;  %v2752_v21 = vadd.f32 %v2751_v27, %v2667_v3  ;;  %v2772_v26 = vmul.f32 0.5, %v2748_v36 }
 0xab0   :  { %5981 = vtanh.f32 %v2754_v39  ;;  %v2755_v29 = vmul.f32 0.5, %v2707_v53 }
 0xab1   :  { %5983 = vtanh.f32 %v2762_v2  ;;  %v2763_v47 = vmul.f32 0.5, %v2709_v54  ;;  %v2773_v49 = vmul.f32 0.5, %v2752_v21 }
 0xab2   :  { %5985 = vtanh.f32 %v2755_v29 }
 0xab3   :  { %5987 = vtanh.f32 %v2746_v61 }
 0xab4   :  { %5989 = vtanh.f32 %v2763_v47 }
 0xab5   :  { %5991 = vtanh.f32 %v2750_v31 }
 0xab6   :  { %5993 = vtanh.f32 %v2772_v26 }
 0xab7   :  { %5995 = vtanh.f32 %v2773_v49 }
 0xaba   :  { %v5982_v62 = vpop.eup %5981 }
 0xabb   :  { %v5984_v17 = vpop.eup %5983  ;;  %v2758_v11 = vmul.f32 0.5, %v5982_v62 }
 0xabc   :  { %v2766_v10 = vmul.f32 0.5, %v5984_v17  ;;  %v5986_v34 = vpop.eup %5985 }
 0xabd   :  { %v2760_v9 = vadd.f32 0.5, %v2758_v11  ;;  %v5988_v12 = vpop.eup %5987  ;;  %v2759_v63 = vmul.f32 0.5, %v5986_v34 }
 0xabe   :  { %v2768_v55 = vadd.f32 0.5, %v2766_v10  ;;  %v5990_v14 = vpop.eup %5989 }
 0xabf   :  { %v2782_v60 = vmul.f32 %v5988_v12, %v2760_v9  ;;  %v2761_v8 = vadd.f32 0.5, %v2759_v63  ;;  %v2767_v61 = vmul.f32 0.5, %v5990_v14  ;;  %v5992_v20 = vpop.eup %5991 }
 0xac0   :  { %v2780_v23 = vmul.f32 %v2768_v55, %v8245_v18  ;;  %v5994_v52 = vpop.eup %5993 }
 0xac1   :  { %v2769_v39 = vadd.f32 0.5, %v2767_v61  ;;  %v2783_v36 = vmul.f32 %v5992_v20, %v2761_v8  ;;  %v5996_v27 = vpop.eup %5995  ;;  %v2776_v2 = vmul.f32 0.5, %v5994_v52 }
 0xac2   :  { %v8295_v3 = vadd.f32 %v2782_v60, %v2780_v23  ;;  %v2777_v18 = vmul.f32 0.5, %v5996_v27 }
 0xac3   :  { %v2781_v53 = vmul.f32 %v2769_v39, %v8249_v41  ;;  %v2778_v21 = vadd.f32 0.5, %v2776_v2 }
 0xac4   :  { %5997 = vtanh.f32 %v8295_v3  ;;  %v2779_v29 = vadd.f32 0.5, %v2777_v18 }
 0xac5   :  { %v8299_v31 = vadd.f32 %v2783_v36, %v2781_v53 }
 0xac7   :  { %5999 = vtanh.f32 %v8299_v31 }
 0xace   :  { %v5998_v54 = vpop.eup %5997 }
 0xacf   :  { %v2788_v62 = vmul.f32 %v5998_v54, %v2778_v21 }
 0xad1   :  { %v6000_v47 = vpop.eup %5999 }
 0xad2   :  { %v2789_v17 = vmul.f32 %v6000_v47, %v2779_v29 }
 0xad4   :  { %v2790_v11 = vpack.c.bf16 %v2789_v17, %v2788_v62 }
 0xad6   :  { %2837 = vmatmul.mubr.bf16.vlgmr.msra.gmra.mrb[152].mxu0 %v2790_v11  ;;  %2880 = vmatmul.mubr.bf16.vlgmr.msra.gmra.mrb[152].mxu1 %v2790_v11 }
 0xad7   :  { %2941 = vmatpush1.bf16.msra.mxu0 %v7945_v33  ;;  %2984 = vmatpush1.bf16.msra.mxu1 %v7951_v56  ;;  %v10021_v33 = vld [vmem:[#allocation32_spill] sm:$0xff] }
 0xad8   :  { %2942 = vmatprep.subr.bf16.mxu0 %v7957_v59  ;;  %2985 = vmatprep.subr.bf16.mxu1 %v7963_v25  ;;  %v2796_v56 = vunpack.c.l.bf16 %v10021_v33  ;;  %v10022_v59 = vld [vmem:[#allocation33_spill] sm:$0xff] }
 0xad9   :  { %2972 = vmatprep.mubr.bf16.mxu0 %v9991_v16  ;;  %3015 = vmatprep.mubr.bf16.mxu1 %v9991_v16  ;;  %v2798_v25 = vunpack.c.l.bf16 %v10022_v59 }
 0xadb   :  { %2943 = vmatpush1.bf16.msra.mxu0 %v7971_v58  ;;  %2986 = vmatpush1.bf16.msra.mxu1 %v7977_v24 }
 0xadc   :  { %2944 = vmatprep.subr.bf16.mxu0 %v7983_v32  ;;  %2987 = vmatprep.subr.bf16.mxu1 %v7989_v43  ;;  %v10023_v32 = vld [vmem:[#allocation34_spill] sm:$0xff] }
 0xadd   :  { %v2797_v43 = vunpack.c.l.bf16 %v10023_v32 }
 0xadf   :  { %2945 = vmatpush1.bf16.msra.mxu0 %v7995_v1  ;;  %2988 = vmatpush1.bf16.msra.mxu1 %v8001_v44  ;;  %v10024_v1 = vld [vmem:[#allocation35_spill] sm:$0xff] }
 0xae0   :  { %2946 = vmatprep.subr.bf16.mxu0 %v8007_v35  ;;  %2989 = vmatprep.subr.bf16.mxu1 %v8013_v38  ;;  %v2799_v44 = vunpack.c.l.bf16 %v10024_v1 }
 0xae3   :  { %2947 = vmatpush1.bf16.msra.mxu0 %v8019_v45  ;;  %2990 = vmatpush1.bf16.msra.mxu1 %v8025_v42 }
 0xae4   :  { %2948 = vmatprep.subr.bf16.mxu0 %v8031_v37  ;;  %2991 = vmatprep.subr.bf16.mxu1 %v8037_v22  ;;  %v2800_v37 = vunpack.c.h.bf16 %v10021_v33  ;;  %v2802_v22 = vunpack.c.h.bf16 %v10022_v59 }
 0xae7   :  { %2949 = vmatpush1.bf16.msra.mxu0 %v8043_v28  ;;  %2992 = vmatpush1.bf16.msra.mxu1 %v8049_v40 }
 0xae8   :  { %2950 = vmatprep.subr.bf16.mxu0 %v8055_v15  ;;  %2993 = vmatprep.subr.bf16.mxu1 %v8061_v30 }
 0xaeb   :  { %2951 = vmatpush1.bf16.msra.mxu0 %v8067_v57  ;;  %2994 = vmatpush1.bf16.msra.mxu1 %v8073_v4  ;;  %v2801_v57 = vunpack.c.h.bf16 %v10023_v32  ;;  %v2803_v4 = vunpack.c.h.bf16 %v10024_v1  ;;  %v8381_v32 = vld [vmem:[%s9780_s2 + $0x20] ss:$16 sps:$4 sm:$0xff]   ;;  %v8393_v1 = vld [vmem:[%s9780_s2 + $0x44] ss:$16 sps:$4 sm:$0xff]  }
 0xaec   :  { %2952 = vmatprep.subr.bf16.mxu0 %v8079_v5  ;;  %2995 = vmatprep.subr.bf16.mxu1 %v8085_v51 }
 0xaef   :  { %2953 = vmatpush1.bf16.msra.mxu0 %v8091_v6  ;;  %2996 = vmatpush1.bf16.msra.mxu1 %v8097_v46 }
 0xaf0   :  { %2954 = vmatprep.subr.bf16.mxu0 %v8103_v7  ;;  %2997 = vmatprep.subr.bf16.mxu1 %v8109_v48 }
 0xaf3   :  { %2955 = vmatpush1.bf16.msra.mxu0 %v8115_v19  ;;  %2998 = vmatpush1.bf16.msra.mxu1 %v8121_v13 }
 0xaf4   :  { %3076 = vmatprep.subr.bf16.mxu0 %v8127_v50  ;;  %3119 = vmatprep.subr.bf16.mxu1 %v8133_v0 }
 0xba9   :  { %v2838_v58 = vpop.f32.mrb[152].mxu0  ;;  %v2881_v24 = vpop.f32.mrb[152].mxu1 }
 0xbaa   :  { %v2839_v35 = vadd.f32 %v2838_v58, %v2796_v56  ;;  %v2882_v38 = vadd.f32 %v2881_v24, %v2798_v25  ;;  %v2840_v45 = vpop.f32.mrb[153].mxu0  ;;  %v2883_v42 = vpop.f32.mrb[153].mxu1  ;;  %v8361_v25 = vld [vmem:[%s9780_s2 + $0x8] ss:$16 sps:$4 sm:$0xff]   ;;  %v8367_v58 = vld [vmem:[%s9780_s2 + $0x24] ss:$16 sps:$4 sm:$0xff]  }
 0xbab   :  { %v2841_v28 = vadd.f32 %v2840_v45, %v2797_v43  ;;  %v2884_v40 = vadd.f32 %v2883_v42, %v2799_v44  ;;  %v2842_v15 = vpop.f32.mrb[154].mxu0  ;;  %v2885_v30 = vpop.f32.mrb[154].mxu1  ;;  %v8373_v24 = vld [vmem:[%s9780_s2 + $0x2c] ss:$16 sps:$4 sm:$0xff]   ;;  %v8387_v43 = vld [vmem:[%s9780_s2 + $0x28] ss:$16 sps:$4 sm:$0xff]  }
 0xbac   :  { %v2890_v5 = vmul.f32 0.5, %v2839_v35  ;;  %v2843_v51 = vadd.f32 %v2842_v15, %v2800_v37  ;;  %v2886_v6 = vadd.f32 %v2885_v30, %v2802_v22  ;;  %v2844_v46 = vpop.f32.mrb[155].mxu0  ;;  %v2887_v7 = vpop.f32.mrb[155].mxu1  ;;  %v8399_v44 = vld [vmem:[%s9780_s2 + $0x4c] ss:$16 sps:$4 sm:$0xff]  }
 0xbad   :  { %v2898_v48 = vmul.f32 0.5, %v2841_v28  ;;  %v2845_v19 = vadd.f32 %v2844_v46, %v2801_v57  ;;  %v2888_v13 = vadd.f32 %v2887_v7, %v2803_v4  ;;  %v2908_v49 = vmul.f32 0.5, %v2884_v40  ;;  %v8405_v35 = vld [vmem:[%s9780_s2 + $0x40] ss:$16 sps:$4 sm:$0xff]   ;;  %v8417_v45 = vld [vmem:[%s9780_s2 + $0x64] ss:$16 sps:$4 sm:$0xff]  }
 0xbae   :  { %6001 = vtanh.f32 %v2890_v5  ;;  %v2891_v50 = vmul.f32 0.5, %v2843_v51  ;;  %v8423_v42 = vld [vmem:[%s9780_s2 + $0x6c] ss:$16 sps:$4 sm:$0xff]   ;;  %v8429_v37 = vld [vmem:[%s9780_s2 + $0x60] ss:$16 sps:$4 sm:$0xff]  }
 0xbaf   :  { %6003 = vtanh.f32 %v2898_v48  ;;  %v2899_v0 = vmul.f32 0.5, %v2845_v19  ;;  %v2909_v9 = vmul.f32 0.5, %v2888_v13  ;;  %v8435_v22 = vld [vmem:[%s9780_s2 + $0x68] ss:$16 sps:$4 sm:$0xff]   ;;  %v8441_v28 = vld [vmem:[%s9780_s2 + $0x84] ss:$16 sps:$4 sm:$0xff]  }
 0xbb0   :  { %6005 = vtanh.f32 %v2891_v50  ;;  %v8447_v40 = vld [vmem:[%s9780_s2 + $0x8c] ss:$16 sps:$4 sm:$0xff]   ;;  %v8453_v15 = vld [vmem:[%s9780_s2 + $0x80] ss:$16 sps:$4 sm:$0xff]   ;;  %v8459_v30 = vld [vmem:[%s9780_s2 + $0x88] ss:$16 sps:$4 sm:$0xff]  }
 0xbb1   :  { %6007 = vtanh.f32 %v2882_v38  ;;  %v8411_v38 = vld [vmem:[%s9780_s2 + $0x48] ss:$16 sps:$4 sm:$0xff]   ;;  %v8465_v57 = vld [vmem:[%s9780_s2 + $0xa4] ss:$16 sps:$4 sm:$0xff]   ;;  %v8471_v4 = vld [vmem:[%s9780_s2 + $0xac] ss:$16 sps:$4 sm:$0xff]  }
 0xbb2   :  { %6009 = vtanh.f32 %v2899_v0  ;;  %v8477_v5 = vld [vmem:[%s9780_s2 + $0xa0] ss:$16 sps:$4 sm:$0xff]   ;;  %v8483_v51 = vld [vmem:[%s9780_s2 + $0xa8] ss:$16 sps:$4 sm:$0xff]   ;;  %v8495_v46 = vld [vmem:[%s9780_s2 + $0xcc] ss:$16 sps:$4 sm:$0xff]  }
 0xbb3   :  { %6011 = vtanh.f32 %v2886_v6  ;;  %v8489_v6 = vld [vmem:[%s9780_s2 + $0xc4] ss:$16 sps:$4 sm:$0xff]   ;;  %v8501_v7 = vld [vmem:[%s9780_s2 + $0xc0] ss:$16 sps:$4 sm:$0xff]   ;;  %v8507_v48 = vld [vmem:[%s9780_s2 + $0xc8] ss:$16 sps:$4 sm:$0xff]  }
 0xbb4   :  { %6013 = vtanh.f32 %v2908_v49  ;;  %v8513_v19 = vld [vmem:[%s9780_s2 + $0xe4] ss:$16 sps:$4 sm:$0xff]   ;;  %v8519_v13 = vld [vmem:[%s9780_s2 + $0xec] ss:$16 sps:$4 sm:$0xff]   ;;  %v8525_v50 = vld [vmem:[%s9780_s2 + $0xe0] ss:$16 sps:$4 sm:$0xff]  }
 0xbb5   :  { %6015 = vtanh.f32 %v2909_v9  ;;  %v8531_v0 = vld [vmem:[%s9780_s2 + $0xe8] ss:$16 sps:$4 sm:$0xff]  }
 0xbb8   :  { %v6002_v41 = vpop.eup %6001 }
 0xbb9   :  { %v6004_v26 = vpop.eup %6003  ;;  %v2894_v10 = vmul.f32 0.5, %v6002_v41  ;;  %v8537_v41 = vld [vmem:[%s9780_s2 + $0x4] ss:$16 sps:$4 sm:$0xff]  }
 0xbba   :  { %v2902_v34 = vmul.f32 0.5, %v6004_v26  ;;  %v6006_v12 = vpop.eup %6005  ;;  %v8543_v26 = vld [vmem:[%s9780_s2 + $0xc] ss:$16 sps:$4 sm:$0xff]  }
 0xbbb   :  { %v2896_v55 = vadd.f32 0.5, %v2894_v10  ;;  %v6008_v63 = vpop.eup %6007  ;;  %v2895_v60 = vmul.f32 0.5, %v6006_v12  ;;  %v10025_v10 = vld [vmem:[#allocation36_spill] sm:$0xff] }
 0xbbc   :  { %v2904_v14 = vadd.f32 0.5, %v2902_v34  ;;  %v6010_v23 = vpop.eup %6009  ;;  %v2932_v49 = vunpack.c.l.bf16 %v10025_v10  ;;  %v10026_v34 = vld [vmem:[#allocation37_spill] sm:$0xff] }
 0xbbd   :  { %v2918_v8 = vmul.f32 %v6008_v63, %v2896_v55  ;;  %v2897_v20 = vadd.f32 0.5, %v2895_v60  ;;  %v2903_v39 = vmul.f32 0.5, %v6010_v23  ;;  %v6012_v36 = vpop.eup %6011  ;;  %v2934_v9 = vunpack.c.l.bf16 %v10026_v34  ;;  %v10027_v63 = vld [vmem:[#allocation38_spill] sm:$0xff]  ;;  %v10028_v60 = vld [vmem:[#allocation39_spill] sm:$0xff] }
 0xbbe   :  { %v2916_v61 = vmul.f32 %v2904_v14, %v8295_v3  ;;  %v6014_v54 = vpop.eup %6013  ;;  %v2933_v14 = vunpack.c.l.bf16 %v10027_v63  ;;  %v2935_v23 = vunpack.c.l.bf16 %v10028_v60 }
 0xbbf   :  { %v2905_v52 = vadd.f32 0.5, %v2903_v39  ;;  %v2919_v27 = vmul.f32 %v6012_v36, %v2897_v20  ;;  %v6016_v21 = vpop.eup %6015  ;;  %v2912_v29 = vmul.f32 0.5, %v6014_v54  ;;  %v2936_v36 = vunpack.c.h.bf16 %v10025_v10 }
 0xbc0   :  { %v8345_v53 = vadd.f32 %v2918_v8, %v2916_v61  ;;  %v2913_v3 = vmul.f32 0.5, %v6016_v21 }
 0xbc1   :  { %v2917_v2 = vmul.f32 %v2905_v52, %v8299_v31  ;;  %v2914_v62 = vadd.f32 0.5, %v2912_v29  ;;  %v8355_v31 = vld [vmem:[%s9780_s2] ss:$16 sps:$4 sm:$0xff]   ;;  %v2938_v52 = vunpack.c.h.bf16 %v10026_v34  ;;  %v2937_v29 = vunpack.c.h.bf16 %v10027_v63 }
 0xbc2   :  { %6017 = vtanh.f32 %v8345_v53  ;;  %v2915_v17 = vadd.f32 0.5, %v2913_v3  ;;  %v2939_v3 = vunpack.c.h.bf16 %v10028_v60 }
 0xbc3   :  { %v8349_v18 = vadd.f32 %v2919_v27, %v2917_v2 }
 0xbc5   :  { %6019 = vtanh.f32 %v8349_v18 }
 0xbcc   :  { %v6018_v47 = vpop.eup %6017 }
 0xbcd   :  { %v2924_v33 = vmul.f32 %v6018_v47, %v2914_v62 }
 0xbcf   :  { %v6020_v11 = vpop.eup %6019 }
 0xbd0   :  { %v2925_v56 = vmul.f32 %v6020_v11, %v2915_v17 }
 0xbd2   :  { %v2926_v59 = vpack.c.bf16 %v2925_v56, %v2924_v33 }
 0xbd4   :  { %2973 = vmatmul.mubr.bf16.vlgmr.msra.gmra.mrb[156].mxu0 %v2926_v59  ;;  %3016 = vmatmul.mubr.bf16.vlgmr.msra.gmra.mrb[156].mxu1 %v2926_v59 }
 0xbd5   :  { %3077 = vmatpush1.bf16.msra.mxu0 %v8355_v31  ;;  %3120 = vmatpush1.bf16.msra.mxu1 %v8361_v25 }
 0xbd6   :  { %3078 = vmatprep.subr.bf16.mxu0 %v8367_v58  ;;  %3121 = vmatprep.subr.bf16.mxu1 %v8373_v24 }
 0xbd7   :  { %3108 = vmatprep.mubr.bf16.mxu0 %v9991_v16  ;;  %3151 = vmatprep.mubr.bf16.mxu1 %v9991_v16 }
 0xbd9   :  { %3079 = vmatpush1.bf16.msra.mxu0 %v8381_v32  ;;  %3122 = vmatpush1.bf16.msra.mxu1 %v8387_v43 }
 0xbda   :  { %3080 = vmatprep.subr.bf16.mxu0 %v8393_v1  ;;  %3123 = vmatprep.subr.bf16.mxu1 %v8399_v44 }
 0xbdd   :  { %3081 = vmatpush1.bf16.msra.mxu0 %v8405_v35  ;;  %3124 = vmatpush1.bf16.msra.mxu1 %v8411_v38 }
 0xbde   :  { %3082 = vmatprep.subr.bf16.mxu0 %v8417_v45  ;;  %3125 = vmatprep.subr.bf16.mxu1 %v8423_v42 }
 0xbe1   :  { %3083 = vmatpush1.bf16.msra.mxu0 %v8429_v37  ;;  %3126 = vmatpush1.bf16.msra.mxu1 %v8435_v22 }
 0xbe2   :  { %3084 = vmatprep.subr.bf16.mxu0 %v8441_v28  ;;  %3127 = vmatprep.subr.bf16.mxu1 %v8447_v40 }
 0xbe5   :  { %3085 = vmatpush1.bf16.msra.mxu0 %v8453_v15  ;;  %3128 = vmatpush1.bf16.msra.mxu1 %v8459_v30 }
 0xbe6   :  { %3086 = vmatprep.subr.bf16.mxu0 %v8465_v57  ;;  %3129 = vmatprep.subr.bf16.mxu1 %v8471_v4 }
 0xbe9   :  { %3087 = vmatpush1.bf16.msra.mxu0 %v8477_v5  ;;  %3130 = vmatpush1.bf16.msra.mxu1 %v8483_v51 }
 0xbea   :  { %3088 = vmatprep.subr.bf16.mxu0 %v8489_v6  ;;  %3131 = vmatprep.subr.bf16.mxu1 %v8495_v46 }
 0xbed   :  { %3089 = vmatpush1.bf16.msra.mxu0 %v8501_v7  ;;  %3132 = vmatpush1.bf16.msra.mxu1 %v8507_v48 }
 0xbee   :  { %3090 = vmatprep.subr.bf16.mxu0 %v8513_v19  ;;  %3133 = vmatprep.subr.bf16.mxu1 %v8519_v13 }
 0xbf1   :  { %3091 = vmatpush1.bf16.msra.mxu0 %v8525_v50  ;;  %3134 = vmatpush1.bf16.msra.mxu1 %v8531_v0 }
 0xbf2   :  { %3212 = vmatprep.subr.bf16.mxu0 %v8537_v41  ;;  %3255 = vmatprep.subr.bf16.mxu1 %v8543_v26 }
 0xca7   :  { %v2974_v12 = vpop.f32.mrb[156].mxu0  ;;  %v3017_v55 = vpop.f32.mrb[156].mxu1 }
 0xca8   :  { %v2975_v8 = vadd.f32 %v2974_v12, %v2932_v49  ;;  %v3018_v61 = vadd.f32 %v3017_v55, %v2934_v9  ;;  %v2976_v20 = vpop.f32.mrb[157].mxu0  ;;  %v3019_v39 = vpop.f32.mrb[157].mxu1 }
 0xca9   :  { %v2977_v27 = vadd.f32 %v2976_v20, %v2933_v14  ;;  %v3020_v2 = vadd.f32 %v3019_v39, %v2935_v23  ;;  %v2978_v54 = vpop.f32.mrb[158].mxu0  ;;  %v3021_v21 = vpop.f32.mrb[158].mxu1 }
 0xcaa   :  { %v3026_v47 = vmul.f32 0.5, %v2975_v8  ;;  %v2979_v62 = vadd.f32 %v2978_v54, %v2936_v36  ;;  %v3022_v17 = vadd.f32 %v3021_v21, %v2938_v52  ;;  %v2980_v11 = vpop.f32.mrb[159].mxu0  ;;  %v3023_v33 = vpop.f32.mrb[159].mxu1 }
 0xcab   :  { %v3034_v56 = vmul.f32 0.5, %v2977_v27  ;;  %v2981_v59 = vadd.f32 %v2980_v11, %v2937_v29  ;;  %v3024_v49 = vadd.f32 %v3023_v33, %v2939_v3  ;;  %v3044_v63 = vmul.f32 0.5, %v3020_v2 }
 0xcac   :  { %6021 = vtanh.f32 %v3026_v47  ;;  %v3027_v10 = vmul.f32 0.5, %v2979_v62 }
 0xcad   :  { %6023 = vtanh.f32 %v3034_v56  ;;  %v3035_v34 = vmul.f32 0.5, %v2981_v59  ;;  %v3045_v60 = vmul.f32 0.5, %v3024_v49 }
 0xcae   :  { %6025 = vtanh.f32 %v3027_v10 }
 0xcaf   :  { %6027 = vtanh.f32 %v3018_v61 }
 0xcb0   :  { %6029 = vtanh.f32 %v3035_v34 }
 0xcb1   :  { %6031 = vtanh.f32 %v3022_v17 }
 0xcb2   :  { %6033 = vtanh.f32 %v3044_v63 }
 0xcb3   :  { %6035 = vtanh.f32 %v3045_v60 }
 0xcb6   :  { %v6022_v9 = vpop.eup %6021 }
 0xcb7   :  { %v6024_v12 = vpop.eup %6023  ;;  %v3030_v55 = vmul.f32 0.5, %v6022_v9 }
 0xcb8   :  { %v3038_v14 = vmul.f32 0.5, %v6024_v12  ;;  %v6026_v23 = vpop.eup %6025 }
 0xcb9   :  { %v3032_v8 = vadd.f32 0.5, %v3030_v55  ;;  %v6028_v20 = vpop.eup %6027  ;;  %v3031_v36 = vmul.f32 0.5, %v6026_v23 }
 0xcba   :  { %v3040_v39 = vadd.f32 0.5, %v3038_v14  ;;  %v6030_v52 = vpop.eup %6029  ;;  %v10030_v14 = vld [vmem:[#allocation41_spill] sm:$0xff] }
 0xcbb   :  { %v3054_v27 = vmul.f32 %v6028_v20, %v3032_v8  ;;  %v3033_v21 = vadd.f32 0.5, %v3031_v36  ;;  %v3039_v61 = vmul.f32 0.5, %v6030_v52  ;;  %v6032_v29 = vpop.eup %6031  ;;  %v3070_v60 = vunpack.c.l.bf16 %v10030_v14  ;;  %v10031_v20 = vld [vmem:[#allocation42_spill] sm:$0xff]  ;;  %v10032_v36 = vld [vmem:[#allocation43_spill] sm:$0xff] }
 0xcbc   :  { %v3052_v54 = vmul.f32 %v3040_v39, %v8345_v53  ;;  %v6034_v11 = vpop.eup %6033  ;;  %v3069_v39 = vunpack.c.l.bf16 %v10031_v20  ;;  %v3071_v52 = vunpack.c.l.bf16 %v10032_v36 }
 0xcbd   :  { %v3041_v47 = vadd.f32 0.5, %v3039_v61  ;;  %v3055_v2 = vmul.f32 %v6032_v29, %v3033_v21  ;;  %v6036_v33 = vpop.eup %6035  ;;  %v3048_v56 = vmul.f32 0.5, %v6034_v11 }
 0xcbe   :  { %v8555_v3 = vadd.f32 %v3054_v27, %v3052_v54  ;;  %v3049_v53 = vmul.f32 0.5, %v6036_v33 }
 0xcbf   :  { %v3053_v62 = vmul.f32 %v3041_v47, %v8349_v18  ;;  %v3050_v49 = vadd.f32 0.5, %v3048_v56  ;;  %v10029_v18 = vld [vmem:[#allocation40_spill] sm:$0xff]  ;;  %v3074_v47 = vunpack.c.h.bf16 %v10030_v14  ;;  %v3073_v56 = vunpack.c.h.bf16 %v10031_v20 }
 0xcc0   :  { %6037 = vtanh.f32 %v8555_v3  ;;  %v3051_v10 = vadd.f32 0.5, %v3049_v53  ;;  %v3068_v63 = vunpack.c.l.bf16 %v10029_v18  ;;  %v3072_v29 = vunpack.c.h.bf16 %v10029_v18 }
 0xcc1   :  { %v8559_v17 = vadd.f32 %v3055_v2, %v3053_v62  ;;  %v3075_v53 = vunpack.c.h.bf16 %v10032_v36 }
 0xcc3   :  { %6039 = vtanh.f32 %v8559_v17 }
 0xcca   :  { %v6038_v59 = vpop.eup %6037 }
 0xccb   :  { %v3060_v9 = vmul.f32 %v6038_v59, %v3050_v49 }
 0xccd   :  { %v6040_v34 = vpop.eup %6039 }
 0xcce   :  { %v3061_v12 = vmul.f32 %v6040_v34, %v3051_v10 }
 0xcd0   :  { %v3062_v55 = vpack.c.bf16 %v3061_v12, %v3060_v9 }
 0xcd2   :  { %3109 = vmatmul.mubr.bf16.vlgmr.msra.gmra.mrb[160].mxu0 %v3062_v55  ;;  %3152 = vmatmul.mubr.bf16.vlgmr.msra.gmra.mrb[160].mxu1 %v3062_v55 }
 0xcd3   :  { %3213 = vmatpush1.bf16.msra.mxu0 %v8355_v31  ;;  %3256 = vmatpush1.bf16.msra.mxu1 %v8361_v25 }
 0xcd4   :  { %3214 = vmatprep.subr.bf16.mxu0 %v8367_v58  ;;  %3257 = vmatprep.subr.bf16.mxu1 %v8373_v24 }
 0xcd5   :  { %3244 = vmatprep.mubr.bf16.mxu0 %v9991_v16  ;;  %3287 = vmatprep.mubr.bf16.mxu1 %v9991_v16 }
 0xcd7   :  { %3215 = vmatpush1.bf16.msra.mxu0 %v8381_v32  ;;  %3258 = vmatpush1.bf16.msra.mxu1 %v8387_v43 }
 0xcd8   :  { %3216 = vmatprep.subr.bf16.mxu0 %v8393_v1  ;;  %3259 = vmatprep.subr.bf16.mxu1 %v8399_v44 }
 0xcdb   :  { %3217 = vmatpush1.bf16.msra.mxu0 %v8405_v35  ;;  %3260 = vmatpush1.bf16.msra.mxu1 %v8411_v38 }
 0xcdc   :  { %3218 = vmatprep.subr.bf16.mxu0 %v8417_v45  ;;  %3261 = vmatprep.subr.bf16.mxu1 %v8423_v42 }
 0xcdf   :  { %3219 = vmatpush1.bf16.msra.mxu0 %v8429_v37  ;;  %3262 = vmatpush1.bf16.msra.mxu1 %v8435_v22 }
 0xce0   :  { %3220 = vmatprep.subr.bf16.mxu0 %v8441_v28  ;;  %3263 = vmatprep.subr.bf16.mxu1 %v8447_v40 }
 0xce3   :  { %3221 = vmatpush1.bf16.msra.mxu0 %v8453_v15  ;;  %3264 = vmatpush1.bf16.msra.mxu1 %v8459_v30 }
 0xce4   :  { %3222 = vmatprep.subr.bf16.mxu0 %v8465_v57  ;;  %3265 = vmatprep.subr.bf16.mxu1 %v8471_v4 }
 0xce7   :  { %3223 = vmatpush1.bf16.msra.mxu0 %v8477_v5  ;;  %3266 = vmatpush1.bf16.msra.mxu1 %v8483_v51 }
 0xce8   :  { %3224 = vmatprep.subr.bf16.mxu0 %v8489_v6  ;;  %3267 = vmatprep.subr.bf16.mxu1 %v8495_v46 }
 0xceb   :  { %3225 = vmatpush1.bf16.msra.mxu0 %v8501_v7  ;;  %3268 = vmatpush1.bf16.msra.mxu1 %v8507_v48 }
 0xcec   :  { %3226 = vmatprep.subr.bf16.mxu0 %v8513_v19  ;;  %3269 = vmatprep.subr.bf16.mxu1 %v8519_v13 }
 0xcef   :  { %3227 = vmatpush1.bf16.msra.mxu0 %v8525_v50  ;;  %3270 = vmatpush1.bf16.msra.mxu1 %v8531_v0 }
 0xcf0   :  { %3348 = vmatprep.subr.bf16.mxu0 %v8537_v41  ;;  %3391 = vmatprep.subr.bf16.mxu1 %v8543_v26 }
 0xda5   :  { %v3110_v23 = vpop.f32.mrb[160].mxu0  ;;  %v3153_v8 = vpop.f32.mrb[160].mxu1 }
 0xda6   :  { %v3111_v27 = vadd.f32 %v3110_v23, %v3068_v63  ;;  %v3154_v54 = vadd.f32 %v3153_v8, %v3070_v60  ;;  %v3112_v21 = vpop.f32.mrb[161].mxu0  ;;  %v3155_v61 = vpop.f32.mrb[161].mxu1 }
 0xda7   :  { %v3113_v2 = vadd.f32 %v3112_v21, %v3069_v39  ;;  %v3156_v62 = vadd.f32 %v3155_v61, %v3071_v52  ;;  %v3114_v11 = vpop.f32.mrb[162].mxu0  ;;  %v3157_v33 = vpop.f32.mrb[162].mxu1 }
 0xda8   :  { %v3162_v59 = vmul.f32 0.5, %v3111_v27  ;;  %v3115_v49 = vadd.f32 %v3114_v11, %v3072_v29  ;;  %v3158_v10 = vadd.f32 %v3157_v33, %v3074_v47  ;;  %v3116_v34 = vpop.f32.mrb[163].mxu0  ;;  %v3159_v9 = vpop.f32.mrb[163].mxu1 }
 0xda9   :  { %v3170_v12 = vmul.f32 0.5, %v3113_v2  ;;  %v3117_v55 = vadd.f32 %v3116_v34, %v3073_v56  ;;  %v3160_v63 = vadd.f32 %v3159_v9, %v3075_v53  ;;  %v3180_v20 = vmul.f32 0.5, %v3156_v62 }
 0xdaa   :  { %6041 = vtanh.f32 %v3162_v59  ;;  %v3163_v18 = vmul.f32 0.5, %v3115_v49 }
 0xdab   :  { %6043 = vtanh.f32 %v3170_v12  ;;  %v3171_v14 = vmul.f32 0.5, %v3117_v55  ;;  %v3181_v36 = vmul.f32 0.5, %v3160_v63 }
 0xdac   :  { %6045 = vtanh.f32 %v3163_v18 }
 0xdad   :  { %6047 = vtanh.f32 %v3154_v54 }
 0xdae   :  { %6049 = vtanh.f32 %v3171_v14 }
 0xdaf   :  { %6051 = vtanh.f32 %v3158_v10 }
 0xdb0   :  { %6053 = vtanh.f32 %v3180_v20 }
 0xdb1   :  { %6055 = vtanh.f32 %v3181_v36 }
 0xdb4   :  { %v6042_v60 = vpop.eup %6041 }
 0xdb5   :  { %v6044_v23 = vpop.eup %6043  ;;  %v3166_v8 = vmul.f32 0.5, %v6042_v60 }
 0xdb6   :  { %v3174_v39 = vmul.f32 0.5, %v6044_v23  ;;  %v6046_v52 = vpop.eup %6045 }
 0xdb7   :  { %v3168_v27 = vadd.f32 0.5, %v3166_v8  ;;  %v6048_v21 = vpop.eup %6047  ;;  %v3167_v29 = vmul.f32 0.5, %v6046_v52 }
 0xdb8   :  { %v3176_v61 = vadd.f32 0.5, %v3174_v39  ;;  %v6050_v47 = vpop.eup %6049  ;;  %v10034_v39 = vld [vmem:[#allocation45_spill] sm:$0xff] }
 0xdb9   :  { %v3190_v2 = vmul.f32 %v6048_v21, %v3168_v27  ;;  %v3169_v33 = vadd.f32 0.5, %v3167_v29  ;;  %v3175_v54 = vmul.f32 0.5, %v6050_v47  ;;  %v6052_v56 = vpop.eup %6051  ;;  %v3206_v36 = vunpack.c.l.bf16 %v10034_v39  ;;  %v10035_v21 = vld [vmem:[#allocation46_spill] sm:$0xff]  ;;  %v10036_v29 = vld [vmem:[#allocation47_spill] sm:$0xff] }
 0xdba   :  { %v3188_v11 = vmul.f32 %v3176_v61, %v8555_v3  ;;  %v6054_v34 = vpop.eup %6053  ;;  %v3205_v61 = vunpack.c.l.bf16 %v10035_v21  ;;  %v3207_v47 = vunpack.c.l.bf16 %v10036_v29 }
 0xdbb   :  { %v3177_v59 = vadd.f32 0.5, %v3175_v54  ;;  %v3191_v62 = vmul.f32 %v6052_v56, %v3169_v33  ;;  %v6056_v9 = vpop.eup %6055  ;;  %v3184_v12 = vmul.f32 0.5, %v6054_v34 }
 0xdbc   :  { %v8605_v53 = vadd.f32 %v3190_v2, %v3188_v11  ;;  %v3185_v3 = vmul.f32 0.5, %v6056_v9 }
 0xdbd   :  { %v3189_v49 = vmul.f32 %v3177_v59, %v8559_v17  ;;  %v3186_v63 = vadd.f32 0.5, %v3184_v12  ;;  %v10033_v17 = vld [vmem:[#allocation44_spill] sm:$0xff]  ;;  %v3210_v59 = vunpack.c.h.bf16 %v10034_v39  ;;  %v3209_v12 = vunpack.c.h.bf16 %v10035_v21 }
 0xdbe   :  { %6057 = vtanh.f32 %v8605_v53  ;;  %v3187_v18 = vadd.f32 0.5, %v3185_v3  ;;  %v3204_v20 = vunpack.c.l.bf16 %v10033_v17  ;;  %v3208_v56 = vunpack.c.h.bf16 %v10033_v17 }
 0xdbf   :  { %v8609_v10 = vadd.f32 %v3191_v62, %v3189_v49  ;;  %v3211_v3 = vunpack.c.h.bf16 %v10036_v29 }
 0xdc1   :  { %6059 = vtanh.f32 %v8609_v10 }
 0xdc8   :  { %v6058_v55 = vpop.eup %6057 }
 0xdc9   :  { %v3196_v60 = vmul.f32 %v6058_v55, %v3186_v63 }
 0xdcb   :  { %v6060_v14 = vpop.eup %6059 }
 0xdcc   :  { %v3197_v23 = vmul.f32 %v6060_v14, %v3187_v18 }
 0xdce   :  { %v3198_v8 = vpack.c.bf16 %v3197_v23, %v3196_v60 }
 0xdd0   :  { %3245 = vmatmul.mubr.bf16.vlgmr.msra.gmra.mrb[164].mxu0 %v3198_v8  ;;  %3288 = vmatmul.mubr.bf16.vlgmr.msra.gmra.mrb[164].mxu1 %v3198_v8 }
 0xdd1   :  { %3349 = vmatpush1.bf16.msra.mxu0 %v8355_v31  ;;  %3392 = vmatpush1.bf16.msra.mxu1 %v8361_v25 }
 0xdd2   :  { %3350 = vmatprep.subr.bf16.mxu0 %v8367_v58  ;;  %3393 = vmatprep.subr.bf16.mxu1 %v8373_v24 }
 0xdd3   :  { %3380 = vmatprep.mubr.bf16.mxu0 %v9991_v16  ;;  %3423 = vmatprep.mubr.bf16.mxu1 %v9991_v16 }
 0xdd5   :  { %3351 = vmatpush1.bf16.msra.mxu0 %v8381_v32  ;;  %3394 = vmatpush1.bf16.msra.mxu1 %v8387_v43 }
 0xdd6   :  { %3352 = vmatprep.subr.bf16.mxu0 %v8393_v1  ;;  %3395 = vmatprep.subr.bf16.mxu1 %v8399_v44 }
 0xdd9   :  { %3353 = vmatpush1.bf16.msra.mxu0 %v8405_v35  ;;  %3396 = vmatpush1.bf16.msra.mxu1 %v8411_v38 }
 0xdda   :  { %3354 = vmatprep.subr.bf16.mxu0 %v8417_v45  ;;  %3397 = vmatprep.subr.bf16.mxu1 %v8423_v42 }
 0xddd   :  { %3355 = vmatpush1.bf16.msra.mxu0 %v8429_v37  ;;  %3398 = vmatpush1.bf16.msra.mxu1 %v8435_v22 }
 0xdde   :  { %3356 = vmatprep.subr.bf16.mxu0 %v8441_v28  ;;  %3399 = vmatprep.subr.bf16.mxu1 %v8447_v40 }
 0xde1   :  { %3357 = vmatpush1.bf16.msra.mxu0 %v8453_v15  ;;  %3400 = vmatpush1.bf16.msra.mxu1 %v8459_v30 }
 0xde2   :  { %3358 = vmatprep.subr.bf16.mxu0 %v8465_v57  ;;  %3401 = vmatprep.subr.bf16.mxu1 %v8471_v4 }
 0xde5   :  { %3359 = vmatpush1.bf16.msra.mxu0 %v8477_v5  ;;  %3402 = vmatpush1.bf16.msra.mxu1 %v8483_v51 }
 0xde6   :  { %3360 = vmatprep.subr.bf16.mxu0 %v8489_v6  ;;  %3403 = vmatprep.subr.bf16.mxu1 %v8495_v46 }
 0xde9   :  { %3361 = vmatpush1.bf16.msra.mxu0 %v8501_v7  ;;  %3404 = vmatpush1.bf16.msra.mxu1 %v8507_v48 }
 0xdea   :  { %3362 = vmatprep.subr.bf16.mxu0 %v8513_v19  ;;  %3405 = vmatprep.subr.bf16.mxu1 %v8519_v13 }
 0xded   :  { %3363 = vmatpush1.bf16.msra.mxu0 %v8525_v50  ;;  %3406 = vmatpush1.bf16.msra.mxu1 %v8531_v0 }
 0xdee   :  { %3484 = vmatprep.subr.bf16.mxu0 %v8537_v41  ;;  %3527 = vmatprep.subr.bf16.mxu1 %v8543_v26 }
 0xea3   :  { %v3246_v52 = vpop.f32.mrb[164].mxu0  ;;  %v3289_v27 = vpop.f32.mrb[164].mxu1 }
 0xea4   :  { %v3247_v2 = vadd.f32 %v3246_v52, %v3204_v20  ;;  %v3290_v11 = vadd.f32 %v3289_v27, %v3206_v36  ;;  %v3248_v33 = vpop.f32.mrb[165].mxu0  ;;  %v3291_v54 = vpop.f32.mrb[165].mxu1 }
 0xea5   :  { %v3249_v62 = vadd.f32 %v3248_v33, %v3205_v61  ;;  %v3292_v49 = vadd.f32 %v3291_v54, %v3207_v47  ;;  %v3250_v34 = vpop.f32.mrb[166].mxu0  ;;  %v3293_v9 = vpop.f32.mrb[166].mxu1 }
 0xea6   :  { %v3298_v55 = vmul.f32 0.5, %v3247_v2  ;;  %v3251_v63 = vadd.f32 %v3250_v34, %v3208_v56  ;;  %v3294_v18 = vadd.f32 %v3293_v9, %v3210_v59  ;;  %v3252_v14 = vpop.f32.mrb[167].mxu0  ;;  %v3295_v60 = vpop.f32.mrb[167].mxu1 }
 0xea7   :  { %v3306_v23 = vmul.f32 0.5, %v3249_v62  ;;  %v3253_v8 = vadd.f32 %v3252_v14, %v3209_v12  ;;  %v3296_v20 = vadd.f32 %v3295_v60, %v3211_v3  ;;  %v3316_v21 = vmul.f32 0.5, %v3292_v49 }
 0xea8   :  { %6061 = vtanh.f32 %v3298_v55  ;;  %v3299_v17 = vmul.f32 0.5, %v3251_v63 }
 0xea9   :  { %6063 = vtanh.f32 %v3306_v23  ;;  %v3307_v39 = vmul.f32 0.5, %v3253_v8  ;;  %v3317_v29 = vmul.f32 0.5, %v3296_v20 }
 0xeaa   :  { %6065 = vtanh.f32 %v3299_v17 }
 0xeab   :  { %6067 = vtanh.f32 %v3290_v11 }
 0xeac   :  { %6069 = vtanh.f32 %v3307_v39 }
 0xead   :  { %6071 = vtanh.f32 %v3294_v18 }
 0xeae   :  { %6073 = vtanh.f32 %v3316_v21 }
 0xeaf   :  { %6075 = vtanh.f32 %v3317_v29 }
 0xeb2   :  { %v6062_v36 = vpop.eup %6061 }
 0xeb3   :  { %v6064_v52 = vpop.eup %6063  ;;  %v3302_v27 = vmul.f32 0.5, %v6062_v36 }
 0xeb4   :  { %v3310_v61 = vmul.f32 0.5, %v6064_v52  ;;  %v6066_v47 = vpop.eup %6065 }
 0xeb5   :  { %v3304_v2 = vadd.f32 0.5, %v3302_v27  ;;  %v6068_v33 = vpop.eup %6067  ;;  %v3303_v56 = vmul.f32 0.5, %v6066_v47 }
 0xeb6   :  { %v3312_v54 = vadd.f32 0.5, %v3310_v61  ;;  %v6070_v59 = vpop.eup %6069  ;;  %v10038_v61 = vld [vmem:[#allocation49_spill] sm:$0xff] }
 0xeb7   :  { %v3326_v62 = vmul.f32 %v6068_v33, %v3304_v2  ;;  %v3305_v9 = vadd.f32 0.5, %v3303_v56  ;;  %v3311_v11 = vmul.f32 0.5, %v6070_v59  ;;  %v6072_v12 = vpop.eup %6071  ;;  %v3342_v29 = vunpack.c.l.bf16 %v10038_v61  ;;  %v10039_v33 = vld [vmem:[#allocation50_spill] sm:$0xff]  ;;  %v10040_v56 = vld [vmem:[#allocation51_spill] sm:$0xff] }
 0xeb8   :  { %v3324_v34 = vmul.f32 %v3312_v54, %v8605_v53  ;;  %v6074_v14 = vpop.eup %6073  ;;  %v3341_v54 = vunpack.c.l.bf16 %v10039_v33  ;;  %v3343_v59 = vunpack.c.l.bf16 %v10040_v56 }
 0xeb9   :  { %v3313_v55 = vadd.f32 0.5, %v3311_v11  ;;  %v3327_v49 = vmul.f32 %v6072_v12, %v3305_v9  ;;  %v6076_v60 = vpop.eup %6075  ;;  %v3320_v23 = vmul.f32 0.5, %v6074_v14 }
 0xeba   :  { %v8655_v3 = vadd.f32 %v3326_v62, %v3324_v34  ;;  %v3321_v53 = vmul.f32 0.5, %v6076_v60 }
 0xebb   :  { %v3325_v63 = vmul.f32 %v3313_v55, %v8609_v10  ;;  %v3322_v20 = vadd.f32 0.5, %v3320_v23  ;;  %v10037_v10 = vld [vmem:[#allocation48_spill] sm:$0xff]  ;;  %v3346_v55 = vunpack.c.h.bf16 %v10038_v61  ;;  %v3345_v23 = vunpack.c.h.bf16 %v10039_v33 }
 0xebc   :  { %6077 = vtanh.f32 %v8655_v3  ;;  %v3323_v17 = vadd.f32 0.5, %v3321_v53  ;;  %v3340_v21 = vunpack.c.l.bf16 %v10037_v10  ;;  %v3344_v12 = vunpack.c.h.bf16 %v10037_v10 }
 0xebd   :  { %v8659_v18 = vadd.f32 %v3327_v49, %v3325_v63  ;;  %v3347_v53 = vunpack.c.h.bf16 %v10040_v56 }
 0xebf   :  { %6079 = vtanh.f32 %v8659_v18 }
 0xec6   :  { %v6078_v8 = vpop.eup %6077 }
 0xec7   :  { %v3332_v36 = vmul.f32 %v6078_v8, %v3322_v20 }
 0xec9   :  { %v6080_v39 = vpop.eup %6079 }
 0xeca   :  { %v3333_v52 = vmul.f32 %v6080_v39, %v3323_v17 }
 0xecc   :  { %v3334_v27 = vpack.c.bf16 %v3333_v52, %v3332_v36 }
 0xece   :  { %3381 = vmatmul.mubr.bf16.vlgmr.msra.gmra.mrb[168].mxu0 %v3334_v27  ;;  %3424 = vmatmul.mubr.bf16.vlgmr.msra.gmra.mrb[168].mxu1 %v3334_v27 }
 0xecf   :  { %3485 = vmatpush1.bf16.msra.mxu0 %v8355_v31  ;;  %3528 = vmatpush1.bf16.msra.mxu1 %v8361_v25 }
 0xed0   :  { %3486 = vmatprep.subr.bf16.mxu0 %v8367_v58  ;;  %3529 = vmatprep.subr.bf16.mxu1 %v8373_v24 }
 0xed1   :  { %3516 = vmatprep.mubr.bf16.mxu0 %v9991_v16  ;;  %3559 = vmatprep.mubr.bf16.mxu1 %v9991_v16 }
 0xed3   :  { %3487 = vmatpush1.bf16.msra.mxu0 %v8381_v32  ;;  %3530 = vmatpush1.bf16.msra.mxu1 %v8387_v43 }
 0xed4   :  { %3488 = vmatprep.subr.bf16.mxu0 %v8393_v1  ;;  %3531 = vmatprep.subr.bf16.mxu1 %v8399_v44 }
 0xed7   :  { %3489 = vmatpush1.bf16.msra.mxu0 %v8405_v35  ;;  %3532 = vmatpush1.bf16.msra.mxu1 %v8411_v38 }
 0xed8   :  { %3490 = vmatprep.subr.bf16.mxu0 %v8417_v45  ;;  %3533 = vmatprep.subr.bf16.mxu1 %v8423_v42 }
 0xedb   :  { %3491 = vmatpush1.bf16.msra.mxu0 %v8429_v37  ;;  %3534 = vmatpush1.bf16.msra.mxu1 %v8435_v22 }
 0xedc   :  { %3492 = vmatprep.subr.bf16.mxu0 %v8441_v28  ;;  %3535 = vmatprep.subr.bf16.mxu1 %v8447_v40 }
 0xedf   :  { %3493 = vmatpush1.bf16.msra.mxu0 %v8453_v15  ;;  %3536 = vmatpush1.bf16.msra.mxu1 %v8459_v30 }
 0xee0   :  { %3494 = vmatprep.subr.bf16.mxu0 %v8465_v57  ;;  %3537 = vmatprep.subr.bf16.mxu1 %v8471_v4 }
 0xee3   :  { %3495 = vmatpush1.bf16.msra.mxu0 %v8477_v5  ;;  %3538 = vmatpush1.bf16.msra.mxu1 %v8483_v51 }
 0xee4   :  { %3496 = vmatprep.subr.bf16.mxu0 %v8489_v6  ;;  %3539 = vmatprep.subr.bf16.mxu1 %v8495_v46 }
 0xee7   :  { %3497 = vmatpush1.bf16.msra.mxu0 %v8501_v7  ;;  %3540 = vmatpush1.bf16.msra.mxu1 %v8507_v48 }
 0xee8   :  { %3498 = vmatprep.subr.bf16.mxu0 %v8513_v19  ;;  %3541 = vmatprep.subr.bf16.mxu1 %v8519_v13 }
 0xeeb   :  { %3499 = vmatpush1.bf16.msra.mxu0 %v8525_v50  ;;  %3542 = vmatpush1.bf16.msra.mxu1 %v8531_v0 }
 0xeec   :  { %3620 = vmatprep.subr.bf16.mxu0 %v8537_v41  ;;  %3663 = vmatprep.subr.bf16.mxu1 %v8543_v26 }
 0xfa1   :  { %v3382_v47 = vpop.f32.mrb[168].mxu0  ;;  %v3425_v2 = vpop.f32.mrb[168].mxu1 }
 0xfa2   :  { %v3383_v62 = vadd.f32 %v3382_v47, %v3340_v21  ;;  %v3426_v34 = vadd.f32 %v3425_v2, %v3342_v29  ;;  %v3384_v9 = vpop.f32.mrb[169].mxu0  ;;  %v3427_v11 = vpop.f32.mrb[169].mxu1 }
 0xfa3   :  { %v3385_v49 = vadd.f32 %v3384_v9, %v3341_v54  ;;  %v3428_v63 = vadd.f32 %v3427_v11, %v3343_v59  ;;  %v3386_v14 = vpop.f32.mrb[170].mxu0  ;;  %v3429_v60 = vpop.f32.mrb[170].mxu1 }
 0xfa4   :  { %v3434_v8 = vmul.f32 0.5, %v3383_v62  ;;  %v3387_v20 = vadd.f32 %v3386_v14, %v3344_v12  ;;  %v3430_v17 = vadd.f32 %v3429_v60, %v3346_v55  ;;  %v3388_v39 = vpop.f32.mrb[171].mxu0  ;;  %v3431_v36 = vpop.f32.mrb[171].mxu1 }
 0xfa5   :  { %v3442_v52 = vmul.f32 0.5, %v3385_v49  ;;  %v3389_v27 = vadd.f32 %v3388_v39, %v3345_v23  ;;  %v3432_v21 = vadd.f32 %v3431_v36, %v3347_v53  ;;  %v3452_v33 = vmul.f32 0.5, %v3428_v63 }
 0xfa6   :  { %6081 = vtanh.f32 %v3434_v8  ;;  %v3435_v10 = vmul.f32 0.5, %v3387_v20 }
 0xfa7   :  { %6083 = vtanh.f32 %v3442_v52  ;;  %v3443_v61 = vmul.f32 0.5, %v3389_v27  ;;  %v3453_v56 = vmul.f32 0.5, %v3432_v21 }
 0xfa8   :  { %6085 = vtanh.f32 %v3435_v10 }
 0xfa9   :  { %6087 = vtanh.f32 %v3426_v34 }
 0xfaa   :  { %6089 = vtanh.f32 %v3443_v61 }
 0xfab   :  { %6091 = vtanh.f32 %v3430_v17 }
 0xfac   :  { %6093 = vtanh.f32 %v3452_v33 }
 0xfad   :  { %6095 = vtanh.f32 %v3453_v56 }
 0xfb0   :  { %v6082_v29 = vpop.eup %6081 }
 0xfb1   :  { %v6084_v47 = vpop.eup %6083  ;;  %v3438_v2 = vmul.f32 0.5, %v6082_v29 }
 0xfb2   :  { %v3446_v54 = vmul.f32 0.5, %v6084_v47  ;;  %v6086_v59 = vpop.eup %6085 }
 0xfb3   :  { %v3440_v62 = vadd.f32 0.5, %v3438_v2  ;;  %v6088_v9 = vpop.eup %6087  ;;  %v3439_v12 = vmul.f32 0.5, %v6086_v59 }
 0xfb4   :  { %v3448_v11 = vadd.f32 0.5, %v3446_v54  ;;  %v6090_v55 = vpop.eup %6089 }
 0xfb5   :  { %v3462_v49 = vmul.f32 %v6088_v9, %v3440_v62  ;;  %v3441_v60 = vadd.f32 0.5, %v3439_v12  ;;  %v3447_v34 = vmul.f32 0.5, %v6090_v55  ;;  %v6092_v23 = vpop.eup %6091 }
 0xfb6   :  { %v3460_v14 = vmul.f32 %v3448_v11, %v8655_v3  ;;  %v6094_v39 = vpop.eup %6093 }
 0xfb7   :  { %v3449_v8 = vadd.f32 0.5, %v3447_v34  ;;  %v3463_v63 = vmul.f32 %v6092_v23, %v3441_v60  ;;  %v6096_v36 = vpop.eup %6095  ;;  %v3456_v52 = vmul.f32 0.5, %v6094_v39 }
 0xfb8   :  { %v8705_v53 = vadd.f32 %v3462_v49, %v3460_v14  ;;  %v3457_v3 = vmul.f32 0.5, %v6096_v36 }
 0xfb9   :  { %v3461_v20 = vmul.f32 %v3449_v8, %v8659_v18  ;;  %v3458_v21 = vadd.f32 0.5, %v3456_v52 }
 0xfba   :  { %6097 = vtanh.f32 %v8705_v53  ;;  %v3459_v10 = vadd.f32 0.5, %v3457_v3 }
 0xfbb   :  { %v8709_v17 = vadd.f32 %v3463_v63, %v3461_v20 }
 0xfbd   :  { %6099 = vtanh.f32 %v8709_v17 }
 0xfc4   :  { %v6098_v27 = vpop.eup %6097 }
 0xfc5   :  { %v3468_v29 = vmul.f32 %v6098_v27, %v3458_v21 }
 0xfc7   :  { %v6100_v61 = vpop.eup %6099 }
 0xfc8   :  { %v3469_v47 = vmul.f32 %v6100_v61, %v3459_v10 }
 0xfca   :  { %v3470_v2 = vpack.c.bf16 %v3469_v47, %v3468_v29 }
 0xfcc   :  { %3517 = vmatmul.mubr.bf16.vlgmr.msra.gmra.mrb[172].mxu0 %v3470_v2  ;;  %3560 = vmatmul.mubr.bf16.vlgmr.msra.gmra.mrb[172].mxu1 %v3470_v2 }
 0xfcd   :  { %3621 = vmatpush1.bf16.msra.mxu0 %v8355_v31  ;;  %3664 = vmatpush1.bf16.msra.mxu1 %v8361_v25  ;;  %v10041_v31 = vld [vmem:[#allocation52_spill] sm:$0xff] }
 0xfce   :  { %3622 = vmatprep.subr.bf16.mxu0 %v8367_v58  ;;  %3665 = vmatprep.subr.bf16.mxu1 %v8373_v24  ;;  %v3476_v25 = vunpack.c.l.bf16 %v10041_v31  ;;  %v10042_v58 = vld [vmem:[#allocation53_spill] sm:$0xff] }
 0xfcf   :  { %3652 = vmatprep.mubr.bf16.mxu0 %v9991_v16  ;;  %3695 = vmatprep.mubr.bf16.mxu1 %v9991_v16  ;;  %v3478_v24 = vunpack.c.l.bf16 %v10042_v58 }
 0xfd1   :  { %3623 = vmatpush1.bf16.msra.mxu0 %v8381_v32  ;;  %3666 = vmatpush1.bf16.msra.mxu1 %v8387_v43 }
 0xfd2   :  { %3624 = vmatprep.subr.bf16.mxu0 %v8393_v1  ;;  %3667 = vmatprep.subr.bf16.mxu1 %v8399_v44  ;;  %v10043_v1 = vld [vmem:[#allocation54_spill] sm:$0xff] }
 0xfd3   :  { %v3477_v44 = vunpack.c.l.bf16 %v10043_v1 }
 0xfd5   :  { %3625 = vmatpush1.bf16.msra.mxu0 %v8405_v35  ;;  %3668 = vmatpush1.bf16.msra.mxu1 %v8411_v38  ;;  %v10044_v35 = vld [vmem:[#allocation55_spill] sm:$0xff] }
 0xfd6   :  { %3626 = vmatprep.subr.bf16.mxu0 %v8417_v45  ;;  %3669 = vmatprep.subr.bf16.mxu1 %v8423_v42  ;;  %v3479_v38 = vunpack.c.l.bf16 %v10044_v35 }
 0xfd9   :  { %3627 = vmatpush1.bf16.msra.mxu0 %v8429_v37  ;;  %3670 = vmatpush1.bf16.msra.mxu1 %v8435_v22 }
 0xfda   :  { %3628 = vmatprep.subr.bf16.mxu0 %v8441_v28  ;;  %3671 = vmatprep.subr.bf16.mxu1 %v8447_v40  ;;  %v3480_v28 = vunpack.c.h.bf16 %v10041_v31  ;;  %v3482_v40 = vunpack.c.h.bf16 %v10042_v58 }
 0xfdd   :  { %3629 = vmatpush1.bf16.msra.mxu0 %v8453_v15  ;;  %3672 = vmatpush1.bf16.msra.mxu1 %v8459_v30 }
 0xfde   :  { %3630 = vmatprep.subr.bf16.mxu0 %v8465_v57  ;;  %3673 = vmatprep.subr.bf16.mxu1 %v8471_v4 }
 0xfe1   :  { %3631 = vmatpush1.bf16.msra.mxu0 %v8477_v5  ;;  %3674 = vmatpush1.bf16.msra.mxu1 %v8483_v51  ;;  %v3481_v5 = vunpack.c.h.bf16 %v10043_v1  ;;  %v3483_v51 = vunpack.c.h.bf16 %v10044_v35  ;;  %v8791_v1 = vld [vmem:[%s9780_s2 + $0x20] ss:$16 sps:$4 sm:$0xff]   ;;  %v8803_v35 = vld [vmem:[%s9780_s2 + $0x44] ss:$16 sps:$4 sm:$0xff]  }
 0xfe2   :  { %3632 = vmatprep.subr.bf16.mxu0 %v8489_v6  ;;  %3675 = vmatprep.subr.bf16.mxu1 %v8495_v46 }
 0xfe5   :  { %3633 = vmatpush1.bf16.msra.mxu0 %v8501_v7  ;;  %3676 = vmatpush1.bf16.msra.mxu1 %v8507_v48 }
 0xfe6   :  { %3634 = vmatprep.subr.bf16.mxu0 %v8513_v19  ;;  %3677 = vmatprep.subr.bf16.mxu1 %v8519_v13 }
 0xfe9   :  { %3635 = vmatpush1.bf16.msra.mxu0 %v8525_v50  ;;  %3678 = vmatpush1.bf16.msra.mxu1 %v8531_v0 }
 0xfea   :  { %3756 = vmatprep.subr.bf16.mxu0 %v8537_v41  ;;  %3799 = vmatprep.subr.bf16.mxu1 %v8543_v26 }
0x109f   :  { %v3518_v32 = vpop.f32.mrb[172].mxu0  ;;  %v3561_v43 = vpop.f32.mrb[172].mxu1 }
0x10a0   :  { %v3519_v45 = vadd.f32 %v3518_v32, %v3476_v25  ;;  %v3562_v42 = vadd.f32 %v3561_v43, %v3478_v24  ;;  %v3520_v37 = vpop.f32.mrb[173].mxu0  ;;  %v3563_v22 = vpop.f32.mrb[173].mxu1  ;;  %v8771_v24 = vld [vmem:[%s9780_s2 + $0x8] ss:$16 sps:$4 sm:$0xff]   ;;  %v8777_v32 = vld [vmem:[%s9780_s2 + $0x24] ss:$16 sps:$4 sm:$0xff]  }
0x10a1   :  { %v3521_v15 = vadd.f32 %v3520_v37, %v3477_v44  ;;  %v3564_v30 = vadd.f32 %v3563_v22, %v3479_v38  ;;  %v3522_v57 = vpop.f32.mrb[174].mxu0  ;;  %v3565_v4 = vpop.f32.mrb[174].mxu1  ;;  %v8783_v43 = vld [vmem:[%s9780_s2 + $0x2c] ss:$16 sps:$4 sm:$0xff]   ;;  %v8797_v44 = vld [vmem:[%s9780_s2 + $0x28] ss:$16 sps:$4 sm:$0xff]  }
0x10a2   :  { %v3570_v6 = vmul.f32 0.5, %v3519_v45  ;;  %v3523_v46 = vadd.f32 %v3522_v57, %v3480_v28  ;;  %v3566_v7 = vadd.f32 %v3565_v4, %v3482_v40  ;;  %v3524_v48 = vpop.f32.mrb[175].mxu0  ;;  %v3567_v19 = vpop.f32.mrb[175].mxu1  ;;  %v8809_v38 = vld [vmem:[%s9780_s2 + $0x4c] ss:$16 sps:$4 sm:$0xff]  }
0x10a3   :  { %v3578_v13 = vmul.f32 0.5, %v3521_v15  ;;  %v3525_v50 = vadd.f32 %v3524_v48, %v3481_v5  ;;  %v3568_v0 = vadd.f32 %v3567_v19, %v3483_v51  ;;  %v3588_v56 = vmul.f32 0.5, %v3564_v30  ;;  %v8815_v45 = vld [vmem:[%s9780_s2 + $0x40] ss:$16 sps:$4 sm:$0xff]   ;;  %v8827_v37 = vld [vmem:[%s9780_s2 + $0x64] ss:$16 sps:$4 sm:$0xff]  }
0x10a4   :  { %6101 = vtanh.f32 %v3570_v6  ;;  %v3571_v41 = vmul.f32 0.5, %v3523_v46  ;;  %v8833_v22 = vld [vmem:[%s9780_s2 + $0x6c] ss:$16 sps:$4 sm:$0xff]   ;;  %v8839_v28 = vld [vmem:[%s9780_s2 + $0x60] ss:$16 sps:$4 sm:$0xff]  }
0x10a5   :  { %6103 = vtanh.f32 %v3578_v13  ;;  %v3579_v26 = vmul.f32 0.5, %v3525_v50  ;;  %v3589_v62 = vmul.f32 0.5, %v3568_v0  ;;  %v8845_v40 = vld [vmem:[%s9780_s2 + $0x68] ss:$16 sps:$4 sm:$0xff]   ;;  %v8851_v15 = vld [vmem:[%s9780_s2 + $0x84] ss:$16 sps:$4 sm:$0xff]  }
0x10a6   :  { %6105 = vtanh.f32 %v3571_v41  ;;  %v8857_v30 = vld [vmem:[%s9780_s2 + $0x8c] ss:$16 sps:$4 sm:$0xff]   ;;  %v8863_v57 = vld [vmem:[%s9780_s2 + $0x80] ss:$16 sps:$4 sm:$0xff]   ;;  %v8869_v4 = vld [vmem:[%s9780_s2 + $0x88] ss:$16 sps:$4 sm:$0xff]  }
0x10a7   :  { %6107 = vtanh.f32 %v3562_v42  ;;  %v8821_v42 = vld [vmem:[%s9780_s2 + $0x48] ss:$16 sps:$4 sm:$0xff]   ;;  %v8875_v5 = vld [vmem:[%s9780_s2 + $0xa4] ss:$16 sps:$4 sm:$0xff]   ;;  %v8881_v51 = vld [vmem:[%s9780_s2 + $0xac] ss:$16 sps:$4 sm:$0xff]  }
0x10a8   :  { %6109 = vtanh.f32 %v3579_v26  ;;  %v8887_v6 = vld [vmem:[%s9780_s2 + $0xa0] ss:$16 sps:$4 sm:$0xff]   ;;  %v8893_v46 = vld [vmem:[%s9780_s2 + $0xa8] ss:$16 sps:$4 sm:$0xff]   ;;  %v8905_v48 = vld [vmem:[%s9780_s2 + $0xcc] ss:$16 sps:$4 sm:$0xff]  }
0x10a9   :  { %6111 = vtanh.f32 %v3566_v7  ;;  %v8899_v7 = vld [vmem:[%s9780_s2 + $0xc4] ss:$16 sps:$4 sm:$0xff]   ;;  %v8911_v19 = vld [vmem:[%s9780_s2 + $0xc0] ss:$16 sps:$4 sm:$0xff]   ;;  %v8917_v13 = vld [vmem:[%s9780_s2 + $0xc8] ss:$16 sps:$4 sm:$0xff]  }
0x10aa   :  { %6113 = vtanh.f32 %v3588_v56  ;;  %v8923_v50 = vld [vmem:[%s9780_s2 + $0xe4] ss:$16 sps:$4 sm:$0xff]   ;;  %v8929_v0 = vld [vmem:[%s9780_s2 + $0xec] ss:$16 sps:$4 sm:$0xff]   ;;  %v8935_v41 = vld [vmem:[%s9780_s2 + $0xe0] ss:$16 sps:$4 sm:$0xff]  }
0x10ab   :  { %6115 = vtanh.f32 %v3589_v62  ;;  %v8941_v26 = vld [vmem:[%s9780_s2 + $0xe8] ss:$16 sps:$4 sm:$0xff]  }
0x10ae   :  { %v6102_v18 = vpop.eup %6101 }
0x10af   :  { %v6104_v33 = vpop.eup %6103  ;;  %v3574_v54 = vmul.f32 0.5, %v6102_v18  ;;  %v8947_v18 = vld [vmem:[%s9780_s2 + $0x4] ss:$16 sps:$4 sm:$0xff]  }
0x10b0   :  { %v3582_v59 = vmul.f32 0.5, %v6104_v33  ;;  %v6106_v9 = vpop.eup %6105  ;;  %v8953_v33 = vld [vmem:[%s9780_s2 + $0xc] ss:$16 sps:$4 sm:$0xff]  }
0x10b1   :  { %v3576_v11 = vadd.f32 0.5, %v3574_v54  ;;  %v6108_v12 = vpop.eup %6107  ;;  %v3575_v49 = vmul.f32 0.5, %v6106_v9  ;;  %v10045_v54 = vld [vmem:[#allocation56_spill] sm:$0xff] }
0x10b2   :  { %v3584_v55 = vadd.f32 0.5, %v3582_v59  ;;  %v6110_v14 = vpop.eup %6109  ;;  %v3612_v56 = vunpack.c.l.bf16 %v10045_v54  ;;  %v10046_v59 = vld [vmem:[#allocation57_spill] sm:$0xff] }
0x10b3   :  { %v3598_v60 = vmul.f32 %v6108_v12, %v3576_v11  ;;  %v3577_v23 = vadd.f32 0.5, %v3575_v49  ;;  %v3583_v8 = vmul.f32 0.5, %v6110_v14  ;;  %v6112_v63 = vpop.eup %6111  ;;  %v3614_v62 = vunpack.c.l.bf16 %v10046_v59  ;;  %v10047_v12 = vld [vmem:[#allocation58_spill] sm:$0xff]  ;;  %v10048_v49 = vld [vmem:[#allocation59_spill] sm:$0xff] }
0x10b4   :  { %v3596_v34 = vmul.f32 %v3584_v55, %v8705_v53  ;;  %v6114_v27 = vpop.eup %6113  ;;  %v3613_v55 = vunpack.c.l.bf16 %v10047_v12  ;;  %v3615_v14 = vunpack.c.l.bf16 %v10048_v49 }
0x10b5   :  { %v3585_v39 = vadd.f32 0.5, %v3583_v8  ;;  %v3599_v36 = vmul.f32 %v6112_v63, %v3577_v23  ;;  %v6116_v21 = vpop.eup %6115  ;;  %v3592_v10 = vmul.f32 0.5, %v6114_v27  ;;  %v3616_v63 = vunpack.c.h.bf16 %v10045_v54 }
0x10b6   :  { %v8755_v20 = vadd.f32 %v3598_v60, %v3596_v34  ;;  %v3593_v53 = vmul.f32 0.5, %v6116_v21 }
0x10b7   :  { %v3597_v52 = vmul.f32 %v3585_v39, %v8709_v17  ;;  %v3594_v29 = vadd.f32 0.5, %v3592_v10  ;;  %v8765_v17 = vld [vmem:[%s9780_s2] ss:$16 sps:$4 sm:$0xff]   ;;  %v3618_v39 = vunpack.c.h.bf16 %v10046_v59  ;;  %v3617_v10 = vunpack.c.h.bf16 %v10047_v12 }
0x10b8   :  { %6117 = vtanh.f32 %v8755_v20  ;;  %v3595_v47 = vadd.f32 0.5, %v3593_v53  ;;  %v3619_v53 = vunpack.c.h.bf16 %v10048_v49 }
0x10b9   :  { %v8759_v3 = vadd.f32 %v3599_v36, %v3597_v52 }
0x10bb   :  { %6119 = vtanh.f32 %v8759_v3 }
0x10c2   :  { %v6118_v61 = vpop.eup %6117 }
0x10c3   :  { %v3604_v31 = vmul.f32 %v6118_v61, %v3594_v29 }
0x10c5   :  { %v6120_v2 = vpop.eup %6119 }
0x10c6   :  { %v3605_v25 = vmul.f32 %v6120_v2, %v3595_v47 }
0x10c8   :  { %v3606_v58 = vpack.c.bf16 %v3605_v25, %v3604_v31 }
0x10ca   :  { %3653 = vmatmul.mubr.bf16.vlgmr.msra.gmra.mrb[176].mxu0 %v3606_v58  ;;  %3696 = vmatmul.mubr.bf16.vlgmr.msra.gmra.mrb[176].mxu1 %v3606_v58 }
0x10cb   :  { %3757 = vmatpush1.bf16.msra.mxu0 %v8765_v17  ;;  %3800 = vmatpush1.bf16.msra.mxu1 %v8771_v24 }
0x10cc   :  { %3758 = vmatprep.subr.bf16.mxu0 %v8777_v32  ;;  %3801 = vmatprep.subr.bf16.mxu1 %v8783_v43 }
0x10cd   :  { %3788 = vmatprep.mubr.bf16.mxu0 %v9991_v16  ;;  %3831 = vmatprep.mubr.bf16.mxu1 %v9991_v16 }
0x10cf   :  { %3759 = vmatpush1.bf16.msra.mxu0 %v8791_v1  ;;  %3802 = vmatpush1.bf16.msra.mxu1 %v8797_v44 }
0x10d0   :  { %3760 = vmatprep.subr.bf16.mxu0 %v8803_v35  ;;  %3803 = vmatprep.subr.bf16.mxu1 %v8809_v38 }
0x10d3   :  { %3761 = vmatpush1.bf16.msra.mxu0 %v8815_v45  ;;  %3804 = vmatpush1.bf16.msra.mxu1 %v8821_v42 }
0x10d4   :  { %3762 = vmatprep.subr.bf16.mxu0 %v8827_v37  ;;  %3805 = vmatprep.subr.bf16.mxu1 %v8833_v22 }
0x10d7   :  { %3763 = vmatpush1.bf16.msra.mxu0 %v8839_v28  ;;  %3806 = vmatpush1.bf16.msra.mxu1 %v8845_v40 }
0x10d8   :  { %3764 = vmatprep.subr.bf16.mxu0 %v8851_v15  ;;  %3807 = vmatprep.subr.bf16.mxu1 %v8857_v30 }
0x10db   :  { %3765 = vmatpush1.bf16.msra.mxu0 %v8863_v57  ;;  %3808 = vmatpush1.bf16.msra.mxu1 %v8869_v4 }
0x10dc   :  { %3766 = vmatprep.subr.bf16.mxu0 %v8875_v5  ;;  %3809 = vmatprep.subr.bf16.mxu1 %v8881_v51 }
0x10df   :  { %3767 = vmatpush1.bf16.msra.mxu0 %v8887_v6  ;;  %3810 = vmatpush1.bf16.msra.mxu1 %v8893_v46 }
0x10e0   :  { %3768 = vmatprep.subr.bf16.mxu0 %v8899_v7  ;;  %3811 = vmatprep.subr.bf16.mxu1 %v8905_v48 }
0x10e3   :  { %3769 = vmatpush1.bf16.msra.mxu0 %v8911_v19  ;;  %3812 = vmatpush1.bf16.msra.mxu1 %v8917_v13 }
0x10e4   :  { %3770 = vmatprep.subr.bf16.mxu0 %v8923_v50  ;;  %3813 = vmatprep.subr.bf16.mxu1 %v8929_v0 }
0x10e7   :  { %3771 = vmatpush1.bf16.msra.mxu0 %v8935_v41  ;;  %3814 = vmatpush1.bf16.msra.mxu1 %v8941_v26 }
0x10e8   :  { %3892 = vmatprep.subr.bf16.mxu0 %v8947_v18  ;;  %3935 = vmatprep.subr.bf16.mxu1 %v8953_v33 }
0x119d   :  { %v3654_v9 = vpop.f32.mrb[176].mxu0  ;;  %v3697_v11 = vpop.f32.mrb[176].mxu1 }
0x119e   :  { %v3655_v60 = vadd.f32 %v3654_v9, %v3612_v56  ;;  %v3698_v34 = vadd.f32 %v3697_v11, %v3614_v62  ;;  %v3656_v23 = vpop.f32.mrb[177].mxu0  ;;  %v3699_v8 = vpop.f32.mrb[177].mxu1 }
0x119f   :  { %v3657_v36 = vadd.f32 %v3656_v23, %v3613_v55  ;;  %v3700_v52 = vadd.f32 %v3699_v8, %v3615_v14  ;;  %v3658_v27 = vpop.f32.mrb[178].mxu0  ;;  %v3701_v21 = vpop.f32.mrb[178].mxu1 }
0x11a0   :  { %v3706_v61 = vmul.f32 0.5, %v3655_v60  ;;  %v3659_v29 = vadd.f32 %v3658_v27, %v3616_v63  ;;  %v3702_v47 = vadd.f32 %v3701_v21, %v3618_v39  ;;  %v3660_v2 = vpop.f32.mrb[179].mxu0  ;;  %v3703_v31 = vpop.f32.mrb[179].mxu1 }
0x11a1   :  { %v3714_v25 = vmul.f32 0.5, %v3657_v36  ;;  %v3661_v58 = vadd.f32 %v3660_v2, %v3617_v10  ;;  %v3704_v56 = vadd.f32 %v3703_v31, %v3619_v53  ;;  %v3724_v12 = vmul.f32 0.5, %v3700_v52 }
0x11a2   :  { %6121 = vtanh.f32 %v3706_v61  ;;  %v3707_v54 = vmul.f32 0.5, %v3659_v29 }
0x11a3   :  { %6123 = vtanh.f32 %v3714_v25  ;;  %v3715_v59 = vmul.f32 0.5, %v3661_v58  ;;  %v3725_v49 = vmul.f32 0.5, %v3704_v56 }
0x11a4   :  { %6125 = vtanh.f32 %v3707_v54 }
0x11a5   :  { %6127 = vtanh.f32 %v3698_v34 }
0x11a6   :  { %6129 = vtanh.f32 %v3715_v59 }
0x11a7   :  { %6131 = vtanh.f32 %v3702_v47 }
0x11a8   :  { %6133 = vtanh.f32 %v3724_v12 }
0x11a9   :  { %6135 = vtanh.f32 %v3725_v49 }
0x11ac   :  { %v6122_v62 = vpop.eup %6121 }
0x11ad   :  { %v6124_v9 = vpop.eup %6123  ;;  %v3710_v11 = vmul.f32 0.5, %v6122_v62 }
0x11ae   :  { %v3718_v55 = vmul.f32 0.5, %v6124_v9  ;;  %v6126_v14 = vpop.eup %6125 }
0x11af   :  { %v3712_v60 = vadd.f32 0.5, %v3710_v11  ;;  %v6128_v23 = vpop.eup %6127  ;;  %v3711_v63 = vmul.f32 0.5, %v6126_v14 }
0x11b0   :  { %v3720_v8 = vadd.f32 0.5, %v3718_v55  ;;  %v6130_v39 = vpop.eup %6129  ;;  %v10050_v55 = vld [vmem:[#allocation61_spill] sm:$0xff] }
0x11b1   :  { %v3734_v36 = vmul.f32 %v6128_v23, %v3712_v60  ;;  %v3713_v21 = vadd.f32 0.5, %v3711_v63  ;;  %v3719_v34 = vmul.f32 0.5, %v6130_v39  ;;  %v6132_v10 = vpop.eup %6131  ;;  %v3750_v49 = vunpack.c.l.bf16 %v10050_v55  ;;  %v10051_v23 = vld [vmem:[#allocation62_spill] sm:$0xff]  ;;  %v10052_v63 = vld [vmem:[#allocation63_spill] sm:$0xff] }
0x11b2   :  { %v3732_v27 = vmul.f32 %v3720_v8, %v8755_v20  ;;  %v6134_v2 = vpop.eup %6133  ;;  %v3749_v8 = vunpack.c.l.bf16 %v10051_v23  ;;  %v3751_v39 = vunpack.c.l.bf16 %v10052_v63 }
0x11b3   :  { %v3721_v61 = vadd.f32 0.5, %v3719_v34  ;;  %v3735_v52 = vmul.f32 %v6132_v10, %v3713_v21  ;;  %v6136_v31 = vpop.eup %6135  ;;  %v3728_v25 = vmul.f32 0.5, %v6134_v2 }
0x11b4   :  { %v8965_v53 = vadd.f32 %v3734_v36, %v3732_v27  ;;  %v3729_v20 = vmul.f32 0.5, %v6136_v31 }
0x11b5   :  { %v3733_v29 = vmul.f32 %v3721_v61, %v8759_v3  ;;  %v3730_v56 = vadd.f32 0.5, %v3728_v25  ;;  %v10049_v3 = vld [vmem:[#allocation60_spill] sm:$0xff]  ;;  %v3754_v61 = vunpack.c.h.bf16 %v10050_v55  ;;  %v3753_v25 = vunpack.c.h.bf16 %v10051_v23 }
0x11b6   :  { %6137 = vtanh.f32 %v8965_v53  ;;  %v3731_v54 = vadd.f32 0.5, %v3729_v20  ;;  %v3748_v12 = vunpack.c.l.bf16 %v10049_v3  ;;  %v3752_v10 = vunpack.c.h.bf16 %v10049_v3 }
0x11b7   :  { %v8969_v47 = vadd.f32 %v3735_v52, %v3733_v29  ;;  %v3755_v20 = vunpack.c.h.bf16 %v10052_v63 }
0x11b9   :  { %6139 = vtanh.f32 %v8969_v47 }
0x11c0   :  { %v6138_v58 = vpop.eup %6137 }
0x11c1   :  { %v3740_v62 = vmul.f32 %v6138_v58, %v3730_v56 }
0x11c3   :  { %v6140_v59 = vpop.eup %6139 }
0x11c4   :  { %v3741_v9 = vmul.f32 %v6140_v59, %v3731_v54 }
0x11c6   :  { %v3742_v11 = vpack.c.bf16 %v3741_v9, %v3740_v62 }
0x11c8   :  { %3789 = vmatmul.mubr.bf16.vlgmr.msra.gmra.mrb[180].mxu0 %v3742_v11  ;;  %3832 = vmatmul.mubr.bf16.vlgmr.msra.gmra.mrb[180].mxu1 %v3742_v11 }
0x11c9   :  { %3893 = vmatpush1.bf16.msra.mxu0 %v8765_v17  ;;  %3936 = vmatpush1.bf16.msra.mxu1 %v8771_v24 }
0x11ca   :  { %3894 = vmatprep.subr.bf16.mxu0 %v8777_v32  ;;  %3937 = vmatprep.subr.bf16.mxu1 %v8783_v43 }
0x11cb   :  { %3924 = vmatprep.mubr.bf16.mxu0 %v9991_v16  ;;  %3967 = vmatprep.mubr.bf16.mxu1 %v9991_v16 }
0x11cd   :  { %3895 = vmatpush1.bf16.msra.mxu0 %v8791_v1  ;;  %3938 = vmatpush1.bf16.msra.mxu1 %v8797_v44 }
0x11ce   :  { %3896 = vmatprep.subr.bf16.mxu0 %v8803_v35  ;;  %3939 = vmatprep.subr.bf16.mxu1 %v8809_v38 }
0x11d1   :  { %3897 = vmatpush1.bf16.msra.mxu0 %v8815_v45  ;;  %3940 = vmatpush1.bf16.msra.mxu1 %v8821_v42 }
0x11d2   :  { %3898 = vmatprep.subr.bf16.mxu0 %v8827_v37  ;;  %3941 = vmatprep.subr.bf16.mxu1 %v8833_v22 }
0x11d5   :  { %3899 = vmatpush1.bf16.msra.mxu0 %v8839_v28  ;;  %3942 = vmatpush1.bf16.msra.mxu1 %v8845_v40 }
0x11d6   :  { %3900 = vmatprep.subr.bf16.mxu0 %v8851_v15  ;;  %3943 = vmatprep.subr.bf16.mxu1 %v8857_v30 }
0x11d9   :  { %3901 = vmatpush1.bf16.msra.mxu0 %v8863_v57  ;;  %3944 = vmatpush1.bf16.msra.mxu1 %v8869_v4 }
0x11da   :  { %3902 = vmatprep.subr.bf16.mxu0 %v8875_v5  ;;  %3945 = vmatprep.subr.bf16.mxu1 %v8881_v51 }
0x11dd   :  { %3903 = vmatpush1.bf16.msra.mxu0 %v8887_v6  ;;  %3946 = vmatpush1.bf16.msra.mxu1 %v8893_v46 }
0x11de   :  { %3904 = vmatprep.subr.bf16.mxu0 %v8899_v7  ;;  %3947 = vmatprep.subr.bf16.mxu1 %v8905_v48 }
0x11e1   :  { %3905 = vmatpush1.bf16.msra.mxu0 %v8911_v19  ;;  %3948 = vmatpush1.bf16.msra.mxu1 %v8917_v13 }
0x11e2   :  { %3906 = vmatprep.subr.bf16.mxu0 %v8923_v50  ;;  %3949 = vmatprep.subr.bf16.mxu1 %v8929_v0 }
0x11e5   :  { %3907 = vmatpush1.bf16.msra.mxu0 %v8935_v41  ;;  %3950 = vmatpush1.bf16.msra.mxu1 %v8941_v26 }
0x11e6   :  { %4028 = vmatprep.subr.bf16.mxu0 %v8947_v18  ;;  %4071 = vmatprep.subr.bf16.mxu1 %v8953_v33 }
0x129b   :  { %v3790_v14 = vpop.f32.mrb[180].mxu0  ;;  %v3833_v60 = vpop.f32.mrb[180].mxu1 }
0x129c   :  { %v3791_v36 = vadd.f32 %v3790_v14, %v3748_v12  ;;  %v3834_v27 = vadd.f32 %v3833_v60, %v3750_v49  ;;  %v3792_v21 = vpop.f32.mrb[181].mxu0  ;;  %v3835_v34 = vpop.f32.mrb[181].mxu1 }
0x129d   :  { %v3793_v52 = vadd.f32 %v3792_v21, %v3749_v8  ;;  %v3836_v29 = vadd.f32 %v3835_v34, %v3751_v39  ;;  %v3794_v2 = vpop.f32.mrb[182].mxu0  ;;  %v3837_v31 = vpop.f32.mrb[182].mxu1 }
0x129e   :  { %v3842_v58 = vmul.f32 0.5, %v3791_v36  ;;  %v3795_v56 = vadd.f32 %v3794_v2, %v3752_v10  ;;  %v3838_v54 = vadd.f32 %v3837_v31, %v3754_v61  ;;  %v3796_v59 = vpop.f32.mrb[183].mxu0  ;;  %v3839_v62 = vpop.f32.mrb[183].mxu1 }
0x129f   :  { %v3850_v9 = vmul.f32 0.5, %v3793_v52  ;;  %v3797_v11 = vadd.f32 %v3796_v59, %v3753_v25  ;;  %v3840_v12 = vadd.f32 %v3839_v62, %v3755_v20  ;;  %v3860_v23 = vmul.f32 0.5, %v3836_v29 }
0x12a0   :  { %6141 = vtanh.f32 %v3842_v58  ;;  %v3843_v3 = vmul.f32 0.5, %v3795_v56 }
0x12a1   :  { %6143 = vtanh.f32 %v3850_v9  ;;  %v3851_v55 = vmul.f32 0.5, %v3797_v11  ;;  %v3861_v63 = vmul.f32 0.5, %v3840_v12 }
0x12a2   :  { %6145 = vtanh.f32 %v3843_v3 }
0x12a3   :  { %6147 = vtanh.f32 %v3834_v27 }
0x12a4   :  { %6149 = vtanh.f32 %v3851_v55 }
0x12a5   :  { %6151 = vtanh.f32 %v3838_v54 }
0x12a6   :  { %6153 = vtanh.f32 %v3860_v23 }
0x12a7   :  { %6155 = vtanh.f32 %v3861_v63 }
0x12aa   :  { %v6142_v49 = vpop.eup %6141 }
0x12ab   :  { %v6144_v14 = vpop.eup %6143  ;;  %v3846_v60 = vmul.f32 0.5, %v6142_v49 }
0x12ac   :  { %v3854_v8 = vmul.f32 0.5, %v6144_v14  ;;  %v6146_v39 = vpop.eup %6145 }
0x12ad   :  { %v3848_v36 = vadd.f32 0.5, %v3846_v60  ;;  %v6148_v21 = vpop.eup %6147  ;;  %v3847_v10 = vmul.f32 0.5, %v6146_v39 }
0x12ae   :  { %v3856_v34 = vadd.f32 0.5, %v3854_v8  ;;  %v6150_v61 = vpop.eup %6149  ;;  %v10054_v8 = vld [vmem:[#allocation65_spill] sm:$0xff] }
0x12af   :  { %v3870_v52 = vmul.f32 %v6148_v21, %v3848_v36  ;;  %v3849_v31 = vadd.f32 0.5, %v3847_v10  ;;  %v3855_v27 = vmul.f32 0.5, %v6150_v61  ;;  %v6152_v25 = vpop.eup %6151  ;;  %v3886_v63 = vunpack.c.l.bf16 %v10054_v8  ;;  %v10055_v21 = vld [vmem:[#allocation66_spill] sm:$0xff]  ;;  %v10056_v10 = vld [vmem:[#allocation67_spill] sm:$0xff] }
0x12b0   :  { %v3868_v2 = vmul.f32 %v3856_v34, %v8965_v53  ;;  %v6154_v59 = vpop.eup %6153  ;;  %v3885_v34 = vunpack.c.l.bf16 %v10055_v21  ;;  %v3887_v61 = vunpack.c.l.bf16 %v10056_v10 }
0x12b1   :  { %v3857_v58 = vadd.f32 0.5, %v3855_v27  ;;  %v3871_v29 = vmul.f32 %v6152_v25, %v3849_v31  ;;  %v6156_v62 = vpop.eup %6155  ;;  %v3864_v9 = vmul.f32 0.5, %v6154_v59 }
0x12b2   :  { %v9015_v20 = vadd.f32 %v3870_v52, %v3868_v2  ;;  %v3865_v53 = vmul.f32 0.5, %v6156_v62 }
0x12b3   :  { %v3869_v56 = vmul.f32 %v3857_v58, %v8969_v47  ;;  %v3866_v12 = vadd.f32 0.5, %v3864_v9  ;;  %v10053_v47 = vld [vmem:[#allocation64_spill] sm:$0xff]  ;;  %v3890_v58 = vunpack.c.h.bf16 %v10054_v8  ;;  %v3889_v9 = vunpack.c.h.bf16 %v10055_v21 }
0x12b4   :  { %6157 = vtanh.f32 %v9015_v20  ;;  %v3867_v3 = vadd.f32 0.5, %v3865_v53  ;;  %v3884_v23 = vunpack.c.l.bf16 %v10053_v47  ;;  %v3888_v25 = vunpack.c.h.bf16 %v10053_v47 }
0x12b5   :  { %v9019_v54 = vadd.f32 %v3871_v29, %v3869_v56  ;;  %v3891_v53 = vunpack.c.h.bf16 %v10056_v10 }
0x12b7   :  { %6159 = vtanh.f32 %v9019_v54 }
0x12be   :  { %v6158_v11 = vpop.eup %6157 }
0x12bf   :  { %v3876_v49 = vmul.f32 %v6158_v11, %v3866_v12 }
0x12c1   :  { %v6160_v55 = vpop.eup %6159 }
0x12c2   :  { %v3877_v14 = vmul.f32 %v6160_v55, %v3867_v3 }
0x12c4   :  { %v3878_v60 = vpack.c.bf16 %v3877_v14, %v3876_v49 }
0x12c6   :  { %3925 = vmatmul.mubr.bf16.vlgmr.msra.gmra.mrb[184].mxu0 %v3878_v60  ;;  %3968 = vmatmul.mubr.bf16.vlgmr.msra.gmra.mrb[184].mxu1 %v3878_v60 }
0x12c7   :  { %4029 = vmatpush1.bf16.msra.mxu0 %v8765_v17  ;;  %4072 = vmatpush1.bf16.msra.mxu1 %v8771_v24 }
0x12c8   :  { %4030 = vmatprep.subr.bf16.mxu0 %v8777_v32  ;;  %4073 = vmatprep.subr.bf16.mxu1 %v8783_v43 }
0x12c9   :  { %4060 = vmatprep.mubr.bf16.mxu0 %v9991_v16  ;;  %4103 = vmatprep.mubr.bf16.mxu1 %v9991_v16 }
0x12cb   :  { %4031 = vmatpush1.bf16.msra.mxu0 %v8791_v1  ;;  %4074 = vmatpush1.bf16.msra.mxu1 %v8797_v44 }
0x12cc   :  { %4032 = vmatprep.subr.bf16.mxu0 %v8803_v35  ;;  %4075 = vmatprep.subr.bf16.mxu1 %v8809_v38 }
0x12cf   :  { %4033 = vmatpush1.bf16.msra.mxu0 %v8815_v45  ;;  %4076 = vmatpush1.bf16.msra.mxu1 %v8821_v42 }
0x12d0   :  { %4034 = vmatprep.subr.bf16.mxu0 %v8827_v37  ;;  %4077 = vmatprep.subr.bf16.mxu1 %v8833_v22 }
0x12d3   :  { %4035 = vmatpush1.bf16.msra.mxu0 %v8839_v28  ;;  %4078 = vmatpush1.bf16.msra.mxu1 %v8845_v40 }
0x12d4   :  { %4036 = vmatprep.subr.bf16.mxu0 %v8851_v15  ;;  %4079 = vmatprep.subr.bf16.mxu1 %v8857_v30 }
0x12d7   :  { %4037 = vmatpush1.bf16.msra.mxu0 %v8863_v57  ;;  %4080 = vmatpush1.bf16.msra.mxu1 %v8869_v4 }
0x12d8   :  { %4038 = vmatprep.subr.bf16.mxu0 %v8875_v5  ;;  %4081 = vmatprep.subr.bf16.mxu1 %v8881_v51 }
0x12db   :  { %4039 = vmatpush1.bf16.msra.mxu0 %v8887_v6  ;;  %4082 = vmatpush1.bf16.msra.mxu1 %v8893_v46 }
0x12dc   :  { %4040 = vmatprep.subr.bf16.mxu0 %v8899_v7  ;;  %4083 = vmatprep.subr.bf16.mxu1 %v8905_v48 }
0x12df   :  { %4041 = vmatpush1.bf16.msra.mxu0 %v8911_v19  ;;  %4084 = vmatpush1.bf16.msra.mxu1 %v8917_v13 }
0x12e0   :  { %4042 = vmatprep.subr.bf16.mxu0 %v8923_v50  ;;  %4085 = vmatprep.subr.bf16.mxu1 %v8929_v0 }
0x12e3   :  { %4043 = vmatpush1.bf16.msra.mxu0 %v8935_v41  ;;  %4086 = vmatpush1.bf16.msra.mxu1 %v8941_v26 }
0x12e4   :  { %4164 = vmatprep.subr.bf16.mxu0 %v8947_v18  ;;  %4207 = vmatprep.subr.bf16.mxu1 %v8953_v33 }
0x1399   :  { %v3926_v39 = vpop.f32.mrb[184].mxu0  ;;  %v3969_v36 = vpop.f32.mrb[184].mxu1 }
0x139a   :  { %v3927_v52 = vadd.f32 %v3926_v39, %v3884_v23  ;;  %v3970_v2 = vadd.f32 %v3969_v36, %v3886_v63  ;;  %v3928_v31 = vpop.f32.mrb[185].mxu0  ;;  %v3971_v27 = vpop.f32.mrb[185].mxu1 }
0x139b   :  { %v3929_v29 = vadd.f32 %v3928_v31, %v3885_v34  ;;  %v3972_v56 = vadd.f32 %v3971_v27, %v3887_v61  ;;  %v3930_v59 = vpop.f32.mrb[186].mxu0  ;;  %v3973_v62 = vpop.f32.mrb[186].mxu1 }
0x139c   :  { %v3978_v11 = vmul.f32 0.5, %v3927_v52  ;;  %v3931_v12 = vadd.f32 %v3930_v59, %v3888_v25  ;;  %v3974_v3 = vadd.f32 %v3973_v62, %v3890_v58  ;;  %v3932_v55 = vpop.f32.mrb[187].mxu0  ;;  %v3975_v49 = vpop.f32.mrb[187].mxu1 }
0x139d   :  { %v3986_v14 = vmul.f32 0.5, %v3929_v29  ;;  %v3933_v60 = vadd.f32 %v3932_v55, %v3889_v9  ;;  %v3976_v23 = vadd.f32 %v3975_v49, %v3891_v53  ;;  %v3996_v21 = vmul.f32 0.5, %v3972_v56 }
0x139e   :  { %6161 = vtanh.f32 %v3978_v11  ;;  %v3979_v47 = vmul.f32 0.5, %v3931_v12 }
0x139f   :  { %6163 = vtanh.f32 %v3986_v14  ;;  %v3987_v8 = vmul.f32 0.5, %v3933_v60  ;;  %v3997_v10 = vmul.f32 0.5, %v3976_v23 }
0x13a0   :  { %6165 = vtanh.f32 %v3979_v47 }
0x13a1   :  { %6167 = vtanh.f32 %v3970_v2 }
0x13a2   :  { %6169 = vtanh.f32 %v3987_v8 }
0x13a3   :  { %6171 = vtanh.f32 %v3974_v3 }
0x13a4   :  { %6173 = vtanh.f32 %v3996_v21 }
0x13a5   :  { %6175 = vtanh.f32 %v3997_v10 }
0x13a8   :  { %v6162_v63 = vpop.eup %6161 }
0x13a9   :  { %v6164_v39 = vpop.eup %6163  ;;  %v3982_v36 = vmul.f32 0.5, %v6162_v63 }
0x13aa   :  { %v3990_v34 = vmul.f32 0.5, %v6164_v39  ;;  %v6166_v61 = vpop.eup %6165 }
0x13ab   :  { %v3984_v52 = vadd.f32 0.5, %v3982_v36  ;;  %v6168_v31 = vpop.eup %6167  ;;  %v3983_v25 = vmul.f32 0.5, %v6166_v61 }
0x13ac   :  { %v3992_v27 = vadd.f32 0.5, %v3990_v34  ;;  %v6170_v58 = vpop.eup %6169  ;;  %v10058_v34 = vld [vmem:[#allocation69_spill] sm:$0xff] }
0x13ad   :  { %v4006_v29 = vmul.f32 %v6168_v31, %v3984_v52  ;;  %v3985_v62 = vadd.f32 0.5, %v3983_v25  ;;  %v3991_v2 = vmul.f32 0.5, %v6170_v58  ;;  %v6172_v9 = vpop.eup %6171  ;;  %v4022_v10 = vunpack.c.l.bf16 %v10058_v34  ;;  %v10059_v31 = vld [vmem:[#allocation70_spill] sm:$0xff]  ;;  %v10060_v25 = vld [vmem:[#allocation71_spill] sm:$0xff] }
0x13ae   :  { %v4004_v59 = vmul.f32 %v3992_v27, %v9015_v20  ;;  %v6174_v55 = vpop.eup %6173  ;;  %v4021_v27 = vunpack.c.l.bf16 %v10059_v31  ;;  %v4023_v58 = vunpack.c.l.bf16 %v10060_v25 }
0x13af   :  { %v3993_v11 = vadd.f32 0.5, %v3991_v2  ;;  %v4007_v56 = vmul.f32 %v6172_v9, %v3985_v62  ;;  %v6176_v49 = vpop.eup %6175  ;;  %v4000_v14 = vmul.f32 0.5, %v6174_v55 }
0x13b0   :  { %v9065_v53 = vadd.f32 %v4006_v29, %v4004_v59  ;;  %v4001_v20 = vmul.f32 0.5, %v6176_v49 }
0x13b1   :  { %v4005_v12 = vmul.f32 %v3993_v11, %v9019_v54  ;;  %v4002_v23 = vadd.f32 0.5, %v4000_v14  ;;  %v10057_v54 = vld [vmem:[#allocation68_spill] sm:$0xff]  ;;  %v4026_v11 = vunpack.c.h.bf16 %v10058_v34  ;;  %v4025_v14 = vunpack.c.h.bf16 %v10059_v31 }
0x13b2   :  { %6177 = vtanh.f32 %v9065_v53  ;;  %v4003_v47 = vadd.f32 0.5, %v4001_v20  ;;  %v4020_v21 = vunpack.c.l.bf16 %v10057_v54  ;;  %v4024_v9 = vunpack.c.h.bf16 %v10057_v54 }
0x13b3   :  { %v9069_v3 = vadd.f32 %v4007_v56, %v4005_v12  ;;  %v4027_v20 = vunpack.c.h.bf16 %v10060_v25 }
0x13b5   :  { %6179 = vtanh.f32 %v9069_v3 }
0x13bc   :  { %v6178_v60 = vpop.eup %6177 }
0x13bd   :  { %v4012_v63 = vmul.f32 %v6178_v60, %v4002_v23 }
0x13bf   :  { %v6180_v8 = vpop.eup %6179 }
0x13c0   :  { %v4013_v39 = vmul.f32 %v6180_v8, %v4003_v47 }
0x13c2   :  { %v4014_v36 = vpack.c.bf16 %v4013_v39, %v4012_v63 }
0x13c4   :  { %4061 = vmatmul.mubr.bf16.vlgmr.msra.gmra.mrb[188].mxu0 %v4014_v36  ;;  %4104 = vmatmul.mubr.bf16.vlgmr.msra.gmra.mrb[188].mxu1 %v4014_v36 }
0x13c5   :  { %4165 = vmatpush1.bf16.msra.mxu0 %v8765_v17  ;;  %4208 = vmatpush1.bf16.msra.mxu1 %v8771_v24 }
0x13c6   :  { %4166 = vmatprep.subr.bf16.mxu0 %v8777_v32  ;;  %4209 = vmatprep.subr.bf16.mxu1 %v8783_v43 }
0x13c7   :  { %4196 = vmatprep.mubr.bf16.mxu0 %v9991_v16  ;;  %4239 = vmatprep.mubr.bf16.mxu1 %v9991_v16 }
0x13c9   :  { %4167 = vmatpush1.bf16.msra.mxu0 %v8791_v1  ;;  %4210 = vmatpush1.bf16.msra.mxu1 %v8797_v44 }
0x13ca   :  { %4168 = vmatprep.subr.bf16.mxu0 %v8803_v35  ;;  %4211 = vmatprep.subr.bf16.mxu1 %v8809_v38 }
0x13cd   :  { %4169 = vmatpush1.bf16.msra.mxu0 %v8815_v45  ;;  %4212 = vmatpush1.bf16.msra.mxu1 %v8821_v42 }
0x13ce   :  { %4170 = vmatprep.subr.bf16.mxu0 %v8827_v37  ;;  %4213 = vmatprep.subr.bf16.mxu1 %v8833_v22 }
0x13d1   :  { %4171 = vmatpush1.bf16.msra.mxu0 %v8839_v28  ;;  %4214 = vmatpush1.bf16.msra.mxu1 %v8845_v40 }
0x13d2   :  { %4172 = vmatprep.subr.bf16.mxu0 %v8851_v15  ;;  %4215 = vmatprep.subr.bf16.mxu1 %v8857_v30 }
0x13d5   :  { %4173 = vmatpush1.bf16.msra.mxu0 %v8863_v57  ;;  %4216 = vmatpush1.bf16.msra.mxu1 %v8869_v4 }
0x13d6   :  { %4174 = vmatprep.subr.bf16.mxu0 %v8875_v5  ;;  %4217 = vmatprep.subr.bf16.mxu1 %v8881_v51 }
0x13d9   :  { %4175 = vmatpush1.bf16.msra.mxu0 %v8887_v6  ;;  %4218 = vmatpush1.bf16.msra.mxu1 %v8893_v46 }
0x13da   :  { %4176 = vmatprep.subr.bf16.mxu0 %v8899_v7  ;;  %4219 = vmatprep.subr.bf16.mxu1 %v8905_v48 }
0x13dd   :  { %4177 = vmatpush1.bf16.msra.mxu0 %v8911_v19  ;;  %4220 = vmatpush1.bf16.msra.mxu1 %v8917_v13 }
0x13de   :  { %4178 = vmatprep.subr.bf16.mxu0 %v8923_v50  ;;  %4221 = vmatprep.subr.bf16.mxu1 %v8929_v0 }
0x13e1   :  { %4179 = vmatpush1.bf16.msra.mxu0 %v8935_v41  ;;  %4222 = vmatpush1.bf16.msra.mxu1 %v8941_v26 }
0x13e2   :  { %4300 = vmatprep.subr.bf16.mxu0 %v8947_v18  ;;  %4343 = vmatprep.subr.bf16.mxu1 %v8953_v33 }
0x1497   :  { %v4062_v61 = vpop.f32.mrb[188].mxu0  ;;  %v4105_v52 = vpop.f32.mrb[188].mxu1 }
0x1498   :  { %v4063_v29 = vadd.f32 %v4062_v61, %v4020_v21  ;;  %v4106_v59 = vadd.f32 %v4105_v52, %v4022_v10  ;;  %v4064_v62 = vpop.f32.mrb[189].mxu0  ;;  %v4107_v2 = vpop.f32.mrb[189].mxu1 }
0x1499   :  { %v4065_v56 = vadd.f32 %v4064_v62, %v4021_v27  ;;  %v4108_v12 = vadd.f32 %v4107_v2, %v4023_v58  ;;  %v4066_v55 = vpop.f32.mrb[190].mxu0  ;;  %v4109_v49 = vpop.f32.mrb[190].mxu1 }
0x149a   :  { %v4114_v60 = vmul.f32 0.5, %v4063_v29  ;;  %v4067_v23 = vadd.f32 %v4066_v55, %v4024_v9  ;;  %v4110_v47 = vadd.f32 %v4109_v49, %v4026_v11  ;;  %v4068_v8 = vpop.f32.mrb[191].mxu0  ;;  %v4111_v63 = vpop.f32.mrb[191].mxu1 }
0x149b   :  { %v4122_v39 = vmul.f32 0.5, %v4065_v56  ;;  %v4069_v36 = vadd.f32 %v4068_v8, %v4025_v14  ;;  %v4112_v21 = vadd.f32 %v4111_v63, %v4027_v20  ;;  %v4132_v31 = vmul.f32 0.5, %v4108_v12 }
0x149c   :  { %6181 = vtanh.f32 %v4114_v60  ;;  %v4115_v54 = vmul.f32 0.5, %v4067_v23 }
0x149d   :  { %6183 = vtanh.f32 %v4122_v39  ;;  %v4123_v34 = vmul.f32 0.5, %v4069_v36  ;;  %v4133_v25 = vmul.f32 0.5, %v4112_v21 }
0x149e   :  { %6185 = vtanh.f32 %v4115_v54 }
0x149f   :  { %6187 = vtanh.f32 %v4106_v59 }
0x14a0   :  { %6189 = vtanh.f32 %v4123_v34 }
0x14a1   :  { %6191 = vtanh.f32 %v4110_v47 }
0x14a2   :  { %6193 = vtanh.f32 %v4132_v31 }
0x14a3   :  { %6195 = vtanh.f32 %v4133_v25 }
0x14a6   :  { %v6182_v10 = vpop.eup %6181 }
0x14a7   :  { %v6184_v61 = vpop.eup %6183  ;;  %v4118_v52 = vmul.f32 0.5, %v6182_v10 }
0x14a8   :  { %v4126_v27 = vmul.f32 0.5, %v6184_v61  ;;  %v6186_v58 = vpop.eup %6185 }
0x14a9   :  { %v4120_v29 = vadd.f32 0.5, %v4118_v52  ;;  %v6188_v62 = vpop.eup %6187  ;;  %v4119_v9 = vmul.f32 0.5, %v6186_v58 }
0x14aa   :  { %v4128_v2 = vadd.f32 0.5, %v4126_v27  ;;  %v6190_v11 = vpop.eup %6189 }
0x14ab   :  { %v4142_v56 = vmul.f32 %v6188_v62, %v4120_v29  ;;  %v4121_v49 = vadd.f32 0.5, %v4119_v9  ;;  %v4127_v59 = vmul.f32 0.5, %v6190_v11  ;;  %v6192_v14 = vpop.eup %6191 }
0x14ac   :  { %v4140_v55 = vmul.f32 %v4128_v2, %v9065_v53  ;;  %v6194_v8 = vpop.eup %6193 }
0x14ad   :  { %v4129_v60 = vadd.f32 0.5, %v4127_v59  ;;  %v4143_v12 = vmul.f32 %v6192_v14, %v4121_v49  ;;  %v6196_v63 = vpop.eup %6195  ;;  %v4136_v39 = vmul.f32 0.5, %v6194_v8 }
0x14ae   :  { %v9115_v20 = vadd.f32 %v4142_v56, %v4140_v55  ;;  %v4137_v53 = vmul.f32 0.5, %v6196_v63 }
0x14af   :  { %v4141_v23 = vmul.f32 %v4129_v60, %v9069_v3  ;;  %v4138_v21 = vadd.f32 0.5, %v4136_v39 }
0x14b0   :  { %6197 = vtanh.f32 %v9115_v20  ;;  %v4139_v54 = vadd.f32 0.5, %v4137_v53 }
0x14b1   :  { %v9119_v47 = vadd.f32 %v4143_v12, %v4141_v23 }
0x14b3   :  { %6199 = vtanh.f32 %v9119_v47 }
0x14ba   :  { %v6198_v36 = vpop.eup %6197 }
0x14bb   :  { %v4148_v10 = vmul.f32 %v6198_v36, %v4138_v21 }
0x14bd   :  { %v6200_v34 = vpop.eup %6199 }
0x14be   :  { %v4149_v61 = vmul.f32 %v6200_v34, %v4139_v54 }
0x14c0   :  { %v4150_v52 = vpack.c.bf16 %v4149_v61, %v4148_v10 }
0x14c2   :  { %4197 = vmatmul.mubr.bf16.vlgmr.msra.gmra.mrb[192].mxu0 %v4150_v52  ;;  %4240 = vmatmul.mubr.bf16.vlgmr.msra.gmra.mrb[192].mxu1 %v4150_v52 }
0x14c3   :  { %4301 = vmatpush1.bf16.msra.mxu0 %v8765_v17  ;;  %4344 = vmatpush1.bf16.msra.mxu1 %v8771_v24  ;;  %v10061_v17 = vld [vmem:[#allocation72_spill] sm:$0xff] }
0x14c4   :  { %4302 = vmatprep.subr.bf16.mxu0 %v8777_v32  ;;  %4345 = vmatprep.subr.bf16.mxu1 %v8783_v43  ;;  %v4156_v24 = vunpack.c.l.bf16 %v10061_v17  ;;  %v10062_v32 = vld [vmem:[#allocation73_spill] sm:$0xff] }
0x14c5   :  { %4332 = vmatprep.mubr.bf16.mxu0 %v9991_v16  ;;  %4375 = vmatprep.mubr.bf16.mxu1 %v9991_v16  ;;  %v4158_v43 = vunpack.c.l.bf16 %v10062_v32 }
0x14c7   :  { %4303 = vmatpush1.bf16.msra.mxu0 %v8791_v1  ;;  %4346 = vmatpush1.bf16.msra.mxu1 %v8797_v44 }
0x14c8   :  { %4304 = vmatprep.subr.bf16.mxu0 %v8803_v35  ;;  %4347 = vmatprep.subr.bf16.mxu1 %v8809_v38  ;;  %v10063_v35 = vld [vmem:[#allocation74_spill] sm:$0xff] }
0x14c9   :  { %v4157_v38 = vunpack.c.l.bf16 %v10063_v35 }
0x14cb   :  { %4305 = vmatpush1.bf16.msra.mxu0 %v8815_v45  ;;  %4348 = vmatpush1.bf16.msra.mxu1 %v8821_v42  ;;  %v10064_v45 = vld [vmem:[#allocation75_spill] sm:$0xff] }
0x14cc   :  { %4306 = vmatprep.subr.bf16.mxu0 %v8827_v37  ;;  %4349 = vmatprep.subr.bf16.mxu1 %v8833_v22  ;;  %v4159_v42 = vunpack.c.l.bf16 %v10064_v45 }
0x14cf   :  { %4307 = vmatpush1.bf16.msra.mxu0 %v8839_v28  ;;  %4350 = vmatpush1.bf16.msra.mxu1 %v8845_v40 }
0x14d0   :  { %4308 = vmatprep.subr.bf16.mxu0 %v8851_v15  ;;  %4351 = vmatprep.subr.bf16.mxu1 %v8857_v30  ;;  %v4160_v15 = vunpack.c.h.bf16 %v10061_v17  ;;  %v4162_v30 = vunpack.c.h.bf16 %v10062_v32 }
0x14d3   :  { %4309 = vmatpush1.bf16.msra.mxu0 %v8863_v57  ;;  %4352 = vmatpush1.bf16.msra.mxu1 %v8869_v4 }
0x14d4   :  { %4310 = vmatprep.subr.bf16.mxu0 %v8875_v5  ;;  %4353 = vmatprep.subr.bf16.mxu1 %v8881_v51 }
0x14d7   :  { %4311 = vmatpush1.bf16.msra.mxu0 %v8887_v6  ;;  %4354 = vmatpush1.bf16.msra.mxu1 %v8893_v46  ;;  %v4161_v6 = vunpack.c.h.bf16 %v10063_v35  ;;  %v4163_v46 = vunpack.c.h.bf16 %v10064_v45  ;;  %v9201_v35 = vld [vmem:[%s9780_s2 + $0x20] ss:$16 sps:$4 sm:$0xff]   ;;  %v9213_v45 = vld [vmem:[%s9780_s2 + $0x44] ss:$16 sps:$4 sm:$0xff]  }
0x14d8   :  { %4312 = vmatprep.subr.bf16.mxu0 %v8899_v7  ;;  %4355 = vmatprep.subr.bf16.mxu1 %v8905_v48 }
0x14db   :  { %4313 = vmatpush1.bf16.msra.mxu0 %v8911_v19  ;;  %4356 = vmatpush1.bf16.msra.mxu1 %v8917_v13 }
0x14dc   :  { %4314 = vmatprep.subr.bf16.mxu0 %v8923_v50  ;;  %4357 = vmatprep.subr.bf16.mxu1 %v8929_v0 }
0x14df   :  { %4315 = vmatpush1.bf16.msra.mxu0 %v8935_v41  ;;  %4358 = vmatpush1.bf16.msra.mxu1 %v8941_v26 }
0x14e0   :  { %4436 = vmatprep.subr.bf16.mxu0 %v8947_v18  ;;  %4479 = vmatprep.subr.bf16.mxu1 %v8953_v33 }
0x1595   :  { %v4198_v1 = vpop.f32.mrb[192].mxu0  ;;  %v4241_v44 = vpop.f32.mrb[192].mxu1 }
0x1596   :  { %v4199_v37 = vadd.f32 %v4198_v1, %v4156_v24  ;;  %v4242_v22 = vadd.f32 %v4241_v44, %v4158_v43  ;;  %v4200_v28 = vpop.f32.mrb[193].mxu0  ;;  %v4243_v40 = vpop.f32.mrb[193].mxu1  ;;  %v9181_v43 = vld [vmem:[%s9780_s2 + $0x8] ss:$16 sps:$4 sm:$0xff]   ;;  %v9187_v1 = vld [vmem:[%s9780_s2 + $0x24] ss:$16 sps:$4 sm:$0xff]  }
0x1597   :  { %v4201_v57 = vadd.f32 %v4200_v28, %v4157_v38  ;;  %v4244_v4 = vadd.f32 %v4243_v40, %v4159_v42  ;;  %v4202_v5 = vpop.f32.mrb[194].mxu0  ;;  %v4245_v51 = vpop.f32.mrb[194].mxu1  ;;  %v9193_v44 = vld [vmem:[%s9780_s2 + $0x2c] ss:$16 sps:$4 sm:$0xff]   ;;  %v9207_v38 = vld [vmem:[%s9780_s2 + $0x28] ss:$16 sps:$4 sm:$0xff]  }
0x1598   :  { %v4250_v7 = vmul.f32 0.5, %v4199_v37  ;;  %v4203_v48 = vadd.f32 %v4202_v5, %v4160_v15  ;;  %v4246_v19 = vadd.f32 %v4245_v51, %v4162_v30  ;;  %v4204_v13 = vpop.f32.mrb[195].mxu0  ;;  %v4247_v50 = vpop.f32.mrb[195].mxu1  ;;  %v9219_v42 = vld [vmem:[%s9780_s2 + $0x4c] ss:$16 sps:$4 sm:$0xff]  }
0x1599   :  { %v4258_v0 = vmul.f32 0.5, %v4201_v57  ;;  %v4205_v41 = vadd.f32 %v4204_v13, %v4161_v6  ;;  %v4248_v26 = vadd.f32 %v4247_v50, %v4163_v46  ;;  %v4268_v25 = vmul.f32 0.5, %v4244_v4  ;;  %v9225_v37 = vld [vmem:[%s9780_s2 + $0x40] ss:$16 sps:$4 sm:$0xff]   ;;  %v9237_v28 = vld [vmem:[%s9780_s2 + $0x64] ss:$16 sps:$4 sm:$0xff]  }
0x159a   :  { %6201 = vtanh.f32 %v4250_v7  ;;  %v4251_v18 = vmul.f32 0.5, %v4203_v48  ;;  %v9243_v40 = vld [vmem:[%s9780_s2 + $0x6c] ss:$16 sps:$4 sm:$0xff]   ;;  %v9249_v15 = vld [vmem:[%s9780_s2 + $0x60] ss:$16 sps:$4 sm:$0xff]  }
0x159b   :  { %6203 = vtanh.f32 %v4258_v0  ;;  %v4259_v33 = vmul.f32 0.5, %v4205_v41  ;;  %v4269_v29 = vmul.f32 0.5, %v4248_v26  ;;  %v9255_v30 = vld [vmem:[%s9780_s2 + $0x68] ss:$16 sps:$4 sm:$0xff]   ;;  %v9261_v57 = vld [vmem:[%s9780_s2 + $0x84] ss:$16 sps:$4 sm:$0xff]  }
0x159c   :  { %6205 = vtanh.f32 %v4251_v18  ;;  %v9267_v4 = vld [vmem:[%s9780_s2 + $0x8c] ss:$16 sps:$4 sm:$0xff]   ;;  %v9273_v5 = vld [vmem:[%s9780_s2 + $0x80] ss:$16 sps:$4 sm:$0xff]   ;;  %v9279_v51 = vld [vmem:[%s9780_s2 + $0x88] ss:$16 sps:$4 sm:$0xff]  }
0x159d   :  { %6207 = vtanh.f32 %v4242_v22  ;;  %v9231_v22 = vld [vmem:[%s9780_s2 + $0x48] ss:$16 sps:$4 sm:$0xff]   ;;  %v9285_v6 = vld [vmem:[%s9780_s2 + $0xa4] ss:$16 sps:$4 sm:$0xff]   ;;  %v9291_v46 = vld [vmem:[%s9780_s2 + $0xac] ss:$16 sps:$4 sm:$0xff]  }
0x159e   :  { %6209 = vtanh.f32 %v4259_v33  ;;  %v9297_v7 = vld [vmem:[%s9780_s2 + $0xa0] ss:$16 sps:$4 sm:$0xff]   ;;  %v9303_v48 = vld [vmem:[%s9780_s2 + $0xa8] ss:$16 sps:$4 sm:$0xff]   ;;  %v9315_v13 = vld [vmem:[%s9780_s2 + $0xcc] ss:$16 sps:$4 sm:$0xff]  }
0x159f   :  { %6211 = vtanh.f32 %v4246_v19  ;;  %v9309_v19 = vld [vmem:[%s9780_s2 + $0xc4] ss:$16 sps:$4 sm:$0xff]   ;;  %v9321_v50 = vld [vmem:[%s9780_s2 + $0xc0] ss:$16 sps:$4 sm:$0xff]   ;;  %v9327_v0 = vld [vmem:[%s9780_s2 + $0xc8] ss:$16 sps:$4 sm:$0xff]  }
0x15a0   :  { %6213 = vtanh.f32 %v4268_v25  ;;  %v9333_v41 = vld [vmem:[%s9780_s2 + $0xe4] ss:$16 sps:$4 sm:$0xff]   ;;  %v9339_v26 = vld [vmem:[%s9780_s2 + $0xec] ss:$16 sps:$4 sm:$0xff]   ;;  %v9345_v18 = vld [vmem:[%s9780_s2 + $0xe0] ss:$16 sps:$4 sm:$0xff]  }
0x15a1   :  { %6215 = vtanh.f32 %v4269_v29  ;;  %v9351_v33 = vld [vmem:[%s9780_s2 + $0xe8] ss:$16 sps:$4 sm:$0xff]  }
0x15a4   :  { %v6202_v3 = vpop.eup %6201 }
0x15a5   :  { %v6204_v31 = vpop.eup %6203  ;;  %v4254_v27 = vmul.f32 0.5, %v6202_v3  ;;  %v9357_v3 = vld [vmem:[%s9780_s2 + $0x4] ss:$16 sps:$4 sm:$0xff]  }
0x15a6   :  { %v4262_v58 = vmul.f32 0.5, %v6204_v31  ;;  %v6206_v62 = vpop.eup %6205  ;;  %v9363_v31 = vld [vmem:[%s9780_s2 + $0xc] ss:$16 sps:$4 sm:$0xff]  }
0x15a7   :  { %v4256_v2 = vadd.f32 0.5, %v4254_v27  ;;  %v6208_v9 = vpop.eup %6207  ;;  %v4255_v56 = vmul.f32 0.5, %v6206_v62  ;;  %v10065_v27 = vld [vmem:[#allocation76_spill] sm:$0xff] }
0x15a8   :  { %v4264_v11 = vadd.f32 0.5, %v4262_v58  ;;  %v6210_v55 = vpop.eup %6209  ;;  %v4292_v25 = vunpack.c.l.bf16 %v10065_v27  ;;  %v10066_v58 = vld [vmem:[#allocation77_spill] sm:$0xff] }
0x15a9   :  { %v4278_v49 = vmul.f32 %v6208_v9, %v4256_v2  ;;  %v4257_v14 = vadd.f32 0.5, %v4255_v56  ;;  %v4263_v60 = vmul.f32 0.5, %v6210_v55  ;;  %v6212_v12 = vpop.eup %6211  ;;  %v4294_v29 = vunpack.c.l.bf16 %v10066_v58  ;;  %v10067_v9 = vld [vmem:[#allocation78_spill] sm:$0xff]  ;;  %v10068_v56 = vld [vmem:[#allocation79_spill] sm:$0xff] }
0x15aa   :  { %v4276_v59 = vmul.f32 %v4264_v11, %v9115_v20  ;;  %v6214_v36 = vpop.eup %6213  ;;  %v4293_v11 = vunpack.c.l.bf16 %v10067_v9  ;;  %v4295_v55 = vunpack.c.l.bf16 %v10068_v56 }
0x15ab   :  { %v4265_v8 = vadd.f32 0.5, %v4263_v60  ;;  %v4279_v63 = vmul.f32 %v6212_v12, %v4257_v14  ;;  %v6216_v21 = vpop.eup %6215  ;;  %v4272_v54 = vmul.f32 0.5, %v6214_v36  ;;  %v4296_v12 = vunpack.c.h.bf16 %v10065_v27 }
0x15ac   :  { %v9165_v23 = vadd.f32 %v4278_v49, %v4276_v59  ;;  %v4273_v20 = vmul.f32 0.5, %v6216_v21 }
0x15ad   :  { %v4277_v39 = vmul.f32 %v4265_v8, %v9119_v47  ;;  %v4274_v10 = vadd.f32 0.5, %v4272_v54  ;;  %v9175_v47 = vld [vmem:[%s9780_s2] ss:$16 sps:$4 sm:$0xff]   ;;  %v4298_v8 = vunpack.c.h.bf16 %v10066_v58  ;;  %v4297_v54 = vunpack.c.h.bf16 %v10067_v9 }
0x15ae   :  { %6217 = vtanh.f32 %v9165_v23  ;;  %v4275_v61 = vadd.f32 0.5, %v4273_v20  ;;  %v4299_v20 = vunpack.c.h.bf16 %v10068_v56 }
0x15af   :  { %v9169_v53 = vadd.f32 %v4279_v63, %v4277_v39 }
0x15b1   :  { %6219 = vtanh.f32 %v9169_v53 }
0x15b8   :  { %v6218_v34 = vpop.eup %6217 }
0x15b9   :  { %v4284_v17 = vmul.f32 %v6218_v34, %v4274_v10 }
0x15bb   :  { %v6220_v52 = vpop.eup %6219 }
0x15bc   :  { %v4285_v24 = vmul.f32 %v6220_v52, %v4275_v61 }
0x15be   :  { %v4286_v32 = vpack.c.bf16 %v4285_v24, %v4284_v17 }
0x15c0   :  { %4333 = vmatmul.mubr.bf16.vlgmr.msra.gmra.mrb[196].mxu0 %v4286_v32  ;;  %4376 = vmatmul.mubr.bf16.vlgmr.msra.gmra.mrb[196].mxu1 %v4286_v32 }
0x15c1   :  { %4437 = vmatpush1.bf16.msra.mxu0 %v9175_v47  ;;  %4480 = vmatpush1.bf16.msra.mxu1 %v9181_v43 }
0x15c2   :  { %4438 = vmatprep.subr.bf16.mxu0 %v9187_v1  ;;  %4481 = vmatprep.subr.bf16.mxu1 %v9193_v44 }
0x15c3   :  { %4468 = vmatprep.mubr.bf16.mxu0 %v9991_v16  ;;  %4511 = vmatprep.mubr.bf16.mxu1 %v9991_v16 }
0x15c5   :  { %4439 = vmatpush1.bf16.msra.mxu0 %v9201_v35  ;;  %4482 = vmatpush1.bf16.msra.mxu1 %v9207_v38 }
0x15c6   :  { %4440 = vmatprep.subr.bf16.mxu0 %v9213_v45  ;;  %4483 = vmatprep.subr.bf16.mxu1 %v9219_v42 }
0x15c9   :  { %4441 = vmatpush1.bf16.msra.mxu0 %v9225_v37  ;;  %4484 = vmatpush1.bf16.msra.mxu1 %v9231_v22 }
0x15ca   :  { %4442 = vmatprep.subr.bf16.mxu0 %v9237_v28  ;;  %4485 = vmatprep.subr.bf16.mxu1 %v9243_v40 }
0x15cd   :  { %4443 = vmatpush1.bf16.msra.mxu0 %v9249_v15  ;;  %4486 = vmatpush1.bf16.msra.mxu1 %v9255_v30 }
0x15ce   :  { %4444 = vmatprep.subr.bf16.mxu0 %v9261_v57  ;;  %4487 = vmatprep.subr.bf16.mxu1 %v9267_v4 }
0x15d1   :  { %4445 = vmatpush1.bf16.msra.mxu0 %v9273_v5  ;;  %4488 = vmatpush1.bf16.msra.mxu1 %v9279_v51 }
0x15d2   :  { %4446 = vmatprep.subr.bf16.mxu0 %v9285_v6  ;;  %4489 = vmatprep.subr.bf16.mxu1 %v9291_v46 }
0x15d5   :  { %4447 = vmatpush1.bf16.msra.mxu0 %v9297_v7  ;;  %4490 = vmatpush1.bf16.msra.mxu1 %v9303_v48 }
0x15d6   :  { %4448 = vmatprep.subr.bf16.mxu0 %v9309_v19  ;;  %4491 = vmatprep.subr.bf16.mxu1 %v9315_v13 }
0x15d9   :  { %4449 = vmatpush1.bf16.msra.mxu0 %v9321_v50  ;;  %4492 = vmatpush1.bf16.msra.mxu1 %v9327_v0 }
0x15da   :  { %4450 = vmatprep.subr.bf16.mxu0 %v9333_v41  ;;  %4493 = vmatprep.subr.bf16.mxu1 %v9339_v26 }
0x15dd   :  { %4451 = vmatpush1.bf16.msra.mxu0 %v9345_v18  ;;  %4494 = vmatpush1.bf16.msra.mxu1 %v9351_v33 }
0x15de   :  { %4572 = vmatprep.subr.bf16.mxu0 %v9357_v3  ;;  %4615 = vmatprep.subr.bf16.mxu1 %v9363_v31 }
0x1693   :  { %v4334_v62 = vpop.f32.mrb[196].mxu0  ;;  %v4377_v2 = vpop.f32.mrb[196].mxu1 }
0x1694   :  { %v4335_v49 = vadd.f32 %v4334_v62, %v4292_v25  ;;  %v4378_v59 = vadd.f32 %v4377_v2, %v4294_v29  ;;  %v4336_v14 = vpop.f32.mrb[197].mxu0  ;;  %v4379_v60 = vpop.f32.mrb[197].mxu1 }
0x1695   :  { %v4337_v63 = vadd.f32 %v4336_v14, %v4293_v11  ;;  %v4380_v39 = vadd.f32 %v4379_v60, %v4295_v55  ;;  %v4338_v36 = vpop.f32.mrb[198].mxu0  ;;  %v4381_v21 = vpop.f32.mrb[198].mxu1 }
0x1696   :  { %v4386_v34 = vmul.f32 0.5, %v4335_v49  ;;  %v4339_v10 = vadd.f32 %v4338_v36, %v4296_v12  ;;  %v4382_v61 = vadd.f32 %v4381_v21, %v4298_v8  ;;  %v4340_v52 = vpop.f32.mrb[199].mxu0  ;;  %v4383_v17 = vpop.f32.mrb[199].mxu1 }
0x1697   :  { %v4394_v24 = vmul.f32 0.5, %v4337_v63  ;;  %v4341_v32 = vadd.f32 %v4340_v52, %v4297_v54  ;;  %v4384_v25 = vadd.f32 %v4383_v17, %v4299_v20  ;;  %v4404_v9 = vmul.f32 0.5, %v4380_v39 }
0x1698   :  { %6221 = vtanh.f32 %v4386_v34  ;;  %v4387_v27 = vmul.f32 0.5, %v4339_v10 }
0x1699   :  { %6223 = vtanh.f32 %v4394_v24  ;;  %v4395_v58 = vmul.f32 0.5, %v4341_v32  ;;  %v4405_v56 = vmul.f32 0.5, %v4384_v25 }
0x169a   :  { %6225 = vtanh.f32 %v4387_v27 }
0x169b   :  { %6227 = vtanh.f32 %v4378_v59 }
0x169c   :  { %6229 = vtanh.f32 %v4395_v58 }
0x169d   :  { %6231 = vtanh.f32 %v4382_v61 }
0x169e   :  { %6233 = vtanh.f32 %v4404_v9 }
0x169f   :  { %6235 = vtanh.f32 %v4405_v56 }
0x16a2   :  { %v6222_v29 = vpop.eup %6221 }
0x16a3   :  { %v6224_v62 = vpop.eup %6223  ;;  %v4390_v2 = vmul.f32 0.5, %v6222_v29 }
0x16a4   :  { %v4398_v11 = vmul.f32 0.5, %v6224_v62  ;;  %v6226_v55 = vpop.eup %6225 }
0x16a5   :  { %v4392_v49 = vadd.f32 0.5, %v4390_v2  ;;  %v6228_v14 = vpop.eup %6227  ;;  %v4391_v12 = vmul.f32 0.5, %v6226_v55 }
0x16a6   :  { %v4400_v60 = vadd.f32 0.5, %v4398_v11  ;;  %v6230_v8 = vpop.eup %6229  ;;  %v10070_v11 = vld [vmem:[#allocation81_spill] sm:$0xff] }
0x16a7   :  { %v4414_v63 = vmul.f32 %v6228_v14, %v4392_v49  ;;  %v4393_v21 = vadd.f32 0.5, %v4391_v12  ;;  %v4399_v59 = vmul.f32 0.5, %v6230_v8  ;;  %v6232_v54 = vpop.eup %6231  ;;  %v4430_v56 = vunpack.c.l.bf16 %v10070_v11  ;;  %v10071_v14 = vld [vmem:[#allocation82_spill] sm:$0xff]  ;;  %v10072_v12 = vld [vmem:[#allocation83_spill] sm:$0xff] }
0x16a8   :  { %v4412_v36 = vmul.f32 %v4400_v60, %v9165_v23  ;;  %v6234_v52 = vpop.eup %6233  ;;  %v4429_v60 = vunpack.c.l.bf16 %v10071_v14  ;;  %v4431_v8 = vunpack.c.l.bf16 %v10072_v12 }
0x16a9   :  { %v4401_v34 = vadd.f32 0.5, %v4399_v59  ;;  %v4415_v39 = vmul.f32 %v6232_v54, %v4393_v21  ;;  %v6236_v17 = vpop.eup %6235  ;;  %v4408_v24 = vmul.f32 0.5, %v6234_v52 }
0x16aa   :  { %v9375_v20 = vadd.f32 %v4414_v63, %v4412_v36  ;;  %v4409_v23 = vmul.f32 0.5, %v6236_v17 }
0x16ab   :  { %v4413_v10 = vmul.f32 %v4401_v34, %v9169_v53  ;;  %v4410_v25 = vadd.f32 0.5, %v4408_v24  ;;  %v10069_v53 = vld [vmem:[#allocation80_spill] sm:$0xff]  ;;  %v4434_v34 = vunpack.c.h.bf16 %v10070_v11  ;;  %v4433_v24 = vunpack.c.h.bf16 %v10071_v14 }
0x16ac   :  { %6237 = vtanh.f32 %v9375_v20  ;;  %v4411_v27 = vadd.f32 0.5, %v4409_v23  ;;  %v4428_v9 = vunpack.c.l.bf16 %v10069_v53  ;;  %v4432_v54 = vunpack.c.h.bf16 %v10069_v53 }
0x16ad   :  { %v9379_v61 = vadd.f32 %v4415_v39, %v4413_v10  ;;  %v4435_v23 = vunpack.c.h.bf16 %v10072_v12 }
0x16af   :  { %6239 = vtanh.f32 %v9379_v61 }
0x16b6   :  { %v6238_v32 = vpop.eup %6237 }
0x16b7   :  { %v4420_v29 = vmul.f32 %v6238_v32, %v4410_v25 }
0x16b9   :  { %v6240_v58 = vpop.eup %6239 }
0x16ba   :  { %v4421_v62 = vmul.f32 %v6240_v58, %v4411_v27 }
0x16bc   :  { %v4422_v2 = vpack.c.bf16 %v4421_v62, %v4420_v29 }
0x16be   :  { %4469 = vmatmul.mubr.bf16.vlgmr.msra.gmra.mrb[200].mxu0 %v4422_v2  ;;  %4512 = vmatmul.mubr.bf16.vlgmr.msra.gmra.mrb[200].mxu1 %v4422_v2 }
0x16bf   :  { %4573 = vmatpush1.bf16.msra.mxu0 %v9175_v47  ;;  %4616 = vmatpush1.bf16.msra.mxu1 %v9181_v43 }
0x16c0   :  { %4574 = vmatprep.subr.bf16.mxu0 %v9187_v1  ;;  %4617 = vmatprep.subr.bf16.mxu1 %v9193_v44 }
0x16c1   :  { %4604 = vmatprep.mubr.bf16.mxu0 %v9991_v16  ;;  %4647 = vmatprep.mubr.bf16.mxu1 %v9991_v16 }
0x16c3   :  { %4575 = vmatpush1.bf16.msra.mxu0 %v9201_v35  ;;  %4618 = vmatpush1.bf16.msra.mxu1 %v9207_v38 }
0x16c4   :  { %4576 = vmatprep.subr.bf16.mxu0 %v9213_v45  ;;  %4619 = vmatprep.subr.bf16.mxu1 %v9219_v42 }
0x16c7   :  { %4577 = vmatpush1.bf16.msra.mxu0 %v9225_v37  ;;  %4620 = vmatpush1.bf16.msra.mxu1 %v9231_v22 }
0x16c8   :  { %4578 = vmatprep.subr.bf16.mxu0 %v9237_v28  ;;  %4621 = vmatprep.subr.bf16.mxu1 %v9243_v40 }
0x16cb   :  { %4579 = vmatpush1.bf16.msra.mxu0 %v9249_v15  ;;  %4622 = vmatpush1.bf16.msra.mxu1 %v9255_v30 }
0x16cc   :  { %4580 = vmatprep.subr.bf16.mxu0 %v9261_v57  ;;  %4623 = vmatprep.subr.bf16.mxu1 %v9267_v4 }
0x16cf   :  { %4581 = vmatpush1.bf16.msra.mxu0 %v9273_v5  ;;  %4624 = vmatpush1.bf16.msra.mxu1 %v9279_v51 }
0x16d0   :  { %4582 = vmatprep.subr.bf16.mxu0 %v9285_v6  ;;  %4625 = vmatprep.subr.bf16.mxu1 %v9291_v46 }
0x16d3   :  { %4583 = vmatpush1.bf16.msra.mxu0 %v9297_v7  ;;  %4626 = vmatpush1.bf16.msra.mxu1 %v9303_v48 }
0x16d4   :  { %4584 = vmatprep.subr.bf16.mxu0 %v9309_v19  ;;  %4627 = vmatprep.subr.bf16.mxu1 %v9315_v13 }
0x16d7   :  { %4585 = vmatpush1.bf16.msra.mxu0 %v9321_v50  ;;  %4628 = vmatpush1.bf16.msra.mxu1 %v9327_v0 }
0x16d8   :  { %4586 = vmatprep.subr.bf16.mxu0 %v9333_v41  ;;  %4629 = vmatprep.subr.bf16.mxu1 %v9339_v26 }
0x16db   :  { %4587 = vmatpush1.bf16.msra.mxu0 %v9345_v18  ;;  %4630 = vmatpush1.bf16.msra.mxu1 %v9351_v33 }
0x16dc   :  { %4708 = vmatprep.subr.bf16.mxu0 %v9357_v3  ;;  %4751 = vmatprep.subr.bf16.mxu1 %v9363_v31 }
0x1791   :  { %v4470_v55 = vpop.f32.mrb[200].mxu0  ;;  %v4513_v49 = vpop.f32.mrb[200].mxu1 }
0x1792   :  { %v4471_v63 = vadd.f32 %v4470_v55, %v4428_v9  ;;  %v4514_v36 = vadd.f32 %v4513_v49, %v4430_v56  ;;  %v4472_v21 = vpop.f32.mrb[201].mxu0  ;;  %v4515_v59 = vpop.f32.mrb[201].mxu1 }
0x1793   :  { %v4473_v39 = vadd.f32 %v4472_v21, %v4429_v60  ;;  %v4516_v10 = vadd.f32 %v4515_v59, %v4431_v8  ;;  %v4474_v52 = vpop.f32.mrb[202].mxu0  ;;  %v4517_v17 = vpop.f32.mrb[202].mxu1 }
0x1794   :  { %v4522_v32 = vmul.f32 0.5, %v4471_v63  ;;  %v4475_v25 = vadd.f32 %v4474_v52, %v4432_v54  ;;  %v4518_v27 = vadd.f32 %v4517_v17, %v4434_v34  ;;  %v4476_v58 = vpop.f32.mrb[203].mxu0  ;;  %v4519_v29 = vpop.f32.mrb[203].mxu1 }
0x1795   :  { %v4530_v62 = vmul.f32 0.5, %v4473_v39  ;;  %v4477_v2 = vadd.f32 %v4476_v58, %v4433_v24  ;;  %v4520_v9 = vadd.f32 %v4519_v29, %v4435_v23  ;;  %v4540_v14 = vmul.f32 0.5, %v4516_v10 }
0x1796   :  { %6241 = vtanh.f32 %v4522_v32  ;;  %v4523_v53 = vmul.f32 0.5, %v4475_v25 }
0x1797   :  { %6243 = vtanh.f32 %v4530_v62  ;;  %v4531_v11 = vmul.f32 0.5, %v4477_v2  ;;  %v4541_v12 = vmul.f32 0.5, %v4520_v9 }
0x1798   :  { %6245 = vtanh.f32 %v4523_v53 }
0x1799   :  { %6247 = vtanh.f32 %v4514_v36 }
0x179a   :  { %6249 = vtanh.f32 %v4531_v11 }
0x179b   :  { %6251 = vtanh.f32 %v4518_v27 }
0x179c   :  { %6253 = vtanh.f32 %v4540_v14 }
0x179d   :  { %6255 = vtanh.f32 %v4541_v12 }
0x17a0   :  { %v6242_v56 = vpop.eup %6241 }
0x17a1   :  { %v6244_v55 = vpop.eup %6243  ;;  %v4526_v49 = vmul.f32 0.5, %v6242_v56 }
0x17a2   :  { %v4534_v60 = vmul.f32 0.5, %v6244_v55  ;;  %v6246_v8 = vpop.eup %6245 }
0x17a3   :  { %v4528_v63 = vadd.f32 0.5, %v4526_v49  ;;  %v6248_v21 = vpop.eup %6247  ;;  %v4527_v54 = vmul.f32 0.5, %v6246_v8 }
0x17a4   :  { %v4536_v59 = vadd.f32 0.5, %v4534_v60  ;;  %v6250_v34 = vpop.eup %6249  ;;  %v10074_v60 = vld [vmem:[#allocation85_spill] sm:$0xff] }
0x17a5   :  { %v4550_v39 = vmul.f32 %v6248_v21, %v4528_v63  ;;  %v4529_v17 = vadd.f32 0.5, %v4527_v54  ;;  %v4535_v36 = vmul.f32 0.5, %v6250_v34  ;;  %v6252_v24 = vpop.eup %6251  ;;  %v4566_v12 = vunpack.c.l.bf16 %v10074_v60  ;;  %v10075_v21 = vld [vmem:[#allocation86_spill] sm:$0xff]  ;;  %v10076_v54 = vld [vmem:[#allocation87_spill] sm:$0xff] }
0x17a6   :  { %v4548_v52 = vmul.f32 %v4536_v59, %v9375_v20  ;;  %v6254_v58 = vpop.eup %6253  ;;  %v4565_v59 = vunpack.c.l.bf16 %v10075_v21  ;;  %v4567_v34 = vunpack.c.l.bf16 %v10076_v54 }
0x17a7   :  { %v4537_v32 = vadd.f32 0.5, %v4535_v36  ;;  %v4551_v10 = vmul.f32 %v6252_v24, %v4529_v17  ;;  %v6256_v29 = vpop.eup %6255  ;;  %v4544_v62 = vmul.f32 0.5, %v6254_v58 }
0x17a8   :  { %v9425_v23 = vadd.f32 %v4550_v39, %v4548_v52  ;;  %v4545_v20 = vmul.f32 0.5, %v6256_v29 }
0x17a9   :  { %v4549_v25 = vmul.f32 %v4537_v32, %v9379_v61  ;;  %v4546_v9 = vadd.f32 0.5, %v4544_v62  ;;  %v10073_v61 = vld [vmem:[#allocation84_spill] sm:$0xff]  ;;  %v4570_v32 = vunpack.c.h.bf16 %v10074_v60  ;;  %v4569_v62 = vunpack.c.h.bf16 %v10075_v21 }
0x17aa   :  { %6257 = vtanh.f32 %v9425_v23  ;;  %v4547_v53 = vadd.f32 0.5, %v4545_v20  ;;  %v4564_v14 = vunpack.c.l.bf16 %v10073_v61  ;;  %v4568_v24 = vunpack.c.h.bf16 %v10073_v61 }
0x17ab   :  { %v9429_v27 = vadd.f32 %v4551_v10, %v4549_v25  ;;  %v4571_v20 = vunpack.c.h.bf16 %v10076_v54 }
0x17ad   :  { %6259 = vtanh.f32 %v9429_v27 }
0x17b4   :  { %v6258_v2 = vpop.eup %6257 }
0x17b5   :  { %v4556_v56 = vmul.f32 %v6258_v2, %v4546_v9 }
0x17b7   :  { %v6260_v11 = vpop.eup %6259 }
0x17b8   :  { %v4557_v55 = vmul.f32 %v6260_v11, %v4547_v53 }
0x17ba   :  { %v4558_v49 = vpack.c.bf16 %v4557_v55, %v4556_v56 }
0x17bc   :  { %4605 = vmatmul.mubr.bf16.vlgmr.msra.gmra.mrb[204].mxu0 %v4558_v49  ;;  %4648 = vmatmul.mubr.bf16.vlgmr.msra.gmra.mrb[204].mxu1 %v4558_v49 }
0x17bd   :  { %4709 = vmatpush1.bf16.msra.mxu0 %v9175_v47  ;;  %4752 = vmatpush1.bf16.msra.mxu1 %v9181_v43 }
0x17be   :  { %4710 = vmatprep.subr.bf16.mxu0 %v9187_v1  ;;  %4753 = vmatprep.subr.bf16.mxu1 %v9193_v44 }
0x17bf   :  { %4740 = vmatprep.mubr.bf16.mxu0 %v9991_v16  ;;  %4783 = vmatprep.mubr.bf16.mxu1 %v9991_v16 }
0x17c1   :  { %4711 = vmatpush1.bf16.msra.mxu0 %v9201_v35  ;;  %4754 = vmatpush1.bf16.msra.mxu1 %v9207_v38 }
0x17c2   :  { %4712 = vmatprep.subr.bf16.mxu0 %v9213_v45  ;;  %4755 = vmatprep.subr.bf16.mxu1 %v9219_v42 }
0x17c5   :  { %4713 = vmatpush1.bf16.msra.mxu0 %v9225_v37  ;;  %4756 = vmatpush1.bf16.msra.mxu1 %v9231_v22 }
0x17c6   :  { %4714 = vmatprep.subr.bf16.mxu0 %v9237_v28  ;;  %4757 = vmatprep.subr.bf16.mxu1 %v9243_v40 }
0x17c9   :  { %4715 = vmatpush1.bf16.msra.mxu0 %v9249_v15  ;;  %4758 = vmatpush1.bf16.msra.mxu1 %v9255_v30 }
0x17ca   :  { %4716 = vmatprep.subr.bf16.mxu0 %v9261_v57  ;;  %4759 = vmatprep.subr.bf16.mxu1 %v9267_v4 }
0x17cd   :  { %4717 = vmatpush1.bf16.msra.mxu0 %v9273_v5  ;;  %4760 = vmatpush1.bf16.msra.mxu1 %v9279_v51 }
0x17ce   :  { %4718 = vmatprep.subr.bf16.mxu0 %v9285_v6  ;;  %4761 = vmatprep.subr.bf16.mxu1 %v9291_v46 }
0x17d1   :  { %4719 = vmatpush1.bf16.msra.mxu0 %v9297_v7  ;;  %4762 = vmatpush1.bf16.msra.mxu1 %v9303_v48 }
0x17d2   :  { %4720 = vmatprep.subr.bf16.mxu0 %v9309_v19  ;;  %4763 = vmatprep.subr.bf16.mxu1 %v9315_v13 }
0x17d5   :  { %4721 = vmatpush1.bf16.msra.mxu0 %v9321_v50  ;;  %4764 = vmatpush1.bf16.msra.mxu1 %v9327_v0 }
0x17d6   :  { %4722 = vmatprep.subr.bf16.mxu0 %v9333_v41  ;;  %4765 = vmatprep.subr.bf16.mxu1 %v9339_v26 }
0x17d9   :  { %4723 = vmatpush1.bf16.msra.mxu0 %v9345_v18  ;;  %4766 = vmatpush1.bf16.msra.mxu1 %v9351_v33 }
0x17da   :  { %4844 = vmatprep.subr.bf16.mxu0 %v9357_v3  ;;  %4887 = vmatprep.subr.bf16.mxu1 %v9363_v31 }
0x188f   :  { %v4606_v8 = vpop.f32.mrb[204].mxu0  ;;  %v4649_v63 = vpop.f32.mrb[204].mxu1 }
0x1890   :  { %v4607_v39 = vadd.f32 %v4606_v8, %v4564_v14  ;;  %v4650_v52 = vadd.f32 %v4649_v63, %v4566_v12  ;;  %v4608_v17 = vpop.f32.mrb[205].mxu0  ;;  %v4651_v36 = vpop.f32.mrb[205].mxu1 }
0x1891   :  { %v4609_v10 = vadd.f32 %v4608_v17, %v4565_v59  ;;  %v4652_v25 = vadd.f32 %v4651_v36, %v4567_v34  ;;  %v4610_v58 = vpop.f32.mrb[206].mxu0  ;;  %v4653_v29 = vpop.f32.mrb[206].mxu1 }
0x1892   :  { %v4658_v2 = vmul.f32 0.5, %v4607_v39  ;;  %v4611_v9 = vadd.f32 %v4610_v58, %v4568_v24  ;;  %v4654_v53 = vadd.f32 %v4653_v29, %v4570_v32  ;;  %v4612_v11 = vpop.f32.mrb[207].mxu0  ;;  %v4655_v56 = vpop.f32.mrb[207].mxu1 }
0x1893   :  { %v4666_v55 = vmul.f32 0.5, %v4609_v10  ;;  %v4613_v49 = vadd.f32 %v4612_v11, %v4569_v62  ;;  %v4656_v14 = vadd.f32 %v4655_v56, %v4571_v20  ;;  %v4676_v21 = vmul.f32 0.5, %v4652_v25 }
0x1894   :  { %6261 = vtanh.f32 %v4658_v2  ;;  %v4659_v61 = vmul.f32 0.5, %v4611_v9 }
0x1895   :  { %6263 = vtanh.f32 %v4666_v55  ;;  %v4667_v60 = vmul.f32 0.5, %v4613_v49  ;;  %v4677_v54 = vmul.f32 0.5, %v4656_v14 }
0x1896   :  { %6265 = vtanh.f32 %v4659_v61 }
0x1897   :  { %6267 = vtanh.f32 %v4650_v52 }
0x1898   :  { %6269 = vtanh.f32 %v4667_v60 }
0x1899   :  { %6271 = vtanh.f32 %v4654_v53 }
0x189a   :  { %6273 = vtanh.f32 %v4676_v21 }
0x189b   :  { %6275 = vtanh.f32 %v4677_v54 }
0x189e   :  { %v6262_v12 = vpop.eup %6261 }
0x189f   :  { %v6264_v8 = vpop.eup %6263  ;;  %v4662_v63 = vmul.f32 0.5, %v6262_v12 }
0x18a0   :  { %v4670_v59 = vmul.f32 0.5, %v6264_v8  ;;  %v6266_v34 = vpop.eup %6265 }
0x18a1   :  { %v4664_v39 = vadd.f32 0.5, %v4662_v63  ;;  %v6268_v17 = vpop.eup %6267  ;;  %v4663_v24 = vmul.f32 0.5, %v6266_v34 }
0x18a2   :  { %v4672_v36 = vadd.f32 0.5, %v4670_v59  ;;  %v6270_v32 = vpop.eup %6269  ;;  %v10078_v59 = vld [vmem:[#allocation89_spill] sm:$0xff] }
0x18a3   :  { %v4686_v10 = vmul.f32 %v6268_v17, %v4664_v39  ;;  %v4665_v29 = vadd.f32 0.5, %v4663_v24  ;;  %v4671_v52 = vmul.f32 0.5, %v6270_v32  ;;  %v6272_v62 = vpop.eup %6271  ;;  %v4702_v54 = vunpack.c.l.bf16 %v10078_v59  ;;  %v10079_v17 = vld [vmem:[#allocation90_spill] sm:$0xff]  ;;  %v10080_v24 = vld [vmem:[#allocation91_spill] sm:$0xff] }
0x18a4   :  { %v4684_v58 = vmul.f32 %v4672_v36, %v9425_v23  ;;  %v6274_v11 = vpop.eup %6273  ;;  %v4701_v36 = vunpack.c.l.bf16 %v10079_v17  ;;  %v4703_v32 = vunpack.c.l.bf16 %v10080_v24 }
0x18a5   :  { %v4673_v2 = vadd.f32 0.5, %v4671_v52  ;;  %v4687_v25 = vmul.f32 %v6272_v62, %v4665_v29  ;;  %v6276_v56 = vpop.eup %6275  ;;  %v4680_v55 = vmul.f32 0.5, %v6274_v11 }
0x18a6   :  { %v9475_v20 = vadd.f32 %v4686_v10, %v4684_v58  ;;  %v4681_v23 = vmul.f32 0.5, %v6276_v56 }
0x18a7   :  { %v4685_v9 = vmul.f32 %v4673_v2, %v9429_v27  ;;  %v4682_v14 = vadd.f32 0.5, %v4680_v55  ;;  %v10077_v27 = vld [vmem:[#allocation88_spill] sm:$0xff]  ;;  %v4706_v2 = vunpack.c.h.bf16 %v10078_v59  ;;  %v4705_v55 = vunpack.c.h.bf16 %v10079_v17 }
0x18a8   :  { %6277 = vtanh.f32 %v9475_v20  ;;  %v4683_v61 = vadd.f32 0.5, %v4681_v23  ;;  %v4700_v21 = vunpack.c.l.bf16 %v10077_v27  ;;  %v4704_v62 = vunpack.c.h.bf16 %v10077_v27 }
0x18a9   :  { %v9479_v53 = vadd.f32 %v4687_v25, %v4685_v9  ;;  %v4707_v23 = vunpack.c.h.bf16 %v10080_v24 }
0x18ab   :  { %6279 = vtanh.f32 %v9479_v53 }
0x18b2   :  { %v6278_v49 = vpop.eup %6277 }
0x18b3   :  { %v4692_v12 = vmul.f32 %v6278_v49, %v4682_v14 }
0x18b5   :  { %v6280_v60 = vpop.eup %6279 }
0x18b6   :  { %v4693_v8 = vmul.f32 %v6280_v60, %v4683_v61 }
0x18b8   :  { %v4694_v63 = vpack.c.bf16 %v4693_v8, %v4692_v12 }
0x18ba   :  { %4741 = vmatmul.mubr.bf16.vlgmr.msra.gmra.mrb[208].mxu0 %v4694_v63  ;;  %4784 = vmatmul.mubr.bf16.vlgmr.msra.gmra.mrb[208].mxu1 %v4694_v63 }
0x18bb   :  { %4845 = vmatpush1.bf16.msra.mxu0 %v9175_v47  ;;  %4888 = vmatpush1.bf16.msra.mxu1 %v9181_v43 }
0x18bc   :  { %4846 = vmatprep.subr.bf16.mxu0 %v9187_v1  ;;  %4889 = vmatprep.subr.bf16.mxu1 %v9193_v44 }
0x18bd   :  { %4876 = vmatprep.mubr.bf16.mxu0 %v9991_v16  ;;  %4919 = vmatprep.mubr.bf16.mxu1 %v9991_v16 }
0x18bf   :  { %4847 = vmatpush1.bf16.msra.mxu0 %v9201_v35  ;;  %4890 = vmatpush1.bf16.msra.mxu1 %v9207_v38 }
0x18c0   :  { %4848 = vmatprep.subr.bf16.mxu0 %v9213_v45  ;;  %4891 = vmatprep.subr.bf16.mxu1 %v9219_v42 }
0x18c3   :  { %4849 = vmatpush1.bf16.msra.mxu0 %v9225_v37  ;;  %4892 = vmatpush1.bf16.msra.mxu1 %v9231_v22 }
0x18c4   :  { %4850 = vmatprep.subr.bf16.mxu0 %v9237_v28  ;;  %4893 = vmatprep.subr.bf16.mxu1 %v9243_v40 }
0x18c7   :  { %4851 = vmatpush1.bf16.msra.mxu0 %v9249_v15  ;;  %4894 = vmatpush1.bf16.msra.mxu1 %v9255_v30 }
0x18c8   :  { %4852 = vmatprep.subr.bf16.mxu0 %v9261_v57  ;;  %4895 = vmatprep.subr.bf16.mxu1 %v9267_v4 }
0x18cb   :  { %4853 = vmatpush1.bf16.msra.mxu0 %v9273_v5  ;;  %4896 = vmatpush1.bf16.msra.mxu1 %v9279_v51 }
0x18cc   :  { %4854 = vmatprep.subr.bf16.mxu0 %v9285_v6  ;;  %4897 = vmatprep.subr.bf16.mxu1 %v9291_v46 }
0x18cf   :  { %4855 = vmatpush1.bf16.msra.mxu0 %v9297_v7  ;;  %4898 = vmatpush1.bf16.msra.mxu1 %v9303_v48 }
0x18d0   :  { %4856 = vmatprep.subr.bf16.mxu0 %v9309_v19  ;;  %4899 = vmatprep.subr.bf16.mxu1 %v9315_v13 }
0x18d3   :  { %4857 = vmatpush1.bf16.msra.mxu0 %v9321_v50  ;;  %4900 = vmatpush1.bf16.msra.mxu1 %v9327_v0 }
0x18d4   :  { %4858 = vmatprep.subr.bf16.mxu0 %v9333_v41  ;;  %4901 = vmatprep.subr.bf16.mxu1 %v9339_v26 }
0x18d7   :  { %4859 = vmatpush1.bf16.msra.mxu0 %v9345_v18  ;;  %4902 = vmatpush1.bf16.msra.mxu1 %v9351_v33 }
0x18d8   :  { %4980 = vmatprep.subr.bf16.mxu0 %v9357_v3  ;;  %5023 = vmatprep.subr.bf16.mxu1 %v9363_v31 }
0x198d   :  { %v4742_v34 = vpop.f32.mrb[208].mxu0  ;;  %v4785_v39 = vpop.f32.mrb[208].mxu1 }
0x198e   :  { %v4743_v10 = vadd.f32 %v4742_v34, %v4700_v21  ;;  %v4786_v58 = vadd.f32 %v4785_v39, %v4702_v54  ;;  %v4744_v29 = vpop.f32.mrb[209].mxu0  ;;  %v4787_v52 = vpop.f32.mrb[209].mxu1 }
0x198f   :  { %v4745_v25 = vadd.f32 %v4744_v29, %v4701_v36  ;;  %v4788_v9 = vadd.f32 %v4787_v52, %v4703_v32  ;;  %v4746_v11 = vpop.f32.mrb[210].mxu0  ;;  %v4789_v56 = vpop.f32.mrb[210].mxu1 }
0x1990   :  { %v4794_v49 = vmul.f32 0.5, %v4743_v10  ;;  %v4747_v14 = vadd.f32 %v4746_v11, %v4704_v62  ;;  %v4790_v61 = vadd.f32 %v4789_v56, %v4706_v2  ;;  %v4748_v60 = vpop.f32.mrb[211].mxu0  ;;  %v4791_v12 = vpop.f32.mrb[211].mxu1 }
0x1991   :  { %v4802_v8 = vmul.f32 0.5, %v4745_v25  ;;  %v4749_v63 = vadd.f32 %v4748_v60, %v4705_v55  ;;  %v4792_v21 = vadd.f32 %v4791_v12, %v4707_v23  ;;  %v4812_v17 = vmul.f32 0.5, %v4788_v9 }
0x1992   :  { %6281 = vtanh.f32 %v4794_v49  ;;  %v4795_v27 = vmul.f32 0.5, %v4747_v14 }
0x1993   :  { %6283 = vtanh.f32 %v4802_v8  ;;  %v4803_v59 = vmul.f32 0.5, %v4749_v63  ;;  %v4813_v24 = vmul.f32 0.5, %v4792_v21 }
0x1994   :  { %6285 = vtanh.f32 %v4795_v27 }
0x1995   :  { %6287 = vtanh.f32 %v4786_v58 }
0x1996   :  { %6289 = vtanh.f32 %v4803_v59 }
0x1997   :  { %6291 = vtanh.f32 %v4790_v61 }
0x1998   :  { %6293 = vtanh.f32 %v4812_v17 }
0x1999   :  { %6295 = vtanh.f32 %v4813_v24 }
0x199c   :  { %v6282_v54 = vpop.eup %6281 }
0x199d   :  { %v6284_v34 = vpop.eup %6283  ;;  %v4798_v39 = vmul.f32 0.5, %v6282_v54 }
0x199e   :  { %v4806_v36 = vmul.f32 0.5, %v6284_v34  ;;  %v6286_v32 = vpop.eup %6285 }
0x199f   :  { %v4800_v10 = vadd.f32 0.5, %v4798_v39  ;;  %v6288_v29 = vpop.eup %6287  ;;  %v4799_v62 = vmul.f32 0.5, %v6286_v32 }
0x19a0   :  { %v4808_v52 = vadd.f32 0.5, %v4806_v36  ;;  %v6290_v2 = vpop.eup %6289 }
0x19a1   :  { %v4822_v25 = vmul.f32 %v6288_v29, %v4800_v10  ;;  %v4801_v56 = vadd.f32 0.5, %v4799_v62  ;;  %v4807_v58 = vmul.f32 0.5, %v6290_v2  ;;  %v6292_v55 = vpop.eup %6291 }
0x19a2   :  { %v4820_v11 = vmul.f32 %v4808_v52, %v9475_v20  ;;  %v6294_v60 = vpop.eup %6293 }
0x19a3   :  { %v4809_v49 = vadd.f32 0.5, %v4807_v58  ;;  %v4823_v9 = vmul.f32 %v6292_v55, %v4801_v56  ;;  %v6296_v12 = vpop.eup %6295  ;;  %v4816_v8 = vmul.f32 0.5, %v6294_v60 }
0x19a4   :  { %v9525_v23 = vadd.f32 %v4822_v25, %v4820_v11  ;;  %v4817_v20 = vmul.f32 0.5, %v6296_v12 }
0x19a5   :  { %v4821_v14 = vmul.f32 %v4809_v49, %v9479_v53  ;;  %v4818_v21 = vadd.f32 0.5, %v4816_v8 }
0x19a6   :  { %6297 = vtanh.f32 %v9525_v23  ;;  %v4819_v27 = vadd.f32 0.5, %v4817_v20 }
0x19a7   :  { %v9529_v61 = vadd.f32 %v4823_v9, %v4821_v14 }
0x19a9   :  { %6299 = vtanh.f32 %v9529_v61 }
0x19b0   :  { %v6298_v63 = vpop.eup %6297 }
0x19b1   :  { %v4828_v54 = vmul.f32 %v6298_v63, %v4818_v21 }
0x19b3   :  { %v6300_v59 = vpop.eup %6299 }
0x19b4   :  { %v4829_v34 = vmul.f32 %v6300_v59, %v4819_v27 }
0x19b6   :  { %v4830_v39 = vpack.c.bf16 %v4829_v34, %v4828_v54 }
0x19b8   :  { %4877 = vmatmul.mubr.bf16.vlgmr.msra.gmra.mrb[212].mxu0 %v4830_v39  ;;  %4920 = vmatmul.mubr.bf16.vlgmr.msra.gmra.mrb[212].mxu1 %v4830_v39 }
0x19b9   :  { %4981 = vmatpush1.bf16.msra.mxu0 %v9175_v47  ;;  %5024 = vmatpush1.bf16.msra.mxu1 %v9181_v43  ;;  %v10081_v47 = vld [vmem:[#allocation92_spill] sm:$0xff] }
0x19ba   :  { %4982 = vmatprep.subr.bf16.mxu0 %v9187_v1  ;;  %5025 = vmatprep.subr.bf16.mxu1 %v9193_v44  ;;  %v4836_v43 = vunpack.c.l.bf16 %v10081_v47  ;;  %v10082_v1 = vld [vmem:[#allocation93_spill] sm:$0xff] }
0x19bb   :  { %5012 = vmatprep.mubr.bf16.mxu0 %v9991_v16  ;;  %5055 = vmatprep.mubr.bf16.mxu1 %v9991_v16  ;;  %v4838_v44 = vunpack.c.l.bf16 %v10082_v1 }
0x19bd   :  { %4983 = vmatpush1.bf16.msra.mxu0 %v9201_v35  ;;  %5026 = vmatpush1.bf16.msra.mxu1 %v9207_v38 }
0x19be   :  { %4984 = vmatprep.subr.bf16.mxu0 %v9213_v45  ;;  %5027 = vmatprep.subr.bf16.mxu1 %v9219_v42  ;;  %v10083_v45 = vld [vmem:[#allocation94_spill] sm:$0xff] }
0x19bf   :  { %v4837_v42 = vunpack.c.l.bf16 %v10083_v45 }
0x19c1   :  { %4985 = vmatpush1.bf16.msra.mxu0 %v9225_v37  ;;  %5028 = vmatpush1.bf16.msra.mxu1 %v9231_v22  ;;  %v10084_v37 = vld [vmem:[#allocation95_spill] sm:$0xff] }
0x19c2   :  { %4986 = vmatprep.subr.bf16.mxu0 %v9237_v28  ;;  %5029 = vmatprep.subr.bf16.mxu1 %v9243_v40  ;;  %v4839_v22 = vunpack.c.l.bf16 %v10084_v37 }
0x19c5   :  { %4987 = vmatpush1.bf16.msra.mxu0 %v9249_v15  ;;  %5030 = vmatpush1.bf16.msra.mxu1 %v9255_v30 }
0x19c6   :  { %4988 = vmatprep.subr.bf16.mxu0 %v9261_v57  ;;  %5031 = vmatprep.subr.bf16.mxu1 %v9267_v4  ;;  %v4840_v57 = vunpack.c.h.bf16 %v10081_v47  ;;  %v4842_v4 = vunpack.c.h.bf16 %v10082_v1 }
0x19c9   :  { %4989 = vmatpush1.bf16.msra.mxu0 %v9273_v5  ;;  %5032 = vmatpush1.bf16.msra.mxu1 %v9279_v51 }
0x19ca   :  { %4990 = vmatprep.subr.bf16.mxu0 %v9285_v6  ;;  %5033 = vmatprep.subr.bf16.mxu1 %v9291_v46 }
0x19cd   :  { %4991 = vmatpush1.bf16.msra.mxu0 %v9297_v7  ;;  %5034 = vmatpush1.bf16.msra.mxu1 %v9303_v48  ;;  %v4841_v7 = vunpack.c.h.bf16 %v10083_v45  ;;  %v4843_v48 = vunpack.c.h.bf16 %v10084_v37  ;;  %v6533_v45 = vld [vmem:[%s9780_s2 + $0x20] ss:$16 sps:$4 sm:$0xff]   ;;  %v6535_v37 = vld [vmem:[%s9780_s2 + $0x44] ss:$16 sps:$4 sm:$0xff]  }
0x19ce   :  { %4992 = vmatprep.subr.bf16.mxu0 %v9309_v19  ;;  %5035 = vmatprep.subr.bf16.mxu1 %v9315_v13 }
0x19d1   :  { %4993 = vmatpush1.bf16.msra.mxu0 %v9321_v50  ;;  %5036 = vmatpush1.bf16.msra.mxu1 %v9327_v0 }
0x19d2   :  { %4994 = vmatprep.subr.bf16.mxu0 %v9333_v41  ;;  %5037 = vmatprep.subr.bf16.mxu1 %v9339_v26 }
0x19d5   :  { %4995 = vmatpush1.bf16.msra.mxu0 %v9345_v18  ;;  %5038 = vmatpush1.bf16.msra.mxu1 %v9351_v33 }
0x19d6   :  { %5116 = vmatprep.subr.bf16.mxu0 %v9357_v3  ;;  %5159 = vmatprep.subr.bf16.mxu1 %v9363_v31 }
0x1a8b   :  { %v4878_v35 = vpop.f32.mrb[212].mxu0  ;;  %v4921_v38 = vpop.f32.mrb[212].mxu1 }
0x1a8c   :  { %v4879_v28 = vadd.f32 %v4878_v35, %v4836_v43  ;;  %v4922_v40 = vadd.f32 %v4921_v38, %v4838_v44  ;;  %v4880_v15 = vpop.f32.mrb[213].mxu0  ;;  %v4923_v30 = vpop.f32.mrb[213].mxu1  ;;  %v6530_v44 = vld [vmem:[%s9780_s2 + $0x8] ss:$16 sps:$4 sm:$0xff]   ;;  %v6531_v35 = vld [vmem:[%s9780_s2 + $0x24] ss:$16 sps:$4 sm:$0xff]  }
0x1a8d   :  { %v4881_v5 = vadd.f32 %v4880_v15, %v4837_v42  ;;  %v4924_v51 = vadd.f32 %v4923_v30, %v4839_v22  ;;  %v4882_v6 = vpop.f32.mrb[214].mxu0  ;;  %v4925_v46 = vpop.f32.mrb[214].mxu1  ;;  %v6532_v38 = vld [vmem:[%s9780_s2 + $0x2c] ss:$16 sps:$4 sm:$0xff]   ;;  %v6534_v42 = vld [vmem:[%s9780_s2 + $0x28] ss:$16 sps:$4 sm:$0xff]  }
0x1a8e   :  { %v4930_v19 = vmul.f32 0.5, %v4879_v28  ;;  %v4883_v13 = vadd.f32 %v4882_v6, %v4840_v57  ;;  %v4926_v50 = vadd.f32 %v4925_v46, %v4842_v4  ;;  %v4884_v0 = vpop.f32.mrb[215].mxu0  ;;  %v4927_v41 = vpop.f32.mrb[215].mxu1  ;;  %v6536_v22 = vld [vmem:[%s9780_s2 + $0x4c] ss:$16 sps:$4 sm:$0xff]  }
0x1a8f   :  { %v4938_v26 = vmul.f32 0.5, %v4881_v5  ;;  %v4885_v18 = vadd.f32 %v4884_v0, %v4841_v7  ;;  %v4928_v33 = vadd.f32 %v4927_v41, %v4843_v48  ;;  %v4948_v24 = vmul.f32 0.5, %v4924_v51  ;;  %v6538_v28 = vld [vmem:[%s9780_s2 + $0x48] ss:$16 sps:$4 sm:$0xff]   ;;  %v6540_v15 = vld [vmem:[%s9780_s2 + $0x6c] ss:$16 sps:$4 sm:$0xff]  }
0x1a90   :  { %6301 = vtanh.f32 %v4930_v19  ;;  %v4931_v3 = vmul.f32 0.5, %v4883_v13  ;;  %v6541_v30 = vld [vmem:[%s9780_s2 + $0x60] ss:$16 sps:$4 sm:$0xff]   ;;  %v6542_v57 = vld [vmem:[%s9780_s2 + $0x68] ss:$16 sps:$4 sm:$0xff]  }
0x1a91   :  { %6303 = vtanh.f32 %v4938_v26  ;;  %v4939_v31 = vmul.f32 0.5, %v4885_v18  ;;  %v4949_v10 = vmul.f32 0.5, %v4928_v33  ;;  %v6543_v4 = vld [vmem:[%s9780_s2 + $0x84] ss:$16 sps:$4 sm:$0xff]   ;;  %v6544_v5 = vld [vmem:[%s9780_s2 + $0x8c] ss:$16 sps:$4 sm:$0xff]  }
0x1a92   :  { %6305 = vtanh.f32 %v4931_v3  ;;  %v6545_v51 = vld [vmem:[%s9780_s2 + $0x80] ss:$16 sps:$4 sm:$0xff]   ;;  %v6546_v6 = vld [vmem:[%s9780_s2 + $0x88] ss:$16 sps:$4 sm:$0xff]   ;;  %v6547_v46 = vld [vmem:[%s9780_s2 + $0xa4] ss:$16 sps:$4 sm:$0xff]  }
0x1a93   :  { %6307 = vtanh.f32 %v4922_v40  ;;  %v6539_v40 = vld [vmem:[%s9780_s2 + $0x64] ss:$16 sps:$4 sm:$0xff]   ;;  %v6548_v7 = vld [vmem:[%s9780_s2 + $0xac] ss:$16 sps:$4 sm:$0xff]   ;;  %v6549_v48 = vld [vmem:[%s9780_s2 + $0xa0] ss:$16 sps:$4 sm:$0xff]  }
0x1a94   :  { %6309 = vtanh.f32 %v4939_v31  ;;  %v6550_v19 = vld [vmem:[%s9780_s2 + $0xa8] ss:$16 sps:$4 sm:$0xff]   ;;  %v6551_v13 = vld [vmem:[%s9780_s2 + $0xc4] ss:$16 sps:$4 sm:$0xff]   ;;  %v6553_v0 = vld [vmem:[%s9780_s2 + $0xc0] ss:$16 sps:$4 sm:$0xff]  }
0x1a95   :  { %6311 = vtanh.f32 %v4926_v50  ;;  %v6552_v50 = vld [vmem:[%s9780_s2 + $0xcc] ss:$16 sps:$4 sm:$0xff]   ;;  %v6554_v41 = vld [vmem:[%s9780_s2 + $0xc8] ss:$16 sps:$4 sm:$0xff]   ;;  %v6555_v26 = vld [vmem:[%s9780_s2 + $0xe4] ss:$16 sps:$4 sm:$0xff]  }
0x1a96   :  { %6313 = vtanh.f32 %v4948_v24  ;;  %v6556_v18 = vld [vmem:[%s9780_s2 + $0xec] ss:$16 sps:$4 sm:$0xff]   ;;  %v6557_v33 = vld [vmem:[%s9780_s2 + $0xe0] ss:$16 sps:$4 sm:$0xff]   ;;  %v6558_v3 = vld [vmem:[%s9780_s2 + $0xe8] ss:$16 sps:$4 sm:$0xff]  }
0x1a97   :  { %6315 = vtanh.f32 %v4949_v10  ;;  %v10085_v31 = vld [vmem:[#allocation96_spill] sm:$0xff]  ;;  %v10087_v10 = vld [vmem:[#allocation98_spill] sm:$0xff] }
0x1a9a   :  { %v6302_v53 = vpop.eup %6301 }
0x1a9b   :  { %v6304_v17 = vpop.eup %6303  ;;  %v4934_v36 = vmul.f32 0.5, %v6302_v53  ;;  %v4972_v53 = vunpack.c.l.bf16 %v10085_v31 }
0x1a9c   :  { %v4942_v32 = vmul.f32 0.5, %v6304_v17  ;;  %v6306_v29 = vpop.eup %6305  ;;  %v10086_v17 = vld [vmem:[#allocation97_spill] sm:$0xff] }
0x1a9d   :  { %v4936_v52 = vadd.f32 0.5, %v4934_v36  ;;  %v6308_v62 = vpop.eup %6307  ;;  %v4935_v25 = vmul.f32 0.5, %v6306_v29  ;;  %v4974_v36 = vunpack.c.l.bf16 %v10086_v17  ;;  %v4973_v29 = vunpack.c.l.bf16 %v10087_v10 }
0x1a9e   :  { %v4944_v2 = vadd.f32 0.5, %v4942_v32  ;;  %v6310_v11 = vpop.eup %6309 }
0x1a9f   :  { %v4958_v56 = vmul.f32 %v6308_v62, %v4936_v52  ;;  %v4937_v55 = vadd.f32 0.5, %v4935_v25  ;;  %v4943_v49 = vmul.f32 0.5, %v6310_v11  ;;  %v6312_v9 = vpop.eup %6311  ;;  %v10088_v52 = vld [vmem:[#allocation99_spill] sm:$0xff] }
0x1aa0   :  { %v4956_v58 = vmul.f32 %v4944_v2, %v9525_v23  ;;  %v6314_v63 = vpop.eup %6313  ;;  %v4975_v62 = vunpack.c.l.bf16 %v10088_v52 }
0x1aa1   :  { %v4945_v60 = vadd.f32 0.5, %v4943_v49  ;;  %v4959_v12 = vmul.f32 %v6312_v9, %v4937_v55  ;;  %v6316_v21 = vpop.eup %6315  ;;  %v4952_v27 = vmul.f32 0.5, %v6314_v63  ;;  %v4978_v55 = vunpack.c.h.bf16 %v10086_v17 }
0x1aa2   :  { %v9575_v14 = vadd.f32 %v4958_v56, %v4956_v58  ;;  %v4953_v23 = vmul.f32 0.5, %v6316_v21  ;;  %v4976_v58 = vunpack.c.h.bf16 %v10085_v31  ;;  %v4979_v63 = vunpack.c.h.bf16 %v10088_v52  ;;  %v5791_v52 = vld [vmem:[%s9782_s4 + $0x30] sm:$0xff]  }
0x1aa3   :  { %v4957_v8 = vmul.f32 %v4945_v60, %v9529_v61  ;;  %v4954_v54 = vadd.f32 0.5, %v4952_v27  ;;  %v6529_v61 = vld [vmem:[%s9780_s2] ss:$16 sps:$4 sm:$0xff]   ;;  %v6560_v17 = vmov 0.0  }
0x1aa4   :  { %6317 = vtanh.f32 %v9575_v14  ;;  %v4955_v34 = vadd.f32 0.5, %v4953_v23 }
0x1aa5   :  { %v9579_v20 = vadd.f32 %v4959_v12, %v4957_v8  ;;  %v4977_v8 = vunpack.c.h.bf16 %v10087_v10  ;;  %v5789_v10 = vld [vmem:[%s9782_s4 + $0x20] sm:$0xff]  }
0x1aa7   :  { %6319 = vtanh.f32 %v9579_v20 }
0x1aae   :  { %v6318_v59 = vpop.eup %6317 }
0x1aaf   :  { %v4964_v47 = vmul.f32 %v6318_v59, %v4954_v54 }
0x1ab1   :  { %v6320_v39 = vpop.eup %6319 }
0x1ab2   :  { %v4965_v43 = vmul.f32 %v6320_v39, %v4955_v34 }
0x1ab4   :  { %v4966_v1 = vpack.c.bf16 %v4965_v43, %v4964_v47 }
0x1ab6   :  { %5013 = vmatmul.mubr.bf16.vlgmr.msra.gmra.mrb[216].mxu0 %v4966_v1  ;;  %5056 = vmatmul.mubr.bf16.vlgmr.msra.gmra.mrb[216].mxu1 %v4966_v1 }
0x1ab7   :  { %5117 = vmatpush1.bf16.msra.mxu0 %v6529_v61  ;;  %5160 = vmatpush1.bf16.msra.mxu1 %v6530_v44 }
0x1ab8   :  { %5118 = vmatprep.subr.bf16.mxu0 %v6531_v35  ;;  %5161 = vmatprep.subr.bf16.mxu1 %v6532_v38 }
0x1ab9   :  { %5148 = vmatprep.mubr.bf16.mxu0 %v9991_v16  ;;  %5191 = vmatprep.mubr.bf16.mxu1 %v9991_v16  ;;  %v6537_v16 = vld [vmem:[%s9780_s2 + $0x40] ss:$16 sps:$4 sm:$0xff]  }
0x1abb   :  { %5119 = vmatpush1.bf16.msra.mxu0 %v6533_v45  ;;  %5162 = vmatpush1.bf16.msra.mxu1 %v6534_v42 }
0x1abc   :  { %5120 = vmatprep.subr.bf16.mxu0 %v6535_v37  ;;  %5163 = vmatprep.subr.bf16.mxu1 %v6536_v22 }
0x1abf   :  { %5121 = vmatpush1.bf16.msra.mxu0 %v6537_v16  ;;  %5164 = vmatpush1.bf16.msra.mxu1 %v6538_v28 }
0x1ac0   :  { %5122 = vmatprep.subr.bf16.mxu0 %v6539_v40  ;;  %5165 = vmatprep.subr.bf16.mxu1 %v6540_v15 }
0x1ac3   :  { %5123 = vmatpush1.bf16.msra.mxu0 %v6541_v30  ;;  %5166 = vmatpush1.bf16.msra.mxu1 %v6542_v57 }
0x1ac4   :  { %5124 = vmatprep.subr.bf16.mxu0 %v6543_v4  ;;  %5167 = vmatprep.subr.bf16.mxu1 %v6544_v5 }
0x1ac7   :  { %5125 = vmatpush1.bf16.msra.mxu0 %v6545_v51  ;;  %5168 = vmatpush1.bf16.msra.mxu1 %v6546_v6 }
0x1ac8   :  { %5126 = vmatprep.subr.bf16.mxu0 %v6547_v46  ;;  %5169 = vmatprep.subr.bf16.mxu1 %v6548_v7 }
0x1acb   :  { %5127 = vmatpush1.bf16.msra.mxu0 %v6549_v48  ;;  %5170 = vmatpush1.bf16.msra.mxu1 %v6550_v19 }
0x1acc   :  { %5128 = vmatprep.subr.bf16.mxu0 %v6551_v13  ;;  %5171 = vmatprep.subr.bf16.mxu1 %v6552_v50 }
0x1acf   :  { %5129 = vmatpush1.bf16.msra.mxu0 %v6553_v0  ;;  %5172 = vmatpush1.bf16.msra.mxu1 %v6554_v41 }
0x1ad0   :  { %5130 = vmatprep.subr.bf16.mxu0 %v6555_v26  ;;  %5173 = vmatprep.subr.bf16.mxu1 %v6556_v18 }
0x1ad3   :  { %5131 = vmatpush1.bf16.msra.mxu0 %v6557_v33  ;;  %5174 = vmatpush1.bf16.msra.mxu1 %v6558_v3 }
0x1ad4   :  { %5654 = vmatprep.subr.bf16.mxu0 %v6560_v17  ;;  %5674 = vmatprep.subr.bf16.mxu1 %v6560_v17 }
0x1b89   :  { %v5014_v24 = vpop.f32.mrb[216].mxu0  ;;  %v5057_v32 = vpop.f32.mrb[216].mxu1 }
0x1b8a   :  { %v5015_v2 = vadd.f32 %v5014_v24, %v4972_v53  ;;  %v5058_v25 = vadd.f32 %v5057_v32, %v4974_v36  ;;  %v5016_v11 = vpop.f32.mrb[217].mxu0  ;;  %v5059_v56 = vpop.f32.mrb[217].mxu1  ;;  %v5786_v36 = vld [vmem:[%s9782_s4 + $0x8] sm:$0xff]   ;;  %v5787_v24 = vld [vmem:[%s9782_s4 + $0x10] sm:$0xff]   ;;  %v5788_v32 = vld [vmem:[%s9782_s4 + $0x18] sm:$0xff]  }
0x1b8b   :  { %v5017_v49 = vadd.f32 %v5016_v11, %v4973_v29  ;;  %v5060_v9 = vadd.f32 %v5059_v56, %v4975_v62  ;;  %v5018_v60 = vpop.f32.mrb[218].mxu0  ;;  %v5061_v12 = vpop.f32.mrb[218].mxu1  ;;  %v5790_v29 = vld [vmem:[%s9782_s4 + $0x28] sm:$0xff]   ;;  %v5792_v62 = vld [vmem:[%s9782_s4 + $0x38] sm:$0xff]   ;;  %v5795_v11 = vld [vmem:[%s9783_s6 + $0x10] sm:$0xff]  }
0x1b8c   :  { %v5066_v21 = vmul.f32 0.5, %v5015_v2  ;;  %v5019_v27 = vadd.f32 %v5018_v60, %v4976_v58  ;;  %v5062_v23 = vadd.f32 %v5061_v12, %v4978_v55  ;;  %v5020_v59 = vpop.f32.mrb[219].mxu0  ;;  %v5063_v54 = vpop.f32.mrb[219].mxu1  ;;  %v5793_v2 = vld [vmem:[%s9783_s6] sm:$0xff]   ;;  %v5796_v56 = vld [vmem:[%s9783_s6 + $0x18] sm:$0xff]   ;;  %v5798_v55 = vld [vmem:[%s9783_s6 + $0x28] sm:$0xff]  }
0x1b8d   :  { %v5074_v34 = vmul.f32 0.5, %v5017_v49  ;;  %v5021_v39 = vadd.f32 %v5020_v59, %v4977_v8  ;;  %v5064_v47 = vadd.f32 %v5063_v54, %v4979_v63  ;;  %v5084_v38 = vmul.f32 0.5, %v5060_v9  ;;  %v5797_v58 = vld [vmem:[%s9783_s6 + $0x20] sm:$0xff]   ;;  %v10089_v49 = vld [vmem:[#allocation100_spill] sm:$0xff]  ;;  %v10090_v60 = vld [vmem:[#allocation101_spill] sm:$0xff] }
0x1b8e   :  { %6321 = vtanh.f32 %v5066_v21  ;;  %v5067_v43 = vmul.f32 0.5, %v5019_v27  ;;  %v5108_v9 = vunpack.c.l.bf16 %v10089_v49  ;;  %v5110_v12 = vunpack.c.l.bf16 %v10090_v60  ;;  %v10091_v21 = vld [vmem:[#allocation102_spill] sm:$0xff] }
0x1b8f   :  { %6323 = vtanh.f32 %v5074_v34  ;;  %v5075_v1 = vmul.f32 0.5, %v5021_v39  ;;  %v5085_v42 = vmul.f32 0.5, %v5064_v47  ;;  %v5109_v27 = vunpack.c.l.bf16 %v10091_v21 }
0x1b90   :  { %6325 = vtanh.f32 %v5067_v43  ;;  %v5112_v43 = vunpack.c.h.bf16 %v10089_v49 }
0x1b91   :  { %6327 = vtanh.f32 %v5058_v25  ;;  %v5794_v25 = vld [vmem:[%s9783_s6 + $0x8] sm:$0xff]  }
0x1b92   :  { %6329 = vtanh.f32 %v5075_v1  ;;  %v5114_v1 = vunpack.c.h.bf16 %v10090_v60 }
0x1b93   :  { %6331 = vtanh.f32 %v5062_v23  ;;  %v10092_v23 = vld [vmem:[#allocation103_spill] sm:$0xff] }
0x1b94   :  { %6333 = vtanh.f32 %v5084_v38  ;;  %v5111_v59 = vunpack.c.l.bf16 %v10092_v23 }
0x1b95   :  { %6335 = vtanh.f32 %v5085_v42  ;;  %v5115_v42 = vunpack.c.h.bf16 %v10092_v23 }
0x1b98   :  { %v6322_v61 = vpop.eup %6321 }
0x1b99   :  { %v6324_v44 = vpop.eup %6323  ;;  %v5070_v35 = vmul.f32 0.5, %v6322_v61 }
0x1b9a   :  { %v5078_v45 = vmul.f32 0.5, %v6324_v44  ;;  %v6326_v37 = vpop.eup %6325 }
0x1b9b   :  { %v5072_v22 = vadd.f32 0.5, %v5070_v35  ;;  %v6328_v16 = vpop.eup %6327  ;;  %v5071_v40 = vmul.f32 0.5, %v6326_v37 }
0x1b9c   :  { %v5080_v28 = vadd.f32 0.5, %v5078_v45  ;;  %v6330_v15 = vpop.eup %6329  ;;  %v5113_v45 = vunpack.c.h.bf16 %v10091_v21 }
0x1b9d   :  { %v5094_v30 = vmul.f32 %v6328_v16, %v5072_v22  ;;  %v5073_v4 = vadd.f32 0.5, %v5071_v40  ;;  %v5079_v5 = vmul.f32 0.5, %v6330_v15  ;;  %v6332_v51 = vpop.eup %6331 }
0x1b9e   :  { %v5092_v57 = vmul.f32 %v5080_v28, %v9575_v14  ;;  %v6334_v13 = vpop.eup %6333 }
0x1b9f   :  { %v5081_v46 = vadd.f32 0.5, %v5079_v5  ;;  %v5095_v7 = vmul.f32 %v6332_v51, %v5073_v4  ;;  %v6336_v50 = vpop.eup %6335  ;;  %v5088_v0 = vmul.f32 0.5, %v6334_v13 }
0x1ba0   :  { %v9683_v6 = vadd.f32 %v5094_v30, %v5092_v57  ;;  %v5089_v14 = vmul.f32 0.5, %v6336_v50 }
0x1ba1   :  { %v5093_v48 = vmul.f32 %v5081_v46, %v9579_v20  ;;  %v5090_v26 = vadd.f32 0.5, %v5088_v0  ;;  %v5785_v20 = vld [vmem:[%s9782_s4] sm:$0xff]  }
0x1ba2   :  { %6337 = vtanh.f32 %v9683_v6  ;;  %v5091_v18 = vadd.f32 0.5, %v5089_v14 }
0x1ba3   :  { %v9687_v19 = vadd.f32 %v5095_v7, %v5093_v48 }
0x1ba5   :  { %6339 = vtanh.f32 %v9687_v19 }
0x1bac   :  { %v6338_v41 = vpop.eup %6337 }
0x1bad   :  { %v5100_v3 = vmul.f32 %v6338_v41, %v5090_v26 }
0x1baf   :  { %v6340_v33 = vpop.eup %6339 }
0x1bb0   :  { %v5101_v31 = vmul.f32 %v6340_v33, %v5091_v18 }
0x1bb2   :  { %v5102_v53 = vpack.c.bf16 %v5101_v31, %v5100_v3 }
0x1bb4   :  { %5149 = vmatmul.mubr.bf16.vlgmr.msra.gmra.mrb[220].mxu0 %v5102_v53  ;;  %5192 = vmatmul.mubr.bf16.vlgmr.msra.gmra.mrb[220].mxu1 %v5102_v53 }
0x1bb5   :  { %5655 = vmatpush3.bf16.msra.mxu0 %v5785_v20  ;;  %5670 = vmatprep.mubr.msk.bf16.mxu0 %vm6561_vm2, %v6560_v17 }
0x1bb6   :  { %5656 = vmatprep.subr.bf16.mxu0 %v6560_v17  ;;  %5690 = vmatprep.mubr.msk.bf16.mxu1 %vm6561_vm2, %v6560_v17 }
0x1bb7   :  { %5675 = vmatpush3.bf16.msra.mxu1 %v5793_v2 }
0x1bb8   :  { %5676 = vmatprep.subr.bf16.mxu1 %v6560_v17 }
0x1bb9   :  { %5657 = vmatpush3.bf16.msra.mxu0 %v5786_v36 }
0x1bba   :  { %5658 = vmatprep.subr.bf16.mxu0 %v6560_v17 }
0x1bbb   :  { %5677 = vmatpush3.bf16.msra.mxu1 %v5794_v25 }
0x1bbc   :  { %5678 = vmatprep.subr.bf16.mxu1 %v6560_v17 }
0x1bbd   :  { %5659 = vmatpush3.bf16.msra.mxu0 %v5787_v24 }
0x1bbe   :  { %5660 = vmatprep.subr.bf16.mxu0 %v6560_v17 }
0x1bbf   :  { %5679 = vmatpush3.bf16.msra.mxu1 %v5795_v11 }
0x1bc0   :  { %5680 = vmatprep.subr.bf16.mxu1 %v6560_v17 }
0x1bc1   :  { %5661 = vmatpush3.bf16.msra.mxu0 %v5788_v32 }
0x1bc2   :  { %5662 = vmatprep.subr.bf16.mxu0 %v6560_v17 }
0x1bc3   :  { %5681 = vmatpush3.bf16.msra.mxu1 %v5796_v56 }
0x1bc4   :  { %5682 = vmatprep.subr.bf16.mxu1 %v6560_v17 }
0x1bc5   :  { %5663 = vmatpush3.bf16.msra.mxu0 %v5789_v10 }
0x1bc6   :  { %5664 = vmatprep.subr.bf16.mxu0 %v6560_v17 }
0x1bc7   :  { %5683 = vmatpush3.bf16.msra.mxu1 %v5797_v58 }
0x1bc8   :  { %5684 = vmatprep.subr.bf16.mxu1 %v6560_v17 }
0x1bc9   :  { %5665 = vmatpush3.bf16.msra.mxu0 %v5790_v29 }
0x1bca   :  { %5666 = vmatprep.subr.bf16.mxu0 %v6560_v17 }
0x1bcb   :  { %5685 = vmatpush3.bf16.msra.mxu1 %v5798_v55 }
0x1bcc   :  { %5686 = vmatprep.subr.bf16.mxu1 %v6560_v17 }
0x1bcd   :  { %5667 = vmatpush3.bf16.msra.mxu0 %v5791_v52 }
0x1bce   :  { %5668 = vmatprep.subr.bf16.mxu0 %v6560_v17 }
0x1bd1   :  { %5669 = vmatpush3.bf16.msra.mxu0 %v5792_v62 }
0x1c87   :  { %v5150_v8 = vpop.f32.mrb[220].mxu0  ;;  %v5193_v63 = vpop.f32.mrb[220].mxu1 }
0x1c88   :  { %v5151_v54 = vadd.f32 %v5150_v8, %v5108_v9  ;;  %v5194_v34 = vadd.f32 %v5193_v63, %v5110_v12  ;;  %v5152_v39 = vpop.f32.mrb[221].mxu0  ;;  %v5195_v47 = vpop.f32.mrb[221].mxu1  ;;  %v5799_v12 = vld [vmem:[%s9783_s6 + $0x30] sm:$0xff]   ;;  %v5618_v8 = vld [vmem:[%s9784_s5] ss:$0 sm:$0xff] }
0x1c89   :  { %v5153_v61 = vadd.f32 %v5152_v39, %v5109_v27  ;;  %v5196_v44 = vadd.f32 %v5195_v47, %v5111_v59  ;;  %v5154_v35 = vpop.f32.mrb[222].mxu0  ;;  %v5197_v38 = vpop.f32.mrb[222].mxu1  ;;  %5687 = vmatpush3.bf16.msra.mxu1 %v5799_v12 }
0x1c8a   :  { %v5202_v37 = vmul.f32 0.5, %v5151_v54  ;;  %v5155_v22 = vadd.f32 %v5154_v35, %v5112_v43  ;;  %v5198_v16 = vadd.f32 %v5197_v38, %v5114_v1  ;;  %v5156_v28 = vpop.f32.mrb[223].mxu0  ;;  %v5199_v40 = vpop.f32.mrb[223].mxu1  ;;  %5688 = vmatprep.subr.bf16.mxu1 %v6560_v17  ;;  %v5627_v17 = vld [vmem:[%s9785_s7] ss:$0 sm:$0xff] }
0x1c8b   :  { %v5210_v15 = vmul.f32 0.5, %v5153_v61  ;;  %v5157_v30 = vadd.f32 %v5156_v28, %v5113_v45  ;;  %v5200_v57 = vadd.f32 %v5199_v40, %v5115_v42  ;;  %v5220_v51 = vmul.f32 0.5, %v5196_v44 }
0x1c8c   :  { %6341 = vtanh.f32 %v5202_v37  ;;  %v5203_v4 = vmul.f32 0.5, %v5155_v22 }
0x1c8d   :  { %6343 = vtanh.f32 %v5210_v15  ;;  %v5211_v5 = vmul.f32 0.5, %v5157_v30  ;;  %v5221_v50 = vmul.f32 0.5, %v5200_v57 }
0x1c8e   :  { %6345 = vtanh.f32 %v5203_v4 }
0x1c8f   :  { %6347 = vtanh.f32 %v5194_v34 }
0x1c90   :  { %6349 = vtanh.f32 %v5211_v5 }
0x1c91   :  { %6351 = vtanh.f32 %v5198_v16 }
0x1c92   :  { %6353 = vtanh.f32 %v5220_v51 }
0x1c93   :  { %6355 = vtanh.f32 %v5221_v50 }
0x1c96   :  { %v6342_v46 = vpop.eup %6341 }
0x1c97   :  { %v6344_v7 = vpop.eup %6343  ;;  %v5206_v48 = vmul.f32 0.5, %v6342_v46 }
0x1c98   :  { %v5214_v13 = vmul.f32 0.5, %v6344_v7  ;;  %v6346_v0 = vpop.eup %6345 }
0x1c99   :  { %v5208_v14 = vadd.f32 0.5, %v5206_v48  ;;  %v6348_v41 = vpop.eup %6347  ;;  %v5207_v18 = vmul.f32 0.5, %v6346_v0 }
0x1c9a   :  { %v5216_v26 = vadd.f32 0.5, %v5214_v13  ;;  %v6350_v33 = vpop.eup %6349 }
0x1c9b   :  { %v5230_v3 = vmul.f32 %v6348_v41, %v5208_v14  ;;  %v5209_v53 = vadd.f32 0.5, %v5207_v18  ;;  %v5215_v20 = vmul.f32 0.5, %v6350_v33  ;;  %v6352_v36 = vpop.eup %6351 }
0x1c9c   :  { %v5228_v31 = vmul.f32 %v5216_v26, %v9683_v6  ;;  %v6354_v52 = vpop.eup %6353 }
0x1c9d   :  { %v5217_v32 = vadd.f32 0.5, %v5215_v20  ;;  %v5231_v10 = vmul.f32 %v6352_v36, %v5209_v53  ;;  %v5224_v2 = vmul.f32 0.5, %v6354_v52  ;;  %v6356_v25 = vpop.eup %6355 }
0x1c9e   :  { %v5232_v24 = vadd.f32 %v5230_v3, %v5228_v31  ;;  %v5225_v56 = vmul.f32 0.5, %v6356_v25 }
0x1c9f   :  { %v5229_v29 = vmul.f32 %v5217_v32, %v9687_v19  ;;  %v5226_v11 = vadd.f32 0.5, %v5224_v2  ;;  %v5800_v19 = vld [vmem:[%s9783_s6 + $0x38] sm:$0xff]  }
0x1ca0   :  { %6357 = vtanh.f32 %v5232_v24  ;;  %v5227_v6 = vadd.f32 0.5, %v5225_v56  ;;  %5689 = vmatpush3.bf16.msra.mxu1 %v5800_v19 }
0x1ca1   :  { %v5233_v62 = vadd.f32 %v5231_v10, %v5229_v29 }
0x1ca3   :  { %6359 = vtanh.f32 %v5233_v62 }
0x1caa   :  { %v6358_v58 = vpop.eup %6357 }
0x1cab   :  { %v5236_v55 = vmul.f32 %v6358_v58, %v5226_v11 }
0x1cad   :  { %v6360_v49 = vpop.eup %6359 }
0x1cae   :  { %v5237_v9 = vmul.f32 %v6360_v49, %v5227_v6 }
0x1cb0   :  { %v5238_v60 = vpack.c.bf16 %v5237_v9, %v5236_v55 }
0x1cb2   :  { %5671 = vmatmul.mubr.bf16.vlgmr.msra.gmra.mrb[224].mxu0 %v5238_v60 }
0x1d85   :  { %v5344_v63 = vpop.f32.mrb[224].mxu0 }
0x1d86   :  { %v5345_v21 = vadd.f32 %v5618_v8, %v5344_v63  ;;  %v5672_v27 = vpop.f32.mrb[225].mxu0 }
0x1d87   :  { %v5347_v23 = vpop.f32.mrb[226].mxu0 }
0x1d88   :  { %v5348_v59 = vadd.f32 %v5618_v8, %v5347_v23  ;;  %v5673_v54 = vpop.f32.mrb[227].mxu0  ;;  %v5351_v34 = vmax.f32 %v5345_v21, 0.0 }
0x1d8a   :  { %v5352_v39 = vmax.f32 %v5348_v59, 0.0 }
0x1d8c   :  { %v5353_v47 = vpack.c.bf16 %v5352_v39, %v5351_v34 }
0x1d8e   :  { %5691 = vmatmul.mubr.bf16.vlgmr.msra.gmra.mrb[224].mxu1 %v5353_v47 }
0x1e61   :  { %v5459_v43 = vpop.f32.mrb[224].mxu1 }
0x1e62   :  { %v5460_v1 = vadd.f32 %v5627_v17, %v5459_v43  ;;  %v5692_v61 = vpop.f32.mrb[225].mxu1 }
0x1e63   :  { %v5462_v44 = vpop.f32.mrb[226].mxu1 }
0x1e64   :  { %5466 = vmax.xlane.f32.xlu0 %v5460_v1  ;;  %v5693_v35 = vpop.f32.mrb[227].mxu1  ;;  %v5463_v38 = vadd.f32 %v5627_v17, %v5462_v44 }
0x1e68   :  { %5468 = vmax.xlane.f32.xlu0 %v5463_v38 }
0x1ef1   :  { %v5467_v45 = vpop.xlane.xlu0 %5466 }
0x1ef2   :  { %v5470_v42 = vsub.f32 %v5460_v1, %v5467_v45 }
0x1ef4   :  { %v5472_v37 = vmul.f32 1.442695, %v5470_v42 }
0x1ef5   :  { %v5469_v22 = vpop.xlane.xlu0 %5468 }
0x1ef6   :  { %v5471_v16 = vsub.f32 %v5463_v38, %v5469_v22  ;;  %6361 = vpow2.f32 %v5472_v37 }
0x1ef8   :  { %v5474_v28 = vmul.f32 1.442695, %v5471_v16 }
0x1efa   :  { %6363 = vpow2.f32 %v5474_v28 }
0x1f00   :  { %v6362_v40 = vpop.eup %6361 }
0x1f01   :  { %5476 = vadd.xlane.f32.xlu1 %v6362_v40 }
0x1f04   :  { %v6364_v15 = vpop.eup %6363 }
0x1f05   :  { %5478 = vadd.xlane.f32.xlu1 %v6364_v15 }
0x1f8e   :  { %v5477_v30 = vpop.xlane.xlu1 %5476 }
0x1f8f   :  { %6365 = vlog2.f32 %v5477_v30 }
0x1f92   :  { %v5479_v57 = vpop.xlane.xlu1 %5478 }
0x1f93   :  { %6367 = vlog2.f32 %v5479_v57 }
0x1f99   :  { %v6366_v4 = vpop.eup %6365 }
0x1f9a   :  { %v5481_v5 = vmul.f32 0.6931472, %v6366_v4 }
0x1f9c   :  { %v5484_v51 = vsub.f32 %v5470_v42, %v5481_v5 }
0x1f9d   :  { %v6368_v46 = vpop.eup %6367 }
0x1f9e   :  { %5486 = vst [vmem:[%s9786_s8] sm:$0xff] %v5484_v51  ;;  %v5483_v7 = vmul.f32 0.6931472, %v6368_v46 }
0x1fa0   :  { %v5485_v48 = vsub.f32 %v5471_v16, %v5483_v7 }
0x1fa2   :  { %5487 = vst [vmem:[%s9786_s8 + $0x8] sm:$0xff] %v5485_v48 }

</bundles_post_ra>
